<compile_context>
chip_gen: v6e
topology: v6e:2x2x1
jax: 0.10.0
libtpu: 0.0.40
codegen_flags: <defaults>
</compile_context>

<pallas_src>
import functools

import jax
import jax.numpy as jnp
from jax.experimental import pallas as pl
from jax.experimental.pallas import tpu as pltpu


# ----------------------------------------------------------------------------
# Helpers
# ----------------------------------------------------------------------------
def _full_spec(a):
    """Full-extent BlockSpec for a grid=(1,) call (block dims == array dims)."""
    nd = a.ndim
    return pl.BlockSpec(a.shape, lambda i, _nd=nd: (0,) * _nd)


def fold_bn(w, b, gamma, beta, mean, var, eps=1e-5):
    """Fold eval-mode BatchNorm into the preceding conv weight / bias."""
    scale = gamma / jnp.sqrt(var + eps)
    return w * scale[:, None, None, None], (b - mean) * scale + beta


def _banded_conv_weight(w_oihw, W, dtype=jnp.bfloat16):
    """(cout,cin,3,3) -> (3, (W+2)*cin, W*cout) banded matrix.

    wbig[di][(w+dj)*cin + ci, w*cout + co] = w_oihw[co, ci, di, dj], so a 3x3
    SAME conv over a padded row-block is 3 plain matmuls (one per kh tap)."""
    cout, cin = w_oihw.shape[0], w_oihw.shape[1]
    wk = jnp.transpose(w_oihw, (2, 3, 1, 0))                 # (kh, kw, cin, cout)
    Wp = W + 2
    mats = []
    for di in range(3):
        m = jnp.zeros((Wp * cin, W * cout), jnp.float32)
        for dj in range(3):
            shift = jnp.eye(Wp, W, k=-dj, dtype=jnp.float32)  # [w+dj, w] = 1
            m = m + jnp.kron(shift, wk[di, dj])
        mats.append(m)
    return jnp.stack(mats).astype(dtype)


# ----------------------------------------------------------------------------
# Conv kernel: SE-scale * (3x3 conv) + folded BN + bias + ReLU, lane-dense out
# ----------------------------------------------------------------------------
def _conv_kernel(x_ref, w_ref, b_ref, *rest, H, WO, has_scale):
    if has_scale:
        scale_ref, o_ref = rest
    else:
        (o_ref,) = rest
    x = x_ref[0]                                    # (Hp, (W+2)*C) f32
    if has_scale:
        x = x * scale_ref[0]                        # SE excitation per input ch
    xb = x.astype(jnp.bfloat16)
    acc = jnp.zeros((H, WO), jnp.float32)
    for di in range(3):                             # 3 sublane-shifted kh taps
        acc = acc + jnp.dot(xb[di:di + H, :], w_ref[di],
                            preferred_element_type=jnp.float32)
    o_ref[0] = jnp.maximum(acc + b_ref[...], 0.0)   # bias(+BN) + ReLU


def conv_layer(x_bhwc, w_oihw, b, scale=None):
    """3x3 SAME conv + bias + ReLU (+ optional per-(B,Cin) SE scale) -> NHWC."""
    B, H, W, C = x_bhwc.shape
    cout = w_oihw.shape[0]
    Hp, Wp = H + 2, W + 2
    xp = jnp.pad(x_bhwc, ((0, 0), (1, 1), (1, 1), (0, 0))).reshape(B, Hp, Wp * C)
    wbig = _banded_conv_weight(w_oihw, W)                       # bf16
    bt = jnp.tile(b.astype(jnp.float32), W).reshape(1, W * cout)

    operands = [xp.astype(jnp.float32), wbig, bt]
    in_specs = [pl.BlockSpec((1, Hp, Wp * C), lambda i: (i, 0, 0)),
                pl.BlockSpec((3, Wp * C, W * cout), lambda i: (0, 0, 0)),
                pl.BlockSpec((1, W * cout), lambda i: (0, 0))]
    has_scale = scale is not None
    if has_scale:
        st = jnp.tile(scale.astype(jnp.float32), (1, Wp)).reshape(B, 1, Wp * C)
        operands.append(st)
        in_specs.append(pl.BlockSpec((1, 1, Wp * C), lambda i: (i, 0, 0)))

    # TODO(synk): grid-invariant weight blocks could use pipeline_mode=pl.Buffered(1);
    # at these sizes double-buffering them is harmless so we keep the default.
    out = pl.pallas_call(
        functools.partial(_conv_kernel, H=H, WO=W * cout, has_scale=has_scale),
        out_shape=jax.ShapeDtypeStruct((B, H, W * cout), jnp.float32),
        grid=(B,),
        in_specs=in_specs,
        out_specs=pl.BlockSpec((1, H, W * cout), lambda i: (i, 0, 0)),
        compiler_params=pltpu.CompilerParams(
            dimension_semantics=("parallel",)),
    )(*operands)
    return out.reshape(B, H, W, cout)


def maxpool2x2_pad1(x):  # MaxPool2d(kernel=2, stride=2, padding=1), NHWC
    return jax.lax.reduce_window(
        x, -jnp.inf, jax.lax.max,
        window_dimensions=(1, 2, 2, 1), window_strides=(1, 2, 2, 1),
        padding=((0, 0), (1, 1), (1, 1), (0, 0)))


# ----------------------------------------------------------------------------
# SE excitation: sigmoid(fc2(relu(fc1(global_avg_pool))))
# ----------------------------------------------------------------------------
def _se_kernel(s_ref, w1_ref, b1_ref, w2_ref, b2_ref, o_ref):
    h = jnp.maximum(jnp.dot(s_ref[...], w1_ref[...],
                            preferred_element_type=jnp.float32) + b1_ref[...], 0.0)
    o_ref[...] = jax.nn.sigmoid(
        jnp.dot(h, w2_ref[...], preferred_element_type=jnp.float32) + b2_ref[...])


def se_scale(s, p):
    B, C = s.shape
    r = p["fc1"]["w"].shape[1]
    ops = [s.astype(jnp.float32), p["fc1"]["w"], p["fc1"]["b"].reshape(1, r),
           p["fc2"]["w"], p["fc2"]["b"].reshape(1, C)]
    return pl.pallas_call(
        _se_kernel,
        out_shape=jax.ShapeDtypeStruct((B, C), jnp.float32),
        grid=(1,),
        in_specs=[_full_spec(a) for a in ops],
        out_specs=pl.BlockSpec((B, C), lambda i: (0, 0)),
    )(*ops)


# ----------------------------------------------------------------------------
# SE_CNN fc + metadata mask (RegressionModel0), fused:
#   xm = (feat @ Wfc + bfc) * relu(metadata @ Wr)
# ----------------------------------------------------------------------------
def _fc_mask_kernel(feat_ref, fcw_ref, fcb_ref, md_ref, mdw_ref, o_ref):
    f = jnp.dot(feat_ref[...].astype(jnp.bfloat16), fcw_ref[...],
                preferred_element_type=jnp.float32) + fcb_ref[...]
    m = jnp.dot(md_ref[...].astype(jnp.bfloat16), mdw_ref[...],
                preferred_element_type=jnp.float32)
    o_ref[...] = f * jnp.maximum(m, 0.0)


def fc_mask(feat, fc_p, metadata, reg2_w):
    B = feat.shape[0]
    D = fc_p["w"].shape[1]
    ops = [feat, fc_p["w"].astype(jnp.bfloat16), fc_p["b"].reshape(1, D),
           metadata.astype(jnp.float32), reg2_w.astype(jnp.bfloat16)]
    return pl.pallas_call(
        _fc_mask_kernel,
        out_shape=jax.ShapeDtypeStruct((B, D), jnp.float32),
        grid=(1,),
        in_specs=[_full_spec(a) for a in ops],
        out_specs=pl.BlockSpec((B, D), lambda i: (0, 0)),
    )(*ops)


def se_cnn_forward(p, x_nchw, metadata, reg2_w):
    x = jnp.transpose(x_nchw, (0, 2, 3, 1))                       # NCHW -> NHWC
    x = conv_layer(x, p["conv1"]["w"], p["conv1"]["b"])           # conv1 + relu
    scale1 = se_scale(jnp.mean(x, axis=(1, 2)), p["se1"])         # SEBlock1(16)

    def cnn_block(h, bp, scale=None):
        wf, bf = fold_bn(bp["conv"]["w"], bp["conv"]["b"],
                         bp["bn"]["gamma"], bp["bn"]["beta"],
                         bp["bn"]["mean"], bp["bn"]["var"])
        return maxpool2x2_pad1(conv_layer(h, wf, bf, scale=scale))

    x = cnn_block(x, p["cnn1"], scale=scale1)                     # SE scale fused
    x = cnn_block(x, p["cnn2"])
    scale2 = se_scale(jnp.mean(x, axis=(1, 2)), p["se2"])         # SEBlock1(32)
    x = cnn_block(x, p["cnn3"], scale=scale2)
    x = cnn_block(x, p["cnn4"])
    B = x.shape[0]
    # NOTE: flatten is in HWC order (a fixed permutation of torch's CHW view);
    # equivalent up to a permutation of the randomly-initialized fc rows.
    feat = x.reshape(B, -1)
    return fc_mask(feat, p["fc"], metadata, reg2_w)


# ----------------------------------------------------------------------------
# TransformerModel: fc1 + 2 post-norm encoder layers + residual ReLU, one call
# ----------------------------------------------------------------------------
def _transformer_kernel(x_ref, fc1w_ref, fc1b_ref,
                        wv_ref, bv_ref, wo_ref, bo_ref, ln1g_ref, ln1b_ref,
                        w1_ref, b1_ref, w2_ref, b2_ref, ln2g_ref, ln2b_ref,
                        o_ref, *, num_layers):
    f32, bf16 = jnp.float32, jnp.bfloat16

    def ln(v, g, b):
        mu = jnp.mean(v, axis=-1, keepdims=True)
        var = jnp.mean(jnp.square(v - mu), axis=-1, keepdims=True)
        return (v - mu) * jax.lax.rsqrt(var + 1e-5) * g + b

    x = x_ref[...]
    inp = jnp.dot(x.astype(bf16), fc1w_ref[...],
                  preferred_element_type=f32) + fc1b_ref[...]
    y = x
    for l in range(num_layers):
        # seq_len == 1: softmax over one key is 1, so MHA(x) == out_proj(V(x));
        # Q/K projections are mathematically irrelevant (eval mode, dropout=0).
        v = jnp.dot(y.astype(bf16), wv_ref[l], preferred_element_type=f32) + bv_ref[l]
        a = jnp.dot(v.astype(bf16), wo_ref[l], preferred_element_type=f32) + bo_ref[l]
        y1 = ln(y + a, ln1g_ref[l], ln1b_ref[l])
        f = jnp.maximum(jnp.dot(y1.astype(bf16), w1_ref[l],
                                preferred_element_type=f32) + b1_ref[l], 0.0)
        ff = jnp.dot(f.astype(bf16), w2_ref[l], preferred_element_type=f32) + b2_ref[l]
        y = ln(y1 + ff, ln2g_ref[l], ln2b_ref[l])
    o_ref[...] = jnp.maximum(y + inp, 0.0)                       # F.relu(x + input)


def transformer_forward(p, x2d):
    lp = p["layers"]
    L = lp["wv"].shape[0]
    bf = jnp.bfloat16
    ops = [x2d,
           p["fc1_w"].astype(bf), p["fc1_b"],
           lp["wv"].astype(bf), lp["bv"], lp["wo"].astype(bf), lp["bo"],
           lp["ln1g"], lp["ln1b"],
           lp["w1"].astype(bf), lp["b1"], lp["w2"].astype(bf), lp["b2"],
           lp["ln2g"], lp["ln2b"]]
    N, D = x2d.shape
    return pl.pallas_call(
        functools.partial(_transformer_kernel, num_layers=L),
        out_shape=jax.ShapeDtypeStruct((N, D), jnp.float32),
        grid=(1,),
        in_specs=[_full_spec(a) for a in ops],
        out_specs=pl.BlockSpec((N, D), lambda i: (0, 0)),
    )(*ops)


# ----------------------------------------------------------------------------
# MultiGAT: fc residual + 2 GATConv layers, fully fused (one pallas_call)
# ----------------------------------------------------------------------------
def _multigat_kernel(x_ref, adj_ref, fcw_ref, fcb_ref,
                     lw1_ref, as1_ref, ad1_ref, b1_ref,
                     lw2_ref, as2_ref, ad2_ref, b2_ref,
                     o_ref, *, heads, out_ch):
    f32, bf16 = jnp.float32, jnp.bfloat16
    x = x_ref[...]
    adj = adj_ref[...]

    def gat_layer(h_in, lw_ref, as_ref, ad_ref):
        xp = jnp.dot(h_in.astype(bf16), lw_ref[...], preferred_element_type=f32)
        outs = []
        for hh in range(heads):                                  # static unroll
            xh = xp[:, hh * out_ch:(hh + 1) * out_ch]            # (N, O)
            asrc = jax.lax.dot_general(as_ref[hh], xh, (((1,), (1,)), ((), ())),
                                       preferred_element_type=f32)   # (1, N)
            adst = jax.lax.dot_general(xh, ad_ref[hh], (((1,), (1,)), ((), ())),
                                       preferred_element_type=f32)   # (N, 1)
            e = adst + asrc                                      # e[dst, src]
            e = jnp.where(e > 0, e, 0.2 * e)                     # leaky_relu(0.2)
            e = jnp.where(adj > 0, e, -1e30)                     # mask non-edges
            e = e - jnp.max(e, axis=1, keepdims=True)
            pw = jnp.exp(e)
            alpha = pw / jnp.sum(pw, axis=1, keepdims=True)      # softmax over src
            outs.append(jnp.dot(alpha, xh, preferred_element_type=f32))
        return jnp.concatenate(outs, axis=1)                     # (N, heads*O)

    h1 = jnp.maximum(gat_layer(x, lw1_ref, as1_ref, ad1_ref) + b1_ref[...], 0.0)
    res = jnp.dot(x.astype(bf16), fcw_ref[...], preferred_element_type=f32) + fcb_ref[...]
    out = gat_layer(h1, lw2_ref, as2_ref, ad2_ref) + b2_ref[...]
    o_ref[...] = jnp.maximum(out + res, 0.0)                     # relu(convN + fc(x))


def multigat_forward(p, x, edge_index, heads=4, out_ch=64):
    # Dense adjacency (duplicate edges collapse; demo edge_index has none).
    N = x.shape[0]
    adj = jnp.zeros((N, N), jnp.float32).at[edge_index[1], edge_index[0]].set(1.0)
    adj = jnp.maximum(adj, jnp.eye(N, dtype=jnp.float32))        # self loops
    bf = jnp.bfloat16
    c1, cN = p["conv1"], p["convN"]
    HO = heads * out_ch
    ops = [x, adj,
           p["fc"]["w"].astype(bf), p["fc"]["b"].reshape(1, HO),
           c1["lin_w"].astype(bf), c1["att_src"], c1["att_dst"], c1["bias"].reshape(1, HO),
           cN["lin_w"].astype(bf), cN["att_src"], cN["att_dst"], cN["bias"].reshape(1, HO)]
    return pl.pallas_call(
        functools.partial(_multigat_kernel, heads=heads, out_ch=out_ch),
        out_shape=jax.ShapeDtypeStruct((N, HO), jnp.float32),
        grid=(1,),
        in_specs=[_full_spec(a) for a in ops],
        out_specs=pl.BlockSpec((N, HO), lambda i: (0, 0)),
    )(*ops)


# ----------------------------------------------------------------------------
# Regression head: fc4(leaky_relu(fc1(pair)))  (dropout = identity in eval)
# ----------------------------------------------------------------------------
def _reg_head_kernel(pair_ref, w1_ref, b1_ref, w4_ref, b4_ref, o_ref):
    h = jnp.dot(pair_ref[...].astype(jnp.bfloat16), w1_ref[...],
                preferred_element_type=jnp.float32) + b1_ref[...]
    h = jnp.where(h > 0, h, 0.01 * h)                            # F.leaky_relu
    o_ref[...] = jnp.sum(h * w4_ref[...], axis=-1, keepdims=True) + b4_ref[...]


def regression_head(pair, p):
    E = pair.shape[0]
    Hd = p["fc1"]["w"].shape[1]
    ops = [pair, p["fc1"]["w"].astype(jnp.bfloat16), p["fc1"]["b"].reshape(1, Hd),
           p["fc4"]["w"].reshape(1, Hd), p["fc4"]["b"].reshape(1, 1)]
    return pl.pallas_call(
        _reg_head_kernel,
        out_shape=jax.ShapeDtypeStruct((E, 1), jnp.float32),
        grid=(1,),
        in_specs=[_full_spec(a) for a in ops],
        out_specs=pl.BlockSpec((E, 1), lambda i: (0, 0)),
    )(*ops)


# ----------------------------------------------------------------------------
# Full model
# ----------------------------------------------------------------------------
def metafluad_forward(params, x, metadata, edge_index):
    xm = se_cnn_forward(params["se_cnn"], x, metadata, params["reg2"]["w"])  # (N,256)
    x_t = transformer_forward(params["transformer"], xm)                     # (N,256)
    x_r = multigat_forward(params["gat"], xm, edge_index)                    # (N,256)
    feature = jnp.concatenate([x_t, x_r], axis=1)                            # (N,512)
    src, dst = edge_index[0], edge_index[1]                                  # create()
    pair = jnp.concatenate([feature[src], feature[dst]], axis=1)             # (E,1024)
    ypre = regression_head(pair, params["reg1"])                             # (E,1)
    return ypre, feature


# ----------------------------------------------------------------------------
# Deterministic parameter initialization (linear weights stored (in, out))
# ----------------------------------------------------------------------------
class KeyGen:
    def __init__(self, seed):
        self.key = jax.random.PRNGKey(seed)

    def __call__(self):
        self.key, sub = jax.random.split(self.key)
        return sub


def init_params(seed, metadata_dim, H, W, cnn_outdim=256,
                heads=4, gat_out=64, num_layers=2, dff=512):
    kg = KeyGen(seed)

    def w(*shape):
        return 0.05 * jax.random.normal(kg(), shape, dtype=jnp.float32)

    def zeros(*s):
        return jnp.zeros(s, jnp.float32)

    def ones(*s):
        return jnp.ones(s, jnp.float32)

    def bn(c):
        return dict(gamma=ones(c), beta=zeros(c), mean=zeros(c), var=ones(c))

    def conv(cin, cout):
        return dict(w=w(cout, cin, 3, 3), b=w(cout))

    def lin(cin, cout):
        return dict(w=w(cin, cout), b=w(cout))

    def pooled(n):
        for _ in range(4):
            n = n // 2 + 1
        return n

    # NOTE: the reference hard-codes Linear(32*22*8, out) for its expected input
    # resolution; here the flatten dim is derived from the chosen (H, W).
    fc_in = 32 * pooled(H) * pooled(W)

    se_cnn = dict(
        conv1=conv(1, 16),
        se1=dict(fc1=lin(16, 1), fc2=lin(1, 16)),
        cnn1=dict(conv=conv(16, 16), bn=bn(16)),
        cnn2=dict(conv=conv(16, 32), bn=bn(32)),
        se2=dict(fc1=lin(32, 2), fc2=lin(2, 32)),
        cnn3=dict(conv=conv(32, 32), bn=bn(32)),
        cnn4=dict(conv=conv(32, 32), bn=bn(32)),
        fc=lin(fc_in, cnn_outdim),
    )

    d = cnn_outdim
    transformer = dict(
        fc1_w=w(d, heads * 64), fc1_b=w(1, heads * 64),
        layers=dict(                     # per-layer params stacked on axis 0
            wv=w(num_layers, d, d), bv=w(num_layers, 1, d),     # V slice of in_proj
            wo=w(num_layers, d, d), bo=w(num_layers, 1, d),
            ln1g=ones(num_layers, 1, d), ln1b=zeros(num_layers, 1, d),
            w1=w(num_layers, d, dff), b1=w(num_layers, 1, dff),
            w2=w(num_layers, dff, d), b2=w(num_layers, 1, d),
            ln2g=ones(num_layers, 1, d), ln2b=zeros(num_layers, 1, d)))

    def gatconv(cin, hh, out):
        return dict(lin_w=w(cin, hh * out), att_src=w(hh, 1, out),
                    att_dst=w(hh, 1, out), bias=w(hh * out))

    gat = dict(fc=lin(d, heads * gat_out),
               conv1=gatconv(d, heads, gat_out),
               convN=gatconv(heads * gat_out, heads, gat_out))

    reg1 = dict(fc1=lin(2 * (heads * 64 + heads * gat_out), 512), fc4=lin(512, 1))
    reg2 = dict(w=w(metadata_dim, cnn_outdim))                   # bias=False

    return dict(se_cnn=se_cnn, transformer=transformer, gat=gat,
                reg1=reg1, reg2=reg2)


# ----------------------------------------------------------------------------
if __name__ == "__main__":
    NUM_NODES, H, W = 6, 24, 16
    METADATA_DIM = 10

    key = jax.random.PRNGKey(0)
    kx, km = jax.random.split(key)
    x = jax.random.normal(kx, (NUM_NODES, 1, H, W), dtype=jnp.float32)       # NCHW
    metadata = jax.random.normal(km, (NUM_NODES, METADATA_DIM), jnp.float32)
    edge_index = jnp.array([[0, 1, 2, 3, 4, 5, 0, 2, 1, 4],
                            [1, 2, 3, 4, 5, 0, 3, 5, 4, 0]], dtype=jnp.int32)

    params = init_params(1234, METADATA_DIM, H, W)

    fwd = jax.jit(metafluad_forward)
    ypre, feature = fwd(params, x, metadata, edge_index)
    jax.block_until_ready((ypre, feature))

    assert ypre.shape == (edge_index.shape[1], 1)
    assert feature.shape == (NUM_NODES, 512)
    assert bool(jnp.all(jnp.isfinite(ypre))) and bool(jnp.all(jnp.isfinite(feature)))
    print("KERNEL_OK")
</pallas_src>

<mosaic_0001>
module attributes {stable_mosaic.version = 11 : i64} {
  func.func @_conv_kernel(%arg0: i32, %arg1: memref<1x26x18xf32, #tpu.memory_space<vmem>>, %arg2: memref<3x18x256xbf16, #tpu.memory_space<vmem>>, %arg3: memref<1x256xf32, #tpu.memory_space<vmem>>, %arg4: memref<1x24x256xf32, #tpu.memory_space<vmem>>) attributes {dimension_semantics = [#tpu.dimension_semantics<parallel>], iteration_bounds = array<i64: 6>, scalar_prefetch = 0 : i64, scratch_operands = 0 : i64, tpu.core_type = #tpu.core_type<tc>, window_params = [{transform_indices = @transform_0, window_bounds = array<i64: 1, 26, 18>}, {pipeline_mode = #tpu.pipeline_mode<synchronous>, transform_indices = @transform_1, window_bounds = array<i64: 3, 18, 256>}, {pipeline_mode = #tpu.pipeline_mode<synchronous>, transform_indices = @transform_2, window_bounds = array<i64: 1, 256>}, {transform_indices = @transform_3, window_bounds = array<i64: 1, 24, 256>}]} {
    %c0 = arith.constant 0 : index
    %c0_0 = arith.constant 0 : index
    %c0_1 = arith.constant 0 : index
    %0 = vector.load %arg1[%c0, %c0_0, %c0_1] : memref<1x26x18xf32, #tpu.memory_space<vmem>>, vector<1x26x18xf32>
    %1 = vector.shape_cast %0 : vector<1x26x18xf32> to vector<26x18xf32>
    %2 = arith.truncf %1 : vector<26x18xf32> to vector<26x18xbf16>
    %cst = arith.constant 0.000000e+00 : f32
    %3 = vector.broadcast %cst : f32 to vector<24x256xf32>
    %4 = vector.extract_strided_slice %2 {offsets = [0, 0], sizes = [24, 18], strides = [1, 1]} : vector<26x18xbf16> to vector<24x18xbf16>
    %c0_2 = arith.constant 0 : index
    %c0_3 = arith.constant 0 : index
    %c0_4 = arith.constant 0 : index
    %5 = vector.load %arg2[%c0_2, %c0_3, %c0_4] : memref<3x18x256xbf16, #tpu.memory_space<vmem>>, vector<1x18x256xbf16>
    %6 = vector.shape_cast %5 : vector<1x18x256xbf16> to vector<18x256xbf16>
    %cst_5 = arith.constant dense<0.000000e+00> : vector<24x256xf32>
    %7 = tpu.matmul %4, %6, %cst_5 {dimension_numbers = #tpu.dot_dimension_numbers<[1], [0], [0], [1], [0, 0, 1, 1], [], []>} : vector<24x18xbf16>, vector<18x256xbf16>, vector<24x256xf32> -> vector<24x256xf32>
    %8 = arith.addf %3, %7 : vector<24x256xf32>
    %9 = vector.extract_strided_slice %2 {offsets = [1, 0], sizes = [24, 18], strides = [1, 1]} : vector<26x18xbf16> to vector<24x18xbf16>
    %c1 = arith.constant 1 : index
    %c0_6 = arith.constant 0 : index
    %c0_7 = arith.constant 0 : index
    %10 = vector.load %arg2[%c1, %c0_6, %c0_7] : memref<3x18x256xbf16, #tpu.memory_space<vmem>>, vector<1x18x256xbf16>
    %11 = vector.shape_cast %10 : vector<1x18x256xbf16> to vector<18x256xbf16>
    %cst_8 = arith.constant dense<0.000000e+00> : vector<24x256xf32>
    %12 = tpu.matmul %9, %11, %cst_8 {dimension_numbers = #tpu.dot_dimension_numbers<[1], [0], [0], [1], [0, 0, 1, 1], [], []>} : vector<24x18xbf16>, vector<18x256xbf16>, vector<24x256xf32> -> vector<24x256xf32>
    %13 = arith.addf %8, %12 : vector<24x256xf32>
    %14 = vector.extract_strided_slice %2 {offsets = [2, 0], sizes = [24, 18], strides = [1, 1]} : vector<26x18xbf16> to vector<24x18xbf16>
    %c2 = arith.constant 2 : index
    %c0_9 = arith.constant 0 : index
    %c0_10 = arith.constant 0 : index
    %15 = vector.load %arg2[%c2, %c0_9, %c0_10] : memref<3x18x256xbf16, #tpu.memory_space<vmem>>, vector<1x18x256xbf16>
    %16 = vector.shape_cast %15 : vector<1x18x256xbf16> to vector<18x256xbf16>
    %cst_11 = arith.constant dense<0.000000e+00> : vector<24x256xf32>
    %17 = tpu.matmul %14, %16, %cst_11 {dimension_numbers = #tpu.dot_dimension_numbers<[1], [0], [0], [1], [0, 0, 1, 1], [], []>} : vector<24x18xbf16>, vector<18x256xbf16>, vector<24x256xf32> -> vector<24x256xf32>
    %18 = arith.addf %13, %17 : vector<24x256xf32>
    %c0_12 = arith.constant 0 : index
    %c0_13 = arith.constant 0 : index
    %19 = vector.load %arg3[%c0_12, %c0_13] : memref<1x256xf32, #tpu.memory_space<vmem>>, vector<1x256xf32>
    %20 = vector.broadcast %19 : vector<1x256xf32> to vector<24x256xf32>
    %21 = arith.addf %18, %20 : vector<24x256xf32>
    %cst_14 = arith.constant 0.000000e+00 : f32
    %22 = vector.broadcast %cst_14 : f32 to vector<24x256xf32>
    %23 = arith.maximumf %21, %22 : vector<24x256xf32>
    %c0_15 = arith.constant 0 : index
    %c0_16 = arith.constant 0 : index
    %c0_17 = arith.constant 0 : index
    %24 = vector.load %arg4[%c0_15, %c0_16, %c0_17] : memref<1x24x256xf32, #tpu.memory_space<vmem>>, vector<1x24x256xf32>
    %25 = vector.shape_cast %24 : vector<1x24x256xf32> to vector<24x256xf32>
    %26 = vector.shape_cast %23 : vector<24x256xf32> to vector<1x24x256xf32>
    tpu.vector_store %arg4[%c0_15, %c0_16, %c0_17], %26 {strides = array<i32>} : memref<1x24x256xf32, #tpu.memory_space<vmem>>, vector<1x24x256xf32>,
    return
  }
  func.func @transform_0(%arg0: i32) -> (i32, i32, i32) {
    %c0_i32 = arith.constant 0 : i32
    %c0_i32_0 = arith.constant 0 : i32
    %c0_i32_1 = arith.constant 0 : i32
    return %arg0, %c0_i32, %c0_i32_0 : i32, i32, i32
  }
  func.func @transform_1(%arg0: i32) -> (i32, i32, i32) {
    %c0_i32 = arith.constant 0 : i32
    %c0_i32_0 = arith.constant 0 : i32
    %c0_i32_1 = arith.constant 0 : i32
    %c0_i32_2 = arith.constant 0 : i32
    return %c0_i32, %c0_i32_0, %c0_i32_1 : i32, i32, i32
  }
  func.func @transform_2(%arg0: i32) -> (i32, i32) {
    %c0_i32 = arith.constant 0 : i32
    %c0_i32_0 = arith.constant 0 : i32
    %c0_i32_1 = arith.constant 0 : i32
    return %c0_i32, %c0_i32_0 : i32, i32
  }
  func.func @transform_3(%arg0: i32) -> (i32, i32, i32) {
    %c0_i32 = arith.constant 0 : i32
    %c0_i32_0 = arith.constant 0 : i32
    %c0_i32_1 = arith.constant 0 : i32
    return %arg0, %c0_i32, %c0_i32_0 : i32, i32, i32
  }
}

module attributes {stable_mosaic.version = 11 : i64} {
  func.func @_se_kernel(%arg0: i32, %arg1: memref<6x16xf32, #tpu.memory_space<vmem>>, %arg2: memref<16x1xf32, #tpu.memory_space<vmem>>, %arg3: memref<1x1xf32, #tpu.memory_space<vmem>>, %arg4: memref<1x16xf32, #tpu.memory_space<vmem>>, %arg5: memref<1x16xf32, #tpu.memory_space<vmem>>, %arg6: memref<6x16xf32, #tpu.memory_space<vmem>>) attributes {dimension_semantics = [#tpu.dimension_semantics<arbitrary>], iteration_bounds = array<i64: 1>, scalar_prefetch = 0 : i64, scratch_operands = 0 : i64, tpu.core_type = #tpu.core_type<tc>, window_params = [{pipeline_mode = #tpu.pipeline_mode<synchronous>, transform_indices = @transform_0, window_bounds = array<i64: 6, 16>}, {pipeline_mode = #tpu.pipeline_mode<synchronous>, transform_indices = @transform_1, window_bounds = array<i64: 16, 1>}, {pipeline_mode = #tpu.pipeline_mode<synchronous>, transform_indices = @transform_2, window_bounds = array<i64: 1, 1>}, {pipeline_mode = #tpu.pipeline_mode<synchronous>, transform_indices = @transform_3, window_bounds = array<i64: 1, 16>}, {pipeline_mode = #tpu.pipeline_mode<synchronous>, transform_indices = @transform_4, window_bounds = array<i64: 1, 16>}, {pipeline_mode = #tpu.pipeline_mode<synchronous>, transform_indices = @transform_5, window_bounds = array<i64: 6, 16>}]} {
    %c0 = arith.constant 0 : index
    %c0_0 = arith.constant 0 : index
    %0 = vector.load %arg1[%c0, %c0_0] : memref<6x16xf32, #tpu.memory_space<vmem>>, vector<6x16xf32>
    %c0_1 = arith.constant 0 : index
    %c0_2 = arith.constant 0 : index
    %1 = vector.load %arg2[%c0_1, %c0_2] : memref<16x1xf32, #tpu.memory_space<vmem>>, vector<16x1xf32>
    %cst = arith.constant dense<0.000000e+00> : vector<6x1xf32>
    %2 = tpu.matmul %0, %1, %cst {dimension_numbers = #tpu.dot_dimension_numbers<[1], [0], [0], [1], [0, 0, 1, 1], [], []>} : vector<6x16xf32>, vector<16x1xf32>, vector<6x1xf32> -> vector<6x1xf32>
    %c0_3 = arith.constant 0 : index
    %c0_4 = arith.constant 0 : index
    %3 = vector.load %arg3[%c0_3, %c0_4] : memref<1x1xf32, #tpu.memory_space<vmem>>, vector<1x1xf32>
    %4 = vector.broadcast %3 : vector<1x1xf32> to vector<6x1xf32>
    %5 = arith.addf %2, %4 : vector<6x1xf32>
    %cst_5 = arith.constant 0.000000e+00 : f32
    %6 = vector.broadcast %cst_5 : f32 to vector<6x1xf32>
    %7 = arith.maximumf %5, %6 : vector<6x1xf32>
    %c0_6 = arith.constant 0 : index
    %c0_7 = arith.constant 0 : index
    %8 = vector.load %arg4[%c0_6, %c0_7] : memref<1x16xf32, #tpu.memory_space<vmem>>, vector<1x16xf32>
    %cst_8 = arith.constant dense<0.000000e+00> : vector<6x16xf32>
    %9 = tpu.matmul %7, %8, %cst_8 {dimension_numbers = #tpu.dot_dimension_numbers<[1], [0], [0], [1], [0, 0, 1, 1], [], []>} : vector<6x1xf32>, vector<1x16xf32>, vector<6x16xf32> -> vector<6x16xf32>
    %c0_9 = arith.constant 0 : index
    %c0_10 = arith.constant 0 : index
    %10 = vector.load %arg5[%c0_9, %c0_10] : memref<1x16xf32, #tpu.memory_space<vmem>>, vector<1x16xf32>
    %11 = vector.broadcast %10 : vector<1x16xf32> to vector<6x16xf32>
    %12 = arith.addf %9, %11 : vector<6x16xf32>
    %13 = arith.negf %12 : vector<6x16xf32>
    %14 = math.exp %13 : vector<6x16xf32>
    %cst_11 = arith.constant 1.000000e+00 : f32
    %15 = vector.broadcast %cst_11 : f32 to vector<6x16xf32>
    %16 = arith.addf %15, %14 : vector<6x16xf32>
    %17 = arith.divf %15, %16 : vector<6x16xf32>
    %c0_12 = arith.constant 0 : index
    %c0_13 = arith.constant 0 : index
    %18 = vector.load %arg6[%c0_12, %c0_13] : memref<6x16xf32, #tpu.memory_space<vmem>>, vector<6x16xf32>
    tpu.vector_store %arg6[%c0_12, %c0_13], %17 {strides = array<i32>} : memref<6x16xf32, #tpu.memory_space<vmem>>, vector<6x16xf32>,
    return
  }
  func.func @transform_0(%arg0: i32) -> (i32, i32) {
    %c0_i32 = arith.constant 0 : i32
    %c0_i32_0 = arith.constant 0 : i32
    %c0_i32_1 = arith.constant 0 : i32
    return %c0_i32, %c0_i32_0 : i32, i32
  }
  func.func @transform_1(%arg0: i32) -> (i32, i32) {
    %c0_i32 = arith.constant 0 : i32
    %c0_i32_0 = arith.constant 0 : i32
    %c0_i32_1 = arith.constant 0 : i32
    return %c0_i32, %c0_i32_0 : i32, i32
  }
  func.func @transform_2(%arg0: i32) -> (i32, i32) {
    %c0_i32 = arith.constant 0 : i32
    %c0_i32_0 = arith.constant 0 : i32
    %c0_i32_1 = arith.constant 0 : i32
    return %c0_i32, %c0_i32_0 : i32, i32
  }
  func.func @transform_3(%arg0: i32) -> (i32, i32) {
    %c0_i32 = arith.constant 0 : i32
    %c0_i32_0 = arith.constant 0 : i32
    %c0_i32_1 = arith.constant 0 : i32
    return %c0_i32, %c0_i32_0 : i32, i32
  }
  func.func @transform_4(%arg0: i32) -> (i32, i32) {
    %c0_i32 = arith.constant 0 : i32
    %c0_i32_0 = arith.constant 0 : i32
    %c0_i32_1 = arith.constant 0 : i32
    return %c0_i32, %c0_i32_0 : i32, i32
  }
  func.func @transform_5(%arg0: i32) -> (i32, i32) {
    %c0_i32 = arith.constant 0 : i32
    %c0_i32_0 = arith.constant 0 : i32
    %c0_i32_1 = arith.constant 0 : i32
    return %c0_i32, %c0_i32_0 : i32, i32
  }
}

module attributes {stable_mosaic.version = 11 : i64} {
  func.func @_conv_kernel(%arg0: i32, %arg1: memref<1x26x288xf32, #tpu.memory_space<vmem>>, %arg2: memref<3x288x256xbf16, #tpu.memory_space<vmem>>, %arg3: memref<1x256xf32, #tpu.memory_space<vmem>>, %arg4: memref<1x1x288xf32, #tpu.memory_space<vmem>>, %arg5: memref<1x24x256xf32, #tpu.memory_space<vmem>>) attributes {dimension_semantics = [#tpu.dimension_semantics<parallel>], iteration_bounds = array<i64: 6>, scalar_prefetch = 0 : i64, scratch_operands = 0 : i64, tpu.core_type = #tpu.core_type<tc>, window_params = [{transform_indices = @transform_0, window_bounds = array<i64: 1, 26, 288>}, {pipeline_mode = #tpu.pipeline_mode<synchronous>, transform_indices = @transform_1, window_bounds = array<i64: 3, 288, 256>}, {pipeline_mode = #tpu.pipeline_mode<synchronous>, transform_indices = @transform_2, window_bounds = array<i64: 1, 256>}, {transform_indices = @transform_3, window_bounds = array<i64: 1, 1, 288>}, {transform_indices = @transform_4, window_bounds = array<i64: 1, 24, 256>}]} {
    %c0 = arith.constant 0 : index
    %c0_0 = arith.constant 0 : index
    %c0_1 = arith.constant 0 : index
    %0 = vector.load %arg1[%c0, %c0_0, %c0_1] : memref<1x26x288xf32, #tpu.memory_space<vmem>>, vector<1x26x288xf32>
    %1 = vector.shape_cast %0 : vector<1x26x288xf32> to vector<26x288xf32>
    %c0_2 = arith.constant 0 : index
    %c0_3 = arith.constant 0 : index
    %c0_4 = arith.constant 0 : index
    %2 = vector.load %arg4[%c0_2, %c0_3, %c0_4] : memref<1x1x288xf32, #tpu.memory_space<vmem>>, vector<1x1x288xf32>
    %3 = vector.shape_cast %2 : vector<1x1x288xf32> to vector<1x288xf32>
    %4 = vector.broadcast %3 : vector<1x288xf32> to vector<26x288xf32>
    %5 = arith.mulf %1, %4 : vector<26x288xf32>
    %6 = arith.truncf %5 : vector<26x288xf32> to vector<26x288xbf16>
    %cst = arith.constant 0.000000e+00 : f32
    %7 = vector.broadcast %cst : f32 to vector<24x256xf32>
    %8 = vector.extract_strided_slice %6 {offsets = [0, 0], sizes = [24, 288], strides = [1, 1]} : vector<26x288xbf16> to vector<24x288xbf16>
    %c0_5 = arith.constant 0 : index
    %c0_6 = arith.constant 0 : index
    %c0_7 = arith.constant 0 : index
    %9 = vector.load %arg2[%c0_5, %c0_6, %c0_7] : memref<3x288x256xbf16, #tpu.memory_space<vmem>>, vector<1x288x256xbf16>
    %10 = vector.shape_cast %9 : vector<1x288x256xbf16> to vector<288x256xbf16>
    %cst_8 = arith.constant dense<0.000000e+00> : vector<24x256xf32>
    %11 = tpu.matmul %8, %10, %cst_8 {dimension_numbers = #tpu.dot_dimension_numbers<[1], [0], [0], [1], [0, 0, 1, 1], [], []>} : vector<24x288xbf16>, vector<288x256xbf16>, vector<24x256xf32> -> vector<24x256xf32>
    %12 = arith.addf %7, %11 : vector<24x256xf32>
    %13 = vector.extract_strided_slice %6 {offsets = [1, 0], sizes = [24, 288], strides = [1, 1]} : vector<26x288xbf16> to vector<24x288xbf16>
    %c1 = arith.constant 1 : index
    %c0_9 = arith.constant 0 : index
    %c0_10 = arith.constant 0 : index
    %14 = vector.load %arg2[%c1, %c0_9, %c0_10] : memref<3x288x256xbf16, #tpu.memory_space<vmem>>, vector<1x288x256xbf16>
    %15 = vector.shape_cast %14 : vector<1x288x256xbf16> to vector<288x256xbf16>
    %cst_11 = arith.constant dense<0.000000e+00> : vector<24x256xf32>
    %16 = tpu.matmul %13, %15, %cst_11 {dimension_numbers = #tpu.dot_dimension_numbers<[1], [0], [0], [1], [0, 0, 1, 1], [], []>} : vector<24x288xbf16>, vector<288x256xbf16>, vector<24x256xf32> -> vector<24x256xf32>
    %17 = arith.addf %12, %16 : vector<24x256xf32>
    %18 = vector.extract_strided_slice %6 {offsets = [2, 0], sizes = [24, 288], strides = [1, 1]} : vector<26x288xbf16> to vector<24x288xbf16>
    %c2 = arith.constant 2 : index
    %c0_12 = arith.constant 0 : index
    %c0_13 = arith.constant 0 : index
    %19 = vector.load %arg2[%c2, %c0_12, %c0_13] : memref<3x288x256xbf16, #tpu.memory_space<vmem>>, vector<1x288x256xbf16>
    %20 = vector.shape_cast %19 : vector<1x288x256xbf16> to vector<288x256xbf16>
    %cst_14 = arith.constant dense<0.000000e+00> : vector<24x256xf32>
    %21 = tpu.matmul %18, %20, %cst_14 {dimension_numbers = #tpu.dot_dimension_numbers<[1], [0], [0], [1], [0, 0, 1, 1], [], []>} : vector<24x288xbf16>, vector<288x256xbf16>, vector<24x256xf32> -> vector<24x256xf32>
    %22 = arith.addf %17, %21 : vector<24x256xf32>
    %c0_15 = arith.constant 0 : index
    %c0_16 = arith.constant 0 : index
    %23 = vector.load %arg3[%c0_15, %c0_16] : memref<1x256xf32, #tpu.memory_space<vmem>>, vector<1x256xf32>
    %24 = vector.broadcast %23 : vector<1x256xf32> to vector<24x256xf32>
    %25 = arith.addf %22, %24 : vector<24x256xf32>
    %cst_17 = arith.constant 0.000000e+00 : f32
    %26 = vector.broadcast %cst_17 : f32 to vector<24x256xf32>
    %27 = arith.maximumf %25, %26 : vector<24x256xf32>
    %c0_18 = arith.constant 0 : index
    %c0_19 = arith.constant 0 : index
    %c0_20 = arith.constant 0 : index
    %28 = vector.load %arg5[%c0_18, %c0_19, %c0_20] : memref<1x24x256xf32, #tpu.memory_space<vmem>>, vector<1x24x256xf32>
    %29 = vector.shape_cast %28 : vector<1x24x256xf32> to vector<24x256xf32>
    %30 = vector.shape_cast %27 : vector<24x256xf32> to vector<1x24x256xf32>
    tpu.vector_store %arg5[%c0_18, %c0_19, %c0_20], %30 {strides = array<i32>} : memref<1x24x256xf32, #tpu.memory_space<vmem>>, vector<1x24x256xf32>,
    return
  }
  func.func @transform_0(%arg0: i32) -> (i32, i32, i32) {
    %c0_i32 = arith.constant 0 : i32
    %c0_i32_0 = arith.constant 0 : i32
    %c0_i32_1 = arith.constant 0 : i32
    return %arg0, %c0_i32, %c0_i32_0 : i32, i32, i32
  }
  func.func @transform_1(%arg0: i32) -> (i32, i32, i32) {
    %c0_i32 = arith.constant 0 : i32
    %c0_i32_0 = arith.constant 0 : i32
    %c0_i32_1 = arith.constant 0 : i32
    %c0_i32_2 = arith.constant 0 : i32
    return %c0_i32, %c0_i32_0, %c0_i32_1 : i32, i32, i32
  }
  func.func @transform_2(%arg0: i32) -> (i32, i32) {
    %c0_i32 = arith.constant 0 : i32
    %c0_i32_0 = arith.constant 0 : i32
    %c0_i32_1 = arith.constant 0 : i32
    return %c0_i32, %c0_i32_0 : i32, i32
  }
  func.func @transform_3(%arg0: i32) -> (i32, i32, i32) {
    %c0_i32 = arith.constant 0 : i32
    %c0_i32_0 = arith.constant 0 : i32
    %c0_i32_1 = arith.constant 0 : i32
    return %arg0, %c0_i32, %c0_i32_0 : i32, i32, i32
  }
  func.func @transform_4(%arg0: i32) -> (i32, i32, i32) {
    %c0_i32 = arith.constant 0 : i32
    %c0_i32_0 = arith.constant 0 : i32
    %c0_i32_1 = arith.constant 0 : i32
    return %arg0, %c0_i32, %c0_i32_0 : i32, i32, i32
  }
}

module attributes {stable_mosaic.version = 11 : i64} {
  func.func @_conv_kernel(%arg0: i32, %arg1: memref<1x15x176xf32, #tpu.memory_space<vmem>>, %arg2: memref<3x176x288xbf16, #tpu.memory_space<vmem>>, %arg3: memref<1x288xf32, #tpu.memory_space<vmem>>, %arg4: memref<1x13x288xf32, #tpu.memory_space<vmem>>) attributes {dimension_semantics = [#tpu.dimension_semantics<parallel>], iteration_bounds = array<i64: 6>, scalar_prefetch = 0 : i64, scratch_operands = 0 : i64, tpu.core_type = #tpu.core_type<tc>, window_params = [{transform_indices = @transform_0, window_bounds = array<i64: 1, 15, 176>}, {pipeline_mode = #tpu.pipeline_mode<synchronous>, transform_indices = @transform_1, window_bounds = array<i64: 3, 176, 288>}, {pipeline_mode = #tpu.pipeline_mode<synchronous>, transform_indices = @transform_2, window_bounds = array<i64: 1, 288>}, {transform_indices = @transform_3, window_bounds = array<i64: 1, 13, 288>}]} {
    %c0 = arith.constant 0 : index
    %c0_0 = arith.constant 0 : index
    %c0_1 = arith.constant 0 : index
    %0 = vector.load %arg1[%c0, %c0_0, %c0_1] : memref<1x15x176xf32, #tpu.memory_space<vmem>>, vector<1x15x176xf32>
    %1 = vector.shape_cast %0 : vector<1x15x176xf32> to vector<15x176xf32>
    %2 = arith.truncf %1 : vector<15x176xf32> to vector<15x176xbf16>
    %cst = arith.constant 0.000000e+00 : f32
    %3 = vector.broadcast %cst : f32 to vector<13x288xf32>
    %4 = vector.extract_strided_slice %2 {offsets = [0, 0], sizes = [13, 176], strides = [1, 1]} : vector<15x176xbf16> to vector<13x176xbf16>
    %c0_2 = arith.constant 0 : index
    %c0_3 = arith.constant 0 : index
    %c0_4 = arith.constant 0 : index
    %5 = vector.load %arg2[%c0_2, %c0_3, %c0_4] : memref<3x176x288xbf16, #tpu.memory_space<vmem>>, vector<1x176x288xbf16>
    %6 = vector.shape_cast %5 : vector<1x176x288xbf16> to vector<176x288xbf16>
    %cst_5 = arith.constant dense<0.000000e+00> : vector<13x288xf32>
    %7 = tpu.matmul %4, %6, %cst_5 {dimension_numbers = #tpu.dot_dimension_numbers<[1], [0], [0], [1], [0, 0, 1, 1], [], []>} : vector<13x176xbf16>, vector<176x288xbf16>, vector<13x288xf32> -> vector<13x288xf32>
    %8 = arith.addf %3, %7 : vector<13x288xf32>
    %9 = vector.extract_strided_slice %2 {offsets = [1, 0], sizes = [13, 176], strides = [1, 1]} : vector<15x176xbf16> to vector<13x176xbf16>
    %c1 = arith.constant 1 : index
    %c0_6 = arith.constant 0 : index
    %c0_7 = arith.constant 0 : index
    %10 = vector.load %arg2[%c1, %c0_6, %c0_7] : memref<3x176x288xbf16, #tpu.memory_space<vmem>>, vector<1x176x288xbf16>
    %11 = vector.shape_cast %10 : vector<1x176x288xbf16> to vector<176x288xbf16>
    %cst_8 = arith.constant dense<0.000000e+00> : vector<13x288xf32>
    %12 = tpu.matmul %9, %11, %cst_8 {dimension_numbers = #tpu.dot_dimension_numbers<[1], [0], [0], [1], [0, 0, 1, 1], [], []>} : vector<13x176xbf16>, vector<176x288xbf16>, vector<13x288xf32> -> vector<13x288xf32>
    %13 = arith.addf %8, %12 : vector<13x288xf32>
    %14 = vector.extract_strided_slice %2 {offsets = [2, 0], sizes = [13, 176], strides = [1, 1]} : vector<15x176xbf16> to vector<13x176xbf16>
    %c2 = arith.constant 2 : index
    %c0_9 = arith.constant 0 : index
    %c0_10 = arith.constant 0 : index
    %15 = vector.load %arg2[%c2, %c0_9, %c0_10] : memref<3x176x288xbf16, #tpu.memory_space<vmem>>, vector<1x176x288xbf16>
    %16 = vector.shape_cast %15 : vector<1x176x288xbf16> to vector<176x288xbf16>
    %cst_11 = arith.constant dense<0.000000e+00> : vector<13x288xf32>
    %17 = tpu.matmul %14, %16, %cst_11 {dimension_numbers = #tpu.dot_dimension_numbers<[1], [0], [0], [1], [0, 0, 1, 1], [], []>} : vector<13x176xbf16>, vector<176x288xbf16>, vector<13x288xf32> -> vector<13x288xf32>
    %18 = arith.addf %13, %17 : vector<13x288xf32>
    %c0_12 = arith.constant 0 : index
    %c0_13 = arith.constant 0 : index
    %19 = vector.load %arg3[%c0_12, %c0_13] : memref<1x288xf32, #tpu.memory_space<vmem>>, vector<1x288xf32>
    %20 = vector.broadcast %19 : vector<1x288xf32> to vector<13x288xf32>
    %21 = arith.addf %18, %20 : vector<13x288xf32>
    %cst_14 = arith.constant 0.000000e+00 : f32
    %22 = vector.broadcast %cst_14 : f32 to vector<13x288xf32>
    %23 = arith.maximumf %21, %22 : vector<13x288xf32>
    %c0_15 = arith.constant 0 : index
    %c0_16 = arith.constant 0 : index
    %c0_17 = arith.constant 0 : index
    %24 = vector.load %arg4[%c0_15, %c0_16, %c0_17] : memref<1x13x288xf32, #tpu.memory_space<vmem>>, vector<1x13x288xf32>
    %25 = vector.shape_cast %24 : vector<1x13x288xf32> to vector<13x288xf32>
    %26 = vector.shape_cast %23 : vector<13x288xf32> to vector<1x13x288xf32>
    tpu.vector_store %arg4[%c0_15, %c0_16, %c0_17], %26 {strides = array<i32>} : memref<1x13x288xf32, #tpu.memory_space<vmem>>, vector<1x13x288xf32>,
    return
  }
  func.func @transform_0(%arg0: i32) -> (i32, i32, i32) {
    %c0_i32 = arith.constant 0 : i32
    %c0_i32_0 = arith.constant 0 : i32
    %c0_i32_1 = arith.constant 0 : i32
    return %arg0, %c0_i32, %c0_i32_0 : i32, i32, i32
  }
  func.func @transform_1(%arg0: i32) -> (i32, i32, i32) {
    %c0_i32 = arith.constant 0 : i32
    %c0_i32_0 = arith.constant 0 : i32
    %c0_i32_1 = arith.constant 0 : i32
    %c0_i32_2 = arith.constant 0 : i32
    return %c0_i32, %c0_i32_0, %c0_i32_1 : i32, i32, i32
  }
  func.func @transform_2(%arg0: i32) -> (i32, i32) {
    %c0_i32 = arith.constant 0 : i32
    %c0_i32_0 = arith.constant 0 : i32
    %c0_i32_1 = arith.constant 0 : i32
    return %c0_i32, %c0_i32_0 : i32, i32
  }
  func.func @transform_3(%arg0: i32) -> (i32, i32, i32) {
    %c0_i32 = arith.constant 0 : i32
    %c0_i32_0 = arith.constant 0 : i32
    %c0_i32_1 = arith.constant 0 : i32
    return %arg0, %c0_i32, %c0_i32_0 : i32, i32, i32
  }
}

module attributes {stable_mosaic.version = 11 : i64} {
  func.func @_se_kernel(%arg0: i32, %arg1: memref<6x32xf32, #tpu.memory_space<vmem>>, %arg2: memref<32x2xf32, #tpu.memory_space<vmem>>, %arg3: memref<1x2xf32, #tpu.memory_space<vmem>>, %arg4: memref<2x32xf32, #tpu.memory_space<vmem>>, %arg5: memref<1x32xf32, #tpu.memory_space<vmem>>, %arg6: memref<6x32xf32, #tpu.memory_space<vmem>>) attributes {dimension_semantics = [#tpu.dimension_semantics<arbitrary>], iteration_bounds = array<i64: 1>, scalar_prefetch = 0 : i64, scratch_operands = 0 : i64, tpu.core_type = #tpu.core_type<tc>, window_params = [{pipeline_mode = #tpu.pipeline_mode<synchronous>, transform_indices = @transform_0, window_bounds = array<i64: 6, 32>}, {pipeline_mode = #tpu.pipeline_mode<synchronous>, transform_indices = @transform_1, window_bounds = array<i64: 32, 2>}, {pipeline_mode = #tpu.pipeline_mode<synchronous>, transform_indices = @transform_2, window_bounds = array<i64: 1, 2>}, {pipeline_mode = #tpu.pipeline_mode<synchronous>, transform_indices = @transform_3, window_bounds = array<i64: 2, 32>}, {pipeline_mode = #tpu.pipeline_mode<synchronous>, transform_indices = @transform_4, window_bounds = array<i64: 1, 32>}, {pipeline_mode = #tpu.pipeline_mode<synchronous>, transform_indices = @transform_5, window_bounds = array<i64: 6, 32>}]} {
    %c0 = arith.constant 0 : index
    %c0_0 = arith.constant 0 : index
    %0 = vector.load %arg1[%c0, %c0_0] : memref<6x32xf32, #tpu.memory_space<vmem>>, vector<6x32xf32>
    %c0_1 = arith.constant 0 : index
    %c0_2 = arith.constant 0 : index
    %1 = vector.load %arg2[%c0_1, %c0_2] : memref<32x2xf32, #tpu.memory_space<vmem>>, vector<32x2xf32>
    %cst = arith.constant dense<0.000000e+00> : vector<6x2xf32>
    %2 = tpu.matmul %0, %1, %cst {dimension_numbers = #tpu.dot_dimension_numbers<[1], [0], [0], [1], [0, 0, 1, 1], [], []>} : vector<6x32xf32>, vector<32x2xf32>, vector<6x2xf32> -> vector<6x2xf32>
    %c0_3 = arith.constant 0 : index
    %c0_4 = arith.constant 0 : index
    %3 = vector.load %arg3[%c0_3, %c0_4] : memref<1x2xf32, #tpu.memory_space<vmem>>, vector<1x2xf32>
    %4 = vector.broadcast %3 : vector<1x2xf32> to vector<6x2xf32>
    %5 = arith.addf %2, %4 : vector<6x2xf32>
    %cst_5 = arith.constant 0.000000e+00 : f32
    %6 = vector.broadcast %cst_5 : f32 to vector<6x2xf32>
    %7 = arith.maximumf %5, %6 : vector<6x2xf32>
    %c0_6 = arith.constant 0 : index
    %c0_7 = arith.constant 0 : index
    %8 = vector.load %arg4[%c0_6, %c0_7] : memref<2x32xf32, #tpu.memory_space<vmem>>, vector<2x32xf32>
    %cst_8 = arith.constant dense<0.000000e+00> : vector<6x32xf32>
    %9 = tpu.matmul %7, %8, %cst_8 {dimension_numbers = #tpu.dot_dimension_numbers<[1], [0], [0], [1], [0, 0, 1, 1], [], []>} : vector<6x2xf32>, vector<2x32xf32>, vector<6x32xf32> -> vector<6x32xf32>
    %c0_9 = arith.constant 0 : index
    %c0_10 = arith.constant 0 : index
    %10 = vector.load %arg5[%c0_9, %c0_10] : memref<1x32xf32, #tpu.memory_space<vmem>>, vector<1x32xf32>
    %11 = vector.broadcast %10 : vector<1x32xf32> to vector<6x32xf32>
    %12 = arith.addf %9, %11 : vector<6x32xf32>
    %13 = arith.negf %12 : vector<6x32xf32>
    %14 = math.exp %13 : vector<6x32xf32>
    %cst_11 = arith.constant 1.000000e+00 : f32
    %15 = vector.broadcast %cst_11 : f32 to vector<6x32xf32>
    %16 = arith.addf %15, %14 : vector<6x32xf32>
    %17 = arith.divf %15, %16 : vector<6x32xf32>
    %c0_12 = arith.constant 0 : index
    %c0_13 = arith.constant 0 : index
    %18 = vector.load %arg6[%c0_12, %c0_13] : memref<6x32xf32, #tpu.memory_space<vmem>>, vector<6x32xf32>
    tpu.vector_store %arg6[%c0_12, %c0_13], %17 {strides = array<i32>} : memref<6x32xf32, #tpu.memory_space<vmem>>, vector<6x32xf32>,
    return
  }
  func.func @transform_0(%arg0: i32) -> (i32, i32) {
    %c0_i32 = arith.constant 0 : i32
    %c0_i32_0 = arith.constant 0 : i32
    %c0_i32_1 = arith.constant 0 : i32
    return %c0_i32, %c0_i32_0 : i32, i32
  }
  func.func @transform_1(%arg0: i32) -> (i32, i32) {
    %c0_i32 = arith.constant 0 : i32
    %c0_i32_0 = arith.constant 0 : i32
    %c0_i32_1 = arith.constant 0 : i32
    return %c0_i32, %c0_i32_0 : i32, i32
  }
  func.func @transform_2(%arg0: i32) -> (i32, i32) {
    %c0_i32 = arith.constant 0 : i32
    %c0_i32_0 = arith.constant 0 : i32
    %c0_i32_1 = arith.constant 0 : i32
    return %c0_i32, %c0_i32_0 : i32, i32
  }
  func.func @transform_3(%arg0: i32) -> (i32, i32) {
    %c0_i32 = arith.constant 0 : i32
    %c0_i32_0 = arith.constant 0 : i32
    %c0_i32_1 = arith.constant 0 : i32
    return %c0_i32, %c0_i32_0 : i32, i32
  }
  func.func @transform_4(%arg0: i32) -> (i32, i32) {
    %c0_i32 = arith.constant 0 : i32
    %c0_i32_0 = arith.constant 0 : i32
    %c0_i32_1 = arith.constant 0 : i32
    return %c0_i32, %c0_i32_0 : i32, i32
  }
  func.func @transform_5(%arg0: i32) -> (i32, i32) {
    %c0_i32 = arith.constant 0 : i32
    %c0_i32_0 = arith.constant 0 : i32
    %c0_i32_1 = arith.constant 0 : i32
    return %c0_i32, %c0_i32_0 : i32, i32
  }
}

module attributes {stable_mosaic.version = 11 : i64} {
  func.func @_conv_kernel(%arg0: i32, %arg1: memref<1x9x224xf32, #tpu.memory_space<vmem>>, %arg2: memref<3x224x160xbf16, #tpu.memory_space<vmem>>, %arg3: memref<1x160xf32, #tpu.memory_space<vmem>>, %arg4: memref<1x1x224xf32, #tpu.memory_space<vmem>>, %arg5: memref<1x7x160xf32, #tpu.memory_space<vmem>>) attributes {dimension_semantics = [#tpu.dimension_semantics<parallel>], iteration_bounds = array<i64: 6>, scalar_prefetch = 0 : i64, scratch_operands = 0 : i64, tpu.core_type = #tpu.core_type<tc>, window_params = [{transform_indices = @transform_0, window_bounds = array<i64: 1, 9, 224>}, {pipeline_mode = #tpu.pipeline_mode<synchronous>, transform_indices = @transform_1, window_bounds = array<i64: 3, 224, 160>}, {pipeline_mode = #tpu.pipeline_mode<synchronous>, transform_indices = @transform_2, window_bounds = array<i64: 1, 160>}, {transform_indices = @transform_3, window_bounds = array<i64: 1, 1, 224>}, {transform_indices = @transform_4, window_bounds = array<i64: 1, 7, 160>}]} {
    %c0 = arith.constant 0 : index
    %c0_0 = arith.constant 0 : index
    %c0_1 = arith.constant 0 : index
    %0 = vector.load %arg1[%c0, %c0_0, %c0_1] : memref<1x9x224xf32, #tpu.memory_space<vmem>>, vector<1x9x224xf32>
    %1 = vector.shape_cast %0 : vector<1x9x224xf32> to vector<9x224xf32>
    %c0_2 = arith.constant 0 : index
    %c0_3 = arith.constant 0 : index
    %c0_4 = arith.constant 0 : index
    %2 = vector.load %arg4[%c0_2, %c0_3, %c0_4] : memref<1x1x224xf32, #tpu.memory_space<vmem>>, vector<1x1x224xf32>
    %3 = vector.shape_cast %2 : vector<1x1x224xf32> to vector<1x224xf32>
    %4 = vector.broadcast %3 : vector<1x224xf32> to vector<9x224xf32>
    %5 = arith.mulf %1, %4 : vector<9x224xf32>
    %6 = arith.truncf %5 : vector<9x224xf32> to vector<9x224xbf16>
    %cst = arith.constant 0.000000e+00 : f32
    %7 = vector.broadcast %cst : f32 to vector<7x160xf32>
    %8 = vector.extract_strided_slice %6 {offsets = [0, 0], sizes = [7, 224], strides = [1, 1]} : vector<9x224xbf16> to vector<7x224xbf16>
    %c0_5 = arith.constant 0 : index
    %c0_6 = arith.constant 0 : index
    %c0_7 = arith.constant 0 : index
    %9 = vector.load %arg2[%c0_5, %c0_6, %c0_7] : memref<3x224x160xbf16, #tpu.memory_space<vmem>>, vector<1x224x160xbf16>
    %10 = vector.shape_cast %9 : vector<1x224x160xbf16> to vector<224x160xbf16>
    %cst_8 = arith.constant dense<0.000000e+00> : vector<7x160xf32>
    %11 = tpu.matmul %8, %10, %cst_8 {dimension_numbers = #tpu.dot_dimension_numbers<[1], [0], [0], [1], [0, 0, 1, 1], [], []>} : vector<7x224xbf16>, vector<224x160xbf16>, vector<7x160xf32> -> vector<7x160xf32>
    %12 = arith.addf %7, %11 : vector<7x160xf32>
    %13 = vector.extract_strided_slice %6 {offsets = [1, 0], sizes = [7, 224], strides = [1, 1]} : vector<9x224xbf16> to vector<7x224xbf16>
    %c1 = arith.constant 1 : index
    %c0_9 = arith.constant 0 : index
    %c0_10 = arith.constant 0 : index
    %14 = vector.load %arg2[%c1, %c0_9, %c0_10] : memref<3x224x160xbf16, #tpu.memory_space<vmem>>, vector<1x224x160xbf16>
    %15 = vector.shape_cast %14 : vector<1x224x160xbf16> to vector<224x160xbf16>
    %cst_11 = arith.constant dense<0.000000e+00> : vector<7x160xf32>
    %16 = tpu.matmul %13, %15, %cst_11 {dimension_numbers = #tpu.dot_dimension_numbers<[1], [0], [0], [1], [0, 0, 1, 1], [], []>} : vector<7x224xbf16>, vector<224x160xbf16>, vector<7x160xf32> -> vector<7x160xf32>
    %17 = arith.addf %12, %16 : vector<7x160xf32>
    %18 = vector.extract_strided_slice %6 {offsets = [2, 0], sizes = [7, 224], strides = [1, 1]} : vector<9x224xbf16> to vector<7x224xbf16>
    %c2 = arith.constant 2 : index
    %c0_12 = arith.constant 0 : index
    %c0_13 = arith.constant 0 : index
    %19 = vector.load %arg2[%c2, %c0_12, %c0_13] : memref<3x224x160xbf16, #tpu.memory_space<vmem>>, vector<1x224x160xbf16>
    %20 = vector.shape_cast %19 : vector<1x224x160xbf16> to vector<224x160xbf16>
    %cst_14 = arith.constant dense<0.000000e+00> : vector<7x160xf32>
    %21 = tpu.matmul %18, %20, %cst_14 {dimension_numbers = #tpu.dot_dimension_numbers<[1], [0], [0], [1], [0, 0, 1, 1], [], []>} : vector<7x224xbf16>, vector<224x160xbf16>, vector<7x160xf32> -> vector<7x160xf32>
    %22 = arith.addf %17, %21 : vector<7x160xf32>
    %c0_15 = arith.constant 0 : index
    %c0_16 = arith.constant 0 : index
    %23 = vector.load %arg3[%c0_15, %c0_16] : memref<1x160xf32, #tpu.memory_space<vmem>>, vector<1x160xf32>
    %24 = vector.broadcast %23 : vector<1x160xf32> to vector<7x160xf32>
    %25 = arith.addf %22, %24 : vector<7x160xf32>
    %cst_17 = arith.constant 0.000000e+00 : f32
    %26 = vector.broadcast %cst_17 : f32 to vector<7x160xf32>
    %27 = arith.maximumf %25, %26 : vector<7x160xf32>
    %c0_18 = arith.constant 0 : index
    %c0_19 = arith.constant 0 : index
    %c0_20 = arith.constant 0 : index
    %28 = vector.load %arg5[%c0_18, %c0_19, %c0_20] : memref<1x7x160xf32, #tpu.memory_space<vmem>>, vector<1x7x160xf32>
    %29 = vector.shape_cast %28 : vector<1x7x160xf32> to vector<7x160xf32>
    %30 = vector.shape_cast %27 : vector<7x160xf32> to vector<1x7x160xf32>
    tpu.vector_store %arg5[%c0_18, %c0_19, %c0_20], %30 {strides = array<i32>} : memref<1x7x160xf32, #tpu.memory_space<vmem>>, vector<1x7x160xf32>,
    return
  }
  func.func @transform_0(%arg0: i32) -> (i32, i32, i32) {
    %c0_i32 = arith.constant 0 : i32
    %c0_i32_0 = arith.constant 0 : i32
    %c0_i32_1 = arith.constant 0 : i32
    return %arg0, %c0_i32, %c0_i32_0 : i32, i32, i32
  }
  func.func @transform_1(%arg0: i32) -> (i32, i32, i32) {
    %c0_i32 = arith.constant 0 : i32
    %c0_i32_0 = arith.constant 0 : i32
    %c0_i32_1 = arith.constant 0 : i32
    %c0_i32_2 = arith.constant 0 : i32
    return %c0_i32, %c0_i32_0, %c0_i32_1 : i32, i32, i32
  }
  func.func @transform_2(%arg0: i32) -> (i32, i32) {
    %c0_i32 = arith.constant 0 : i32
    %c0_i32_0 = arith.constant 0 : i32
    %c0_i32_1 = arith.constant 0 : i32
    return %c0_i32, %c0_i32_0 : i32, i32
  }
  func.func @transform_3(%arg0: i32) -> (i32, i32, i32) {
    %c0_i32 = arith.constant 0 : i32
    %c0_i32_0 = arith.constant 0 : i32
    %c0_i32_1 = arith.constant 0 : i32
    return %arg0, %c0_i32, %c0_i32_0 : i32, i32, i32
  }
  func.func @transform_4(%arg0: i32) -> (i32, i32, i32) {
    %c0_i32 = arith.constant 0 : i32
    %c0_i32_0 = arith.constant 0 : i32
    %c0_i32_1 = arith.constant 0 : i32
    return %arg0, %c0_i32, %c0_i32_0 : i32, i32, i32
  }
}

module attributes {stable_mosaic.version = 11 : i64} {
  func.func @_conv_kernel(%arg0: i32, %arg1: memref<1x6x160xf32, #tpu.memory_space<vmem>>, %arg2: memref<3x160x96xbf16, #tpu.memory_space<vmem>>, %arg3: memref<1x96xf32, #tpu.memory_space<vmem>>, %arg4: memref<1x4x96xf32, #tpu.memory_space<vmem>>) attributes {dimension_semantics = [#tpu.dimension_semantics<parallel>], iteration_bounds = array<i64: 6>, scalar_prefetch = 0 : i64, scratch_operands = 0 : i64, tpu.core_type = #tpu.core_type<tc>, window_params = [{transform_indices = @transform_0, window_bounds = array<i64: 1, 6, 160>}, {pipeline_mode = #tpu.pipeline_mode<synchronous>, transform_indices = @transform_1, window_bounds = array<i64: 3, 160, 96>}, {pipeline_mode = #tpu.pipeline_mode<synchronous>, transform_indices = @transform_2, window_bounds = array<i64: 1, 96>}, {transform_indices = @transform_3, window_bounds = array<i64: 1, 4, 96>}]} {
    %c0 = arith.constant 0 : index
    %c0_0 = arith.constant 0 : index
    %c0_1 = arith.constant 0 : index
    %0 = vector.load %arg1[%c0, %c0_0, %c0_1] : memref<1x6x160xf32, #tpu.memory_space<vmem>>, vector<1x6x160xf32>
    %1 = vector.shape_cast %0 : vector<1x6x160xf32> to vector<6x160xf32>
    %2 = arith.truncf %1 : vector<6x160xf32> to vector<6x160xbf16>
    %cst = arith.constant 0.000000e+00 : f32
    %3 = vector.broadcast %cst : f32 to vector<4x96xf32>
    %4 = vector.extract_strided_slice %2 {offsets = [0, 0], sizes = [4, 160], strides = [1, 1]} : vector<6x160xbf16> to vector<4x160xbf16>
    %c0_2 = arith.constant 0 : index
    %c0_3 = arith.constant 0 : index
    %c0_4 = arith.constant 0 : index
    %5 = vector.load %arg2[%c0_2, %c0_3, %c0_4] : memref<3x160x96xbf16, #tpu.memory_space<vmem>>, vector<1x160x96xbf16>
    %6 = vector.shape_cast %5 : vector<1x160x96xbf16> to vector<160x96xbf16>
    %cst_5 = arith.constant dense<0.000000e+00> : vector<4x96xf32>
    %7 = tpu.matmul %4, %6, %cst_5 {dimension_numbers = #tpu.dot_dimension_numbers<[1], [0], [0], [1], [0, 0, 1, 1], [], []>} : vector<4x160xbf16>, vector<160x96xbf16>, vector<4x96xf32> -> vector<4x96xf32>
    %8 = arith.addf %3, %7 : vector<4x96xf32>
    %9 = vector.extract_strided_slice %2 {offsets = [1, 0], sizes = [4, 160], strides = [1, 1]} : vector<6x160xbf16> to vector<4x160xbf16>
    %c1 = arith.constant 1 : index
    %c0_6 = arith.constant 0 : index
    %c0_7 = arith.constant 0 : index
    %10 = vector.load %arg2[%c1, %c0_6, %c0_7] : memref<3x160x96xbf16, #tpu.memory_space<vmem>>, vector<1x160x96xbf16>
    %11 = vector.shape_cast %10 : vector<1x160x96xbf16> to vector<160x96xbf16>
    %cst_8 = arith.constant dense<0.000000e+00> : vector<4x96xf32>
    %12 = tpu.matmul %9, %11, %cst_8 {dimension_numbers = #tpu.dot_dimension_numbers<[1], [0], [0], [1], [0, 0, 1, 1], [], []>} : vector<4x160xbf16>, vector<160x96xbf16>, vector<4x96xf32> -> vector<4x96xf32>
    %13 = arith.addf %8, %12 : vector<4x96xf32>
    %14 = vector.extract_strided_slice %2 {offsets = [2, 0], sizes = [4, 160], strides = [1, 1]} : vector<6x160xbf16> to vector<4x160xbf16>
    %c2 = arith.constant 2 : index
    %c0_9 = arith.constant 0 : index
    %c0_10 = arith.constant 0 : index
    %15 = vector.load %arg2[%c2, %c0_9, %c0_10] : memref<3x160x96xbf16, #tpu.memory_space<vmem>>, vector<1x160x96xbf16>
    %16 = vector.shape_cast %15 : vector<1x160x96xbf16> to vector<160x96xbf16>
    %cst_11 = arith.constant dense<0.000000e+00> : vector<4x96xf32>
    %17 = tpu.matmul %14, %16, %cst_11 {dimension_numbers = #tpu.dot_dimension_numbers<[1], [0], [0], [1], [0, 0, 1, 1], [], []>} : vector<4x160xbf16>, vector<160x96xbf16>, vector<4x96xf32> -> vector<4x96xf32>
    %18 = arith.addf %13, %17 : vector<4x96xf32>
    %c0_12 = arith.constant 0 : index
    %c0_13 = arith.constant 0 : index
    %19 = vector.load %arg3[%c0_12, %c0_13] : memref<1x96xf32, #tpu.memory_space<vmem>>, vector<1x96xf32>
    %20 = vector.broadcast %19 : vector<1x96xf32> to vector<4x96xf32>
    %21 = arith.addf %18, %20 : vector<4x96xf32>
    %cst_14 = arith.constant 0.000000e+00 : f32
    %22 = vector.broadcast %cst_14 : f32 to vector<4x96xf32>
    %23 = arith.maximumf %21, %22 : vector<4x96xf32>
    %c0_15 = arith.constant 0 : index
    %c0_16 = arith.constant 0 : index
    %c0_17 = arith.constant 0 : index
    %24 = vector.load %arg4[%c0_15, %c0_16, %c0_17] : memref<1x4x96xf32, #tpu.memory_space<vmem>>, vector<1x4x96xf32>
    %25 = vector.shape_cast %24 : vector<1x4x96xf32> to vector<4x96xf32>
    %26 = vector.shape_cast %23 : vector<4x96xf32> to vector<1x4x96xf32>
    tpu.vector_store %arg4[%c0_15, %c0_16, %c0_17], %26 {strides = array<i32>} : memref<1x4x96xf32, #tpu.memory_space<vmem>>, vector<1x4x96xf32>,
    return
  }
  func.func @transform_0(%arg0: i32) -> (i32, i32, i32) {
    %c0_i32 = arith.constant 0 : i32
    %c0_i32_0 = arith.constant 0 : i32
    %c0_i32_1 = arith.constant 0 : i32
    return %arg0, %c0_i32, %c0_i32_0 : i32, i32, i32
  }
  func.func @transform_1(%arg0: i32) -> (i32, i32, i32) {
    %c0_i32 = arith.constant 0 : i32
    %c0_i32_0 = arith.constant 0 : i32
    %c0_i32_1 = arith.constant 0 : i32
    %c0_i32_2 = arith.constant 0 : i32
    return %c0_i32, %c0_i32_0, %c0_i32_1 : i32, i32, i32
  }
  func.func @transform_2(%arg0: i32) -> (i32, i32) {
    %c0_i32 = arith.constant 0 : i32
    %c0_i32_0 = arith.constant 0 : i32
    %c0_i32_1 = arith.constant 0 : i32
    return %c0_i32, %c0_i32_0 : i32, i32
  }
  func.func @transform_3(%arg0: i32) -> (i32, i32, i32) {
    %c0_i32 = arith.constant 0 : i32
    %c0_i32_0 = arith.constant 0 : i32
    %c0_i32_1 = arith.constant 0 : i32
    return %arg0, %c0_i32, %c0_i32_0 : i32, i32, i32
  }
}

module attributes {stable_mosaic.version = 11 : i64} {
  func.func @_fc_mask_kernel(%arg0: i32, %arg1: memref<6x192xf32, #tpu.memory_space<vmem>>, %arg2: memref<192x256xbf16, #tpu.memory_space<vmem>>, %arg3: memref<1x256xf32, #tpu.memory_space<vmem>>, %arg4: memref<6x10xf32, #tpu.memory_space<vmem>>, %arg5: memref<10x256xbf16, #tpu.memory_space<vmem>>, %arg6: memref<6x256xf32, #tpu.memory_space<vmem>>) attributes {dimension_semantics = [#tpu.dimension_semantics<arbitrary>], iteration_bounds = array<i64: 1>, scalar_prefetch = 0 : i64, scratch_operands = 0 : i64, tpu.core_type = #tpu.core_type<tc>, window_params = [{pipeline_mode = #tpu.pipeline_mode<synchronous>, transform_indices = @transform_0, window_bounds = array<i64: 6, 192>}, {pipeline_mode = #tpu.pipeline_mode<synchronous>, transform_indices = @transform_1, window_bounds = array<i64: 192, 256>}, {pipeline_mode = #tpu.pipeline_mode<synchronous>, transform_indices = @transform_2, window_bounds = array<i64: 1, 256>}, {pipeline_mode = #tpu.pipeline_mode<synchronous>, transform_indices = @transform_3, window_bounds = array<i64: 6, 10>}, {pipeline_mode = #tpu.pipeline_mode<synchronous>, transform_indices = @transform_4, window_bounds = array<i64: 10, 256>}, {pipeline_mode = #tpu.pipeline_mode<synchronous>, transform_indices = @transform_5, window_bounds = array<i64: 6, 256>}]} {
    %c0 = arith.constant 0 : index
    %c0_0 = arith.constant 0 : index
    %0 = vector.load %arg1[%c0, %c0_0] : memref<6x192xf32, #tpu.memory_space<vmem>>, vector<6x192xf32>
    %1 = arith.truncf %0 : vector<6x192xf32> to vector<6x192xbf16>
    %c0_1 = arith.constant 0 : index
    %c0_2 = arith.constant 0 : index
    %2 = vector.load %arg2[%c0_1, %c0_2] : memref<192x256xbf16, #tpu.memory_space<vmem>>, vector<192x256xbf16>
    %cst = arith.constant dense<0.000000e+00> : vector<6x256xf32>
    %3 = tpu.matmul %1, %2, %cst {dimension_numbers = #tpu.dot_dimension_numbers<[1], [0], [0], [1], [0, 0, 1, 1], [], []>} : vector<6x192xbf16>, vector<192x256xbf16>, vector<6x256xf32> -> vector<6x256xf32>
    %c0_3 = arith.constant 0 : index
    %c0_4 = arith.constant 0 : index
    %4 = vector.load %arg3[%c0_3, %c0_4] : memref<1x256xf32, #tpu.memory_space<vmem>>, vector<1x256xf32>
    %5 = vector.broadcast %4 : vector<1x256xf32> to vector<6x256xf32>
    %6 = arith.addf %3, %5 : vector<6x256xf32>
    %c0_5 = arith.constant 0 : index
    %c0_6 = arith.constant 0 : index
    %7 = vector.load %arg4[%c0_5, %c0_6] : memref<6x10xf32, #tpu.memory_space<vmem>>, vector<6x10xf32>
    %8 = arith.truncf %7 : vector<6x10xf32> to vector<6x10xbf16>
    %c0_7 = arith.constant 0 : index
    %c0_8 = arith.constant 0 : index
    %9 = vector.load %arg5[%c0_7, %c0_8] : memref<10x256xbf16, #tpu.memory_space<vmem>>, vector<10x256xbf16>
    %cst_9 = arith.constant dense<0.000000e+00> : vector<6x256xf32>
    %10 = tpu.matmul %8, %9, %cst_9 {dimension_numbers = #tpu.dot_dimension_numbers<[1], [0], [0], [1], [0, 0, 1, 1], [], []>} : vector<6x10xbf16>, vector<10x256xbf16>, vector<6x256xf32> -> vector<6x256xf32>
    %cst_10 = arith.constant 0.000000e+00 : f32
    %11 = vector.broadcast %cst_10 : f32 to vector<6x256xf32>
    %12 = arith.maximumf %10, %11 : vector<6x256xf32>
    %13 = arith.mulf %6, %12 : vector<6x256xf32>
    %c0_11 = arith.constant 0 : index
    %c0_12 = arith.constant 0 : index
    %14 = vector.load %arg6[%c0_11, %c0_12] : memref<6x256xf32, #tpu.memory_space<vmem>>, vector<6x256xf32>
    tpu.vector_store %arg6[%c0_11, %c0_12], %13 {strides = array<i32>} : memref<6x256xf32, #tpu.memory_space<vmem>>, vector<6x256xf32>,
    return
  }
  func.func @transform_0(%arg0: i32) -> (i32, i32) {
    %c0_i32 = arith.constant 0 : i32
    %c0_i32_0 = arith.constant 0 : i32
    %c0_i32_1 = arith.constant 0 : i32
    return %c0_i32, %c0_i32_0 : i32, i32
  }
  func.func @transform_1(%arg0: i32) -> (i32, i32) {
    %c0_i32 = arith.constant 0 : i32
    %c0_i32_0 = arith.constant 0 : i32
    %c0_i32_1 = arith.constant 0 : i32
    return %c0_i32, %c0_i32_0 : i32, i32
  }
  func.func @transform_2(%arg0: i32) -> (i32, i32) {
    %c0_i32 = arith.constant 0 : i32
    %c0_i32_0 = arith.constant 0 : i32
    %c0_i32_1 = arith.constant 0 : i32
    return %c0_i32, %c0_i32_0 : i32, i32
  }
  func.func @transform_3(%arg0: i32) -> (i32, i32) {
    %c0_i32 = arith.constant 0 : i32
    %c0_i32_0 = arith.constant 0 : i32
    %c0_i32_1 = arith.constant 0 : i32
    return %c0_i32, %c0_i32_0 : i32, i32
  }
  func.func @transform_4(%arg0: i32) -> (i32, i32) {
    %c0_i32 = arith.constant 0 : i32
    %c0_i32_0 = arith.constant 0 : i32
    %c0_i32_1 = arith.constant 0 : i32
    return %c0_i32, %c0_i32_0 : i32, i32
  }
  func.func @transform_5(%arg0: i32) -> (i32, i32) {
    %c0_i32 = arith.constant 0 : i32
    %c0_i32_0 = arith.constant 0 : i32
    %c0_i32_1 = arith.constant 0 : i32
    return %c0_i32, %c0_i32_0 : i32, i32
  }
}

module attributes {stable_mosaic.version = 11 : i64} {
  func.func @_transformer_kernel(%arg0: i32, %arg1: memref<6x256xf32, #tpu.memory_space<vmem>>, %arg2: memref<256x256xbf16, #tpu.memory_space<vmem>>, %arg3: memref<1x256xf32, #tpu.memory_space<vmem>>, %arg4: memref<2x256x256xbf16, #tpu.memory_space<vmem>>, %arg5: memref<2x1x256xf32, #tpu.memory_space<vmem>>, %arg6: memref<2x256x256xbf16, #tpu.memory_space<vmem>>, %arg7: memref<2x1x256xf32, #tpu.memory_space<vmem>>, %arg8: memref<2x1x256xf32, #tpu.memory_space<vmem>>, %arg9: memref<2x1x256xf32, #tpu.memory_space<vmem>>, %arg10: memref<2x256x512xbf16, #tpu.memory_space<vmem>>, %arg11: memref<2x1x512xf32, #tpu.memory_space<vmem>>, %arg12: memref<2x512x256xbf16, #tpu.memory_space<vmem>>, %arg13: memref<2x1x256xf32, #tpu.memory_space<vmem>>, %arg14: memref<2x1x256xf32, #tpu.memory_space<vmem>>, %arg15: memref<2x1x256xf32, #tpu.memory_space<vmem>>, %arg16: memref<6x256xf32, #tpu.memory_space<vmem>>) attributes {dimension_semantics = [#tpu.dimension_semantics<arbitrary>], iteration_bounds = array<i64: 1>, scalar_prefetch = 0 : i64, scratch_operands = 0 : i64, tpu.core_type = #tpu.core_type<tc>, window_params = [{pipeline_mode = #tpu.pipeline_mode<synchronous>, transform_indices = @transform_0, window_bounds = array<i64: 6, 256>}, {pipeline_mode = #tpu.pipeline_mode<synchronous>, transform_indices = @transform_1, window_bounds = array<i64: 256, 256>}, {pipeline_mode = #tpu.pipeline_mode<synchronous>, transform_indices = @transform_2, window_bounds = array<i64: 1, 256>}, {pipeline_mode = #tpu.pipeline_mode<synchronous>, transform_indices = @transform_3, window_bounds = array<i64: 2, 256, 256>}, {pipeline_mode = #tpu.pipeline_mode<synchronous>, transform_indices = @transform_4, window_bounds = array<i64: 2, 1, 256>}, {pipeline_mode = #tpu.pipeline_mode<synchronous>, transform_indices = @transform_5, window_bounds = array<i64: 2, 256, 256>}, {pipeline_mode = #tpu.pipeline_mode<synchronous>, transform_indices = @transform_6, window_bounds = array<i64: 2, 1, 256>}, {pipeline_mode = #tpu.pipeline_mode<synchronous>, transform_indices = @transform_7, window_bounds = array<i64: 2, 1, 256>}, {pipeline_mode = #tpu.pipeline_mode<synchronous>, transform_indices = @transform_8, window_bounds = array<i64: 2, 1, 256>}, {pipeline_mode = #tpu.pipeline_mode<synchronous>, transform_indices = @transform_9, window_bounds = array<i64: 2, 256, 512>}, {pipeline_mode = #tpu.pipeline_mode<synchronous>, transform_indices = @transform_10, window_bounds = array<i64: 2, 1, 512>}, {pipeline_mode = #tpu.pipeline_mode<synchronous>, transform_indices = @transform_11, window_bounds = array<i64: 2, 512, 256>}, {pipeline_mode = #tpu.pipeline_mode<synchronous>, transform_indices = @transform_12, window_bounds = array<i64: 2, 1, 256>}, {pipeline_mode = #tpu.pipeline_mode<synchronous>, transform_indices = @transform_13, window_bounds = array<i64: 2, 1, 256>}, {pipeline_mode = #tpu.pipeline_mode<synchronous>, transform_indices = @transform_14, window_bounds = array<i64: 2, 1, 256>}, {pipeline_mode = #tpu.pipeline_mode<synchronous>, transform_indices = @transform_15, window_bounds = array<i64: 6, 256>}]} {
    %c0 = arith.constant 0 : index
    %c0_0 = arith.constant 0 : index
    %0 = vector.load %arg1[%c0, %c0_0] : memref<6x256xf32, #tpu.memory_space<vmem>>, vector<6x256xf32>
    %1 = arith.truncf %0 : vector<6x256xf32> to vector<6x256xbf16>
    %c0_1 = arith.constant 0 : index
    %c0_2 = arith.constant 0 : index
    %2 = vector.load %arg2[%c0_1, %c0_2] : memref<256x256xbf16, #tpu.memory_space<vmem>>, vector<256x256xbf16>
    %cst = arith.constant dense<0.000000e+00> : vector<6x256xf32>
    %3 = tpu.matmul %1, %2, %cst {dimension_numbers = #tpu.dot_dimension_numbers<[1], [0], [0], [1], [0, 0, 1, 1], [], []>} : vector<6x256xbf16>, vector<256x256xbf16>, vector<6x256xf32> -> vector<6x256xf32>
    %c0_3 = arith.constant 0 : index
    %c0_4 = arith.constant 0 : index
    %4 = vector.load %arg3[%c0_3, %c0_4] : memref<1x256xf32, #tpu.memory_space<vmem>>, vector<1x256xf32>
    %5 = vector.broadcast %4 : vector<1x256xf32> to vector<6x256xf32>
    %6 = arith.addf %3, %5 : vector<6x256xf32>
    %7 = arith.truncf %0 : vector<6x256xf32> to vector<6x256xbf16>
    %c0_5 = arith.constant 0 : index
    %c0_6 = arith.constant 0 : index
    %c0_7 = arith.constant 0 : index
    %8 = vector.load %arg4[%c0_5, %c0_6, %c0_7] : memref<2x256x256xbf16, #tpu.memory_space<vmem>>, vector<1x256x256xbf16>
    %9 = vector.shape_cast %8 : vector<1x256x256xbf16> to vector<256x256xbf16>
    %cst_8 = arith.constant dense<0.000000e+00> : vector<6x256xf32>
    %10 = tpu.matmul %7, %9, %cst_8 {dimension_numbers = #tpu.dot_dimension_numbers<[1], [0], [0], [1], [0, 0, 1, 1], [], []>} : vector<6x256xbf16>, vector<256x256xbf16>, vector<6x256xf32> -> vector<6x256xf32>
    %c0_9 = arith.constant 0 : index
    %c0_10 = arith.constant 0 : index
    %c0_11 = arith.constant 0 : index
    %11 = vector.load %arg5[%c0_9, %c0_10, %c0_11] : memref<2x1x256xf32, #tpu.memory_space<vmem>>, vector<1x1x256xf32>
    %12 = vector.shape_cast %11 : vector<1x1x256xf32> to vector<1x256xf32>
    %13 = vector.broadcast %12 : vector<1x256xf32> to vector<6x256xf32>
    %14 = arith.addf %10, %13 : vector<6x256xf32>
    %15 = arith.truncf %14 : vector<6x256xf32> to vector<6x256xbf16>
    %c0_12 = arith.constant 0 : index
    %c0_13 = arith.constant 0 : index
    %c0_14 = arith.constant 0 : index
    %16 = vector.load %arg6[%c0_12, %c0_13, %c0_14] : memref<2x256x256xbf16, #tpu.memory_space<vmem>>, vector<1x256x256xbf16>
    %17 = vector.shape_cast %16 : vector<1x256x256xbf16> to vector<256x256xbf16>
    %cst_15 = arith.constant dense<0.000000e+00> : vector<6x256xf32>
    %18 = tpu.matmul %15, %17, %cst_15 {dimension_numbers = #tpu.dot_dimension_numbers<[1], [0], [0], [1], [0, 0, 1, 1], [], []>} : vector<6x256xbf16>, vector<256x256xbf16>, vector<6x256xf32> -> vector<6x256xf32>
    %c0_16 = arith.constant 0 : index
    %c0_17 = arith.constant 0 : index
    %c0_18 = arith.constant 0 : index
    %19 = vector.load %arg7[%c0_16, %c0_17, %c0_18] : memref<2x1x256xf32, #tpu.memory_space<vmem>>, vector<1x1x256xf32>
    %20 = vector.shape_cast %19 : vector<1x1x256xf32> to vector<1x256xf32>
    %21 = vector.broadcast %20 : vector<1x256xf32> to vector<6x256xf32>
    %22 = arith.addf %18, %21 : vector<6x256xf32>
    %23 = arith.addf %0, %22 : vector<6x256xf32>
    %c0_19 = arith.constant 0 : index
    %c0_20 = arith.constant 0 : index
    %c0_21 = arith.constant 0 : index
    %24 = vector.load %arg8[%c0_19, %c0_20, %c0_21] : memref<2x1x256xf32, #tpu.memory_space<vmem>>, vector<1x1x256xf32>
    %25 = vector.shape_cast %24 : vector<1x1x256xf32> to vector<1x256xf32>
    %c0_22 = arith.constant 0 : index
    %c0_23 = arith.constant 0 : index
    %c0_24 = arith.constant 0 : index
    %26 = vector.load %arg9[%c0_22, %c0_23, %c0_24] : memref<2x1x256xf32, #tpu.memory_space<vmem>>, vector<1x1x256xf32>
    %27 = vector.shape_cast %26 : vector<1x1x256xf32> to vector<1x256xf32>
    %cst_25 = arith.constant dense<0.000000e+00> : vector<6xf32>
    %28 = vector.multi_reduction <add>, %23, %cst_25 [1] : vector<6x256xf32> to vector<6xf32>
    %29 = vector.shape_cast %28 : vector<6xf32> to vector<6x1xf32>
    %cst_26 = arith.constant 2.560000e+02 : f32
    %30 = vector.broadcast %cst_26 : f32 to vector<6x1xf32>
    %31 = arith.divf %29, %30 : vector<6x1xf32>
    %32 = vector.broadcast %31 : vector<6x1xf32> to vector<6x256xf32>
    %33 = arith.subf %23, %32 : vector<6x256xf32>
    %34 = arith.mulf %33, %33 : vector<6x256xf32>
    %cst_27 = arith.constant dense<0.000000e+00> : vector<6xf32>
    %35 = vector.multi_reduction <add>, %34, %cst_27 [1] : vector<6x256xf32> to vector<6xf32>
    %36 = vector.shape_cast %35 : vector<6xf32> to vector<6x1xf32>
    %cst_28 = arith.constant 2.560000e+02 : f32
    %37 = vector.broadcast %cst_28 : f32 to vector<6x1xf32>
    %38 = arith.divf %36, %37 : vector<6x1xf32>
    %39 = vector.broadcast %31 : vector<6x1xf32> to vector<6x256xf32>
    %40 = arith.subf %23, %39 : vector<6x256xf32>
    %cst_29 = arith.constant 9.99999974E-6 : f32
    %41 = vector.broadcast %cst_29 : f32 to vector<6x1xf32>
    %42 = arith.addf %38, %41 : vector<6x1xf32>
    %43 = math.rsqrt %42 : vector<6x1xf32>
    %44 = vector.broadcast %43 : vector<6x1xf32> to vector<6x256xf32>
    %45 = arith.mulf %40, %44 : vector<6x256xf32>
    %46 = vector.broadcast %25 : vector<1x256xf32> to vector<6x256xf32>
    %47 = arith.mulf %45, %46 : vector<6x256xf32>
    %48 = vector.broadcast %27 : vector<1x256xf32> to vector<6x256xf32>
    %49 = arith.addf %47, %48 : vector<6x256xf32>
    %50 = arith.truncf %49 : vector<6x256xf32> to vector<6x256xbf16>
    %c0_30 = arith.constant 0 : index
    %c0_31 = arith.constant 0 : index
    %c0_32 = arith.constant 0 : index
    %51 = vector.load %arg10[%c0_30, %c0_31, %c0_32] : memref<2x256x512xbf16, #tpu.memory_space<vmem>>, vector<1x256x512xbf16>
    %52 = vector.shape_cast %51 : vector<1x256x512xbf16> to vector<256x512xbf16>
    %cst_33 = arith.constant dense<0.000000e+00> : vector<6x512xf32>
    %53 = tpu.matmul %50, %52, %cst_33 {dimension_numbers = #tpu.dot_dimension_numbers<[1], [0], [0], [1], [0, 0, 1, 1], [], []>} : vector<6x256xbf16>, vector<256x512xbf16>, vector<6x512xf32> -> vector<6x512xf32>
    %c0_34 = arith.constant 0 : index
    %c0_35 = arith.constant 0 : index
    %c0_36 = arith.constant 0 : index
    %54 = vector.load %arg11[%c0_34, %c0_35, %c0_36] : memref<2x1x512xf32, #tpu.memory_space<vmem>>, vector<1x1x512xf32>
    %55 = vector.shape_cast %54 : vector<1x1x512xf32> to vector<1x512xf32>
    %56 = vector.broadcast %55 : vector<1x512xf32> to vector<6x512xf32>
    %57 = arith.addf %53, %56 : vector<6x512xf32>
    %cst_37 = arith.constant 0.000000e+00 : f32
    %58 = vector.broadcast %cst_37 : f32 to vector<6x512xf32>
    %59 = arith.maximumf %57, %58 : vector<6x512xf32>
    %60 = arith.truncf %59 : vector<6x512xf32> to vector<6x512xbf16>
    %c0_38 = arith.constant 0 : index
    %c0_39 = arith.constant 0 : index
    %c0_40 = arith.constant 0 : index
    %61 = vector.load %arg12[%c0_38, %c0_39, %c0_40] : memref<2x512x256xbf16, #tpu.memory_space<vmem>>, vector<1x512x256xbf16>
    %62 = vector.shape_cast %61 : vector<1x512x256xbf16> to vector<512x256xbf16>
    %cst_41 = arith.constant dense<0.000000e+00> : vector<6x256xf32>
    %63 = tpu.matmul %60, %62, %cst_41 {dimension_numbers = #tpu.dot_dimension_numbers<[1], [0], [0], [1], [0, 0, 1, 1], [], []>} : vector<6x512xbf16>, vector<512x256xbf16>, vector<6x256xf32> -> vector<6x256xf32>
    %c0_42 = arith.constant 0 : index
    %c0_43 = arith.constant 0 : index
    %c0_44 = arith.constant 0 : index
    %64 = vector.load %arg13[%c0_42, %c0_43, %c0_44] : memref<2x1x256xf32, #tpu.memory_space<vmem>>, vector<1x1x256xf32>
    %65 = vector.shape_cast %64 : vector<1x1x256xf32> to vector<1x256xf32>
    %66 = vector.broadcast %65 : vector<1x256xf32> to vector<6x256xf32>
    %67 = arith.addf %63, %66 : vector<6x256xf32>
    %68 = arith.addf %49, %67 : vector<6x256xf32>
    %c0_45 = arith.constant 0 : index
    %c0_46 = arith.constant 0 : index
    %c0_47 = arith.constant 0 : index
    %69 = vector.load %arg14[%c0_45, %c0_46, %c0_47] : memref<2x1x256xf32, #tpu.memory_space<vmem>>, vector<1x1x256xf32>
    %70 = vector.shape_cast %69 : vector<1x1x256xf32> to vector<1x256xf32>
    %c0_48 = arith.constant 0 : index
    %c0_49 = arith.constant 0 : index
    %c0_50 = arith.constant 0 : index
    %71 = vector.load %arg15[%c0_48, %c0_49, %c0_50] : memref<2x1x256xf32, #tpu.memory_space<vmem>>, vector<1x1x256xf32>
    %72 = vector.shape_cast %71 : vector<1x1x256xf32> to vector<1x256xf32>
    %cst_51 = arith.constant dense<0.000000e+00> : vector<6xf32>
    %73 = vector.multi_reduction <add>, %68, %cst_51 [1] : vector<6x256xf32> to vector<6xf32>
    %74 = vector.shape_cast %73 : vector<6xf32> to vector<6x1xf32>
    %cst_52 = arith.constant 2.560000e+02 : f32
    %75 = vector.broadcast %cst_52 : f32 to vector<6x1xf32>
    %76 = arith.divf %74, %75 : vector<6x1xf32>
    %77 = vector.broadcast %76 : vector<6x1xf32> to vector<6x256xf32>
    %78 = arith.subf %68, %77 : vector<6x256xf32>
    %79 = arith.mulf %78, %78 : vector<6x256xf32>
    %cst_53 = arith.constant dense<0.000000e+00> : vector<6xf32>
    %80 = vector.multi_reduction <add>, %79, %cst_53 [1] : vector<6x256xf32> to vector<6xf32>
    %81 = vector.shape_cast %80 : vector<6xf32> to vector<6x1xf32>
    %cst_54 = arith.constant 2.560000e+02 : f32
    %82 = vector.broadcast %cst_54 : f32 to vector<6x1xf32>
    %83 = arith.divf %81, %82 : vector<6x1xf32>
    %84 = vector.broadcast %76 : vector<6x1xf32> to vector<6x256xf32>
    %85 = arith.subf %68, %84 : vector<6x256xf32>
    %cst_55 = arith.constant 9.99999974E-6 : f32
    %86 = vector.broadcast %cst_55 : f32 to vector<6x1xf32>
    %87 = arith.addf %83, %86 : vector<6x1xf32>
    %88 = math.rsqrt %87 : vector<6x1xf32>
    %89 = vector.broadcast %88 : vector<6x1xf32> to vector<6x256xf32>
    %90 = arith.mulf %85, %89 : vector<6x256xf32>
    %91 = vector.broadcast %70 : vector<1x256xf32> to vector<6x256xf32>
    %92 = arith.mulf %90, %91 : vector<6x256xf32>
    %93 = vector.broadcast %72 : vector<1x256xf32> to vector<6x256xf32>
    %94 = arith.addf %92, %93 : vector<6x256xf32>
    %95 = arith.truncf %94 : vector<6x256xf32> to vector<6x256xbf16>
    %c1 = arith.constant 1 : index
    %c0_56 = arith.constant 0 : index
    %c0_57 = arith.constant 0 : index
    %96 = vector.load %arg4[%c1, %c0_56, %c0_57] : memref<2x256x256xbf16, #tpu.memory_space<vmem>>, vector<1x256x256xbf16>
    %97 = vector.shape_cast %96 : vector<1x256x256xbf16> to vector<256x256xbf16>
    %cst_58 = arith.constant dense<0.000000e+00> : vector<6x256xf32>
    %98 = tpu.matmul %95, %97, %cst_58 {dimension_numbers = #tpu.dot_dimension_numbers<[1], [0], [0], [1], [0, 0, 1, 1], [], []>} : vector<6x256xbf16>, vector<256x256xbf16>, vector<6x256xf32> -> vector<6x256xf32>
    %c1_59 = arith.constant 1 : index
    %c0_60 = arith.constant 0 : index
    %c0_61 = arith.constant 0 : index
    %99 = vector.load %arg5[%c1_59, %c0_60, %c0_61] : memref<2x1x256xf32, #tpu.memory_space<vmem>>, vector<1x1x256xf32>
    %100 = vector.shape_cast %99 : vector<1x1x256xf32> to vector<1x256xf32>
    %101 = vector.broadcast %100 : vector<1x256xf32> to vector<6x256xf32>
    %102 = arith.addf %98, %101 : vector<6x256xf32>
    %103 = arith.truncf %102 : vector<6x256xf32> to vector<6x256xbf16>
    %c1_62 = arith.constant 1 : index
    %c0_63 = arith.constant 0 : index
    %c0_64 = arith.constant 0 : index
    %104 = vector.load %arg6[%c1_62, %c0_63, %c0_64] : memref<2x256x256xbf16, #tpu.memory_space<vmem>>, vector<1x256x256xbf16>
    %105 = vector.shape_cast %104 : vector<1x256x256xbf16> to vector<256x256xbf16>
    %cst_65 = arith.constant dense<0.000000e+00> : vector<6x256xf32>
    %106 = tpu.matmul %103, %105, %cst_65 {dimension_numbers = #tpu.dot_dimension_numbers<[1], [0], [0], [1], [0, 0, 1, 1], [], []>} : vector<6x256xbf16>, vector<256x256xbf16>, vector<6x256xf32> -> vector<6x256xf32>
    %c1_66 = arith.constant 1 : index
    %c0_67 = arith.constant 0 : index
    %c0_68 = arith.constant 0 : index
    %107 = vector.load %arg7[%c1_66, %c0_67, %c0_68] : memref<2x1x256xf32, #tpu.memory_space<vmem>>, vector<1x1x256xf32>
    %108 = vector.shape_cast %107 : vector<1x1x256xf32> to vector<1x256xf32>
    %109 = vector.broadcast %108 : vector<1x256xf32> to vector<6x256xf32>
    %110 = arith.addf %106, %109 : vector<6x256xf32>
    %111 = arith.addf %94, %110 : vector<6x256xf32>
    %c1_69 = arith.constant 1 : index
    %c0_70 = arith.constant 0 : index
    %c0_71 = arith.constant 0 : index
    %112 = vector.load %arg8[%c1_69, %c0_70, %c0_71] : memref<2x1x256xf32, #tpu.memory_space<vmem>>, vector<1x1x256xf32>
    %113 = vector.shape_cast %112 : vector<1x1x256xf32> to vector<1x256xf32>
    %c1_72 = arith.constant 1 : index
    %c0_73 = arith.constant 0 : index
    %c0_74 = arith.constant 0 : index
    %114 = vector.load %arg9[%c1_72, %c0_73, %c0_74] : memref<2x1x256xf32, #tpu.memory_space<vmem>>, vector<1x1x256xf32>
    %115 = vector.shape_cast %114 : vector<1x1x256xf32> to vector<1x256xf32>
    %cst_75 = arith.constant dense<0.000000e+00> : vector<6xf32>
    %116 = vector.multi_reduction <add>, %111, %cst_75 [1] : vector<6x256xf32> to vector<6xf32>
    %117 = vector.shape_cast %116 : vector<6xf32> to vector<6x1xf32>
    %cst_76 = arith.constant 2.560000e+02 : f32
    %118 = vector.broadcast %cst_76 : f32 to vector<6x1xf32>
    %119 = arith.divf %117, %118 : vector<6x1xf32>
    %120 = vector.broadcast %119 : vector<6x1xf32> to vector<6x256xf32>
    %121 = arith.subf %111, %120 : vector<6x256xf32>
    %122 = arith.mulf %121, %121 : vector<6x256xf32>
    %cst_77 = arith.constant dense<0.000000e+00> : vector<6xf32>
    %123 = vector.multi_reduction <add>, %122, %cst_77 [1] : vector<6x256xf32> to vector<6xf32>
    %124 = vector.shape_cast %123 : vector<6xf32> to vector<6x1xf32>
    %cst_78 = arith.constant 2.560000e+02 : f32
    %125 = vector.broadcast %cst_78 : f32 to vector<6x1xf32>
    %126 = arith.divf %124, %125 : vector<6x1xf32>
    %127 = vector.broadcast %119 : vector<6x1xf32> to vector<6x256xf32>
    %128 = arith.subf %111, %127 : vector<6x256xf32>
    %cst_79 = arith.constant 9.99999974E-6 : f32
    %129 = vector.broadcast %cst_79 : f32 to vector<6x1xf32>
    %130 = arith.addf %126, %129 : vector<6x1xf32>
    %131 = math.rsqrt %130 : vector<6x1xf32>
    %132 = vector.broadcast %131 : vector<6x1xf32> to vector<6x256xf32>
    %133 = arith.mulf %128, %132 : vector<6x256xf32>
    %134 = vector.broadcast %113 : vector<1x256xf32> to vector<6x256xf32>
    %135 = arith.mulf %133, %134 : vector<6x256xf32>
    %136 = vector.broadcast %115 : vector<1x256xf32> to vector<6x256xf32>
    %137 = arith.addf %135, %136 : vector<6x256xf32>
    %138 = arith.truncf %137 : vector<6x256xf32> to vector<6x256xbf16>
    %c1_80 = arith.constant 1 : index
    %c0_81 = arith.constant 0 : index
    %c0_82 = arith.constant 0 : index
    %139 = vector.load %arg10[%c1_80, %c0_81, %c0_82] : memref<2x256x512xbf16, #tpu.memory_space<vmem>>, vector<1x256x512xbf16>
    %140 = vector.shape_cast %139 : vector<1x256x512xbf16> to vector<256x512xbf16>
    %cst_83 = arith.constant dense<0.000000e+00> : vector<6x512xf32>
    %141 = tpu.matmul %138, %140, %cst_83 {dimension_numbers = #tpu.dot_dimension_numbers<[1], [0], [0], [1], [0, 0, 1, 1], [], []>} : vector<6x256xbf16>, vector<256x512xbf16>, vector<6x512xf32> -> vector<6x512xf32>
    %c1_84 = arith.constant 1 : index
    %c0_85 = arith.constant 0 : index
    %c0_86 = arith.constant 0 : index
    %142 = vector.load %arg11[%c1_84, %c0_85, %c0_86] : memref<2x1x512xf32, #tpu.memory_space<vmem>>, vector<1x1x512xf32>
    %143 = vector.shape_cast %142 : vector<1x1x512xf32> to vector<1x512xf32>
    %144 = vector.broadcast %143 : vector<1x512xf32> to vector<6x512xf32>
    %145 = arith.addf %141, %144 : vector<6x512xf32>
    %cst_87 = arith.constant 0.000000e+00 : f32
    %146 = vector.broadcast %cst_87 : f32 to vector<6x512xf32>
    %147 = arith.maximumf %145, %146 : vector<6x512xf32>
    %148 = arith.truncf %147 : vector<6x512xf32> to vector<6x512xbf16>
    %c1_88 = arith.constant 1 : index
    %c0_89 = arith.constant 0 : index
    %c0_90 = arith.constant 0 : index
    %149 = vector.load %arg12[%c1_88, %c0_89, %c0_90] : memref<2x512x256xbf16, #tpu.memory_space<vmem>>, vector<1x512x256xbf16>
    %150 = vector.shape_cast %149 : vector<1x512x256xbf16> to vector<512x256xbf16>
    %cst_91 = arith.constant dense<0.000000e+00> : vector<6x256xf32>
    %151 = tpu.matmul %148, %150, %cst_91 {dimension_numbers = #tpu.dot_dimension_numbers<[1], [0], [0], [1], [0, 0, 1, 1], [], []>} : vector<6x512xbf16>, vector<512x256xbf16>, vector<6x256xf32> -> vector<6x256xf32>
    %c1_92 = arith.constant 1 : index
    %c0_93 = arith.constant 0 : index
    %c0_94 = arith.constant 0 : index
    %152 = vector.load %arg13[%c1_92, %c0_93, %c0_94] : memref<2x1x256xf32, #tpu.memory_space<vmem>>, vector<1x1x256xf32>
    %153 = vector.shape_cast %152 : vector<1x1x256xf32> to vector<1x256xf32>
    %154 = vector.broadcast %153 : vector<1x256xf32> to vector<6x256xf32>
    %155 = arith.addf %151, %154 : vector<6x256xf32>
    %156 = arith.addf %137, %155 : vector<6x256xf32>
    %c1_95 = arith.constant 1 : index
    %c0_96 = arith.constant 0 : index
    %c0_97 = arith.constant 0 : index
    %157 = vector.load %arg14[%c1_95, %c0_96, %c0_97] : memref<2x1x256xf32, #tpu.memory_space<vmem>>, vector<1x1x256xf32>
    %158 = vector.shape_cast %157 : vector<1x1x256xf32> to vector<1x256xf32>
    %c1_98 = arith.constant 1 : index
    %c0_99 = arith.constant 0 : index
    %c0_100 = arith.constant 0 : index
    %159 = vector.load %arg15[%c1_98, %c0_99, %c0_100] : memref<2x1x256xf32, #tpu.memory_space<vmem>>, vector<1x1x256xf32>
    %160 = vector.shape_cast %159 : vector<1x1x256xf32> to vector<1x256xf32>
    %cst_101 = arith.constant dense<0.000000e+00> : vector<6xf32>
    %161 = vector.multi_reduction <add>, %156, %cst_101 [1] : vector<6x256xf32> to vector<6xf32>
    %162 = vector.shape_cast %161 : vector<6xf32> to vector<6x1xf32>
    %cst_102 = arith.constant 2.560000e+02 : f32
    %163 = vector.broadcast %cst_102 : f32 to vector<6x1xf32>
    %164 = arith.divf %162, %163 : vector<6x1xf32>
    %165 = vector.broadcast %164 : vector<6x1xf32> to vector<6x256xf32>
    %166 = arith.subf %156, %165 : vector<6x256xf32>
    %167 = arith.mulf %166, %166 : vector<6x256xf32>
    %cst_103 = arith.constant dense<0.000000e+00> : vector<6xf32>
    %168 = vector.multi_reduction <add>, %167, %cst_103 [1] : vector<6x256xf32> to vector<6xf32>
    %169 = vector.shape_cast %168 : vector<6xf32> to vector<6x1xf32>
    %cst_104 = arith.constant 2.560000e+02 : f32
    %170 = vector.broadcast %cst_104 : f32 to vector<6x1xf32>
    %171 = arith.divf %169, %170 : vector<6x1xf32>
    %172 = vector.broadcast %164 : vector<6x1xf32> to vector<6x256xf32>
    %173 = arith.subf %156, %172 : vector<6x256xf32>
    %cst_105 = arith.constant 9.99999974E-6 : f32
    %174 = vector.broadcast %cst_105 : f32 to vector<6x1xf32>
    %175 = arith.addf %171, %174 : vector<6x1xf32>
    %176 = math.rsqrt %175 : vector<6x1xf32>
    %177 = vector.broadcast %176 : vector<6x1xf32> to vector<6x256xf32>
    %178 = arith.mulf %173, %177 : vector<6x256xf32>
    %179 = vector.broadcast %158 : vector<1x256xf32> to vector<6x256xf32>
    %180 = arith.mulf %178, %179 : vector<6x256xf32>
    %181 = vector.broadcast %160 : vector<1x256xf32> to vector<6x256xf32>
    %182 = arith.addf %180, %181 : vector<6x256xf32>
    %183 = arith.addf %182, %6 : vector<6x256xf32>
    %cst_106 = arith.constant 0.000000e+00 : f32
    %184 = vector.broadcast %cst_106 : f32 to vector<6x256xf32>
    %185 = arith.maximumf %183, %184 : vector<6x256xf32>
    %c0_107 = arith.constant 0 : index
    %c0_108 = arith.constant 0 : index
    %186 = vector.load %arg16[%c0_107, %c0_108] : memref<6x256xf32, #tpu.memory_space<vmem>>, vector<6x256xf32>
    tpu.vector_store %arg16[%c0_107, %c0_108], %185 {strides = array<i32>} : memref<6x256xf32, #tpu.memory_space<vmem>>, vector<6x256xf32>,
    return
  }
  func.func @transform_0(%arg0: i32) -> (i32, i32) {
    %c0_i32 = arith.constant 0 : i32
    %c0_i32_0 = arith.constant 0 : i32
    %c0_i32_1 = arith.constant 0 : i32
    return %c0_i32, %c0_i32_0 : i32, i32
  }
  func.func @transform_1(%arg0: i32) -> (i32, i32) {
    %c0_i32 = arith.constant 0 : i32
    %c0_i32_0 = arith.constant 0 : i32
    %c0_i32_1 = arith.constant 0 : i32
    return %c0_i32, %c0_i32_0 : i32, i32
  }
  func.func @transform_2(%arg0: i32) -> (i32, i32) {
    %c0_i32 = arith.constant 0 : i32
    %c0_i32_0 = arith.constant 0 : i32
    %c0_i32_1 = arith.constant 0 : i32
    return %c0_i32, %c0_i32_0 : i32, i32
  }
  func.func @transform_3(%arg0: i32) -> (i32, i32, i32) {
    %c0_i32 = arith.constant 0 : i32
    %c0_i32_0 = arith.constant 0 : i32
    %c0_i32_1 = arith.constant 0 : i32
    %c0_i32_2 = arith.constant 0 : i32
    return %c0_i32, %c0_i32_0, %c0_i32_1 : i32, i32, i32
  }
  func.func @transform_4(%arg0: i32) -> (i32, i32, i32) {
    %c0_i32 = arith.constant 0 : i32
    %c0_i32_0 = arith.constant 0 : i32
    %c0_i32_1 = arith.constant 0 : i32
    %c0_i32_2 = arith.constant 0 : i32
    return %c0_i32, %c0_i32_0, %c0_i32_1 : i32, i32, i32
  }
  func.func @transform_5(%arg0: i32) -> (i32, i32, i32) {
    %c0_i32 = arith.constant 0 : i32
    %c0_i32_0 = arith.constant 0 : i32
    %c0_i32_1 = arith.constant 0 : i32
    %c0_i32_2 = arith.constant 0 : i32
    return %c0_i32, %c0_i32_0, %c0_i32_1 : i32, i32, i32
  }
  func.func @transform_6(%arg0: i32) -> (i32, i32, i32) {
    %c0_i32 = arith.constant 0 : i32
    %c0_i32_0 = arith.constant 0 : i32
    %c0_i32_1 = arith.constant 0 : i32
    %c0_i32_2 = arith.constant 0 : i32
    return %c0_i32, %c0_i32_0, %c0_i32_1 : i32, i32, i32
  }
  func.func @transform_7(%arg0: i32) -> (i32, i32, i32) {
    %c0_i32 = arith.constant 0 : i32
    %c0_i32_0 = arith.constant 0 : i32
    %c0_i32_1 = arith.constant 0 : i32
    %c0_i32_2 = arith.constant 0 : i32
    return %c0_i32, %c0_i32_0, %c0_i32_1 : i32, i32, i32
  }
  func.func @transform_8(%arg0: i32) -> (i32, i32, i32) {
    %c0_i32 = arith.constant 0 : i32
    %c0_i32_0 = arith.constant 0 : i32
    %c0_i32_1 = arith.constant 0 : i32
    %c0_i32_2 = arith.constant 0 : i32
    return %c0_i32, %c0_i32_0, %c0_i32_1 : i32, i32, i32
  }
  func.func @transform_9(%arg0: i32) -> (i32, i32, i32) {
    %c0_i32 = arith.constant 0 : i32
    %c0_i32_0 = arith.constant 0 : i32
    %c0_i32_1 = arith.constant 0 : i32
    %c0_i32_2 = arith.constant 0 : i32
    return %c0_i32, %c0_i32_0, %c0_i32_1 : i32, i32, i32
  }
  func.func @transform_10(%arg0: i32) -> (i32, i32, i32) {
    %c0_i32 = arith.constant 0 : i32
    %c0_i32_0 = arith.constant 0 : i32
    %c0_i32_1 = arith.constant 0 : i32
    %c0_i32_2 = arith.constant 0 : i32
    return %c0_i32, %c0_i32_0, %c0_i32_1 : i32, i32, i32
  }
  func.func @transform_11(%arg0: i32) -> (i32, i32, i32) {
    %c0_i32 = arith.constant 0 : i32
    %c0_i32_0 = arith.constant 0 : i32
    %c0_i32_1 = arith.constant 0 : i32
    %c0_i32_2 = arith.constant 0 : i32
    return %c0_i32, %c0_i32_0, %c0_i32_1 : i32, i32, i32
  }
  func.func @transform_12(%arg0: i32) -> (i32, i32, i32) {
    %c0_i32 = arith.constant 0 : i32
    %c0_i32_0 = arith.constant 0 : i32
    %c0_i32_1 = arith.constant 0 : i32
    %c0_i32_2 = arith.constant 0 : i32
    return %c0_i32, %c0_i32_0, %c0_i32_1 : i32, i32, i32
  }
  func.func @transform_13(%arg0: i32) -> (i32, i32, i32) {
    %c0_i32 = arith.constant 0 : i32
    %c0_i32_0 = arith.constant 0 : i32
    %c0_i32_1 = arith.constant 0 : i32
    %c0_i32_2 = arith.constant 0 : i32
    return %c0_i32, %c0_i32_0, %c0_i32_1 : i32, i32, i32
  }
  func.func @transform_14(%arg0: i32) -> (i32, i32, i32) {
    %c0_i32 = arith.constant 0 : i32
    %c0_i32_0 = arith.constant 0 : i32
    %c0_i32_1 = arith.constant 0 : i32
    %c0_i32_2 = arith.constant 0 : i32
    return %c0_i32, %c0_i32_0, %c0_i32_1 : i32, i32, i32
  }
  func.func @transform_15(%arg0: i32) -> (i32, i32) {
    %c0_i32 = arith.constant 0 : i32
    %c0_i32_0 = arith.constant 0 : i32
    %c0_i32_1 = arith.constant 0 : i32
    return %c0_i32, %c0_i32_0 : i32, i32
  }
}

module attributes {stable_mosaic.version = 11 : i64} {
  func.func @_multigat_kernel(%arg0: i32, %arg1: memref<6x256xf32, #tpu.memory_space<vmem>>, %arg2: memref<6x6xf32, #tpu.memory_space<vmem>>, %arg3: memref<256x256xbf16, #tpu.memory_space<vmem>>, %arg4: memref<1x256xf32, #tpu.memory_space<vmem>>, %arg5: memref<256x256xbf16, #tpu.memory_space<vmem>>, %arg6: memref<4x1x64xf32, #tpu.memory_space<vmem>>, %arg7: memref<4x1x64xf32, #tpu.memory_space<vmem>>, %arg8: memref<1x256xf32, #tpu.memory_space<vmem>>, %arg9: memref<256x256xbf16, #tpu.memory_space<vmem>>, %arg10: memref<4x1x64xf32, #tpu.memory_space<vmem>>, %arg11: memref<4x1x64xf32, #tpu.memory_space<vmem>>, %arg12: memref<1x256xf32, #tpu.memory_space<vmem>>, %arg13: memref<6x256xf32, #tpu.memory_space<vmem>>) attributes {dimension_semantics = [#tpu.dimension_semantics<arbitrary>], iteration_bounds = array<i64: 1>, scalar_prefetch = 0 : i64, scratch_operands = 0 : i64, tpu.core_type = #tpu.core_type<tc>, window_params = [{pipeline_mode = #tpu.pipeline_mode<synchronous>, transform_indices = @transform_0, window_bounds = array<i64: 6, 256>}, {pipeline_mode = #tpu.pipeline_mode<synchronous>, transform_indices = @transform_1, window_bounds = array<i64: 6, 6>}, {pipeline_mode = #tpu.pipeline_mode<synchronous>, transform_indices = @transform_2, window_bounds = array<i64: 256, 256>}, {pipeline_mode = #tpu.pipeline_mode<synchronous>, transform_indices = @transform_3, window_bounds = array<i64: 1, 256>}, {pipeline_mode = #tpu.pipeline_mode<synchronous>, transform_indices = @transform_4, window_bounds = array<i64: 256, 256>}, {pipeline_mode = #tpu.pipeline_mode<synchronous>, transform_indices = @transform_5, window_bounds = array<i64: 4, 1, 64>}, {pipeline_mode = #tpu.pipeline_mode<synchronous>, transform_indices = @transform_6, window_bounds = array<i64: 4, 1, 64>}, {pipeline_mode = #tpu.pipeline_mode<synchronous>, transform_indices = @transform_7, window_bounds = array<i64: 1, 256>}, {pipeline_mode = #tpu.pipeline_mode<synchronous>, transform_indices = @transform_8, window_bounds = array<i64: 256, 256>}, {pipeline_mode = #tpu.pipeline_mode<synchronous>, transform_indices = @transform_9, window_bounds = array<i64: 4, 1, 64>}, {pipeline_mode = #tpu.pipeline_mode<synchronous>, transform_indices = @transform_10, window_bounds = array<i64: 4, 1, 64>}, {pipeline_mode = #tpu.pipeline_mode<synchronous>, transform_indices = @transform_11, window_bounds = array<i64: 1, 256>}, {pipeline_mode = #tpu.pipeline_mode<synchronous>, transform_indices = @transform_12, window_bounds = array<i64: 6, 256>}]} {
    %c0 = arith.constant 0 : index
    %c0_0 = arith.constant 0 : index
    %0 = vector.load %arg1[%c0, %c0_0] : memref<6x256xf32, #tpu.memory_space<vmem>>, vector<6x256xf32>
    %c0_1 = arith.constant 0 : index
    %c0_2 = arith.constant 0 : index
    %1 = vector.load %arg2[%c0_1, %c0_2] : memref<6x6xf32, #tpu.memory_space<vmem>>, vector<6x6xf32>
    %2 = arith.truncf %0 : vector<6x256xf32> to vector<6x256xbf16>
    %c0_3 = arith.constant 0 : index
    %c0_4 = arith.constant 0 : index
    %3 = vector.load %arg5[%c0_3, %c0_4] : memref<256x256xbf16, #tpu.memory_space<vmem>>, vector<256x256xbf16>
    %cst = arith.constant dense<0.000000e+00> : vector<6x256xf32>
    %4 = tpu.matmul %2, %3, %cst {dimension_numbers = #tpu.dot_dimension_numbers<[1], [0], [0], [1], [0, 0, 1, 1], [], []>} : vector<6x256xbf16>, vector<256x256xbf16>, vector<6x256xf32> -> vector<6x256xf32>
    %5 = vector.extract_strided_slice %4 {offsets = [0, 0], sizes = [6, 64], strides = [1, 1]} : vector<6x256xf32> to vector<6x64xf32>
    %c0_5 = arith.constant 0 : index
    %c0_6 = arith.constant 0 : index
    %c0_7 = arith.constant 0 : index
    %6 = vector.load %arg6[%c0_5, %c0_6, %c0_7] : memref<4x1x64xf32, #tpu.memory_space<vmem>>, vector<1x1x64xf32>
    %7 = vector.shape_cast %6 : vector<1x1x64xf32> to vector<1x64xf32>
    %cst_8 = arith.constant dense<0.000000e+00> : vector<1x6xf32>
    %8 = tpu.matmul %7, %5, %cst_8 {dimension_numbers = #tpu.dot_dimension_numbers<[1], [1], [0], [0], [0, 0, 1, 0], [], []>} : vector<1x64xf32>, vector<6x64xf32>, vector<1x6xf32> -> vector<1x6xf32>
    %c0_9 = arith.constant 0 : index
    %c0_10 = arith.constant 0 : index
    %c0_11 = arith.constant 0 : index
    %9 = vector.load %arg7[%c0_9, %c0_10, %c0_11] : memref<4x1x64xf32, #tpu.memory_space<vmem>>, vector<1x1x64xf32>
    %10 = vector.shape_cast %9 : vector<1x1x64xf32> to vector<1x64xf32>
    %cst_12 = arith.constant dense<0.000000e+00> : vector<6x1xf32>
    %11 = tpu.matmul %5, %10, %cst_12 {dimension_numbers = #tpu.dot_dimension_numbers<[1], [1], [0], [0], [0, 0, 1, 0], [], []>} : vector<6x64xf32>, vector<1x64xf32>, vector<6x1xf32> -> vector<6x1xf32>
    %12 = vector.broadcast %11 : vector<6x1xf32> to vector<6x6xf32>
    %13 = vector.broadcast %8 : vector<1x6xf32> to vector<6x6xf32>
    %14 = arith.addf %12, %13 : vector<6x6xf32>
    %cst_13 = arith.constant 0.000000e+00 : f32
    %15 = vector.broadcast %cst_13 : f32 to vector<6x6xf32>
    %16 = arith.cmpf ogt, %14, %15 : vector<6x6xf32>
    %cst_14 = arith.constant 2.000000e-01 : f32
    %17 = vector.broadcast %cst_14 : f32 to vector<6x6xf32>
    %18 = arith.mulf %17, %14 : vector<6x6xf32>
    %19 = arith.select %16, %14, %18 : vector<6x6xi1>, vector<6x6xf32>
    %cst_15 = arith.constant 0.000000e+00 : f32
    %20 = vector.broadcast %cst_15 : f32 to vector<6x6xf32>
    %21 = arith.cmpf ogt, %1, %20 : vector<6x6xf32>
    %cst_16 = arith.constant -1.000000e+30 : f32
    %22 = vector.broadcast %cst_16 : f32 to vector<6x6xf32>
    %23 = arith.select %21, %19, %22 : vector<6x6xi1>, vector<6x6xf32>
    %cst_17 = arith.constant dense<0xFF800000> : vector<6xf32>
    %24 = vector.multi_reduction <maximumf>, %23, %cst_17 [1] : vector<6x6xf32> to vector<6xf32>
    %25 = vector.shape_cast %24 : vector<6xf32> to vector<6x1xf32>
    %26 = vector.broadcast %25 : vector<6x1xf32> to vector<6x6xf32>
    %27 = arith.subf %23, %26 : vector<6x6xf32>
    %28 = math.exp %27 : vector<6x6xf32>
    %cst_18 = arith.constant dense<0.000000e+00> : vector<6xf32>
    %29 = vector.multi_reduction <add>, %28, %cst_18 [1] : vector<6x6xf32> to vector<6xf32>
    %30 = vector.shape_cast %29 : vector<6xf32> to vector<6x1xf32>
    %31 = vector.broadcast %30 : vector<6x1xf32> to vector<6x6xf32>
    %32 = arith.divf %28, %31 : vector<6x6xf32>
    %cst_19 = arith.constant dense<0.000000e+00> : vector<6x64xf32>
    %33 = tpu.matmul %32, %5, %cst_19 {dimension_numbers = #tpu.dot_dimension_numbers<[1], [0], [0], [1], [0, 0, 1, 1], [], []>} : vector<6x6xf32>, vector<6x64xf32>, vector<6x64xf32> -> vector<6x64xf32>
    %34 = vector.extract_strided_slice %4 {offsets = [0, 64], sizes = [6, 64], strides = [1, 1]} : vector<6x256xf32> to vector<6x64xf32>
    %c1 = arith.constant 1 : index
    %c0_20 = arith.constant 0 : index
    %c0_21 = arith.constant 0 : index
    %35 = vector.load %arg6[%c1, %c0_20, %c0_21] : memref<4x1x64xf32, #tpu.memory_space<vmem>>, vector<1x1x64xf32>
    %36 = vector.shape_cast %35 : vector<1x1x64xf32> to vector<1x64xf32>
    %cst_22 = arith.constant dense<0.000000e+00> : vector<1x6xf32>
    %37 = tpu.matmul %36, %34, %cst_22 {dimension_numbers = #tpu.dot_dimension_numbers<[1], [1], [0], [0], [0, 0, 1, 0], [], []>} : vector<1x64xf32>, vector<6x64xf32>, vector<1x6xf32> -> vector<1x6xf32>
    %c1_23 = arith.constant 1 : index
    %c0_24 = arith.constant 0 : index
    %c0_25 = arith.constant 0 : index
    %38 = vector.load %arg7[%c1_23, %c0_24, %c0_25] : memref<4x1x64xf32, #tpu.memory_space<vmem>>, vector<1x1x64xf32>
    %39 = vector.shape_cast %38 : vector<1x1x64xf32> to vector<1x64xf32>
    %cst_26 = arith.constant dense<0.000000e+00> : vector<6x1xf32>
    %40 = tpu.matmul %34, %39, %cst_26 {dimension_numbers = #tpu.dot_dimension_numbers<[1], [1], [0], [0], [0, 0, 1, 0], [], []>} : vector<6x64xf32>, vector<1x64xf32>, vector<6x1xf32> -> vector<6x1xf32>
    %41 = vector.broadcast %40 : vector<6x1xf32> to vector<6x6xf32>
    %42 = vector.broadcast %37 : vector<1x6xf32> to vector<6x6xf32>
    %43 = arith.addf %41, %42 : vector<6x6xf32>
    %cst_27 = arith.constant 0.000000e+00 : f32
    %44 = vector.broadcast %cst_27 : f32 to vector<6x6xf32>
    %45 = arith.cmpf ogt, %43, %44 : vector<6x6xf32>
    %cst_28 = arith.constant 2.000000e-01 : f32
    %46 = vector.broadcast %cst_28 : f32 to vector<6x6xf32>
    %47 = arith.mulf %46, %43 : vector<6x6xf32>
    %48 = arith.select %45, %43, %47 : vector<6x6xi1>, vector<6x6xf32>
    %cst_29 = arith.constant 0.000000e+00 : f32
    %49 = vector.broadcast %cst_29 : f32 to vector<6x6xf32>
    %50 = arith.cmpf ogt, %1, %49 : vector<6x6xf32>
    %cst_30 = arith.constant -1.000000e+30 : f32
    %51 = vector.broadcast %cst_30 : f32 to vector<6x6xf32>
    %52 = arith.select %50, %48, %51 : vector<6x6xi1>, vector<6x6xf32>
    %cst_31 = arith.constant dense<0xFF800000> : vector<6xf32>
    %53 = vector.multi_reduction <maximumf>, %52, %cst_31 [1] : vector<6x6xf32> to vector<6xf32>
    %54 = vector.shape_cast %53 : vector<6xf32> to vector<6x1xf32>
    %55 = vector.broadcast %54 : vector<6x1xf32> to vector<6x6xf32>
    %56 = arith.subf %52, %55 : vector<6x6xf32>
    %57 = math.exp %56 : vector<6x6xf32>
    %cst_32 = arith.constant dense<0.000000e+00> : vector<6xf32>
    %58 = vector.multi_reduction <add>, %57, %cst_32 [1] : vector<6x6xf32> to vector<6xf32>
    %59 = vector.shape_cast %58 : vector<6xf32> to vector<6x1xf32>
    %60 = vector.broadcast %59 : vector<6x1xf32> to vector<6x6xf32>
    %61 = arith.divf %57, %60 : vector<6x6xf32>
    %cst_33 = arith.constant dense<0.000000e+00> : vector<6x64xf32>
    %62 = tpu.matmul %61, %34, %cst_33 {dimension_numbers = #tpu.dot_dimension_numbers<[1], [0], [0], [1], [0, 0, 1, 1], [], []>} : vector<6x6xf32>, vector<6x64xf32>, vector<6x64xf32> -> vector<6x64xf32>
    %63 = vector.extract_strided_slice %4 {offsets = [0, 128], sizes = [6, 64], strides = [1, 1]} : vector<6x256xf32> to vector<6x64xf32>
    %c2 = arith.constant 2 : index
    %c0_34 = arith.constant 0 : index
    %c0_35 = arith.constant 0 : index
    %64 = vector.load %arg6[%c2, %c0_34, %c0_35] : memref<4x1x64xf32, #tpu.memory_space<vmem>>, vector<1x1x64xf32>
    %65 = vector.shape_cast %64 : vector<1x1x64xf32> to vector<1x64xf32>
    %cst_36 = arith.constant dense<0.000000e+00> : vector<1x6xf32>
    %66 = tpu.matmul %65, %63, %cst_36 {dimension_numbers = #tpu.dot_dimension_numbers<[1], [1], [0], [0], [0, 0, 1, 0], [], []>} : vector<1x64xf32>, vector<6x64xf32>, vector<1x6xf32> -> vector<1x6xf32>
    %c2_37 = arith.constant 2 : index
    %c0_38 = arith.constant 0 : index
    %c0_39 = arith.constant 0 : index
    %67 = vector.load %arg7[%c2_37, %c0_38, %c0_39] : memref<4x1x64xf32, #tpu.memory_space<vmem>>, vector<1x1x64xf32>
    %68 = vector.shape_cast %67 : vector<1x1x64xf32> to vector<1x64xf32>
    %cst_40 = arith.constant dense<0.000000e+00> : vector<6x1xf32>
    %69 = tpu.matmul %63, %68, %cst_40 {dimension_numbers = #tpu.dot_dimension_numbers<[1], [1], [0], [0], [0, 0, 1, 0], [], []>} : vector<6x64xf32>, vector<1x64xf32>, vector<6x1xf32> -> vector<6x1xf32>
    %70 = vector.broadcast %69 : vector<6x1xf32> to vector<6x6xf32>
    %71 = vector.broadcast %66 : vector<1x6xf32> to vector<6x6xf32>
    %72 = arith.addf %70, %71 : vector<6x6xf32>
    %cst_41 = arith.constant 0.000000e+00 : f32
    %73 = vector.broadcast %cst_41 : f32 to vector<6x6xf32>
    %74 = arith.cmpf ogt, %72, %73 : vector<6x6xf32>
    %cst_42 = arith.constant 2.000000e-01 : f32
    %75 = vector.broadcast %cst_42 : f32 to vector<6x6xf32>
    %76 = arith.mulf %75, %72 : vector<6x6xf32>
    %77 = arith.select %74, %72, %76 : vector<6x6xi1>, vector<6x6xf32>
    %cst_43 = arith.constant 0.000000e+00 : f32
    %78 = vector.broadcast %cst_43 : f32 to vector<6x6xf32>
    %79 = arith.cmpf ogt, %1, %78 : vector<6x6xf32>
    %cst_44 = arith.constant -1.000000e+30 : f32
    %80 = vector.broadcast %cst_44 : f32 to vector<6x6xf32>
    %81 = arith.select %79, %77, %80 : vector<6x6xi1>, vector<6x6xf32>
    %cst_45 = arith.constant dense<0xFF800000> : vector<6xf32>
    %82 = vector.multi_reduction <maximumf>, %81, %cst_45 [1] : vector<6x6xf32> to vector<6xf32>
    %83 = vector.shape_cast %82 : vector<6xf32> to vector<6x1xf32>
    %84 = vector.broadcast %83 : vector<6x1xf32> to vector<6x6xf32>
    %85 = arith.subf %81, %84 : vector<6x6xf32>
    %86 = math.exp %85 : vector<6x6xf32>
    %cst_46 = arith.constant dense<0.000000e+00> : vector<6xf32>
    %87 = vector.multi_reduction <add>, %86, %cst_46 [1] : vector<6x6xf32> to vector<6xf32>
    %88 = vector.shape_cast %87 : vector<6xf32> to vector<6x1xf32>
    %89 = vector.broadcast %88 : vector<6x1xf32> to vector<6x6xf32>
    %90 = arith.divf %86, %89 : vector<6x6xf32>
    %cst_47 = arith.constant dense<0.000000e+00> : vector<6x64xf32>
    %91 = tpu.matmul %90, %63, %cst_47 {dimension_numbers = #tpu.dot_dimension_numbers<[1], [0], [0], [1], [0, 0, 1, 1], [], []>} : vector<6x6xf32>, vector<6x64xf32>, vector<6x64xf32> -> vector<6x64xf32>
    %92 = vector.extract_strided_slice %4 {offsets = [0, 192], sizes = [6, 64], strides = [1, 1]} : vector<6x256xf32> to vector<6x64xf32>
    %c3 = arith.constant 3 : index
    %c0_48 = arith.constant 0 : index
    %c0_49 = arith.constant 0 : index
    %93 = vector.load %arg6[%c3, %c0_48, %c0_49] : memref<4x1x64xf32, #tpu.memory_space<vmem>>, vector<1x1x64xf32>
    %94 = vector.shape_cast %93 : vector<1x1x64xf32> to vector<1x64xf32>
    %cst_50 = arith.constant dense<0.000000e+00> : vector<1x6xf32>
    %95 = tpu.matmul %94, %92, %cst_50 {dimension_numbers = #tpu.dot_dimension_numbers<[1], [1], [0], [0], [0, 0, 1, 0], [], []>} : vector<1x64xf32>, vector<6x64xf32>, vector<1x6xf32> -> vector<1x6xf32>
    %c3_51 = arith.constant 3 : index
    %c0_52 = arith.constant 0 : index
    %c0_53 = arith.constant 0 : index
    %96 = vector.load %arg7[%c3_51, %c0_52, %c0_53] : memref<4x1x64xf32, #tpu.memory_space<vmem>>, vector<1x1x64xf32>
    %97 = vector.shape_cast %96 : vector<1x1x64xf32> to vector<1x64xf32>
    %cst_54 = arith.constant dense<0.000000e+00> : vector<6x1xf32>
    %98 = tpu.matmul %92, %97, %cst_54 {dimension_numbers = #tpu.dot_dimension_numbers<[1], [1], [0], [0], [0, 0, 1, 0], [], []>} : vector<6x64xf32>, vector<1x64xf32>, vector<6x1xf32> -> vector<6x1xf32>
    %99 = vector.broadcast %98 : vector<6x1xf32> to vector<6x6xf32>
    %100 = vector.broadcast %95 : vector<1x6xf32> to vector<6x6xf32>
    %101 = arith.addf %99, %100 : vector<6x6xf32>
    %cst_55 = arith.constant 0.000000e+00 : f32
    %102 = vector.broadcast %cst_55 : f32 to vector<6x6xf32>
    %103 = arith.cmpf ogt, %101, %102 : vector<6x6xf32>
    %cst_56 = arith.constant 2.000000e-01 : f32
    %104 = vector.broadcast %cst_56 : f32 to vector<6x6xf32>
    %105 = arith.mulf %104, %101 : vector<6x6xf32>
    %106 = arith.select %103, %101, %105 : vector<6x6xi1>, vector<6x6xf32>
    %cst_57 = arith.constant 0.000000e+00 : f32
    %107 = vector.broadcast %cst_57 : f32 to vector<6x6xf32>
    %108 = arith.cmpf ogt, %1, %107 : vector<6x6xf32>
    %cst_58 = arith.constant -1.000000e+30 : f32
    %109 = vector.broadcast %cst_58 : f32 to vector<6x6xf32>
    %110 = arith.select %108, %106, %109 : vector<6x6xi1>, vector<6x6xf32>
    %cst_59 = arith.constant dense<0xFF800000> : vector<6xf32>
    %111 = vector.multi_reduction <maximumf>, %110, %cst_59 [1] : vector<6x6xf32> to vector<6xf32>
    %112 = vector.shape_cast %111 : vector<6xf32> to vector<6x1xf32>
    %113 = vector.broadcast %112 : vector<6x1xf32> to vector<6x6xf32>
    %114 = arith.subf %110, %113 : vector<6x6xf32>
    %115 = math.exp %114 : vector<6x6xf32>
    %cst_60 = arith.constant dense<0.000000e+00> : vector<6xf32>
    %116 = vector.multi_reduction <add>, %115, %cst_60 [1] : vector<6x6xf32> to vector<6xf32>
    %117 = vector.shape_cast %116 : vector<6xf32> to vector<6x1xf32>
    %118 = vector.broadcast %117 : vector<6x1xf32> to vector<6x6xf32>
    %119 = arith.divf %115, %118 : vector<6x6xf32>
    %cst_61 = arith.constant dense<0.000000e+00> : vector<6x64xf32>
    %120 = tpu.matmul %119, %92, %cst_61 {dimension_numbers = #tpu.dot_dimension_numbers<[1], [0], [0], [1], [0, 0, 1, 1], [], []>} : vector<6x6xf32>, vector<6x64xf32>, vector<6x64xf32> -> vector<6x64xf32>
    %121 = tpu.concatenate %33, %62, %91, %120 in 1 : vector<6x64xf32>, vector<6x64xf32>, vector<6x64xf32>, vector<6x64xf32> -> vector<6x256xf32>
    %c0_62 = arith.constant 0 : index
    %c0_63 = arith.constant 0 : index
    %122 = vector.load %arg8[%c0_62, %c0_63] : memref<1x256xf32, #tpu.memory_space<vmem>>, vector<1x256xf32>
    %123 = vector.broadcast %122 : vector<1x256xf32> to vector<6x256xf32>
    %124 = arith.addf %121, %123 : vector<6x256xf32>
    %cst_64 = arith.constant 0.000000e+00 : f32
    %125 = vector.broadcast %cst_64 : f32 to vector<6x256xf32>
    %126 = arith.maximumf %124, %125 : vector<6x256xf32>
    %127 = arith.truncf %0 : vector<6x256xf32> to vector<6x256xbf16>
    %c0_65 = arith.constant 0 : index
    %c0_66 = arith.constant 0 : index
    %128 = vector.load %arg3[%c0_65, %c0_66] : memref<256x256xbf16, #tpu.memory_space<vmem>>, vector<256x256xbf16>
    %cst_67 = arith.constant dense<0.000000e+00> : vector<6x256xf32>
    %129 = tpu.matmul %127, %128, %cst_67 {dimension_numbers = #tpu.dot_dimension_numbers<[1], [0], [0], [1], [0, 0, 1, 1], [], []>} : vector<6x256xbf16>, vector<256x256xbf16>, vector<6x256xf32> -> vector<6x256xf32>
    %c0_68 = arith.constant 0 : index
    %c0_69 = arith.constant 0 : index
    %130 = vector.load %arg4[%c0_68, %c0_69] : memref<1x256xf32, #tpu.memory_space<vmem>>, vector<1x256xf32>
    %131 = vector.broadcast %130 : vector<1x256xf32> to vector<6x256xf32>
    %132 = arith.addf %129, %131 : vector<6x256xf32>
    %133 = arith.truncf %126 : vector<6x256xf32> to vector<6x256xbf16>
    %c0_70 = arith.constant 0 : index
    %c0_71 = arith.constant 0 : index
    %134 = vector.load %arg9[%c0_70, %c0_71] : memref<256x256xbf16, #tpu.memory_space<vmem>>, vector<256x256xbf16>
    %cst_72 = arith.constant dense<0.000000e+00> : vector<6x256xf32>
    %135 = tpu.matmul %133, %134, %cst_72 {dimension_numbers = #tpu.dot_dimension_numbers<[1], [0], [0], [1], [0, 0, 1, 1], [], []>} : vector<6x256xbf16>, vector<256x256xbf16>, vector<6x256xf32> -> vector<6x256xf32>
    %136 = vector.extract_strided_slice %135 {offsets = [0, 0], sizes = [6, 64], strides = [1, 1]} : vector<6x256xf32> to vector<6x64xf32>
    %c0_73 = arith.constant 0 : index
    %c0_74 = arith.constant 0 : index
    %c0_75 = arith.constant 0 : index
    %137 = vector.load %arg10[%c0_73, %c0_74, %c0_75] : memref<4x1x64xf32, #tpu.memory_space<vmem>>, vector<1x1x64xf32>
    %138 = vector.shape_cast %137 : vector<1x1x64xf32> to vector<1x64xf32>
    %cst_76 = arith.constant dense<0.000000e+00> : vector<1x6xf32>
    %139 = tpu.matmul %138, %136, %cst_76 {dimension_numbers = #tpu.dot_dimension_numbers<[1], [1], [0], [0], [0, 0, 1, 0], [], []>} : vector<1x64xf32>, vector<6x64xf32>, vector<1x6xf32> -> vector<1x6xf32>
    %c0_77 = arith.constant 0 : index
    %c0_78 = arith.constant 0 : index
    %c0_79 = arith.constant 0 : index
    %140 = vector.load %arg11[%c0_77, %c0_78, %c0_79] : memref<4x1x64xf32, #tpu.memory_space<vmem>>, vector<1x1x64xf32>
    %141 = vector.shape_cast %140 : vector<1x1x64xf32> to vector<1x64xf32>
    %cst_80 = arith.constant dense<0.000000e+00> : vector<6x1xf32>
    %142 = tpu.matmul %136, %141, %cst_80 {dimension_numbers = #tpu.dot_dimension_numbers<[1], [1], [0], [0], [0, 0, 1, 0], [], []>} : vector<6x64xf32>, vector<1x64xf32>, vector<6x1xf32> -> vector<6x1xf32>
    %143 = vector.broadcast %142 : vector<6x1xf32> to vector<6x6xf32>
    %144 = vector.broadcast %139 : vector<1x6xf32> to vector<6x6xf32>
    %145 = arith.addf %143, %144 : vector<6x6xf32>
    %cst_81 = arith.constant 0.000000e+00 : f32
    %146 = vector.broadcast %cst_81 : f32 to vector<6x6xf32>
    %147 = arith.cmpf ogt, %145, %146 : vector<6x6xf32>
    %cst_82 = arith.constant 2.000000e-01 : f32
    %148 = vector.broadcast %cst_82 : f32 to vector<6x6xf32>
    %149 = arith.mulf %148, %145 : vector<6x6xf32>
    %150 = arith.select %147, %145, %149 : vector<6x6xi1>, vector<6x6xf32>
    %cst_83 = arith.constant 0.000000e+00 : f32
    %151 = vector.broadcast %cst_83 : f32 to vector<6x6xf32>
    %152 = arith.cmpf ogt, %1, %151 : vector<6x6xf32>
    %cst_84 = arith.constant -1.000000e+30 : f32
    %153 = vector.broadcast %cst_84 : f32 to vector<6x6xf32>
    %154 = arith.select %152, %150, %153 : vector<6x6xi1>, vector<6x6xf32>
    %cst_85 = arith.constant dense<0xFF800000> : vector<6xf32>
    %155 = vector.multi_reduction <maximumf>, %154, %cst_85 [1] : vector<6x6xf32> to vector<6xf32>
    %156 = vector.shape_cast %155 : vector<6xf32> to vector<6x1xf32>
    %157 = vector.broadcast %156 : vector<6x1xf32> to vector<6x6xf32>
    %158 = arith.subf %154, %157 : vector<6x6xf32>
    %159 = math.exp %158 : vector<6x6xf32>
    %cst_86 = arith.constant dense<0.000000e+00> : vector<6xf32>
    %160 = vector.multi_reduction <add>, %159, %cst_86 [1] : vector<6x6xf32> to vector<6xf32>
    %161 = vector.shape_cast %160 : vector<6xf32> to vector<6x1xf32>
    %162 = vector.broadcast %161 : vector<6x1xf32> to vector<6x6xf32>
    %163 = arith.divf %159, %162 : vector<6x6xf32>
    %cst_87 = arith.constant dense<0.000000e+00> : vector<6x64xf32>
    %164 = tpu.matmul %163, %136, %cst_87 {dimension_numbers = #tpu.dot_dimension_numbers<[1], [0], [0], [1], [0, 0, 1, 1], [], []>} : vector<6x6xf32>, vector<6x64xf32>, vector<6x64xf32> -> vector<6x64xf32>
    %165 = vector.extract_strided_slice %135 {offsets = [0, 64], sizes = [6, 64], strides = [1, 1]} : vector<6x256xf32> to vector<6x64xf32>
    %c1_88 = arith.constant 1 : index
    %c0_89 = arith.constant 0 : index
    %c0_90 = arith.constant 0 : index
    %166 = vector.load %arg10[%c1_88, %c0_89, %c0_90] : memref<4x1x64xf32, #tpu.memory_space<vmem>>, vector<1x1x64xf32>
    %167 = vector.shape_cast %166 : vector<1x1x64xf32> to vector<1x64xf32>
    %cst_91 = arith.constant dense<0.000000e+00> : vector<1x6xf32>
    %168 = tpu.matmul %167, %165, %cst_91 {dimension_numbers = #tpu.dot_dimension_numbers<[1], [1], [0], [0], [0, 0, 1, 0], [], []>} : vector<1x64xf32>, vector<6x64xf32>, vector<1x6xf32> -> vector<1x6xf32>
    %c1_92 = arith.constant 1 : index
    %c0_93 = arith.constant 0 : index
    %c0_94 = arith.constant 0 : index
    %169 = vector.load %arg11[%c1_92, %c0_93, %c0_94] : memref<4x1x64xf32, #tpu.memory_space<vmem>>, vector<1x1x64xf32>
    %170 = vector.shape_cast %169 : vector<1x1x64xf32> to vector<1x64xf32>
    %cst_95 = arith.constant dense<0.000000e+00> : vector<6x1xf32>
    %171 = tpu.matmul %165, %170, %cst_95 {dimension_numbers = #tpu.dot_dimension_numbers<[1], [1], [0], [0], [0, 0, 1, 0], [], []>} : vector<6x64xf32>, vector<1x64xf32>, vector<6x1xf32> -> vector<6x1xf32>
    %172 = vector.broadcast %171 : vector<6x1xf32> to vector<6x6xf32>
    %173 = vector.broadcast %168 : vector<1x6xf32> to vector<6x6xf32>
    %174 = arith.addf %172, %173 : vector<6x6xf32>
    %cst_96 = arith.constant 0.000000e+00 : f32
    %175 = vector.broadcast %cst_96 : f32 to vector<6x6xf32>
    %176 = arith.cmpf ogt, %174, %175 : vector<6x6xf32>
    %cst_97 = arith.constant 2.000000e-01 : f32
    %177 = vector.broadcast %cst_97 : f32 to vector<6x6xf32>
    %178 = arith.mulf %177, %174 : vector<6x6xf32>
    %179 = arith.select %176, %174, %178 : vector<6x6xi1>, vector<6x6xf32>
    %cst_98 = arith.constant 0.000000e+00 : f32
    %180 = vector.broadcast %cst_98 : f32 to vector<6x6xf32>
    %181 = arith.cmpf ogt, %1, %180 : vector<6x6xf32>
    %cst_99 = arith.constant -1.000000e+30 : f32
    %182 = vector.broadcast %cst_99 : f32 to vector<6x6xf32>
    %183 = arith.select %181, %179, %182 : vector<6x6xi1>, vector<6x6xf32>
    %cst_100 = arith.constant dense<0xFF800000> : vector<6xf32>
    %184 = vector.multi_reduction <maximumf>, %183, %cst_100 [1] : vector<6x6xf32> to vector<6xf32>
    %185 = vector.shape_cast %184 : vector<6xf32> to vector<6x1xf32>
    %186 = vector.broadcast %185 : vector<6x1xf32> to vector<6x6xf32>
    %187 = arith.subf %183, %186 : vector<6x6xf32>
    %188 = math.exp %187 : vector<6x6xf32>
    %cst_101 = arith.constant dense<0.000000e+00> : vector<6xf32>
    %189 = vector.multi_reduction <add>, %188, %cst_101 [1] : vector<6x6xf32> to vector<6xf32>
    %190 = vector.shape_cast %189 : vector<6xf32> to vector<6x1xf32>
    %191 = vector.broadcast %190 : vector<6x1xf32> to vector<6x6xf32>
    %192 = arith.divf %188, %191 : vector<6x6xf32>
    %cst_102 = arith.constant dense<0.000000e+00> : vector<6x64xf32>
    %193 = tpu.matmul %192, %165, %cst_102 {dimension_numbers = #tpu.dot_dimension_numbers<[1], [0], [0], [1], [0, 0, 1, 1], [], []>} : vector<6x6xf32>, vector<6x64xf32>, vector<6x64xf32> -> vector<6x64xf32>
    %194 = vector.extract_strided_slice %135 {offsets = [0, 128], sizes = [6, 64], strides = [1, 1]} : vector<6x256xf32> to vector<6x64xf32>
    %c2_103 = arith.constant 2 : index
    %c0_104 = arith.constant 0 : index
    %c0_105 = arith.constant 0 : index
    %195 = vector.load %arg10[%c2_103, %c0_104, %c0_105] : memref<4x1x64xf32, #tpu.memory_space<vmem>>, vector<1x1x64xf32>
    %196 = vector.shape_cast %195 : vector<1x1x64xf32> to vector<1x64xf32>
    %cst_106 = arith.constant dense<0.000000e+00> : vector<1x6xf32>
    %197 = tpu.matmul %196, %194, %cst_106 {dimension_numbers = #tpu.dot_dimension_numbers<[1], [1], [0], [0], [0, 0, 1, 0], [], []>} : vector<1x64xf32>, vector<6x64xf32>, vector<1x6xf32> -> vector<1x6xf32>
    %c2_107 = arith.constant 2 : index
    %c0_108 = arith.constant 0 : index
    %c0_109 = arith.constant 0 : index
    %198 = vector.load %arg11[%c2_107, %c0_108, %c0_109] : memref<4x1x64xf32, #tpu.memory_space<vmem>>, vector<1x1x64xf32>
    %199 = vector.shape_cast %198 : vector<1x1x64xf32> to vector<1x64xf32>
    %cst_110 = arith.constant dense<0.000000e+00> : vector<6x1xf32>
    %200 = tpu.matmul %194, %199, %cst_110 {dimension_numbers = #tpu.dot_dimension_numbers<[1], [1], [0], [0], [0, 0, 1, 0], [], []>} : vector<6x64xf32>, vector<1x64xf32>, vector<6x1xf32> -> vector<6x1xf32>
    %201 = vector.broadcast %200 : vector<6x1xf32> to vector<6x6xf32>
    %202 = vector.broadcast %197 : vector<1x6xf32> to vector<6x6xf32>
    %203 = arith.addf %201, %202 : vector<6x6xf32>
    %cst_111 = arith.constant 0.000000e+00 : f32
    %204 = vector.broadcast %cst_111 : f32 to vector<6x6xf32>
    %205 = arith.cmpf ogt, %203, %204 : vector<6x6xf32>
    %cst_112 = arith.constant 2.000000e-01 : f32
    %206 = vector.broadcast %cst_112 : f32 to vector<6x6xf32>
    %207 = arith.mulf %206, %203 : vector<6x6xf32>
    %208 = arith.select %205, %203, %207 : vector<6x6xi1>, vector<6x6xf32>
    %cst_113 = arith.constant 0.000000e+00 : f32
    %209 = vector.broadcast %cst_113 : f32 to vector<6x6xf32>
    %210 = arith.cmpf ogt, %1, %209 : vector<6x6xf32>
    %cst_114 = arith.constant -1.000000e+30 : f32
    %211 = vector.broadcast %cst_114 : f32 to vector<6x6xf32>
    %212 = arith.select %210, %208, %211 : vector<6x6xi1>, vector<6x6xf32>
    %cst_115 = arith.constant dense<0xFF800000> : vector<6xf32>
    %213 = vector.multi_reduction <maximumf>, %212, %cst_115 [1] : vector<6x6xf32> to vector<6xf32>
    %214 = vector.shape_cast %213 : vector<6xf32> to vector<6x1xf32>
    %215 = vector.broadcast %214 : vector<6x1xf32> to vector<6x6xf32>
    %216 = arith.subf %212, %215 : vector<6x6xf32>
    %217 = math.exp %216 : vector<6x6xf32>
    %cst_116 = arith.constant dense<0.000000e+00> : vector<6xf32>
    %218 = vector.multi_reduction <add>, %217, %cst_116 [1] : vector<6x6xf32> to vector<6xf32>
    %219 = vector.shape_cast %218 : vector<6xf32> to vector<6x1xf32>
    %220 = vector.broadcast %219 : vector<6x1xf32> to vector<6x6xf32>
    %221 = arith.divf %217, %220 : vector<6x6xf32>
    %cst_117 = arith.constant dense<0.000000e+00> : vector<6x64xf32>
    %222 = tpu.matmul %221, %194, %cst_117 {dimension_numbers = #tpu.dot_dimension_numbers<[1], [0], [0], [1], [0, 0, 1, 1], [], []>} : vector<6x6xf32>, vector<6x64xf32>, vector<6x64xf32> -> vector<6x64xf32>
    %223 = vector.extract_strided_slice %135 {offsets = [0, 192], sizes = [6, 64], strides = [1, 1]} : vector<6x256xf32> to vector<6x64xf32>
    %c3_118 = arith.constant 3 : index
    %c0_119 = arith.constant 0 : index
    %c0_120 = arith.constant 0 : index
    %224 = vector.load %arg10[%c3_118, %c0_119, %c0_120] : memref<4x1x64xf32, #tpu.memory_space<vmem>>, vector<1x1x64xf32>
    %225 = vector.shape_cast %224 : vector<1x1x64xf32> to vector<1x64xf32>
    %cst_121 = arith.constant dense<0.000000e+00> : vector<1x6xf32>
    %226 = tpu.matmul %225, %223, %cst_121 {dimension_numbers = #tpu.dot_dimension_numbers<[1], [1], [0], [0], [0, 0, 1, 0], [], []>} : vector<1x64xf32>, vector<6x64xf32>, vector<1x6xf32> -> vector<1x6xf32>
    %c3_122 = arith.constant 3 : index
    %c0_123 = arith.constant 0 : index
    %c0_124 = arith.constant 0 : index
    %227 = vector.load %arg11[%c3_122, %c0_123, %c0_124] : memref<4x1x64xf32, #tpu.memory_space<vmem>>, vector<1x1x64xf32>
    %228 = vector.shape_cast %227 : vector<1x1x64xf32> to vector<1x64xf32>
    %cst_125 = arith.constant dense<0.000000e+00> : vector<6x1xf32>
    %229 = tpu.matmul %223, %228, %cst_125 {dimension_numbers = #tpu.dot_dimension_numbers<[1], [1], [0], [0], [0, 0, 1, 0], [], []>} : vector<6x64xf32>, vector<1x64xf32>, vector<6x1xf32> -> vector<6x1xf32>
    %230 = vector.broadcast %229 : vector<6x1xf32> to vector<6x6xf32>
    %231 = vector.broadcast %226 : vector<1x6xf32> to vector<6x6xf32>
    %232 = arith.addf %230, %231 : vector<6x6xf32>
    %cst_126 = arith.constant 0.000000e+00 : f32
    %233 = vector.broadcast %cst_126 : f32 to vector<6x6xf32>
    %234 = arith.cmpf ogt, %232, %233 : vector<6x6xf32>
    %cst_127 = arith.constant 2.000000e-01 : f32
    %235 = vector.broadcast %cst_127 : f32 to vector<6x6xf32>
    %236 = arith.mulf %235, %232 : vector<6x6xf32>
    %237 = arith.select %234, %232, %236 : vector<6x6xi1>, vector<6x6xf32>
    %cst_128 = arith.constant 0.000000e+00 : f32
    %238 = vector.broadcast %cst_128 : f32 to vector<6x6xf32>
    %239 = arith.cmpf ogt, %1, %238 : vector<6x6xf32>
    %cst_129 = arith.constant -1.000000e+30 : f32
    %240 = vector.broadcast %cst_129 : f32 to vector<6x6xf32>
    %241 = arith.select %239, %237, %240 : vector<6x6xi1>, vector<6x6xf32>
    %cst_130 = arith.constant dense<0xFF800000> : vector<6xf32>
    %242 = vector.multi_reduction <maximumf>, %241, %cst_130 [1] : vector<6x6xf32> to vector<6xf32>
    %243 = vector.shape_cast %242 : vector<6xf32> to vector<6x1xf32>
    %244 = vector.broadcast %243 : vector<6x1xf32> to vector<6x6xf32>
    %245 = arith.subf %241, %244 : vector<6x6xf32>
    %246 = math.exp %245 : vector<6x6xf32>
    %cst_131 = arith.constant dense<0.000000e+00> : vector<6xf32>
    %247 = vector.multi_reduction <add>, %246, %cst_131 [1] : vector<6x6xf32> to vector<6xf32>
    %248 = vector.shape_cast %247 : vector<6xf32> to vector<6x1xf32>
    %249 = vector.broadcast %248 : vector<6x1xf32> to vector<6x6xf32>
    %250 = arith.divf %246, %249 : vector<6x6xf32>
    %cst_132 = arith.constant dense<0.000000e+00> : vector<6x64xf32>
    %251 = tpu.matmul %250, %223, %cst_132 {dimension_numbers = #tpu.dot_dimension_numbers<[1], [0], [0], [1], [0, 0, 1, 1], [], []>} : vector<6x6xf32>, vector<6x64xf32>, vector<6x64xf32> -> vector<6x64xf32>
    %252 = tpu.concatenate %164, %193, %222, %251 in 1 : vector<6x64xf32>, vector<6x64xf32>, vector<6x64xf32>, vector<6x64xf32> -> vector<6x256xf32>
    %c0_133 = arith.constant 0 : index
    %c0_134 = arith.constant 0 : index
    %253 = vector.load %arg12[%c0_133, %c0_134] : memref<1x256xf32, #tpu.memory_space<vmem>>, vector<1x256xf32>
    %254 = vector.broadcast %253 : vector<1x256xf32> to vector<6x256xf32>
    %255 = arith.addf %252, %254 : vector<6x256xf32>
    %256 = arith.addf %255, %132 : vector<6x256xf32>
    %cst_135 = arith.constant 0.000000e+00 : f32
    %257 = vector.broadcast %cst_135 : f32 to vector<6x256xf32>
    %258 = arith.maximumf %256, %257 : vector<6x256xf32>
    %c0_136 = arith.constant 0 : index
    %c0_137 = arith.constant 0 : index
    %259 = vector.load %arg13[%c0_136, %c0_137] : memref<6x256xf32, #tpu.memory_space<vmem>>, vector<6x256xf32>
    tpu.vector_store %arg13[%c0_136, %c0_137], %258 {strides = array<i32>} : memref<6x256xf32, #tpu.memory_space<vmem>>, vector<6x256xf32>,
    return
  }
  func.func @transform_0(%arg0: i32) -> (i32, i32) {
    %c0_i32 = arith.constant 0 : i32
    %c0_i32_0 = arith.constant 0 : i32
    %c0_i32_1 = arith.constant 0 : i32
    return %c0_i32, %c0_i32_0 : i32, i32
  }
  func.func @transform_1(%arg0: i32) -> (i32, i32) {
    %c0_i32 = arith.constant 0 : i32
    %c0_i32_0 = arith.constant 0 : i32
    %c0_i32_1 = arith.constant 0 : i32
    return %c0_i32, %c0_i32_0 : i32, i32
  }
  func.func @transform_2(%arg0: i32) -> (i32, i32) {
    %c0_i32 = arith.constant 0 : i32
    %c0_i32_0 = arith.constant 0 : i32
    %c0_i32_1 = arith.constant 0 : i32
    return %c0_i32, %c0_i32_0 : i32, i32
  }
  func.func @transform_3(%arg0: i32) -> (i32, i32) {
    %c0_i32 = arith.constant 0 : i32
    %c0_i32_0 = arith.constant 0 : i32
    %c0_i32_1 = arith.constant 0 : i32
    return %c0_i32, %c0_i32_0 : i32, i32
  }
  func.func @transform_4(%arg0: i32) -> (i32, i32) {
    %c0_i32 = arith.constant 0 : i32
    %c0_i32_0 = arith.constant 0 : i32
    %c0_i32_1 = arith.constant 0 : i32
    return %c0_i32, %c0_i32_0 : i32, i32
  }
  func.func @transform_5(%arg0: i32) -> (i32, i32, i32) {
    %c0_i32 = arith.constant 0 : i32
    %c0_i32_0 = arith.constant 0 : i32
    %c0_i32_1 = arith.constant 0 : i32
    %c0_i32_2 = arith.constant 0 : i32
    return %c0_i32, %c0_i32_0, %c0_i32_1 : i32, i32, i32
  }
  func.func @transform_6(%arg0: i32) -> (i32, i32, i32) {
    %c0_i32 = arith.constant 0 : i32
    %c0_i32_0 = arith.constant 0 : i32
    %c0_i32_1 = arith.constant 0 : i32
    %c0_i32_2 = arith.constant 0 : i32
    return %c0_i32, %c0_i32_0, %c0_i32_1 : i32, i32, i32
  }
  func.func @transform_7(%arg0: i32) -> (i32, i32) {
    %c0_i32 = arith.constant 0 : i32
    %c0_i32_0 = arith.constant 0 : i32
    %c0_i32_1 = arith.constant 0 : i32
    return %c0_i32, %c0_i32_0 : i32, i32
  }
  func.func @transform_8(%arg0: i32) -> (i32, i32) {
    %c0_i32 = arith.constant 0 : i32
    %c0_i32_0 = arith.constant 0 : i32
    %c0_i32_1 = arith.constant 0 : i32
    return %c0_i32, %c0_i32_0 : i32, i32
  }
  func.func @transform_9(%arg0: i32) -> (i32, i32, i32) {
    %c0_i32 = arith.constant 0 : i32
    %c0_i32_0 = arith.constant 0 : i32
    %c0_i32_1 = arith.constant 0 : i32
    %c0_i32_2 = arith.constant 0 : i32
    return %c0_i32, %c0_i32_0, %c0_i32_1 : i32, i32, i32
  }
  func.func @transform_10(%arg0: i32) -> (i32, i32, i32) {
    %c0_i32 = arith.constant 0 : i32
    %c0_i32_0 = arith.constant 0 : i32
    %c0_i32_1 = arith.constant 0 : i32
    %c0_i32_2 = arith.constant 0 : i32
    return %c0_i32, %c0_i32_0, %c0_i32_1 : i32, i32, i32
  }
  func.func @transform_11(%arg0: i32) -> (i32, i32) {
    %c0_i32 = arith.constant 0 : i32
    %c0_i32_0 = arith.constant 0 : i32
    %c0_i32_1 = arith.constant 0 : i32
    return %c0_i32, %c0_i32_0 : i32, i32
  }
  func.func @transform_12(%arg0: i32) -> (i32, i32) {
    %c0_i32 = arith.constant 0 : i32
    %c0_i32_0 = arith.constant 0 : i32
    %c0_i32_1 = arith.constant 0 : i32
    return %c0_i32, %c0_i32_0 : i32, i32
  }
}

module attributes {stable_mosaic.version = 11 : i64} {
  func.func @_reg_head_kernel(%arg0: i32, %arg1: memref<10x1024xf32, #tpu.memory_space<vmem>>, %arg2: memref<1024x512xbf16, #tpu.memory_space<vmem>>, %arg3: memref<1x512xf32, #tpu.memory_space<vmem>>, %arg4: memref<1x512xf32, #tpu.memory_space<vmem>>, %arg5: memref<1x1xf32, #tpu.memory_space<vmem>>, %arg6: memref<10x1xf32, #tpu.memory_space<vmem>>) attributes {dimension_semantics = [#tpu.dimension_semantics<arbitrary>], iteration_bounds = array<i64: 1>, scalar_prefetch = 0 : i64, scratch_operands = 0 : i64, tpu.core_type = #tpu.core_type<tc>, window_params = [{pipeline_mode = #tpu.pipeline_mode<synchronous>, transform_indices = @transform_0, window_bounds = array<i64: 10, 1024>}, {pipeline_mode = #tpu.pipeline_mode<synchronous>, transform_indices = @transform_1, window_bounds = array<i64: 1024, 512>}, {pipeline_mode = #tpu.pipeline_mode<synchronous>, transform_indices = @transform_2, window_bounds = array<i64: 1, 512>}, {pipeline_mode = #tpu.pipeline_mode<synchronous>, transform_indices = @transform_3, window_bounds = array<i64: 1, 512>}, {pipeline_mode = #tpu.pipeline_mode<synchronous>, transform_indices = @transform_4, window_bounds = array<i64: 1, 1>}, {pipeline_mode = #tpu.pipeline_mode<synchronous>, transform_indices = @transform_5, window_bounds = array<i64: 10, 1>}]} {
    %c0 = arith.constant 0 : index
    %c0_0 = arith.constant 0 : index
    %0 = vector.load %arg1[%c0, %c0_0] : memref<10x1024xf32, #tpu.memory_space<vmem>>, vector<10x1024xf32>
    %1 = arith.truncf %0 : vector<10x1024xf32> to vector<10x1024xbf16>
    %c0_1 = arith.constant 0 : index
    %c0_2 = arith.constant 0 : index
    %2 = vector.load %arg2[%c0_1, %c0_2] : memref<1024x512xbf16, #tpu.memory_space<vmem>>, vector<1024x512xbf16>
    %cst = arith.constant dense<0.000000e+00> : vector<10x512xf32>
    %3 = tpu.matmul %1, %2, %cst {dimension_numbers = #tpu.dot_dimension_numbers<[1], [0], [0], [1], [0, 0, 1, 1], [], []>} : vector<10x1024xbf16>, vector<1024x512xbf16>, vector<10x512xf32> -> vector<10x512xf32>
    %c0_3 = arith.constant 0 : index
    %c0_4 = arith.constant 0 : index
    %4 = vector.load %arg3[%c0_3, %c0_4] : memref<1x512xf32, #tpu.memory_space<vmem>>, vector<1x512xf32>
    %5 = vector.broadcast %4 : vector<1x512xf32> to vector<10x512xf32>
    %6 = arith.addf %3, %5 : vector<10x512xf32>
    %cst_5 = arith.constant 0.000000e+00 : f32
    %7 = vector.broadcast %cst_5 : f32 to vector<10x512xf32>
    %8 = arith.cmpf ogt, %6, %7 : vector<10x512xf32>
    %cst_6 = arith.constant 0.00999999977 : f32
    %9 = vector.broadcast %cst_6 : f32 to vector<10x512xf32>
    %10 = arith.mulf %9, %6 : vector<10x512xf32>
    %11 = arith.select %8, %6, %10 : vector<10x512xi1>, vector<10x512xf32>
    %c0_7 = arith.constant 0 : index
    %c0_8 = arith.constant 0 : index
    %12 = vector.load %arg4[%c0_7, %c0_8] : memref<1x512xf32, #tpu.memory_space<vmem>>, vector<1x512xf32>
    %13 = vector.broadcast %12 : vector<1x512xf32> to vector<10x512xf32>
    %14 = arith.mulf %11, %13 : vector<10x512xf32>
    %cst_9 = arith.constant dense<0.000000e+00> : vector<10xf32>
    %15 = vector.multi_reduction <add>, %14, %cst_9 [1] : vector<10x512xf32> to vector<10xf32>
    %16 = vector.shape_cast %15 : vector<10xf32> to vector<10x1xf32>
    %c0_10 = arith.constant 0 : index
    %c0_11 = arith.constant 0 : index
    %17 = vector.load %arg5[%c0_10, %c0_11] : memref<1x1xf32, #tpu.memory_space<vmem>>, vector<1x1xf32>
    %18 = vector.broadcast %17 : vector<1x1xf32> to vector<10x1xf32>
    %19 = arith.addf %16, %18 : vector<10x1xf32>
    %c0_12 = arith.constant 0 : index
    %c0_13 = arith.constant 0 : index
    %20 = vector.load %arg6[%c0_12, %c0_13] : memref<10x1xf32, #tpu.memory_space<vmem>>, vector<10x1xf32>
    tpu.vector_store %arg6[%c0_12, %c0_13], %19 {strides = array<i32>} : memref<10x1xf32, #tpu.memory_space<vmem>>, vector<10x1xf32>,
    return
  }
  func.func @transform_0(%arg0: i32) -> (i32, i32) {
    %c0_i32 = arith.constant 0 : i32
    %c0_i32_0 = arith.constant 0 : i32
    %c0_i32_1 = arith.constant 0 : i32
    return %c0_i32, %c0_i32_0 : i32, i32
  }
  func.func @transform_1(%arg0: i32) -> (i32, i32) {
    %c0_i32 = arith.constant 0 : i32
    %c0_i32_0 = arith.constant 0 : i32
    %c0_i32_1 = arith.constant 0 : i32
    return %c0_i32, %c0_i32_0 : i32, i32
  }
  func.func @transform_2(%arg0: i32) -> (i32, i32) {
    %c0_i32 = arith.constant 0 : i32
    %c0_i32_0 = arith.constant 0 : i32
    %c0_i32_1 = arith.constant 0 : i32
    return %c0_i32, %c0_i32_0 : i32, i32
  }
  func.func @transform_3(%arg0: i32) -> (i32, i32) {
    %c0_i32 = arith.constant 0 : i32
    %c0_i32_0 = arith.constant 0 : i32
    %c0_i32_1 = arith.constant 0 : i32
    return %c0_i32, %c0_i32_0 : i32, i32
  }
  func.func @transform_4(%arg0: i32) -> (i32, i32) {
    %c0_i32 = arith.constant 0 : i32
    %c0_i32_0 = arith.constant 0 : i32
    %c0_i32_1 = arith.constant 0 : i32
    return %c0_i32, %c0_i32_0 : i32, i32
  }
  func.func @transform_5(%arg0: i32) -> (i32, i32) {
    %c0_i32 = arith.constant 0 : i32
    %c0_i32_0 = arith.constant 0 : i32
    %c0_i32_1 = arith.constant 0 : i32
    return %c0_i32, %c0_i32_0 : i32, i32
  }
}

</mosaic_0001>

<bundles_post_ra>
// kernel: tile.39
= control target key start
LH: loop header
LB: loop body
LE: loop exit
PB: predicated region body
PF: predicated region fallthrough
CT: control target
= control target key end

     0   :  { %s7_s6 = smov 3  ;;  %s21_s9 = smov 3  ;;  %vm4_vm0 = vcmask 130048   ;;  %vm11_vm1 = vcmask 1048448   ;;  %vm18_vm2 = vcmask 917248   ;;  %vm25_vm3 = vcmask 786048   ;;  %s131_s0 = inlined_call_operand.vmem [shape: f32[16,16], index: 0, kind: input, shape index: {}]   ;;  %s132_s1 = inlined_call_operand.vmem [shape: f32[1,256], index: 1, kind: output, shape index: {}]  }
   0x1   :  { %v69_v0 = vld [vmem:[%s131_s0 + $0x7] ss:$8 sm:%s7_s6]   ;;  %s84_s10 = smov 112   ;;  %v71_v1 = vld [vmem:[%s131_s0 + $0x5] ss:$8 sm:%s21_s9]   ;;  %s14_s13 = smov 3 }
   0x2   :  { %9 = vrot.lane.b32.xlu0 %v69_v0, %s84_s10  ;;  %s85_s14 = smov 80   ;;  %v70_v2 = vld [vmem:[%s131_s0 + $0x6] ss:$8 sm:%s14_s13]   ;;  %s28_s17 = smov 3  ;;  %vm32_vm4 = vcmask 654848   ;;  %vm39_vm5 = vcmask 523648  }
   0x3   :  { %23 = vrot.lane.b32.xlu1 %v71_v1, %s85_s14  ;;  %v72_v3 = vld [vmem:[%s131_s0 + $0x4] ss:$8 sm:%s28_s17]   ;;  %s35_s20 = smov 3  ;;  %s42_s21 = smov 3  ;;  %vm46_vm6 = vcmask 392448   ;;  %vm53_vm7 = vcmask 261248  }
   0x4   :  { %s86_s22 = smov 96   ;;  %s87_s23 = smov 64   ;;  %v73_v4 = vld [vmem:[%s131_s0 + $0x3] ss:$8 sm:%s35_s20]   ;;  %v74_v5 = vld [vmem:[%s131_s0 + $0x2] ss:$8 sm:%s42_s21]  }
   0x5   :  { %s2_s26 = smov 3  ;;  %s49_s29 = smov 3 }
   0x6   :  { %16 = vrot.lane.b32.xlu0 %v70_v2, %s86_s22  ;;  %v3_v6 = vld [vmem:[%s131_s0] ss:$8 sm:%s2_s26]   ;;  %s88_s3 = smov 48   ;;  %s89_s4 = smov 32  }
   0x7   :  { %30 = vrot.lane.b32.xlu1 %v72_v3, %s87_s23  ;;  %5 = vst.msk [vmem:[#allocation0] ss:$8 sm:$0x3] %vm4_vm0, %v3_v6   ;;  %v75_v7 = vld [vmem:[%s131_s0 + $0x1] ss:$8 sm:%s49_s29]   ;;  %s90_s0 = smov 16  }
   0xa   :  { %37 = vrot.lane.b32.xlu0 %v73_v4, %s88_s3 }
   0xb   :  { %44 = vrot.lane.b32.xlu1 %v74_v5, %s89_s4 }
   0xe   :  { %51 = vrot.lane.b32.xlu0 %v75_v7, %s90_s0 }
  0x74   :  { %v10_v8 = vpop.permute.xlu0 %9  }
  0x75   :  { %12 = vst.msk [vmem:[#allocation0] ss:$8 sm:$0x3] %vm11_vm1, %v10_v8   ;;  %v24_v9 = vpop.permute.xlu1 %23  }
  0x78   :  { %v17_v10 = vpop.permute.xlu0 %16  }
  0x79   :  { %19 = vst.msk [vmem:[#allocation0] ss:$8 sm:$0x3] %vm18_vm2, %v17_v10   ;;  %v31_v11 = vpop.permute.xlu1 %30  }
  0x7a   :  { %26 = vst.msk [vmem:[#allocation0] ss:$8 sm:$0x3] %vm25_vm3, %v24_v9  }
  0x7b   :  { %33 = vst.msk [vmem:[#allocation0] ss:$8 sm:$0x3] %vm32_vm4, %v31_v11  }
  0x7c   :  { %v38_v12 = vpop.permute.xlu0 %37  }
  0x7d   :  { %40 = vst.msk [vmem:[#allocation0] ss:$8 sm:$0x3] %vm39_vm5, %v38_v12   ;;  %v45_v13 = vpop.permute.xlu1 %44  }
  0x7e   :  { %47 = vst.msk [vmem:[#allocation0] ss:$8 sm:$0x3] %vm46_vm6, %v45_v13  }
  0x80   :  { %v52_v14 = vpop.permute.xlu0 %51  }
  0x81   :  { %54 = vst.msk [vmem:[#allocation0] ss:$8 sm:$0x3] %vm53_vm7, %v52_v14  }
  0x88   :  { %v59_v15 = vld [vmem:[#allocation0] sm:$0x1]  ;;  %v64_v16 = vld [vmem:[#allocation0 + $0x8] sm:$0x1] }
  0x89   :  { %62 = vst [vmem:[%s132_s1] sm:$0x1] %v59_v15  ;;  %76 = vst [vmem:[%s132_s1 + $0x1] sm:$0x1] %v64_v16 }

// kernel: metafluad_forward.11
= control target key start
LH: loop header
LB: loop body
LE: loop exit
PB: predicated region body
PF: predicated region fallthrough
CT: control target
= control target key end

     0   :  { %s632_s12 = smov 0   ;;  %s710_s0 = inlined_call_operand.vmem [shape: f32[6,26,18], index: 0, kind: input, shape index: {}]   ;;  %s711_s1 = inlined_call_operand.vmem [shape: bf16[3,18,256], index: 1, kind: input, shape index: {}]   ;;  %s712_s2 = inlined_call_operand.vmem [shape: f32[1,256], index: 2, kind: input, shape index: {}]   ;;  %s713_s3 = inlined_call_operand.vmem [shape: f32[6,24,256], index: 3, kind: output, shape index: {}]  }
   0x1 LB: > { %s536_s13 = sadd.s32 4294967295, %s609_s12   ;;  %p540_p0 = scmp.ge.s32.totalorder %s609_s12, 1  ;;  %s609_s12 = sphi %s632_s12, %s13_s12  }
   0x2   : > { %p137_p1 = scmp.lt.s32.totalorder %s609_s12, 7 }
   0x4   : > { %p138_p2 = pnand %p540_p0, %p137_p1 }
   0x5   : > { %p161_p3 = scmp.lt.s32.totalorder (!%p138_p2), %s536_s13, 5 }
   0x6   : > { %141 = sbr.rel (%p138_p2) target bundleno = 244 (0xf4), region = 32 }
   0xb   : > { %v546_v0 = vld [vmem:[%s711_s1 + $0x28] sm:$0x11]  ;;  %vm223_vm0 = vcmask 1040384   ;;  %v590_v3 = vld [vmem:[%s711_s1 + $0x1c] ss:$8 sps:$4 sm:$0xff]   ;;  %v611_v4 = vmov 0   ;;  %v453_v37 = vlaneseq }
   0xc   : > { %v550_v1 = vcombine.high %v546_v0, %v546_v0  ;;  %v549_v2 = vcombine.low %v546_v0, %v546_v0  ;;  %272 = vmatprep.mubr.bf16.mxu1 %v611_v4  ;;  %262 = vmatprep.mubr.bf16.mxu0 %v611_v4  ;;  %v180_v5 = vld [vmem:[%s711_s1 + $0x10] sm:$0x11]  ;;  %v563_v6 = vld [vmem:[%s711_s1 + $0x40] sm:$0x11]  ;;  %s715_s13 = smov (!%p161_p3, %s536_s13), 5  ;;  %vm216_vm1 = vcmask 146432  }
   0xd   : > { %v592_v8 = vld [vmem:[%s711_s1 + $0x18] ss:$8 sps:$4 sm:$0xff]   ;;  %v557_v9 = vcombine.high %v180_v5, %v180_v5  ;;  %v567_v10 = vcombine.high %v563_v6, %v563_v6  ;;  %s573_s24 = sshll.u32 %s715_s13, 5  ;;  %v556_v19 = vcombine.low %v180_v5, %v180_v5  ;;  %v566_v23 = vcombine.low %v563_v6, %v563_v6  ;;  %v599_v27 = vld [vmem:[%s711_s1 + $0x4] ss:$8 sps:$4 sm:$0xff]   ;;  %s578_s11 = smul.u32 48, %s715_s13 }
   0xe   : > { %574 = vmatprep.subr.msk.bf16.mxu1 %vm223_vm0, %v550_v1  ;;  %v225_v7 = vsel %vm223_vm0, %v549_v2, 0  ;;  %551 = vmatprep.subr.msk.bf16.mxu0 %vm223_vm0, %v550_v1  ;;  %s165_s27 = scalar_lea.vmem %s710_s0, %s573_s24  ;;  %vm185_vm2 = vsmask.f32 7424  ;;  %v602_v30 = vld [vmem:[%s711_s1 + $0x34] ss:$8 sps:$4 sm:$0xff]   ;;  %vm363_vm3 = vcmask 1046528  }
   0xf   : > { %576 = vmatpush1.bf16.msra.mxu1 %v225_v7  ;;  %243 = vmatpush1.bf16.msra.mxu0 %v225_v7  ;;  %v174_v11 = vld [vmem:[%s165_s27 + $0x10] sm:$0xff]  ;;  %v175_v12 = vld [vmem:[%s165_s27 + $0x18] sm:$0x3]  ;;  %v172_v13 = vld [vmem:[%s165_s27] sm:$0xff]  ;;  %v301_v26 = vsel %vm223_vm0, %v556_v19, 0  ;;  %v389_v29 = vsel %vm223_vm0, %v566_v23, 0  ;;  %s699_s16 = scalar_lea.vmem %s713_s3, %s578_s11 }
  0x10   : > { %575 = vmatprep.subr.bf16.mxu1 %v590_v3  ;;  %244 = vmatprep.subr.bf16.mxu0 %v590_v3  ;;  %v177_v14 = vpack.c.bf16 %v175_v12, %v174_v11  ;;  %v173_v15 = vld [vmem:[%s165_s27 + $0x8] sm:$0xff]  ;;  %v600_v33 = vld [vmem:[%s711_s1 + $0x30] ss:$8 sps:$4 sm:$0xff]   ;;  %v454_v39 = vshrl.u32 %v453_v37, 7  ;;  %v451_v47 = vld [vmem:[%s712_s2] sm:$0x3] }
  0x11   : > { %v176_v16 = vpack.c.bf16 %v173_v15, %v172_v13  ;;  %v597_v32 = vld [vmem:[%s711_s1] ss:$8 sps:$4 sm:$0xff]  }
  0x12   : > { %v194_v17 = vshll.u32 %v177_v14, 16  ;;  %v198_v18 = vshrl.u32 %v177_v14, 16  ;;  %v365_v35 = vrot.slane %v177_v14, 1  ;;  %v455_v44 = vsub.s32 0, %v454_v39 }
  0x13   : > { %577 = vmatpush1.bf16.msra.mxu1 %v592_v8  ;;  %245 = vmatpush1.bf16.msra.mxu0 %v592_v8  ;;  %v187_v20 = vshrl.u32 %v176_v16, 16  ;;  %v189_v21 = vshll.u32 %v176_v16, 16  ;;  %v364_v34 = vrot.slane %v176_v16, 1  ;;  %v459_v48 = vsub.s32 1, %v454_v39 }
  0x14   : > { %558 = vmatprep.subr.msk.bf16.mxu1 %vm223_vm0, %v557_v9  ;;  %568 = vmatprep.subr.msk.bf16.mxu0 %vm223_vm0, %v567_v10  ;;  %v196_v22 = vrot.slane %v194_v17, 1  ;;  %v456_v52 = vrot.slane %v451_v47, %v455_v44 }
  0x15   : > { %v191_v24 = vrot.slane %v189_v21, 1  ;;  %v366_v36 = vsel %vm363_vm3, %v364_v34, %v365_v35  ;;  %v460_v57 = vrot.slane %v451_v47, %v459_v48 }
  0x16   : > { %v200_v25 = vor.u32 %v198_v18, %v196_v22 }
  0x17   : > { %v192_v28 = vor.u32 %v191_v24, %v187_v20 }
  0x18   : > { %553 = vmatmul.mubr.msk.bf16.vlgmr.msra.gmra.mxu1 %vm216_vm1, %v200_v25 }
  0x19   : > { %319 = vmatpush1.bf16.msra.mxu1 %v301_v26  ;;  %v197_v31 = vsel %vm185_vm2, %v192_v28, %v196_v22  ;;  %338 = vmatprep.mubr.bf16.mxu1 %v611_v4 }
  0x1a   : > { %552 = vmatmul.mubr.msk.bf16.vlgmr.msra.gmra.mxu0 %vm216_vm1, %v197_v31  ;;  %320 = vmatprep.subr.bf16.mxu1 %v599_v27 }
  0x1b   : > { %407 = vmatpush1.bf16.msra.mxu0 %v389_v29  ;;  %426 = vmatprep.mubr.bf16.mxu0 %v611_v4 }
  0x1c   : > { %408 = vmatprep.subr.bf16.mxu0 %v602_v30 }
  0x1d   : > { %321 = vmatpush1.bf16.msra.mxu1 %v597_v32 }
  0x1f   : > { %409 = vmatpush1.bf16.msra.mxu0 %v600_v33 }
  0x20   : > { %559 = vmatmul.mubr.msk.bf16.vlgmr.msra.gmra.mxu1 %vm216_vm1, %v176_v16 }
  0x21   : > { %348 = vmatprep.mubr.bf16.mxu1 %v611_v4 }
  0x22   : > { %569 = vmatmul.mubr.msk.bf16.vlgmr.msra.gmra.mxu0 %vm216_vm1, %v366_v36 }
  0x23   : > { %436 = vmatprep.mubr.bf16.mxu0 %v611_v4 }
  0x28   : > { %560 = vmatmul.mubr.msk.bf16.gmra.mxu1 %vm216_vm1, %v177_v14 }
  0x2a   : > { %570 = vmatmul.mubr.msk.bf16.gmra.mxu0 %vm216_vm1, %v365_v35 }
  0xd8   : > { %v274_v38 = vpop.f32.mrf.mxu1 }
  0xda   : > { %v264_v40 = vpop.f32.mrf.mxu0  ;;  %v276_v41 = vpop.f32.mrf.mxu1 }
  0xdc   : > { %v266_v42 = vpop.f32.mrf.mxu0  ;;  %v278_v43 = vpop.f32.mrf.mxu1 }
  0xde   : > { %v268_v45 = vpop.f32.mrf.mxu0  ;;  %v279_v46 = vpop.f32.mrf.mxu1 }
  0xe0   : > { %v270_v49 = vpop.f32.mrf.mxu0  ;;  %v340_v50 = vpop.f32.mrf.mxu1 }
  0xe1   : > { %v341_v51 = vadd.f32 %v340_v50, %v264_v40 }
  0xe2   : > { %v428_v53 = vpop.f32.mrf.mxu0  ;;  %v342_v54 = vpop.f32.mrf.mxu1 }
  0xe3   : > { %v445_v55 = vadd.f32 %v428_v53, %v341_v51  ;;  %v343_v56 = vadd.f32 %v342_v54, %v266_v42 }
  0xe4   : > { %v430_v58 = vpop.f32.mrf.mxu0  ;;  %v344_v59 = vpop.f32.mrf.mxu1 }
  0xe5   : > { %v463_v60 = vadd.f32 %v456_v52, %v445_v55  ;;  %v446_v61 = vadd.f32 %v430_v58, %v343_v56  ;;  %v345_v62 = vadd.f32 %v344_v59, %v268_v45 }
  0xe6   : > { %v432_v63 = vpop.f32.mrf.mxu0  ;;  %v346_v0 = vpop.f32.mrf.mxu1 }
  0xe7   : > { %v469_v1 = vmax.f32 %v463_v60, 0.0  ;;  %v464_v2 = vadd.f32 %v460_v57, %v446_v61  ;;  %v447_v3 = vadd.f32 %v432_v63, %v345_v62  ;;  %v347_v4 = vadd.f32 %v346_v0, %v270_v49 }
  0xe8   : > { %v434_v5 = vpop.f32.mrf.mxu0  ;;  %v350_v6 = vpop.f32.mrf.mxu1 }
  0xe9   : > { %475 = vst [vmem:[%s699_s16] sm:$0xff] %v469_v1  ;;  %v470_v7 = vmax.f32 %v464_v2, 0.0  ;;  %v465_v8 = vadd.f32 %v456_v52, %v447_v3  ;;  %v448_v9 = vadd.f32 %v434_v5, %v347_v4  ;;  %v351_v10 = vadd.f32 %v350_v6, %v274_v38 }
  0xea   : > { %v438_v11 = vpop.f32.mrf.mxu0  ;;  %v352_v12 = vpop.f32.mrf.mxu1 }
  0xeb   : > { %476 = vst [vmem:[%s699_s16 + $0x8] sm:$0xff] %v470_v7  ;;  %v471_v13 = vmax.f32 %v465_v8, 0.0  ;;  %v466_v14 = vadd.f32 %v460_v57, %v448_v9  ;;  %v449_v15 = vadd.f32 %v438_v11, %v351_v10  ;;  %v353_v16 = vadd.f32 %v352_v12, %v276_v41 }
  0xec   : > { %v440_v17 = vpop.f32.mrf.mxu0  ;;  %v354_v18 = vpop.f32.mrf.mxu1 }
  0xed   : > { %477 = vst [vmem:[%s699_s16 + $0x10] sm:$0xff] %v471_v13  ;;  %v472_v19 = vmax.f32 %v466_v14, 0.0  ;;  %v467_v20 = vadd.f32 %v456_v52, %v449_v15  ;;  %v450_v21 = vadd.f32 %v440_v17, %v353_v16 }
  0xee   : > { %v442_v22 = vpop.f32.mrf.mxu0  ;;  %v355_v23 = vpop.f32.mrf.mxu1 }
  0xef   : > { %478 = vst [vmem:[%s699_s16 + $0x18] sm:$0xff] %v472_v19  ;;  %v473_v24 = vmax.f32 %v467_v20, 0.0  ;;  %v468_v25 = vadd.f32 %v460_v57, %v450_v21 }
  0xf0   : > { %v443_v26 = vpop.f32.mrf.mxu0 }
  0xf1   : > { %479 = vst [vmem:[%s699_s16 + $0x20] sm:$0xff] %v473_v24  ;;  %v474_v27 = vmax.f32 %v468_v25, 0.0 }
  0xf3   : > { %480 = vst [vmem:[%s699_s16 + $0x28] sm:$0xff] %v474_v27 }
  0xf4 PF: > { %s13_s12 = sadd.s32 1, %s609_s12  }
  0xf5   : > { %p10_p4 = scmp.ge.s32.totalorder %s13_s12, 8  }
  0xf7   :  { %12 = sbr.rel (!%p10_p4) target bundleno = 1 (0x1), region = 64 }

// kernel: metafluad_forward.12
= control target key start
LH: loop header
LB: loop body
LE: loop exit
PB: predicated region body
PF: predicated region fallthrough
CT: control target
= control target key end

     0   :  { %v234_v0 = vmov 0.0   ;;  %vm235_vm0 = vmmov 0   ;;  %vm32_vm1 = vcmask 130048   ;;  %vm119_vm2 = vcmask 1040384   ;;  %s287_s1 = inlined_call_operand.vmem [shape: f32[16,1], index: 1, kind: input, shape index: {}]   ;;  %s288_s0 = inlined_call_operand.vmem [shape: f32[6,16], index: 0, kind: input, shape index: {}]   ;;  %s289_s2 = inlined_call_operand.<no memory space> [shape: f32[1,1], index: 2, kind: input, shape index: {}]   ;;  %s290_s3 = inlined_call_operand.vmem [shape: f32[1,16], index: 3, kind: input, shape index: {}]   ;;  %s291_s4 = inlined_call_operand.vmem [shape: f32[1,16], index: 4, kind: input, shape index: {}]   ;;  %s292_s5 = inlined_call_operand.vmem [shape: f32[6,16], index: 5, kind: output, shape index: {}]  }
   0x1   :  { %216 = vmatprep.subr.mxu0 %v234_v0  ;;  %v24_v1 = vld [vmem:[%s287_s1 + $0x8] sm:$0xff]  ;;  %v23_v2 = vld [vmem:[%s287_s1] sm:$0xff]  ;;  %220 = vmatprep.mubr.msk.f32.mxu0 %vm235_vm0, %v234_v0  ;;  %v10_v3 = vstv %s289_s2  ;;  %vm115_vm3 = vcmask 7168   ;;  %vm199_vm4 = vcmask 128000  }
   0x2   :  { %217 = vmatpush3.msra.mxu0 %v24_v1  ;;  %v22_v4 = vld [vmem:[%s288_s0] sm:$0x3f]  ;;  %11 = vst [vmem:[#allocation2] sm:$0x1] %v10_v3  ;;  %223 = vmatprep.subr.mxu1 %v234_v0 }
   0x3   :  { %218 = vmatprep.subr.mxu0 %v234_v0  ;;  %225 = vmatprep.mubr.msk.f32.mxu1 %vm235_vm0, %v234_v0  ;;  %v107_v5 = vld [vmem:[%s290_s3] sm:$0x1] }
   0x4   :  { %219 = vmatpush3.msra.mxu0 %v23_v2  ;;  %224 = vmatpush3.msk.msra.mxu1 %vm119_vm2, %v107_v5  ;;  %v207_v11 = vld [vmem:[%s291_s4] ss:$0 sm:$0xff] }
   0x5   :  { %221 = vmatmul.mubr.msk.f32.vlgmr.msra.gmra.mxu0 %vm32_vm1, %v22_v4 }
   0x9   :  { %v205_v6 = vld [vmem:[#allocation2] ss:$0 sm:$0xff] }
  0xc5   :  { %v102_v7 = vpop.f32.mrf.mxu0 }
  0xc6   :  { %v103_v8 = vadd.f32 %v205_v6, %v102_v7 }
  0xc7   :  { %v222_v9 = vpop.f32.mrf.mxu0 }
  0xc8   :  { %v106_v10 = vmax.f32 %v103_v8, 0.0 }
  0xca   :  { %226 = vmatmul.mubr.msk.f32.vlgmr.msra.gmra.mxu1 %vm115_vm3, %v106_v10 }
 0x18a   :  { %v189_v12 = vpop.f32.mrf.mxu1 }
 0x18b   :  { %v190_v13 = vadd.f32 %v207_v11, %v189_v12 }
 0x18c   :  { %v227_v14 = vpop.f32.mrf.mxu1 }
 0x18d   :  { %v210_v15 = vmul.f32 -1.442695, %v190_v13 }
 0x18f   :  { %230 = vpow2.f32 %v210_v15 }
 0x19c   :  { %v231_v16 = vpop.eup %230 }
 0x19d   :  { %v196_v17 = vadd.f32 1.0, %v231_v16 }
 0x19f   :  { %232 = vrcp.f32 %v196_v17 }
 0x1ac   :  { %v233_v18 = vpop.eup %232 }
 0x1ad   :  { %200 = vst.msk [vmem:[%s292_s5] sm:$0x3f] %vm199_vm4, %v233_v18 }

// kernel: metafluad_forward.13
= control target key start
LH: loop header
LB: loop body
LE: loop exit
PB: predicated region body
PF: predicated region fallthrough
CT: control target
= control target key end

     0   :  { %s1812_s15 = smov 0   ;;  %s2265_s0 = inlined_call_operand.vmem [shape: f32[6,26,288], index: 0, kind: input, shape index: {}]   ;;  %s2266_s1 = inlined_call_operand.vmem [shape: bf16[3,288,256], index: 1, kind: input, shape index: {}]   ;;  %s2267_s2 = inlined_call_operand.vmem [shape: f32[1,256], index: 2, kind: input, shape index: {}]   ;;  %s2268_s3 = inlined_call_operand.vmem [shape: f32[6,1,288], index: 3, kind: input, shape index: {}]   ;;  %s2269_s4 = inlined_call_operand.vmem [shape: f32[6,24,256], index: 4, kind: output, shape index: {}]  }
   0x1 LB: > { %s1409_s16 = sadd.s32 4294967295, %s1784_s15   ;;  %p1413_p0 = scmp.ge.s32.totalorder %s1784_s15, 1  ;;  %s1784_s15 = sphi %s1812_s15, %s14_s15  }
   0x2   : > { %p171_p1 = scmp.lt.s32.totalorder %s1784_s15, 7 }
   0x4   : > { %p172_p2 = pnand %p1413_p0, %p171_p1 }
   0x5   : > { %p201_p3 = scmp.lt.s32.totalorder (!%p172_p2), %s1409_s16, 5 }
   0x6   : > { %175 = sbr.rel (%p172_p2) target bundleno = 353 (0x161), region = 36 }
   0xb   : > { %v1616_v0 = vld [vmem:[%s2266_s1 + $0x194] ss:$8 sps:$4 sm:$0xff]   ;;  %v1620_v2 = vld [vmem:[%s2266_s1 + $0x190] ss:$8 sps:$4 sm:$0xff]   ;;  %v1622_v4 = vld [vmem:[%s2266_s1 + $0x184] ss:$8 sps:$4 sm:$0xff]   ;;  %v230_v38 = vlaneseq }
   0xc   : > { %v1618_v1 = vld [vmem:[%s2266_s1 + $0x74] ss:$8 sps:$4 sm:$0xff]   ;;  %573 = vmatprep.subr.bf16.mxu0 %v1616_v0  ;;  %v1621_v3 = vld [vmem:[%s2266_s1 + $0x70] ss:$8 sps:$4 sm:$0xff]   ;;  %v1624_v5 = vld [vmem:[%s2266_s1 + $0x64] ss:$8 sps:$4 sm:$0xff]  }
   0xd   : > { %859 = vmatprep.subr.bf16.mxu1 %v1618_v1  ;;  %574 = vmatpush1.bf16.msra.mxu0 %v1620_v2  ;;  %v1626_v6 = vld [vmem:[%s2266_s1 + $0x180] ss:$8 sps:$4 sm:$0xff]   ;;  %v1628_v8 = vld [vmem:[%s2266_s1 + $0x174] ss:$8 sps:$4 sm:$0xff]   ;;  %v1632_v10 = vld [vmem:[%s2266_s1 + $0x170] ss:$8 sps:$4 sm:$0xff]  }
   0xe   : > { %860 = vmatpush1.bf16.msra.mxu1 %v1621_v3  ;;  %575 = vmatprep.subr.bf16.mxu0 %v1622_v4  ;;  %v1627_v7 = vld [vmem:[%s2266_s1 + $0x60] ss:$8 sps:$4 sm:$0xff]   ;;  %v1630_v9 = vld [vmem:[%s2266_s1 + $0x54] ss:$8 sps:$4 sm:$0xff]   ;;  %v1633_v11 = vld [vmem:[%s2266_s1 + $0x50] ss:$8 sps:$4 sm:$0xff]  }
   0xf   : > { %861 = vmatprep.subr.bf16.mxu1 %v1624_v5  ;;  %v1634_v12 = vld [vmem:[%s2266_s1 + $0x164] ss:$8 sps:$4 sm:$0xff]   ;;  %v1638_v14 = vld [vmem:[%s2266_s1 + $0x160] ss:$8 sps:$4 sm:$0xff]   ;;  %v1640_v16 = vld [vmem:[%s2266_s1 + $0x154] ss:$8 sps:$4 sm:$0xff]  }
  0x10   : > { %v1636_v13 = vld [vmem:[%s2266_s1 + $0x44] ss:$8 sps:$4 sm:$0xff]   ;;  %v1639_v15 = vld [vmem:[%s2266_s1 + $0x40] ss:$8 sps:$4 sm:$0xff]   ;;  %v1642_v17 = vld [vmem:[%s2266_s1 + $0x34] ss:$8 sps:$4 sm:$0xff]  }
  0x11   : > { %576 = vmatpush1.bf16.msra.mxu0 %v1626_v6  ;;  %v1644_v18 = vld [vmem:[%s2266_s1 + $0x150] ss:$8 sps:$4 sm:$0xff]   ;;  %v1646_v20 = vld [vmem:[%s2266_s1 + $0x144] ss:$8 sps:$4 sm:$0xff]   ;;  %v1650_v22 = vld [vmem:[%s2266_s1 + $0x140] ss:$8 sps:$4 sm:$0xff]  }
  0x12   : > { %862 = vmatpush1.bf16.msra.mxu1 %v1627_v7  ;;  %577 = vmatprep.subr.bf16.mxu0 %v1628_v8  ;;  %v1645_v19 = vld [vmem:[%s2266_s1 + $0x30] ss:$8 sps:$4 sm:$0xff]   ;;  %v1648_v21 = vld [vmem:[%s2266_s1 + $0x24] ss:$8 sps:$4 sm:$0xff]   ;;  %v1651_v23 = vld [vmem:[%s2266_s1 + $0x20] ss:$8 sps:$4 sm:$0xff]  }
  0x13   : > { %863 = vmatprep.subr.bf16.mxu1 %v1630_v9  ;;  %v1652_v24 = vld [vmem:[%s2266_s1 + $0x134] ss:$8 sps:$4 sm:$0xff]   ;;  %v1656_v26 = vld [vmem:[%s2266_s1 + $0x130] ss:$8 sps:$4 sm:$0xff]   ;;  %v1658_v28 = vld [vmem:[%s2266_s1 + $0x124] ss:$8 sps:$4 sm:$0xff]  }
  0x14   : > { %v1654_v25 = vld [vmem:[%s2266_s1 + $0x14] ss:$8 sps:$4 sm:$0xff]   ;;  %v1657_v27 = vld [vmem:[%s2266_s1 + $0x10] ss:$8 sps:$4 sm:$0xff]   ;;  %v1660_v29 = vld [vmem:[%s2266_s1 + $0x4] ss:$8 sps:$4 sm:$0xff]  }
  0x15   : > { %578 = vmatpush1.bf16.msra.mxu0 %v1632_v10  ;;  %v1662_v30 = vld [vmem:[%s2266_s1 + $0x120] ss:$8 sps:$4 sm:$0xff]   ;;  %v1664_v32 = vld [vmem:[%s2266_s1 + $0x214] ss:$8 sps:$4 sm:$0xff]   ;;  %v1668_v34 = vld [vmem:[%s2266_s1 + $0x210] ss:$8 sps:$4 sm:$0xff]  }
  0x16   : > { %864 = vmatpush1.bf16.msra.mxu1 %v1633_v11  ;;  %579 = vmatprep.subr.bf16.mxu0 %v1634_v12  ;;  %v1663_v31 = vld [vmem:[%s2266_s1] ss:$8 sps:$4 sm:$0xff]   ;;  %v1666_v33 = vld [vmem:[%s2266_s1 + $0xf4] ss:$8 sps:$4 sm:$0xff]   ;;  %v1669_v35 = vld [vmem:[%s2266_s1 + $0xf0] ss:$8 sps:$4 sm:$0xff]  }
  0x17   : > { %865 = vmatprep.subr.bf16.mxu1 %v1636_v13  ;;  %v1670_v36 = vld [vmem:[%s2266_s1 + $0x204] ss:$8 sps:$4 sm:$0xff]   ;;  %s2271_s16 = smov (!%p201_p3, %s1409_s16), 5  ;;  %v1674_v39 = vld [vmem:[%s2266_s1 + $0x200] ss:$8 sps:$4 sm:$0xff]   ;;  %v1954_v43 = vshrl.u32 %v230_v38, 7 }
  0x18   : > { %v1672_v37 = vld [vmem:[%s2266_s1 + $0xe4] ss:$8 sps:$4 sm:$0xff]   ;;  %v1675_v40 = vld [vmem:[%s2266_s1 + $0xe0] ss:$8 sps:$4 sm:$0xff]   ;;  %v1676_v41 = vld [vmem:[%s2266_s1 + $0x1f4] ss:$8 sps:$4 sm:$0xff]  }
  0x19   : > { %580 = vmatpush1.bf16.msra.mxu0 %v1638_v14  ;;  %v1678_v42 = vld [vmem:[%s2266_s1 + $0xd4] ss:$8 sps:$4 sm:$0xff]   ;;  %s1604_s29 = smul.u32 96, %s2271_s16  ;;  %v1680_v44 = vld [vmem:[%s2266_s1 + $0x1f0] ss:$8 sps:$4 sm:$0xff]   ;;  %v236_v48 = vsub.s32 1, %v1954_v43 }
  0x1a   : > { %866 = vmatpush1.bf16.msra.mxu1 %v1639_v15  ;;  %581 = vmatprep.subr.bf16.mxu0 %v1640_v16  ;;  %s1605_s30 = smul.u32 3, %s2271_s16  ;;  %v1681_v45 = vld [vmem:[%s2266_s1 + $0xd0] ss:$8 sps:$4 sm:$0xff]   ;;  %v1682_v46 = vld [vmem:[%s2266_s1 + $0x1e4] ss:$8 sps:$4 sm:$0xff]   ;;  %v232_v49 = vsub.s32 0, %v1954_v43 }
  0x1b   : > { %867 = vmatprep.subr.bf16.mxu1 %v1642_v17  ;;  %v1684_v47 = vld [vmem:[%s2266_s1 + $0xc4] ss:$8 sps:$4 sm:$0xff]   ;;  %s1971_s17 = scalar_lea.vmem %s2265_s0, %s1604_s29  ;;  %v1686_v50 = vld [vmem:[%s2266_s1 + $0x1e0] ss:$8 sps:$4 sm:$0xff]   ;;  %v1688_v52 = vld [vmem:[%s2266_s1 + $0x1d4] ss:$8 sps:$4 sm:$0xff]  }
  0x1c   : > { %s209_s20 = scalar_lea.vmem %s2268_s3, %s1605_s30  ;;  %v1687_v51 = vld [vmem:[%s2266_s1 + $0xc0] ss:$8 sps:$4 sm:$0xff]   ;;  %v1690_v53 = vld [vmem:[%s2266_s1 + $0xb4] ss:$8 sps:$4 sm:$0xff]   ;;  %v1692_v58 = vld [vmem:[%s2266_s1 + $0x1d0] ss:$8 sps:$4 sm:$0xff]  }
  0x1d   : > { %582 = vmatpush1.bf16.msra.mxu0 %v1644_v18  ;;  %v217_v54 = vld [vmem:[%s1971_s17 + $0x8] sm:$0xff]  ;;  %v220_v55 = vld [vmem:[%s1971_s17 + $0x20] sm:$0xff]  ;;  %v223_v56 = vld [vmem:[%s1971_s17 + $0x38] sm:$0xff]  ;;  %v240_v12 = vsub.s32 2, %v1954_v43  ;;  %vm336_vm0 = vsmask.f32 7424 }
  0x1e   : > { %868 = vmatpush1.bf16.msra.mxu1 %v1645_v19  ;;  %583 = vmatprep.subr.bf16.mxu0 %v1646_v20  ;;  %v228_v57 = vld [vmem:[%s209_s20] sm:$0x7]  ;;  %v1693_v59 = vld [vmem:[%s2266_s1 + $0xb0] ss:$8 sps:$4 sm:$0xff]   ;;  %v225_v4 = vld [vmem:[%s1971_s17 + $0x48] sm:$0x3] }
  0x1f   : > { %869 = vmatprep.subr.bf16.mxu1 %v1648_v21  ;;  %v226_v60 = vld [vmem:[%s1971_s17 + $0x50] sm:$0x3]  ;;  %v237_v61 = vrot.slane %v228_v57, %v236_v48  ;;  %v216_v62 = vld [vmem:[%s1971_s17] sm:$0xff]  ;;  %v219_v63 = vld [vmem:[%s1971_s17 + $0x18] sm:$0xff]  ;;  %v233_v0 = vrot.slane %v228_v57, %v232_v49  ;;  %vm1004_vm1 = vcmask 1046528   ;;  %vm566_vm2 = vcmask 261120  }
  0x20   : > { %v222_v1 = vld [vmem:[%s1971_s17 + $0x30] sm:$0xff]  ;;  %v1694_v5 = vld [vmem:[%s2266_s1 + $0x1c4] ss:$8 sps:$4 sm:$0xff]   ;;  %v1698_v11 = vld [vmem:[%s2266_s1 + $0x1c0] ss:$8 sps:$4 sm:$0xff]   ;;  %s1606_s28 = smul.u32 48, %s2271_s16 }
  0x21   : > { %584 = vmatpush1.bf16.msra.mxu0 %v1650_v22  ;;  %v246_v2 = vmul.f32 %v237_v61, %v217_v54  ;;  %v249_v3 = vmul.f32 %v237_v61, %v220_v55  ;;  %v1696_v6 = vld [vmem:[%s2266_s1 + $0xa4] ss:$8 sps:$4 sm:$0xff]   ;;  %v252_v7 = vmul.f32 %v237_v61, %v223_v56  ;;  %v255_v8 = vmul.f32 %v237_v61, %v226_v60  ;;  %v1699_v16 = vld [vmem:[%s2266_s1 + $0xa0] ss:$8 sps:$4 sm:$0xff]   ;;  %v1700_v20 = vld [vmem:[%s2266_s1 + $0x1b4] ss:$8 sps:$4 sm:$0xff]  }
  0x22   : > { %870 = vmatpush1.bf16.msra.mxu1 %v1651_v23  ;;  %585 = vmatprep.subr.bf16.mxu0 %v1652_v24  ;;  %v245_v10 = vmul.f32 %v233_v0, %v216_v62  ;;  %v248_v13 = vmul.f32 %v233_v0, %v219_v63  ;;  %v251_v14 = vmul.f32 %v233_v0, %v222_v1  ;;  %v1702_v21 = vld [vmem:[%s2266_s1 + $0x94] ss:$8 sps:$4 sm:$0xff]   ;;  %v1704_v24 = vld [vmem:[%s2266_s1 + $0x1b0] ss:$8 sps:$4 sm:$0xff]   ;;  %v1717_v62 = vld [vmem:[%s2266_s1 + $0x2a4] ss:$8 sps:$4 sm:$0xff]   ;;  %s2253_s16 = scalar_lea.vmem %s2269_s4, %s1606_s28 }
  0x23   : > { %871 = vmatprep.subr.bf16.mxu1 %v1654_v25  ;;  %v2014_v9 = vpack.c.bf16 %v249_v3, %v246_v2  ;;  %v254_v15 = vmul.f32 %v233_v0, %v225_v4  ;;  %v2023_v17 = vpack.c.bf16 %v255_v8, %v252_v7  ;;  %v1705_v25 = vld [vmem:[%s2266_s1 + $0x90] ss:$8 sps:$4 sm:$0xff]   ;;  %v1726_v1 = vld [vmem:[%s2266_s1 + $0x224] ss:$8 sps:$4 sm:$0xff]   ;;  %v1724_v7 = vld [vmem:[%s2266_s1 + $0x220] ss:$8 sps:$4 sm:$0xff]  }
  0x24   : > { %v257_v22 = vpack.c.bf16 %v248_v13, %v245_v10  ;;  %v1712_v60 = vld [vmem:[%s2266_s1 + $0x2b0] ss:$8 sps:$4 sm:$0xff]   ;;  %v1738_v8 = vld [vmem:[%s2266_s1 + $0x114] ss:$8 sps:$4 sm:$0xff]  }
  0x25   : > { %586 = vmatpush1.bf16.msra.mxu0 %v1656_v26  ;;  %v350_v18 = vshrl.u32 %v2014_v9, 16  ;;  %v352_v19 = vshll.u32 %v2014_v9, 16  ;;  %v2033_v23 = vpack.c.bf16 %v254_v15, %v251_v14  ;;  %891 = vmatprep.mubr.bf16.mxu1 %v2014_v9  ;;  %v1718_v63 = vld [vmem:[%s2266_s1 + $0x230] ss:$8 sps:$4 sm:$0xff]   ;;  %v1008_v10 = vrot.slane %v2014_v9, 1 }
  0x26   : > { %872 = vmatpush1.bf16.msra.mxu1 %v1657_v27  ;;  %587 = vmatprep.subr.bf16.mxu0 %v1658_v28  ;;  %v357_v27 = vshll.u32 %v2023_v17, 16  ;;  %v1706_v28 = vld [vmem:[%s2266_s1 + $0x1a4] ss:$8 sps:$4 sm:$0xff]   ;;  %v1005_v54 = vrot.slane %v257_v22, 1 }
  0x27   : > { %873 = vmatprep.subr.bf16.mxu1 %v1660_v29  ;;  %v354_v26 = vrot.slane %v352_v19, 1  ;;  %v1708_v29 = vld [vmem:[%s2266_s1 + $0x84] ss:$8 sps:$4 sm:$0xff]   ;;  %v373_v2 = vshrl.u32 %v2033_v23, 16 }
  0x29   : > { %588 = vmatpush1.bf16.msra.mxu0 %v1662_v30  ;;  %v241_v30 = vrot.slane %v228_v57, %v240_v12  ;;  %v1006_v57 = vrot.slane %v2033_v23, 1 }
  0x2a   : > { %874 = vmatpush1.bf16.msra.mxu1 %v1663_v31  ;;  %589 = vmatprep.subr.bf16.mxu0 %v1664_v32  ;;  %v340_v31 = vshll.u32 %v257_v22, 16  ;;  %v218_v32 = vld [vmem:[%s1971_s17 + $0x10] sm:$0xff] }
  0x2b   : > { %875 = vmatprep.subr.bf16.mxu1 %v1666_v33  ;;  %v355_v33 = vor.u32 %v354_v26, %v350_v18  ;;  %v2084_v0 = vsel %vm1004_vm1, %v1005_v54, %v1006_v57  ;;  %v1729_v18 = vld [vmem:[%s2266_s1 + $0x284] ss:$8 sps:$4 sm:$0xff]   ;;  %v1730_v26 = vld [vmem:[%s2266_s1 + $0x270] ss:$8 sps:$4 sm:$0xff]  }
  0x2c   : > { %v342_v38 = vrot.slane %v340_v31, 1  ;;  %v1733_v31 = vld [vmem:[%s2266_s1 + $0x260] ss:$8 sps:$4 sm:$0xff]  }
  0x2d   : > { %590 = vmatpush2.bf16.msra.mxu0 %v1668_v34  ;;  %v359_v34 = vrot.slane %v357_v27, 1  ;;  %v1735_v27 = vld [vmem:[%s2266_s1 + $0x264] ss:$8 sps:$4 sm:$0xff]  }
  0x2e   : > { %876 = vmatpush2.bf16.msra.mxu1 %v1669_v35  ;;  %591 = vmatprep.subr.bf16.mxu0 %v1670_v36  ;;  %v338_v35 = vshrl.u32 %v257_v22, 16  ;;  %v345_v36 = vshll.u32 %v2033_v23, 16 }
  0x2f   : > { %877 = vmatprep.subr.bf16.mxu1 %v1672_v37  ;;  %v221_v37 = vld [vmem:[%s1971_s17 + $0x28] sm:$0xff] }
  0x31   : > { %592 = vmatpush2.bf16.msra.mxu0 %v1674_v39  ;;  %v1710_v39 = vld [vmem:[%s2266_s1 + $0x1a0] ss:$8 sps:$4 sm:$0xff]  }
  0x32   : > { %878 = vmatpush2.bf16.msra.mxu1 %v1675_v40  ;;  %593 = vmatprep.subr.bf16.mxu0 %v1676_v41  ;;  %v360_v40 = vsel %vm336_vm0, %v355_v33, %v359_v34  ;;  %v1711_v41 = vld [vmem:[%s2266_s1 + $0x80] ss:$8 sps:$4 sm:$0xff]  }
  0x33   : > { %879 = vmatprep.subr.bf16.mxu1 %v1678_v42  ;;  %v247_v42 = vmul.f32 %v241_v30, %v218_v32  ;;  %605 = vmatprep.mubr.bf16.mxu0 %v360_v40  ;;  %v1741_v32 = vld [vmem:[%s2266_s1 + $0x254] ss:$8 sps:$4 sm:$0xff]   ;;  %v1742_v33 = vld [vmem:[%s2266_s1 + $0x100] ss:$8 sps:$4 sm:$0xff]   ;;  %v1748_v40 = vld [vmem:[%s2266_s1 + $0x330] ss:$8 sps:$4 sm:$0xff]  }
  0x35   : > { %594 = vmatpush2.bf16.msra.mxu0 %v1680_v44  ;;  %v224_v44 = vld [vmem:[%s1971_s17 + $0x40] sm:$0xff] }
  0x36   : > { %880 = vmatpush2.bf16.msra.mxu1 %v1681_v45  ;;  %595 = vmatprep.subr.bf16.mxu0 %v1682_v46  ;;  %v227_v45 = vld [vmem:[%s1971_s17 + $0x58] sm:$0x3]  ;;  %v250_v46 = vmul.f32 %v241_v30, %v221_v37  ;;  %v253_v55 = vmul.f32 %v241_v30, %v224_v44  ;;  %v1747_v37 = vld [vmem:[%s2266_s1 + $0x244] ss:$8 sps:$4 sm:$0xff]  }
  0x37   : > { %881 = vmatprep.subr.bf16.mxu1 %v1684_v47  ;;  %v343_v47 = vor.u32 %v342_v38, %v338_v35  ;;  %v256_v56 = vmul.f32 %v241_v30, %v227_v45  ;;  %v1745_v38 = vld [vmem:[%s2266_s1 + $0x240] ss:$8 sps:$4 sm:$0xff]   ;;  %v1771_v44 = vld [vmem:[%s2266_s1 + $0x344] ss:$8 sps:$4 sm:$0xff]  }
  0x38   : > { %v1751_v45 = vld [vmem:[%s2266_s1 + $0x320] ss:$8 sps:$4 sm:$0xff]  }
  0x39   : > { %596 = vmatpush2.bf16.msra.mxu0 %v1686_v50  ;;  %v347_v50 = vrot.slane %v345_v36, 1  ;;  %v2090_v3 = vpack.c.bf16 %v256_v56, %v253_v55  ;;  %v1739_v36 = vld [vmem:[%s2266_s1 + $0x250] ss:$8 sps:$4 sm:$0xff]   ;;  %v1765_v55 = vld [vmem:[%s2266_s1 + $0x2f4] ss:$8 sps:$4 sm:$0xff]  }
  0x3a   : > { %882 = vmatpush2.bf16.msra.mxu1 %v1687_v51  ;;  %597 = vmatprep.subr.bf16.mxu0 %v1688_v52  ;;  %v376_v51 = vshrl.u32 %v2023_v17, 16  ;;  %v1714_v52 = vld [vmem:[%s2266_s1 + $0x2b4] ss:$8 sps:$4 sm:$0xff]   ;;  %v1763_v56 = vld [vmem:[%s2266_s1 + $0x2f0] ss:$8 sps:$4 sm:$0xff]  }
  0x3b   : > { %883 = vmatprep.subr.bf16.mxu1 %v1690_v53  ;;  %v1720_v53 = vld [vmem:[%s2266_s1 + $0x234] ss:$8 sps:$4 sm:$0xff]   ;;  %v375_v12 = vor.u32 %v373_v2, %v347_v50  ;;  %v369_v15 = vshll.u32 %v2090_v3, 16  ;;  %v379_v30 = vshrl.u32 %v2090_v3, 16  ;;  %v1012_v54 = vrot.slane %v2090_v3, 1 }
  0x3c   : > { %v378_v61 = vor.u32 %v376_v51, %v359_v34  ;;  %v1762_v34 = vld [vmem:[%s2266_s1 + $0x354] ss:$8 sps:$4 sm:$0xff]   ;;  %v1759_v51 = vld [vmem:[%s2266_s1 + $0x304] ss:$8 sps:$4 sm:$0xff]  }
  0x3d   : > { %598 = vmatpush2.bf16.msra.mxu0 %v1692_v58  ;;  %v2069_v58 = vpack.c.bf16 %v250_v46, %v247_v42  ;;  %v1760_v42 = vld [vmem:[%s2266_s1 + $0x350] ss:$8 sps:$4 sm:$0xff]   ;;  %v1756_v46 = vld [vmem:[%s2266_s1 + $0x314] ss:$8 sps:$4 sm:$0xff]  }
  0x3e   : > { %884 = vmatpush2.bf16.msra.mxu1 %v1693_v59  ;;  %599 = vmatprep.subr.bf16.mxu0 %v1694_v5  ;;  %v348_v59 = vsel %vm336_vm0, %v343_v47, %v347_v50  ;;  %v1715_v5 = vld [vmem:[%s2266_s1 + $0x2a0] ss:$8 sps:$4 sm:$0xff]   ;;  %v1754_v50 = vld [vmem:[%s2266_s1 + $0x310] ss:$8 sps:$4 sm:$0xff]  }
  0x3f   : > { %885 = vmatprep.subr.bf16.mxu1 %v1696_v6  ;;  %v364_v4 = vshll.u32 %v2069_v58, 16  ;;  %v1723_v6 = vld [vmem:[%s2266_s1 + $0x294] ss:$8 sps:$4 sm:$0xff]   ;;  %v362_v13 = vshrl.u32 %v2069_v58, 16  ;;  %v1769_v47 = vld [vmem:[%s2266_s1 + $0x340] ss:$8 sps:$4 sm:$0xff]  }
  0x41   : > { %600 = vmatpush2.bf16.msra.mxu0 %v1698_v11  ;;  %v1009_v11 = vrot.slane %v2023_v17, 1  ;;  %v366_v14 = vrot.slane %v364_v4, 1 }
  0x42   : > { %886 = vmatpush2.bf16.msra.mxu1 %v1699_v16  ;;  %601 = vmatprep.subr.bf16.mxu0 %v1700_v20  ;;  %v1721_v16 = vld [vmem:[%s2266_s1 + $0x290] ss:$8 sps:$4 sm:$0xff]   ;;  %v371_v20 = vrot.slane %v369_v15, 1 }
  0x43   : > { %887 = vmatprep.subr.bf16.mxu1 %v1702_v21  ;;  %v1010_v9 = vsel %vm1004_vm1, %v1008_v10, %v1009_v11  ;;  %v367_v19 = vor.u32 %v366_v14, %v362_v13  ;;  %v1727_v21 = vld [vmem:[%s2266_s1 + $0x280] ss:$8 sps:$4 sm:$0xff]  }
  0x44   : > { %v381_v35 = vor.u32 %v379_v30, %v371_v20 }
  0x45   : > { %602 = vmatpush2.bf16.msra.mxu0 %v1704_v24  ;;  %v1732_v24 = vld [vmem:[%s2266_s1 + $0x274] ss:$8 sps:$4 sm:$0xff]  }
  0x46   : > { %888 = vmatpush2.bf16.msra.mxu1 %v1705_v25  ;;  %603 = vmatprep.subr.bf16.mxu0 %v1706_v28  ;;  %v372_v25 = vsel %vm336_vm0, %v367_v19, %v371_v20  ;;  %v1736_v28 = vld [vmem:[%s2266_s1 + $0x110] ss:$8 sps:$4 sm:$0xff]  }
  0x47   : > { %889 = vmatprep.subr.bf16.mxu1 %v1708_v29  ;;  %v1744_v29 = vld [vmem:[%s2266_s1 + $0x104] ss:$8 sps:$4 sm:$0xff]  }
  0x49   : > { %604 = vmatpush2.bf16.msra.mxu0 %v1710_v39  ;;  %v1750_v39 = vld [vmem:[%s2266_s1 + $0x334] ss:$8 sps:$4 sm:$0xff]  }
  0x4a   : > { %890 = vmatpush2.bf16.msra.mxu1 %v1711_v41  ;;  %636 = vmatprep.subr.bf16.mxu0 %v1720_v53  ;;  %v1753_v41 = vld [vmem:[%s2266_s1 + $0x324] ss:$8 sps:$4 sm:$0xff]   ;;  %v1011_v53 = vrot.slane %v2069_v58, 1 }
  0x4b   : > { %1204 = vmatprep.subr.bf16.mxu1 %v1714_v52  ;;  %v1757_v52 = vld [vmem:[%s2266_s1 + $0x300] ss:$8 sps:$4 sm:$0xff]  }
  0x4c   : > { %606 = vmatmul.mubr.bf16.vlgmr.msra.gmra.mxu0 %v348_v59  ;;  %v1013_v59 = vsel %vm1004_vm1, %v1011_v53, %v1012_v54 }
  0x4d   : > { %892 = vmatmul.mubr.bf16.vlgmr.msra.gmra.mxu1 %v257_v22  ;;  %615 = vmatprep.mubr.bf16.mxu0 %v378_v61  ;;  %v1786_v22 = vmov 0   ;;  %v1774_v61 = vld [vmem:[%s2266_s1 + $0x2d4] ss:$8 sps:$4 sm:$0xff]  }
  0x4e   : > { %1205 = vmatpush1.bf16.msra.mxu1 %v1712_v60  ;;  %637 = vmatpush1.bf16.msra.mxu0 %v1718_v63  ;;  %v1768_v60 = vld [vmem:[%s2266_s1 + $0x2e4] ss:$8 sps:$4 sm:$0xff]  }
  0x4f   : > { %1206 = vmatprep.subr.bf16.mxu1 %v1717_v62  ;;  %638 = vmatprep.subr.bf16.mxu0 %v1726_v1  ;;  %v1772_v62 = vld [vmem:[%s2266_s1 + $0x2d0] ss:$8 sps:$4 sm:$0xff]   ;;  %v1777_v63 = vld [vmem:[%s2266_s1 + $0x2c4] ss:$8 sps:$4 sm:$0xff]   ;;  %v1775_v1 = vld [vmem:[%s2266_s1 + $0x2c0] ss:$8 sps:$4 sm:$0xff]  }
  0x50   : > { %901 = vmatprep.mubr.bf16.mxu1 %v2023_v17 }
  0x52   : > { %1207 = vmatpush1.bf16.msra.mxu1 %v1715_v5  ;;  %639 = vmatpush1.bf16.msra.mxu0 %v1724_v7 }
  0x53   : > { %1208 = vmatprep.subr.bf16.mxu1 %v1723_v6  ;;  %922 = vmatprep.subr.bf16.mxu0 %v1738_v8 }
  0x54   : > { %616 = vmatmul.mubr.bf16.gmra.mxu0 %v375_v12 }
  0x55   : > { %902 = vmatmul.mubr.bf16.gmra.mxu1 %v2033_v23  ;;  %656 = vmatprep.mubr.bf16.mxu0 %v1786_v22 }
  0x56   : > { %1209 = vmatpush1.bf16.msra.mxu1 %v1721_v16  ;;  %1236 = vmatprep.mubr.bf16.mxu1 %v1010_v9 }
  0x57   : > { %1210 = vmatprep.subr.bf16.mxu1 %v1729_v18 }
  0x5a   : > { %1211 = vmatpush1.bf16.msra.mxu1 %v1727_v21 }
  0x5b   : > { %1212 = vmatprep.subr.bf16.mxu1 %v1732_v24 }
  0x5c   : > { %1488 = vmatmul.mubr.msk.bf16.vlgmr.msra.gmra.mxu0 %vm566_vm2, %v372_v25 }
  0x5d   : > { %666 = vmatprep.mubr.bf16.mxu0 %v1786_v22  ;;  %923 = vmatpush1.bf16.msra.mxu0 %v1736_v28 }
  0x5e   : > { %1213 = vmatpush1.bf16.msra.mxu1 %v1730_v26  ;;  %924 = vmatprep.subr.bf16.mxu0 %v1744_v29 }
  0x5f   : > { %1214 = vmatprep.subr.bf16.mxu1 %v1735_v27 }
  0x61   : > { %925 = vmatpush1.bf16.msra.mxu0 %v1742_v33 }
  0x62   : > { %1215 = vmatpush1.bf16.msra.mxu1 %v1733_v31  ;;  %1267 = vmatprep.subr.bf16.mxu0 %v1762_v34 }
  0x63   : > { %1216 = vmatprep.subr.bf16.mxu1 %v1741_v32 }
  0x64   : > { %1489 = vmatmul.mubr.msk.bf16.gmra.mxu0 %vm566_vm2, %v381_v35 }
  0x65   : > { %942 = vmatprep.mubr.bf16.mxu0 %v1786_v22 }
  0x66   : > { %1217 = vmatpush1.bf16.msra.mxu1 %v1739_v36 }
  0x67   : > { %1218 = vmatprep.subr.bf16.mxu1 %v1747_v37 }
  0x6a   : > { %1219 = vmatpush1.bf16.msra.mxu1 %v1745_v38 }
  0x6b   : > { %1220 = vmatprep.subr.bf16.mxu1 %v1750_v39 }
  0x6c   : > { %1526 = vmatmul.mubr.msk.bf16.vlgmr.msra.gmra.mxu0 %vm566_vm2, %v2069_v58  ;;  %v1766_v58 = vld [vmem:[%s2266_s1 + $0x2e0] ss:$8 sps:$4 sm:$0xff]  }
  0x6d   : > { %952 = vmatprep.mubr.bf16.mxu0 %v1786_v22  ;;  %1268 = vmatpush1.bf16.msra.mxu0 %v1760_v42 }
  0x6e   : > { %1221 = vmatpush2.bf16.msra.mxu1 %v1748_v40  ;;  %1269 = vmatprep.subr.bf16.mxu0 %v1771_v44 }
  0x6f   : > { %1222 = vmatprep.subr.bf16.mxu1 %v1753_v41  ;;  %v1312_v41 = vld [vmem:[%s2267_s2] sm:$0x3] }
  0x70   : > { %v1317_v53 = vrot.slane %v1312_v41, %v232_v49 }
  0x71   : > { %1270 = vmatpush1.bf16.msra.mxu0 %v1769_v47 }
  0x72   : > { %1223 = vmatpush2.bf16.msra.mxu1 %v1751_v45 }
  0x73   : > { %1224 = vmatprep.subr.bf16.mxu1 %v1756_v46 }
  0x74   : > { %1527 = vmatmul.mubr.msk.bf16.gmra.mxu0 %vm566_vm2, %v2090_v3 }
  0x75   : > { %1287 = vmatprep.mubr.bf16.mxu0 %v1786_v22 }
  0x76   : > { %1225 = vmatpush2.bf16.msra.mxu1 %v1754_v50 }
  0x77   : > { %1226 = vmatprep.subr.bf16.mxu1 %v1759_v51 }
  0x7a   : > { %1227 = vmatpush2.bf16.msra.mxu1 %v1757_v52 }
  0x7b   : > { %1228 = vmatprep.subr.bf16.mxu1 %v1765_v55 }
  0x7c   : > { %1600 = vmatmul.mubr.msk.bf16.vlgmr.msra.gmra.mxu0 %vm566_vm2, %v1013_v59 }
  0x7d   : > { %1297 = vmatprep.mubr.bf16.mxu0 %v1786_v22 }
  0x7e   : > { %1229 = vmatpush2.bf16.msra.mxu1 %v1763_v56  ;;  %v1321_v56 = vrot.slane %v1312_v41, %v236_v48 }
  0x7f   : > { %1230 = vmatprep.subr.bf16.mxu1 %v1768_v60 }
  0x82   : > { %1231 = vmatpush2.bf16.msra.mxu1 %v1766_v58 }
  0x83   : > { %1232 = vmatprep.subr.bf16.mxu1 %v1774_v61 }
  0x84   : > { %1601 = vmatmul.mubr.msk.bf16.gmra.mxu0 %vm566_vm2, %v1012_v54 }
  0x86   : > { %1233 = vmatpush2.bf16.msra.mxu1 %v1772_v62 }
  0x87   : > { %1234 = vmatprep.subr.bf16.mxu1 %v1777_v63 }
  0x8a   : > { %1235 = vmatpush2.bf16.msra.mxu1 %v1775_v1 }
  0x8d   : > { %1237 = vmatmul.mubr.bf16.vlgmr.msra.gmra.mxu1 %v2084_v0 }
  0x8e   : > { %1246 = vmatprep.mubr.bf16.mxu1 %v1009_v11 }
  0x95   : > { %1247 = vmatmul.mubr.bf16.gmra.mxu1 %v1006_v57 }
 0x10c   : > { %v607_v2 = vpop.f32.mrf.mxu0 }
 0x10d   : > { %v893_v3 = vpop.f32.mrf.mxu1 }
 0x10e   : > { %v609_v4 = vpop.f32.mrf.mxu0 }
 0x10f   : > { %v895_v5 = vpop.f32.mrf.mxu1 }
 0x110   : > { %v611_v6 = vpop.f32.mrf.mxu0 }
 0x111   : > { %v897_v7 = vpop.f32.mrf.mxu1 }
 0x112   : > { %v613_v8 = vpop.f32.mrf.mxu0 }
 0x113   : > { %v899_v10 = vpop.f32.mrf.mxu1 }
 0x114   : > { %v617_v12 = vpop.f32.mrf.mxu0 }
 0x115   : > { %v903_v13 = vpop.f32.mrf.mxu1 }
 0x116   : > { %v619_v14 = vpop.f32.mrf.mxu0 }
 0x117   : > { %v2240_v15 = vpop.f32.mrf.mxu1 }
 0x118   : > { %v621_v0 = vpop.f32.mrf.mxu0 }
 0x119   : > { %v907_v16 = vpop.f32.mrf.mxu1 }
 0x11a   : > { %v622_v17 = vpop.f32.mrf.mxu0 }
 0x11b   : > { %v908_v11 = vpop.f32.mrf.mxu1 }
 0x11c   : > { %v658_v18 = vpop.f32.mrf.mxu0 }
 0x11d   : > { %v659_v38 = vadd.f32 %v658_v18, %v607_v2 }
 0x11e   : > { %v660_v23 = vpop.f32.mrf.mxu0 }
 0x11f   : > { %v661_v40 = vadd.f32 %v660_v23, %v609_v4  ;;  %v894_v45 = vadd.f32 %v893_v3, %v659_v38 }
 0x120   : > { %v662_v57 = vpop.f32.mrf.mxu0 }
 0x121   : > { %v663_v44 = vadd.f32 %v662_v57, %v611_v6  ;;  %v896_v51 = vadd.f32 %v895_v5, %v661_v40 }
 0x122   : > { %v664_v9 = vpop.f32.mrf.mxu0 }
 0x123   : > { %v665_v46 = vadd.f32 %v664_v9, %v613_v8  ;;  %v898_v60 = vadd.f32 %v897_v7, %v663_v44 }
 0x124   : > { %v668_v19 = vpop.f32.mrf.mxu0 }
 0x125   : > { %v669_v54 = vadd.f32 %v668_v19, %v617_v12  ;;  %v900_v63 = vadd.f32 %v899_v10, %v665_v46 }
 0x126   : > { %v670_v20 = vpop.f32.mrf.mxu0 }
 0x127   : > { %v671_v62 = vadd.f32 %v670_v20, %v619_v14  ;;  %v904_v6 = vadd.f32 %v903_v13, %v669_v54 }
 0x128   : > { %v672_v21 = vpop.f32.mrf.mxu0 }
 0x129   : > { %v906_v10 = vadd.f32 %v2240_v15, %v671_v62 }
 0x12a   : > { %v673_v22 = vpop.f32.mrf.mxu0 }
 0x12c   : > { %v944_v24 = vpop.f32.mrf.mxu0 }
 0x12d   : > { %v945_v50 = vadd.f32 %v944_v24, %v894_v45 }
 0x12e   : > { %v946_v25 = vpop.f32.mrf.mxu0 }
 0x12f   : > { %v947_v59 = vadd.f32 %v946_v25, %v896_v51 }
 0x130   : > { %v948_v26 = vpop.f32.mrf.mxu0 }
 0x131   : > { %v949_v2 = vadd.f32 %v948_v26, %v898_v60 }
 0x132   : > { %v950_v27 = vpop.f32.mrf.mxu0 }
 0x133   : > { %v951_v8 = vadd.f32 %v950_v27, %v900_v63 }
 0x134   : > { %v954_v28 = vpop.f32.mrf.mxu0 }
 0x135   : > { %v955_v14 = vadd.f32 %v954_v28, %v904_v6 }
 0x136   : > { %v956_v29 = vpop.f32.mrf.mxu0 }
 0x137   : > { %v957_v18 = vadd.f32 %v956_v29, %v906_v10 }
 0x138   : > { %v958_v30 = vpop.f32.mrf.mxu0 }
 0x13a   : > { %v959_v31 = vpop.f32.mrf.mxu0 }
 0x13c   : > { %v1289_v32 = vpop.f32.mrf.mxu0 }
 0x13e   : > { %v1291_v33 = vpop.f32.mrf.mxu0 }
 0x140   : > { %v1293_v34 = vpop.f32.mrf.mxu0 }
 0x142   : > { %v1295_v35 = vpop.f32.mrf.mxu0 }
 0x144   : > { %v1299_v36 = vpop.f32.mrf.mxu0 }
 0x146   : > { %v1301_v37 = vpop.f32.mrf.mxu0 }
 0x148   : > { %v1303_v39 = vpop.f32.mrf.mxu0 }
 0x14a   : > { %v1304_v42 = vpop.f32.mrf.mxu0 }
 0x14d   : > { %v1238_v47 = vpop.f32.mrf.mxu1 }
 0x14e   : > { %v1290_v52 = vadd.f32 %v1289_v32, %v1238_v47 }
 0x14f   : > { %v1240_v55 = vpop.f32.mrf.mxu1 }
 0x150   : > { %v1306_v58 = vadd.f32 %v1290_v52, %v945_v50  ;;  %v1292_v61 = vadd.f32 %v1291_v33, %v1240_v55 }
 0x151   : > { %v1242_v1 = vpop.f32.mrf.mxu1 }
 0x152   : > { %v1324_v3 = vadd.f32 %v1317_v53, %v1306_v58  ;;  %v1307_v4 = vadd.f32 %v1292_v61, %v947_v59  ;;  %v1294_v5 = vadd.f32 %v1293_v34, %v1242_v1 }
 0x153   : > { %v1244_v43 = vpop.f32.mrf.mxu1 }
 0x154   : > { %v1330_v48 = vmax.f32 %v1324_v3, 0.0  ;;  %v1325_v49 = vadd.f32 %v1321_v56, %v1307_v4  ;;  %v1308_v7 = vadd.f32 %v1294_v5, %v949_v2  ;;  %v1296_v12 = vadd.f32 %v1295_v35, %v1244_v43 }
 0x155   : > { %v1248_v0 = vpop.f32.mrf.mxu1 }
 0x156   : > { %1336 = vst [vmem:[%s2253_s16] sm:$0xff] %v1330_v48  ;;  %v1331_v13 = vmax.f32 %v1325_v49, 0.0  ;;  %v1326_v16 = vadd.f32 %v1317_v53, %v1308_v7  ;;  %v1309_v17 = vadd.f32 %v1296_v12, %v951_v8  ;;  %v1300_v11 = vadd.f32 %v1299_v36, %v1248_v0 }
 0x157   : > { %v1250_v23 = vpop.f32.mrf.mxu1 }
 0x158   : > { %1337 = vst [vmem:[%s2253_s16 + $0x8] sm:$0xff] %v1331_v13  ;;  %v1332_v57 = vmax.f32 %v1326_v16, 0.0  ;;  %v1327_v9 = vadd.f32 %v1321_v56, %v1309_v17  ;;  %v1310_v19 = vadd.f32 %v1300_v11, %v955_v14  ;;  %v1302_v20 = vadd.f32 %v1301_v37, %v1250_v23 }
 0x159   : > { %v1252_v21 = vpop.f32.mrf.mxu1 }
 0x15a   : > { %1338 = vst [vmem:[%s2253_s16 + $0x10] sm:$0xff] %v1332_v57  ;;  %v1333_v15 = vmax.f32 %v1327_v9, 0.0  ;;  %v1328_v22 = vadd.f32 %v1317_v53, %v1310_v19  ;;  %v1311_v24 = vadd.f32 %v1302_v20, %v957_v18 }
 0x15b   : > { %v1253_v25 = vpop.f32.mrf.mxu1 }
 0x15c   : > { %1339 = vst [vmem:[%s2253_s16 + $0x18] sm:$0xff] %v1333_v15  ;;  %v1334_v26 = vmax.f32 %v1328_v22, 0.0  ;;  %v1329_v27 = vadd.f32 %v1321_v56, %v1311_v24 }
 0x15e   : > { %1340 = vst [vmem:[%s2253_s16 + $0x20] sm:$0xff] %v1334_v26  ;;  %v1335_v28 = vmax.f32 %v1329_v27, 0.0 }
 0x160   : > { %1341 = vst [vmem:[%s2253_s16 + $0x28] sm:$0xff] %v1335_v28 }
 0x161 PF: > { %s14_s15 = sadd.s32 1, %s1784_s15  }
 0x162   : > { %p11_p4 = scmp.ge.s32.totalorder %s14_s15, 8  }
 0x164   :  { %13 = sbr.rel (!%p11_p4) target bundleno = 1 (0x1), region = 71 }

// kernel: tile.53
= control target key start
LH: loop header
LB: loop body
LE: loop exit
PB: predicated region body
PF: predicated region fallthrough
CT: control target
= control target key end

     0   :  { %s28_s0 = inlined_call_operand.vmem [shape: f32[32], index: 0, kind: input, shape index: {}]   ;;  %s29_s1 = inlined_call_operand.vmem [shape: f32[9,32], index: 1, kind: output, shape index: {}]  }
   0x1   :  { %v4_v0 = vld [vmem:[%s28_s0] ss:$0 sm:$0xff] }
   0x2   :  { %5 = vst [vmem:[%s29_s1] sm:$0xff] %v4_v0  ;;  %8 = vst [vmem:[%s29_s1 + $0x8] sm:$0xff] %v4_v0 }

// kernel: tile.54
= control target key start
LH: loop header
LB: loop body
LE: loop exit
PB: predicated region body
PF: predicated region fallthrough
CT: control target
= control target key end

     0   :  { %s6_s6 = smov 3  ;;  %s13_s11 = smov 3  ;;  %vm3_vm0 = vcmask 261120   ;;  %vm10_vm1 = vcmask 1048320   ;;  %vm17_vm2 = vcmask 785920   ;;  %vm24_vm3 = vcmask 523520   ;;  %s90_s0 = inlined_call_operand.vmem [shape: f32[9,32], index: 0, kind: input, shape index: {}]   ;;  %s91_s1 = inlined_call_operand.vmem [shape: f32[1,288], index: 1, kind: output, shape index: {}]  }
   0x1   :  { %v2_v0 = vld [vmem:[%s90_s0] ss:$4 sm:$0x7]   ;;  %v48_v1 = vld [vmem:[%s90_s0 + $0x3] ss:$4 sm:%s6_s6]   ;;  %s56_s12 = smov 96  }
   0x2   :  { %8 = vrot.lane.b32.xlu0 %v48_v1, %s56_s12  ;;  %s20_s13 = smov 3  ;;  %4 = vst.msk [vmem:[#allocation0] ss:$8 sm:$0x7] %vm3_vm0, %v2_v0   ;;  %v49_v2 = vld [vmem:[%s90_s0 + $0x2] ss:$4 sm:%s13_s11]  }
   0x3   :  { %v50_v3 = vld [vmem:[%s90_s0 + $0x1] ss:$4 sm:%s20_s13]   ;;  %s57_s0 = smov 32   ;;  %s58_s18 = smov 64  }
   0x4   :  { %22 = vrot.lane.b32.xlu1 %v50_v3, %s57_s0 }
   0x6   :  { %15 = vrot.lane.b32.xlu0 %v49_v2, %s58_s18 }
   0x9   :  { %v41_v4 = vld [vmem:[#allocation0 + $0x10] sm:$0x1] }
   0xa   :  { %52 = vst [vmem:[%s91_s1 + $0x2] sm:$0x1] %v41_v4 }
  0x74   :  { %v9_v5 = vpop.permute.xlu0 %8  }
  0x75   :  { %11 = vst.msk [vmem:[#allocation0] ss:$8 sm:$0x3] %vm10_vm1, %v9_v5  }
  0x76   :  { %v23_v6 = vpop.permute.xlu1 %22  }
  0x78   :  { %v16_v7 = vpop.permute.xlu0 %15  }
  0x79   :  { %18 = vst.msk [vmem:[#allocation0] ss:$8 sm:$0x3] %vm17_vm2, %v16_v7  }
  0x7a   :  { %25 = vst.msk [vmem:[#allocation0] ss:$8 sm:$0x3] %vm24_vm3, %v23_v6  }
  0x81   :  { %v30_v8 = vld [vmem:[#allocation0] sm:$0x1]  ;;  %v35_v9 = vld [vmem:[#allocation0 + $0x8] sm:$0x1] }
  0x82   :  { %33 = vst [vmem:[%s91_s1] sm:$0x1] %v30_v8  ;;  %51 = vst [vmem:[%s91_s1 + $0x1] sm:$0x1] %v35_v9 }

// kernel: metafluad_forward.14
= control target key start
LH: loop header
LB: loop body
LE: loop exit
PB: predicated region body
PF: predicated region fallthrough
CT: control target
= control target key end

     0   :  { %s1594_s12 = smov 0   ;;  %s1972_s0 = inlined_call_operand.vmem [shape: f32[6,15,176], index: 0, kind: input, shape index: {}]   ;;  %s1973_s1 = inlined_call_operand.vmem [shape: bf16[3,176,288], index: 1, kind: input, shape index: {}]   ;;  %s1974_s2 = inlined_call_operand.vmem [shape: f32[1,288], index: 2, kind: input, shape index: {}]   ;;  %s1975_s3 = inlined_call_operand.vmem [shape: f32[6,13,288], index: 3, kind: output, shape index: {}]  }
   0x1 LB: > { %s1219_s13 = sadd.s32 4294967295, %s1571_s12   ;;  %p1223_p0 = scmp.ge.s32.totalorder %s1571_s12, 1  ;;  %s1571_s12 = sphi %s1594_s12, %s13_s12  }
   0x2   : > { %p137_p1 = scmp.lt.s32.totalorder %s1571_s12, 7 }
   0x4   : > { %p138_p2 = pnand %p1223_p0, %p137_p1 }
   0x5   : > { %p161_p3 = scmp.lt.s32.totalorder (!%p138_p2), %s1219_s13, 5 }
   0x6   : > { %141 = sbr.rel (%p138_p2) target bundleno = 350 (0x15e), region = 32 }
   0xb   : > { %v1433_v0 = vld [vmem:[%s1973_s1 + $0x1b4] ss:$12 sps:$4 sm:$0xff]   ;;  %v1573_v1 = vmov 0   ;;  %v1435_v2 = vld [vmem:[%s1973_s1 + $0x1b8] ss:$12 sps:$4 sm:$0xff]   ;;  %s1977_s13 = smov (!%p161_p3, %s1219_s13), 5 }
   0xc   : > { %505 = vmatprep.subr.bf16.mxu1 %v1573_v1  ;;  %462 = vmatprep.subr.bf16.mxu0 %v1433_v0  ;;  %v1436_v3 = vld [vmem:[%s1973_s1 + $0x1b0] ss:$12 sps:$4 sm:$0xff]   ;;  %v1439_v5 = vld [vmem:[%s1973_s1 + $0x1a0] ss:$12 sps:$4 sm:$0xff]   ;;  %v1440_v6 = vld [vmem:[%s1973_s1 + $0x198] ss:$12 sps:$4 sm:$0xff]  }
   0xd   : > { %506 = vmatpush1.bf16.msra.mxu1 %v1435_v2  ;;  %v1437_v4 = vld [vmem:[%s1973_s1 + $0x19c] ss:$12 sps:$4 sm:$0xff]   ;;  %463 = vmatpush1.bf16.msra.mxu0 %v1436_v3  ;;  %v1441_v7 = vld [vmem:[%s1973_s1 + $0x184] ss:$12 sps:$4 sm:$0xff]   ;;  %v1444_v9 = vld [vmem:[%s1973_s1 + $0x180] ss:$12 sps:$4 sm:$0xff]  }
   0xe   : > { %507 = vmatprep.subr.bf16.mxu1 %v1573_v1  ;;  %464 = vmatprep.subr.bf16.mxu0 %v1437_v4  ;;  %v1443_v8 = vld [vmem:[%s1973_s1 + $0x188] ss:$12 sps:$4 sm:$0xff]   ;;  %v1445_v10 = vld [vmem:[%s1973_s1 + $0x16c] ss:$12 sps:$4 sm:$0xff]   ;;  %v1447_v11 = vld [vmem:[%s1973_s1 + $0x170] ss:$12 sps:$4 sm:$0xff]  }
   0xf   : > { %v1448_v12 = vld [vmem:[%s1973_s1 + $0x168] ss:$12 sps:$4 sm:$0xff]   ;;  %v1451_v14 = vld [vmem:[%s1973_s1 + $0x158] ss:$12 sps:$4 sm:$0xff]   ;;  %v1452_v15 = vld [vmem:[%s1973_s1 + $0x150] ss:$12 sps:$4 sm:$0xff]  }
  0x10   : > { %v1449_v13 = vld [vmem:[%s1973_s1 + $0x154] ss:$12 sps:$4 sm:$0xff]   ;;  %v1453_v16 = vld [vmem:[%s1973_s1 + $0x13c] ss:$12 sps:$4 sm:$0xff]   ;;  %s1422_s23 = sshll.u32 %s1977_s13, 5  ;;  %vm458_vm0 = vcmask 392192  }
  0x11   : > { %508 = vmatpush1.bf16.msra.mxu1 %v1439_v5  ;;  %465 = vmatpush1.bf16.msra.mxu0 %v1440_v6  ;;  %v1455_v17 = vld [vmem:[%s1973_s1 + $0x140] ss:$12 sps:$4 sm:$0xff]   ;;  %v1456_v18 = vld [vmem:[%s1973_s1 + $0x138] ss:$12 sps:$4 sm:$0xff]   ;;  %s165_s30 = scalar_lea.vmem %s1972_s0, %s1422_s23  ;;  %v1459_v20 = vld [vmem:[%s1973_s1 + $0x128] ss:$12 sps:$4 sm:$0xff]  }
  0x12   : > { %509 = vmatprep.subr.bf16.mxu1 %v1573_v1  ;;  %466 = vmatprep.subr.bf16.mxu0 %v1441_v7  ;;  %v1457_v19 = vld [vmem:[%s1973_s1 + $0x124] ss:$12 sps:$4 sm:$0xff]   ;;  %v1460_v21 = vld [vmem:[%s1973_s1 + $0x120] ss:$12 sps:$4 sm:$0xff]   ;;  %v175_v25 = vld [vmem:[%s165_s30 + $0x18] sm:$0x7f] }
  0x13   : > { %v1461_v22 = vld [vmem:[%s1973_s1 + $0x10c] ss:$12 sps:$4 sm:$0xff]   ;;  %v1463_v24 = vld [vmem:[%s1973_s1 + $0x110] ss:$12 sps:$4 sm:$0xff]   ;;  %v172_v26 = vld [vmem:[%s165_s30] sm:$0xff]  ;;  %s1423_s18 = smul.u32 48, %s1977_s13 }
  0x14   : > { %v173_v23 = vld [vmem:[%s165_s30 + $0x8] sm:$0xff]  ;;  %v174_v28 = vld [vmem:[%s165_s30 + $0x10] sm:$0x7f]  ;;  %v1468_v36 = vld [vmem:[%s1973_s1 + $0x1f8] ss:$12 sps:$4 sm:$0xff]   ;;  %vm1158_vm1 = vcmask 261120  }
  0x15   : > { %510 = vmatpush1.bf16.msra.mxu1 %v1443_v8  ;;  %467 = vmatpush1.bf16.msra.mxu0 %v1444_v9  ;;  %v1688_v27 = vpack.c.bf16 %v175_v25, %v173_v23  ;;  %v1464_v29 = vld [vmem:[%s1973_s1 + $0x108] ss:$12 sps:$4 sm:$0xff]   ;;  %v1699_v33 = vpack.c.bf16 %v174_v28, %v172_v26  ;;  %v1467_v34 = vld [vmem:[%s1973_s1 + $0x200] ss:$12 sps:$4 sm:$0xff]   ;;  %v1469_v37 = vld [vmem:[%s1973_s1 + $0x1e4] ss:$12 sps:$4 sm:$0xff]   ;;  %s170_s21 = scalar_lea.vmem %s1975_s3, %s1423_s18 }
  0x16   : > { %511 = vmatprep.subr.bf16.mxu1 %v1573_v1  ;;  %468 = vmatprep.subr.bf16.mxu0 %v1445_v10  ;;  %v1465_v30 = vld [vmem:[%s1973_s1 + $0x1fc] ss:$12 sps:$4 sm:$0xff]   ;;  %v1472_v41 = vld [vmem:[%s1973_s1 + $0x1e0] ss:$12 sps:$4 sm:$0xff]   ;;  %v1484_v52 = vld [vmem:[%s1973_s1 + $0x98] ss:$12 sps:$4 sm:$0xff]  }
  0x17   : > { %v275_v31 = vshrl.u32 %v1688_v27, 16  ;;  %v277_v32 = vshll.u32 %v1688_v27, 16  ;;  %v270_v39 = vshll.u32 %v1699_v33, 16  ;;  %v1471_v40 = vld [vmem:[%s1973_s1 + $0x1e8] ss:$12 sps:$4 sm:$0xff]   ;;  %v268_v43 = vshrl.u32 %v1699_v33, 16 }
  0x18   : > { %v1473_v42 = vld [vmem:[%s1973_s1 + $0x1cc] ss:$12 sps:$4 sm:$0xff]   ;;  %v1475_v45 = vld [vmem:[%s1973_s1 + $0x1d0] ss:$12 sps:$4 sm:$0xff]   ;;  %v1476_v46 = vld [vmem:[%s1973_s1 + $0x1c8] ss:$12 sps:$4 sm:$0xff]  }
  0x19   : > { %512 = vmatpush1.bf16.msra.mxu1 %v1447_v11  ;;  %469 = vmatpush1.bf16.msra.mxu0 %v1448_v12  ;;  %v279_v35 = vrot.slane %v277_v32, 1  ;;  %v272_v44 = vrot.slane %v270_v39, 1  ;;  %v1479_v47 = vld [vmem:[%s1973_s1 + $0xac] ss:$12 sps:$4 sm:$0xff]   ;;  %v1480_v49 = vld [vmem:[%s1973_s1 + $0xb0] ss:$12 sps:$4 sm:$0xff]  }
  0x1a   : > { %513 = vmatprep.subr.bf16.mxu1 %v1573_v1  ;;  %470 = vmatprep.subr.bf16.mxu0 %v1449_v13  ;;  %v1477_v50 = vld [vmem:[%s1973_s1 + $0xa8] ss:$12 sps:$4 sm:$0xff]   ;;  %v1481_v53 = vld [vmem:[%s1973_s1 + $0x90] ss:$12 sps:$4 sm:$0xff]   ;;  %v1488_v55 = vld [vmem:[%s1973_s1 + $0x80] ss:$12 sps:$4 sm:$0xff]  }
  0x1b   : > { %v280_v38 = vor.u32 %v279_v35, %v275_v31  ;;  %v273_v48 = vor.u32 %v272_v44, %v268_v43  ;;  %v1483_v51 = vld [vmem:[%s1973_s1 + $0x94] ss:$12 sps:$4 sm:$0xff]   ;;  %v1487_v54 = vld [vmem:[%s1973_s1 + $0x7c] ss:$12 sps:$4 sm:$0xff]   ;;  %v1485_v56 = vld [vmem:[%s1973_s1 + $0x78] ss:$12 sps:$4 sm:$0xff]  }
  0x1c   : > { %v1491_v57 = vld [vmem:[%s1973_s1 + $0x64] ss:$12 sps:$4 sm:$0xff]   ;;  %v1492_v58 = vld [vmem:[%s1973_s1 + $0x68] ss:$12 sps:$4 sm:$0xff]   ;;  %v1489_v59 = vld [vmem:[%s1973_s1 + $0x60] ss:$12 sps:$4 sm:$0xff]  }
  0x1d   : > { %514 = vmatpush1.bf16.msra.mxu1 %v1451_v14  ;;  %471 = vmatpush1.bf16.msra.mxu0 %v1452_v15  ;;  %v1495_v60 = vld [vmem:[%s1973_s1 + $0x4c] ss:$12 sps:$4 sm:$0xff]   ;;  %v1496_v61 = vld [vmem:[%s1973_s1 + $0x50] ss:$12 sps:$4 sm:$0xff]   ;;  %v1493_v62 = vld [vmem:[%s1973_s1 + $0x48] ss:$12 sps:$4 sm:$0xff]  }
  0x1e   : > { %515 = vmatprep.subr.bf16.mxu1 %v1573_v1  ;;  %472 = vmatprep.subr.bf16.mxu0 %v1453_v16  ;;  %v1499_v63 = vld [vmem:[%s1973_s1 + $0x34] ss:$12 sps:$4 sm:$0xff]   ;;  %v1500_v0 = vld [vmem:[%s1973_s1 + $0x38] ss:$12 sps:$4 sm:$0xff]   ;;  %v1497_v2 = vld [vmem:[%s1973_s1 + $0x30] ss:$12 sps:$4 sm:$0xff]  }
  0x1f   : > { %1305 = vmatprep.mubr.msk.bf16.mxu1 %vm458_vm0, %v280_v38  ;;  %1304 = vmatprep.mubr.msk.bf16.mxu0 %vm458_vm0, %v280_v38  ;;  %v1503_v3 = vld [vmem:[%s1973_s1 + $0x1c] ss:$12 sps:$4 sm:$0xff]   ;;  %v1504_v4 = vld [vmem:[%s1973_s1 + $0x20] ss:$12 sps:$4 sm:$0xff]   ;;  %v1501_v5 = vld [vmem:[%s1973_s1 + $0x18] ss:$12 sps:$4 sm:$0xff]  }
  0x20   : > { %v1507_v6 = vld [vmem:[%s1973_s1 + $0x4] ss:$12 sps:$4 sm:$0xff]   ;;  %v1508_v7 = vld [vmem:[%s1973_s1 + $0x8] ss:$12 sps:$4 sm:$0xff]   ;;  %v1505_v8 = vld [vmem:[%s1973_s1] ss:$12 sps:$4 sm:$0xff]  }
  0x21   : > { %516 = vmatpush1.bf16.msra.mxu1 %v1455_v17  ;;  %473 = vmatpush1.bf16.msra.mxu0 %v1456_v18  ;;  %v1511_v9 = vld [vmem:[%s1973_s1 + $0xf4] ss:$12 sps:$4 sm:$0xff]   ;;  %v1512_v10 = vld [vmem:[%s1973_s1 + $0xf8] ss:$12 sps:$4 sm:$0xff]   ;;  %v1509_v11 = vld [vmem:[%s1973_s1 + $0xf0] ss:$12 sps:$4 sm:$0xff]  }
  0x22   : > { %517 = vmatprep.subr.bf16.mxu1 %v1573_v1  ;;  %474 = vmatprep.subr.bf16.mxu0 %v1457_v19  ;;  %v1515_v12 = vld [vmem:[%s1973_s1 + $0xdc] ss:$12 sps:$4 sm:$0xff]   ;;  %v1516_v13 = vld [vmem:[%s1973_s1 + $0xe0] ss:$12 sps:$4 sm:$0xff]   ;;  %v1513_v14 = vld [vmem:[%s1973_s1 + $0xd8] ss:$12 sps:$4 sm:$0xff]  }
  0x23   : > { %v1519_v15 = vld [vmem:[%s1973_s1 + $0xc4] ss:$12 sps:$4 sm:$0xff]   ;;  %v1520_v16 = vld [vmem:[%s1973_s1 + $0xc8] ss:$12 sps:$4 sm:$0xff]   ;;  %v1517_v17 = vld [vmem:[%s1973_s1 + $0xc0] ss:$12 sps:$4 sm:$0xff]  }
  0x24   : > { %v1523_v18 = vld [vmem:[%s1973_s1 + $0x2bc] ss:$12 sps:$4 sm:$0xff]   ;;  %v1524_v19 = vld [vmem:[%s1973_s1 + $0x2c0] ss:$12 sps:$4 sm:$0xff]   ;;  %v1543_v35 = vld [vmem:[%s1973_s1 + $0x244] ss:$12 sps:$4 sm:$0xff]  }
  0x25   : > { %518 = vmatpush1.bf16.msra.mxu1 %v1459_v20  ;;  %475 = vmatpush1.bf16.msra.mxu0 %v1460_v21  ;;  %v1521_v20 = vld [vmem:[%s1973_s1 + $0x2b8] ss:$12 sps:$4 sm:$0xff]   ;;  %v1528_v23 = vld [vmem:[%s1973_s1 + $0x2a8] ss:$12 sps:$4 sm:$0xff]   ;;  %v1532_v26 = vld [vmem:[%s1973_s1 + $0x290] ss:$12 sps:$4 sm:$0xff]  }
  0x26   : > { %519 = vmatprep.subr.bf16.mxu1 %v1573_v1  ;;  %476 = vmatprep.subr.bf16.mxu0 %v1461_v22  ;;  %v1527_v21 = vld [vmem:[%s1973_s1 + $0x2a4] ss:$12 sps:$4 sm:$0xff]   ;;  %v856_v22 = vrot.slane %v1688_v27, 1  ;;  %v1531_v25 = vld [vmem:[%s1973_s1 + $0x28c] ss:$12 sps:$4 sm:$0xff]   ;;  %vm1162_vm2 = vcmask 258048  }
  0x27   : > { %v1535_v28 = vld [vmem:[%s1973_s1 + $0x274] ss:$12 sps:$4 sm:$0xff]   ;;  %v1539_v31 = vld [vmem:[%s1973_s1 + $0x25c] ss:$12 sps:$4 sm:$0xff]   ;;  %v1547_v38 = vld [vmem:[%s1973_s1 + $0x22c] ss:$12 sps:$4 sm:$0xff]  }
  0x28   : > { %v1540_v32 = vld [vmem:[%s1973_s1 + $0x260] ss:$12 sps:$4 sm:$0xff]   ;;  %v1548_v39 = vld [vmem:[%s1973_s1 + $0x230] ss:$12 sps:$4 sm:$0xff]  }
  0x29   : > { %520 = vmatpush1.bf16.msra.mxu1 %v1463_v24  ;;  %477 = vmatpush1.bf16.msra.mxu0 %v1464_v29  ;;  %v1525_v24 = vld [vmem:[%s1973_s1 + $0x2a0] ss:$12 sps:$4 sm:$0xff]   ;;  %v1536_v29 = vld [vmem:[%s1973_s1 + $0x278] ss:$12 sps:$4 sm:$0xff]   ;;  %v1549_v43 = vld [vmem:[%s1973_s1 + $0x210] ss:$12 sps:$4 sm:$0xff]  }
  0x2a   : > { %531 = vmatprep.subr.bf16.mxu1 %v1573_v1  ;;  %488 = vmatprep.subr.bf16.mxu0 %v1465_v30  ;;  %v1533_v30 = vld [vmem:[%s1973_s1 + $0x270] ss:$12 sps:$4 sm:$0xff]  }
  0x2b   : > { %v1555_v44 = vld [vmem:[%s1973_s1 + $0x304] ss:$12 sps:$4 sm:$0xff]  }
  0x2d   : > { %532 = vmatpush2.bf16.msra.mxu1 %v1467_v34  ;;  %489 = vmatpush2.bf16.msra.mxu0 %v1468_v36  ;;  %v1537_v34 = vld [vmem:[%s1973_s1 + $0x258] ss:$12 sps:$4 sm:$0xff]   ;;  %v1544_v36 = vld [vmem:[%s1973_s1 + $0x248] ss:$12 sps:$4 sm:$0xff]  }
  0x2e   : > { %533 = vmatprep.subr.bf16.mxu1 %v1573_v1  ;;  %490 = vmatprep.subr.bf16.mxu0 %v1469_v37  ;;  %v1541_v37 = vld [vmem:[%s1973_s1 + $0x240] ss:$12 sps:$4 sm:$0xff]  }
  0x31   : > { %534 = vmatpush2.bf16.msra.mxu1 %v1471_v40  ;;  %491 = vmatpush2.bf16.msra.mxu0 %v1472_v41  ;;  %v1545_v40 = vld [vmem:[%s1973_s1 + $0x228] ss:$12 sps:$4 sm:$0xff]  }
  0x32   : > { %535 = vmatprep.subr.bf16.mxu1 %v1573_v1  ;;  %492 = vmatprep.subr.bf16.mxu0 %v1473_v42  ;;  %v1551_v41 = vld [vmem:[%s1973_s1 + $0x214] ss:$12 sps:$4 sm:$0xff]   ;;  %v1552_v42 = vld [vmem:[%s1973_s1 + $0x218] ss:$12 sps:$4 sm:$0xff]  }
  0x35   : > { %536 = vmatpush2.bf16.msra.mxu1 %v1475_v45  ;;  %493 = vmatpush2.bf16.msra.mxu0 %v1476_v46  ;;  %v1556_v45 = vld [vmem:[%s1973_s1 + $0x308] ss:$12 sps:$4 sm:$0xff]   ;;  %v1553_v46 = vld [vmem:[%s1973_s1 + $0x300] ss:$12 sps:$4 sm:$0xff]  }
  0x36   : > { %767 = vmatprep.subr.bf16.mxu1 %v1573_v1  ;;  %724 = vmatprep.subr.bf16.mxu0 %v1479_v47  ;;  %v1559_v47 = vld [vmem:[%s1973_s1 + $0x2ec] ss:$12 sps:$4 sm:$0xff]  }
  0x38   : > { %538 = vmatmul.mubr.bf16.vlgmr.msra.gmra.mxu1 %v273_v48  ;;  %495 = vmatmul.mubr.bf16.vlgmr.msra.gmra.mxu0 %v273_v48  ;;  %v1560_v48 = vld [vmem:[%s1973_s1 + $0x2f0] ss:$12 sps:$4 sm:$0xff]  }
  0x39   : > { %768 = vmatpush1.bf16.msra.mxu1 %v1480_v49  ;;  %725 = vmatpush1.bf16.msra.mxu0 %v1477_v50  ;;  %v1557_v49 = vld [vmem:[%s1973_s1 + $0x2e8] ss:$12 sps:$4 sm:$0xff]  }
  0x3a   : > { %769 = vmatprep.subr.bf16.mxu1 %v1573_v1  ;;  %726 = vmatprep.subr.bf16.mxu0 %v1483_v51  ;;  %v1563_v50 = vld [vmem:[%s1973_s1 + $0x2d4] ss:$12 sps:$4 sm:$0xff]   ;;  %v1564_v51 = vld [vmem:[%s1973_s1 + $0x2d8] ss:$12 sps:$4 sm:$0xff]  }
  0x3b   : > { %1340 = vmatprep.mubr.msk.bf16.mxu1 %vm458_vm0, %v1688_v27  ;;  %1339 = vmatprep.mubr.msk.bf16.mxu0 %vm458_vm0, %v1688_v27  ;;  %v1529_v27 = vld [vmem:[%s1973_s1 + $0x288] ss:$12 sps:$4 sm:$0xff]  }
  0x3d   : > { %770 = vmatpush1.bf16.msra.mxu1 %v1484_v52  ;;  %727 = vmatpush1.bf16.msra.mxu0 %v1481_v53  ;;  %v1561_v52 = vld [vmem:[%s1973_s1 + $0x2d0] ss:$12 sps:$4 sm:$0xff]   ;;  %v855_v53 = vrot.slane %v1699_v33, 1 }
  0x3e   : > { %771 = vmatprep.subr.bf16.mxu1 %v1573_v1  ;;  %728 = vmatprep.subr.bf16.mxu0 %v1487_v54 }
  0x41   : > { %772 = vmatpush1.bf16.msra.mxu1 %v1488_v55  ;;  %729 = vmatpush1.bf16.msra.mxu0 %v1485_v56 }
  0x42   : > { %773 = vmatprep.subr.bf16.mxu1 %v1573_v1  ;;  %730 = vmatprep.subr.bf16.mxu0 %v1491_v57 }
  0x45   : > { %774 = vmatpush1.bf16.msra.mxu1 %v1492_v58  ;;  %731 = vmatpush1.bf16.msra.mxu0 %v1489_v59 }
  0x46   : > { %775 = vmatprep.subr.bf16.mxu1 %v1573_v1  ;;  %732 = vmatprep.subr.bf16.mxu0 %v1495_v60 }
  0x49   : > { %776 = vmatpush1.bf16.msra.mxu1 %v1496_v61  ;;  %733 = vmatpush1.bf16.msra.mxu0 %v1493_v62 }
  0x4a   : > { %777 = vmatprep.subr.bf16.mxu1 %v1573_v1  ;;  %734 = vmatprep.subr.bf16.mxu0 %v1499_v63 }
  0x4d   : > { %778 = vmatpush1.bf16.msra.mxu1 %v1500_v0  ;;  %735 = vmatpush1.bf16.msra.mxu0 %v1497_v2 }
  0x4e   : > { %779 = vmatprep.subr.bf16.mxu1 %v1573_v1  ;;  %736 = vmatprep.subr.bf16.mxu0 %v1503_v3  ;;  %v1129_v3 = vlaneseq }
  0x51   : > { %780 = vmatpush1.bf16.msra.mxu1 %v1504_v4  ;;  %737 = vmatpush1.bf16.msra.mxu0 %v1501_v5  ;;  %v1130_v4 = vshrl.u32 %v1129_v3, 7 }
  0x52   : > { %781 = vmatprep.subr.bf16.mxu1 %v1573_v1  ;;  %738 = vmatprep.subr.bf16.mxu0 %v1507_v6 }
  0x53   : > { %v1139_v6 = vsub.s32 2, %v1130_v4 }
  0x55   : > { %782 = vmatpush1.bf16.msra.mxu1 %v1508_v7  ;;  %739 = vmatpush1.bf16.msra.mxu0 %v1505_v8  ;;  %v1127_v7 = vld [vmem:[%s1974_s2] sm:$0x7]  ;;  %v1131_v8 = vsub.s32 0, %v1130_v4 }
  0x56   : > { %793 = vmatprep.subr.bf16.mxu1 %v1573_v1  ;;  %750 = vmatprep.subr.bf16.mxu0 %v1511_v9  ;;  %v1135_v9 = vsub.s32 1, %v1130_v4 }
  0x59   : > { %794 = vmatpush2.bf16.msra.mxu1 %v1512_v10  ;;  %751 = vmatpush2.bf16.msra.mxu0 %v1509_v11 }
  0x5a   : > { %795 = vmatprep.subr.bf16.mxu1 %v1573_v1  ;;  %752 = vmatprep.subr.bf16.mxu0 %v1515_v12  ;;  %v1140_v12 = vrot.slane %v1127_v7, %v1139_v6 }
  0x5d   : > { %796 = vmatpush2.bf16.msra.mxu1 %v1516_v13  ;;  %753 = vmatpush2.bf16.msra.mxu0 %v1513_v14 }
  0x5e   : > { %797 = vmatprep.subr.bf16.mxu1 %v1573_v1  ;;  %754 = vmatprep.subr.bf16.mxu0 %v1519_v15  ;;  %v1132_v15 = vrot.slane %v1127_v7, %v1131_v8 }
  0x61   : > { %798 = vmatpush2.bf16.msra.mxu1 %v1520_v16  ;;  %755 = vmatpush2.bf16.msra.mxu0 %v1517_v17 }
  0x62   : > { %1080 = vmatprep.subr.bf16.mxu1 %v1573_v1  ;;  %1037 = vmatprep.subr.bf16.mxu0 %v1523_v18 }
  0x64   : > { %800 = vmatmul.mubr.bf16.vlgmr.msra.gmra.mxu1 %v1699_v33  ;;  %757 = vmatmul.mubr.bf16.vlgmr.msra.gmra.mxu0 %v1699_v33 }
  0x65   : > { %1081 = vmatpush1.bf16.msra.mxu1 %v1524_v19  ;;  %1038 = vmatpush1.bf16.msra.mxu0 %v1521_v20 }
  0x66   : > { %1082 = vmatprep.subr.bf16.mxu1 %v1573_v1  ;;  %1039 = vmatprep.subr.bf16.mxu0 %v1527_v21  ;;  %v1136_v21 = vrot.slane %v1127_v7, %v1135_v9 }
  0x67   : > { %1419 = vmatprep.mubr.msk.bf16.mxu1 %vm458_vm0, %v856_v22  ;;  %1418 = vmatprep.mubr.msk.bf16.mxu0 %vm458_vm0, %v856_v22 }
  0x69   : > { %1083 = vmatpush1.bf16.msra.mxu1 %v1528_v23  ;;  %1040 = vmatpush1.bf16.msra.mxu0 %v1525_v24 }
  0x6a   : > { %1084 = vmatprep.subr.bf16.mxu1 %v1573_v1  ;;  %1041 = vmatprep.subr.bf16.mxu0 %v1531_v25 }
  0x6d   : > { %1085 = vmatpush1.bf16.msra.mxu1 %v1532_v26  ;;  %1042 = vmatpush1.bf16.msra.mxu0 %v1529_v27 }
  0x6e   : > { %1086 = vmatprep.subr.bf16.mxu1 %v1573_v1  ;;  %1043 = vmatprep.subr.bf16.mxu0 %v1535_v28 }
  0x71   : > { %1087 = vmatpush1.bf16.msra.mxu1 %v1536_v29  ;;  %1044 = vmatpush1.bf16.msra.mxu0 %v1533_v30 }
  0x72   : > { %1088 = vmatprep.subr.bf16.mxu1 %v1573_v1  ;;  %1045 = vmatprep.subr.bf16.mxu0 %v1539_v31 }
  0x75   : > { %1089 = vmatpush1.bf16.msra.mxu1 %v1540_v32  ;;  %1046 = vmatpush1.bf16.msra.mxu0 %v1537_v34 }
  0x76   : > { %1090 = vmatprep.subr.bf16.mxu1 %v1573_v1  ;;  %1047 = vmatprep.subr.bf16.mxu0 %v1543_v35 }
  0x79   : > { %1091 = vmatpush1.bf16.msra.mxu1 %v1544_v36  ;;  %1048 = vmatpush1.bf16.msra.mxu0 %v1541_v37 }
  0x7a   : > { %1092 = vmatprep.subr.bf16.mxu1 %v1573_v1  ;;  %1049 = vmatprep.subr.bf16.mxu0 %v1547_v38 }
  0x7d   : > { %1093 = vmatpush1.bf16.msra.mxu1 %v1548_v39  ;;  %1050 = vmatpush1.bf16.msra.mxu0 %v1545_v40 }
  0x7e   : > { %1094 = vmatprep.subr.bf16.mxu1 %v1573_v1  ;;  %1051 = vmatprep.subr.bf16.mxu0 %v1551_v41 }
  0x81   : > { %1095 = vmatpush1.bf16.msra.mxu1 %v1552_v42  ;;  %1052 = vmatpush1.bf16.msra.mxu0 %v1549_v43 }
  0x82   : > { %1106 = vmatprep.subr.bf16.mxu1 %v1573_v1  ;;  %1063 = vmatprep.subr.bf16.mxu0 %v1555_v44 }
  0x85   : > { %1107 = vmatpush2.bf16.msra.mxu1 %v1556_v45  ;;  %1064 = vmatpush2.bf16.msra.mxu0 %v1553_v46 }
  0x86   : > { %1108 = vmatprep.subr.bf16.mxu1 %v1573_v1  ;;  %1065 = vmatprep.subr.bf16.mxu0 %v1559_v47 }
  0x89   : > { %1109 = vmatpush2.bf16.msra.mxu1 %v1560_v48  ;;  %1066 = vmatpush2.bf16.msra.mxu0 %v1557_v49 }
  0x8a   : > { %1110 = vmatprep.subr.bf16.mxu1 %v1573_v1  ;;  %1067 = vmatprep.subr.bf16.mxu0 %v1563_v50 }
  0x8d   : > { %1111 = vmatpush2.bf16.msra.mxu1 %v1564_v51  ;;  %1068 = vmatpush2.bf16.msra.mxu0 %v1561_v52 }
  0x90   : > { %1113 = vmatmul.mubr.bf16.vlgmr.msra.gmra.mxu1 %v855_v53  ;;  %1070 = vmatmul.mubr.bf16.vlgmr.msra.gmra.mxu0 %v855_v53 }
  0xf8   : > { %v539_v54 = vpop.f32.mrf.mxu1  ;;  %v496_v1 = vpop.f32.mrf.mxu0 }
  0xfa   : > { %v541_v55 = vpop.f32.mrf.mxu1  ;;  %v498_v62 = vpop.f32.mrf.mxu0 }
  0xfc   : > { %v542_v56 = vpop.f32.mrf.mxu1  ;;  %v500_v63 = vpop.f32.mrf.mxu0 }
  0xfe   : > { %v544_v57 = vpop.f32.mrf.mxu1  ;;  %v502_v0 = vpop.f32.mrf.mxu0 }
 0x124   : > { %v801_v58 = vpop.f32.mrf.mxu1  ;;  %v758_v2 = vpop.f32.mrf.mxu0 }
 0x125   : > { %v802_v10 = vadd.f32 %v801_v58, %v539_v54  ;;  %v759_v13 = vadd.f32 %v758_v2, %v496_v1 }
 0x126   : > { %v803_v59 = vpop.f32.mrf.mxu1  ;;  %v760_v33 = vpop.f32.mrf.mxu0 }
 0x127   : > { %v761_v18 = vadd.f32 %v760_v33, %v498_v62 }
 0x128   : > { %v804_v60 = vpop.f32.mrf.mxu1  ;;  %v762_v5 = vpop.f32.mrf.mxu0 }
 0x129   : > { %v805_v22 = vadd.f32 %v804_v60, %v542_v56  ;;  %v763_v25 = vadd.f32 %v762_v5, %v500_v63 }
 0x12a   : > { %v806_v61 = vpop.f32.mrf.mxu1  ;;  %v764_v11 = vpop.f32.mrf.mxu0 }
 0x12b   : > { %v765_v32 = vadd.f32 %v764_v11, %v502_v0 }
 0x150   : > { %v1114_v14 = vpop.f32.mrf.mxu1  ;;  %v1071_v17 = vpop.f32.mrf.mxu0 }
 0x151   : > { %v1123_v16 = vadd.f32 %v1114_v14, %v802_v10  ;;  %v1121_v19 = vadd.f32 %v1071_v17, %v759_v13 }
 0x152   : > { %v1116_v20 = vpop.f32.mrf.mxu1  ;;  %v1073_v24 = vpop.f32.mrf.mxu0 }
 0x153   : > { %v1146_v23 = vadd.f32 %v1140_v12, %v1123_v16  ;;  %v1144_v26 = vadd.f32 %v1132_v15, %v1121_v19  ;;  %v1122_v27 = vadd.f32 %v1073_v24, %v761_v18 }
 0x154   : > { %v1117_v28 = vpop.f32.mrf.mxu1  ;;  %v1075_v31 = vpop.f32.mrf.mxu0 }
 0x155   : > { %v1152_v29 = vmax.f32 %v1146_v23, 0.0  ;;  %v1126_v30 = vadd.f32 %v1117_v28, %v805_v22  ;;  %v1150_v34 = vmax.f32 %v1144_v26, 0.0  ;;  %v1145_v35 = vadd.f32 %v1136_v21, %v1122_v27 }
 0x156   : > { %v1124_v36 = vadd.f32 %v1075_v31, %v763_v25  ;;  %v1119_v37 = vpop.f32.mrf.mxu1  ;;  %v1077_v39 = vpop.f32.mrf.mxu0 }
 0x157   : > { %1159 = vst.msk [vmem:[%s170_s21 + $0x10] sm:$0xff] %vm1158_vm1, %v1152_v29  ;;  %v1149_v38 = vadd.f32 %v1140_v12, %v1126_v30  ;;  %1156 = vst [vmem:[%s170_s21] sm:$0xff] %v1150_v34  ;;  %v1151_v40 = vmax.f32 %v1145_v35, 0.0  ;;  %v1125_v42 = vadd.f32 %v1077_v39, %v765_v32 }
 0x158   : > { %v1147_v41 = vadd.f32 %v1132_v15, %v1124_v36 }
 0x159   : > { %v1155_v43 = vmax.f32 %v1149_v38, 0.0  ;;  %1157 = vst [vmem:[%s170_s21 + $0x8] sm:$0xff] %v1151_v40  ;;  %v1148_v45 = vadd.f32 %v1136_v21, %v1125_v42 }
 0x15a   : > { %v1153_v44 = vmax.f32 %v1147_v41, 0.0 }
 0x15b   : > { %1163 = vst.msk [vmem:[%s170_s21 + $0x28] sm:$0x1f] %vm1162_vm2, %v1155_v43  ;;  %v1154_v46 = vmax.f32 %v1148_v45, 0.0 }
 0x15c   : > { %1160 = vst [vmem:[%s170_s21 + $0x18] sm:$0x1f] %v1153_v44 }
 0x15d   : > { %1161 = vst [vmem:[%s170_s21 + $0x20] sm:$0x1f] %v1154_v46 }
 0x15e PF: > { %s13_s12 = sadd.s32 1, %s1571_s12  }
 0x15f   : > { %p10_p4 = scmp.ge.s32.totalorder %s13_s12, 8  }
 0x161   :  { %12 = sbr.rel (!%p10_p4) target bundleno = 1 (0x1), region = 64 }

// kernel: metafluad_forward.15
= control target key start
LH: loop header
LB: loop body
LE: loop exit
PB: predicated region body
PF: predicated region fallthrough
CT: control target
= control target key end

     0   :  { %v240_v0 = vmov 0.0   ;;  %vm241_vm0 = vmmov 0   ;;  %vm32_vm1 = vcmask 261120   ;;  %vm119_vm2 = vcmask 1041408   ;;  %s299_s1 = inlined_call_operand.vmem [shape: f32[32,2], index: 1, kind: input, shape index: {}]   ;;  %s300_s0 = inlined_call_operand.vmem [shape: f32[6,32], index: 0, kind: input, shape index: {}]   ;;  %s301_s3 = inlined_call_operand.vmem [shape: f32[2,32], index: 3, kind: input, shape index: {}]   ;;  %s302_s2 = inlined_call_operand.vmem [shape: f32[1,2], index: 2, kind: input, shape index: {}]   ;;  %s303_s4 = inlined_call_operand.vmem [shape: f32[1,32], index: 4, kind: input, shape index: {}]   ;;  %s304_s5 = inlined_call_operand.vmem [shape: f32[6,32], index: 5, kind: output, shape index: {}]  }
   0x1   :  { %218 = vmatprep.subr.mxu0 %v240_v0  ;;  %v24_v1 = vld [vmem:[%s299_s1 + $0x18] sm:$0xff]  ;;  %v23_v2 = vld [vmem:[%s299_s1 + $0x10] sm:$0xff]  ;;  %226 = vmatprep.mubr.msk.f32.mxu0 %vm241_vm0, %v240_v0  ;;  %v22_v3 = vld [vmem:[%s299_s1 + $0x8] sm:$0xff]  ;;  %vm115_vm3 = vcmask 15360   ;;  %vm199_vm4 = vcmask 259072  }
   0x2   :  { %219 = vmatpush3.msra.mxu0 %v24_v1  ;;  %229 = vmatprep.subr.mxu1 %v240_v0  ;;  %v21_v4 = vld [vmem:[%s299_s1] sm:$0xff] }
   0x3   :  { %220 = vmatprep.subr.mxu0 %v240_v0  ;;  %231 = vmatprep.mubr.msk.f32.mxu1 %vm241_vm0, %v240_v0  ;;  %v20_v5 = vld [vmem:[%s300_s0] sm:$0x3f] }
   0x4   :  { %221 = vmatpush3.msra.mxu0 %v23_v2  ;;  %v107_v6 = vld [vmem:[%s301_s3] sm:$0x3] }
   0x5   :  { %222 = vmatprep.subr.mxu0 %v240_v0  ;;  %230 = vmatpush3.msk.msra.mxu1 %vm119_vm2, %v107_v6  ;;  %v205_v7 = vld [vmem:[%s302_s2] ss:$0 sm:$0xff] }
   0x6   :  { %223 = vmatpush3.msra.mxu0 %v22_v3  ;;  %v207_v12 = vld [vmem:[%s303_s4] ss:$0 sm:$0xff] }
   0x7   :  { %224 = vmatprep.subr.mxu0 %v240_v0 }
   0x8   :  { %225 = vmatpush3.msra.mxu0 %v21_v4 }
   0x9   :  { %227 = vmatmul.mubr.msk.f32.vlgmr.msra.gmra.mxu0 %vm32_vm1, %v20_v5 }
  0xc9   :  { %v102_v8 = vpop.f32.mrf.mxu0 }
  0xca   :  { %v103_v9 = vadd.f32 %v205_v7, %v102_v8 }
  0xcb   :  { %v228_v10 = vpop.f32.mrf.mxu0 }
  0xcc   :  { %v106_v11 = vmax.f32 %v103_v9, 0.0 }
  0xce   :  { %232 = vmatmul.mubr.msk.f32.vlgmr.msra.gmra.mxu1 %vm115_vm3, %v106_v11 }
 0x18e   :  { %v189_v13 = vpop.f32.mrf.mxu1 }
 0x18f   :  { %v190_v14 = vadd.f32 %v207_v12, %v189_v13 }
 0x190   :  { %v233_v15 = vpop.f32.mrf.mxu1 }
 0x191   :  { %v210_v16 = vmul.f32 -1.442695, %v190_v14 }
 0x193   :  { %236 = vpow2.f32 %v210_v16 }
 0x1a0   :  { %v237_v17 = vpop.eup %236 }
 0x1a1   :  { %v196_v18 = vadd.f32 1.0, %v237_v17 }
 0x1a3   :  { %238 = vrcp.f32 %v196_v18 }
 0x1b0   :  { %v239_v19 = vpop.eup %238 }
 0x1b1   :  { %200 = vst.msk [vmem:[%s304_s5] sm:$0x3f] %vm199_vm4, %v239_v19 }

// kernel: tile.58
= control target key start
LH: loop header
LB: loop body
LE: loop exit
PB: predicated region body
PF: predicated region fallthrough
CT: control target
= control target key end

     0   :  { %s22_s0 = inlined_call_operand.vmem [shape: f32[32], index: 0, kind: input, shape index: {}]   ;;  %s23_s1 = inlined_call_operand.vmem [shape: f32[5,32], index: 1, kind: output, shape index: {}]  }
   0x1   :  { %v4_v0 = vld [vmem:[%s22_s0] ss:$0 sm:$0xff] }
   0x2   :  { %5 = vst [vmem:[%s23_s1] sm:$0xff] %v4_v0 }

// kernel: tile.59
= control target key start
LH: loop header
LB: loop body
LE: loop exit
PB: predicated region body
PF: predicated region fallthrough
CT: control target
= control target key end

     0   :  { %s45_s8 = smov 96   ;;  %s2_s11 = smov 3  ;;  %vm4_vm0 = vcmask 261120   ;;  %vm10_vm1 = vcmask 1048320   ;;  %vm16_vm2 = vcmask 785920   ;;  %vm22_vm3 = vcmask 523520   ;;  %s76_s0 = inlined_call_operand.vmem [shape: f32[5,32], index: 0, kind: input, shape index: {}]   ;;  %s77_s1 = inlined_call_operand.vmem [shape: f32[1,160], index: 1, kind: output, shape index: {}]  }
   0x1   :  { %v38_v0 = vld [vmem:[%s76_s0 + $0x3] sm:$0x1]   ;;  %v40_v1 = vld [vmem:[%s76_s0 + $0x1] sm:$0x1]   ;;  %v39_v2 = vld [vmem:[%s76_s0 + $0x2] sm:$0x1]  }
   0x2   :  { %8 = vrot.lane.b32.xlu0 %v38_v0, %s45_s8  ;;  %s46_s14 = smov 32   ;;  %v3_v3 = vld [vmem:[%s76_s0] ss:$4 sm:%s2_s11]   ;;  %s47_s0 = smov 64  }
   0x3   :  { %20 = vrot.lane.b32.xlu1 %v40_v1, %s46_s14  ;;  %5 = vst.msk [vmem:[#allocation0] ss:$8 sm:$0x3] %vm4_vm0, %v3_v3  }
   0x6   :  { %14 = vrot.lane.b32.xlu0 %v39_v2, %s47_s0 }
   0xa   :  { %v33_v4 = vld [vmem:[#allocation0 + $0x8] sm:$0x1] }
   0xb   :  { %41 = vst [vmem:[%s77_s1 + $0x1] sm:$0x1] %v33_v4 }
  0x74   :  { %v9_v5 = vpop.permute.xlu0 %8  }
  0x75   :  { %11 = vst.msk [vmem:[#allocation0] sm:$0x1] %vm10_vm1, %v9_v5   ;;  %v21_v6 = vpop.permute.xlu1 %20  }
  0x78   :  { %v15_v7 = vpop.permute.xlu0 %14  }
  0x79   :  { %17 = vst.msk [vmem:[#allocation0] sm:$0x1] %vm16_vm2, %v15_v7  }
  0x7a   :  { %23 = vst.msk [vmem:[#allocation0] sm:$0x1] %vm22_vm3, %v21_v6  }
  0x81   :  { %v28_v8 = vld [vmem:[#allocation0] sm:$0x1] }
  0x82   :  { %31 = vst [vmem:[%s77_s1] sm:$0x1] %v28_v8 }

// kernel: metafluad_forward.16
= control target key start
LH: loop header
LB: loop body
LE: loop exit
PB: predicated region body
PF: predicated region fallthrough
CT: control target
= control target key end

     0   :  { %s1308_s15 = smov 0   ;;  %s1613_s0 = inlined_call_operand.vmem [shape: f32[6,9,224], index: 0, kind: input, shape index: {}]   ;;  %s1614_s1 = inlined_call_operand.vmem [shape: bf16[3,224,160], index: 1, kind: input, shape index: {}]   ;;  %s1615_s2 = inlined_call_operand.vmem [shape: f32[1,160], index: 2, kind: input, shape index: {}]   ;;  %s1616_s3 = inlined_call_operand.vmem [shape: f32[6,1,224], index: 3, kind: input, shape index: {}]   ;;  %s1617_s4 = inlined_call_operand.vmem [shape: f32[6,7,160], index: 4, kind: output, shape index: {}]  }
   0x1 LB: > { %s984_s16 = sadd.s32 4294967295, %s1281_s15   ;;  %p988_p0 = scmp.ge.s32.totalorder %s1281_s15, 1  ;;  %s1281_s15 = sphi %s1308_s15, %s14_s15  }
   0x2   : > { %p171_p1 = scmp.lt.s32.totalorder %s1281_s15, 7 }
   0x4   : > { %p172_p2 = pnand %p988_p0, %p171_p1 }
   0x5   : > { %p201_p3 = scmp.lt.s32.totalorder (!%p172_p2), %s984_s16, 5 }
   0x6   : > { %175 = sbr.rel (%p172_p2) target bundleno = 326 (0x146), region = 36 }
   0xb   : > { %v1149_v0 = vld [vmem:[%s1614_s1 + $0x154] ss:$8 sps:$4 sm:$0xff]   ;;  %v1153_v2 = vld [vmem:[%s1614_s1 + $0x150] ss:$8 sps:$4 sm:$0xff]   ;;  %v1155_v4 = vld [vmem:[%s1614_s1 + $0x144] ss:$8 sps:$4 sm:$0xff]   ;;  %v222_v31 = vlaneseq }
   0xc   : > { %v1151_v1 = vld [vmem:[%s1614_s1 + $0x74] ss:$8 sps:$4 sm:$0xff]   ;;  %454 = vmatprep.subr.bf16.mxu0 %v1149_v0  ;;  %v1154_v3 = vld [vmem:[%s1614_s1 + $0x70] ss:$8 sps:$4 sm:$0xff]   ;;  %v1157_v5 = vld [vmem:[%s1614_s1 + $0x64] ss:$8 sps:$4 sm:$0xff]  }
   0xd   : > { %637 = vmatprep.subr.bf16.mxu1 %v1151_v1  ;;  %455 = vmatpush1.bf16.msra.mxu0 %v1153_v2  ;;  %v1159_v6 = vld [vmem:[%s1614_s1 + $0x140] ss:$8 sps:$4 sm:$0xff]   ;;  %v1161_v8 = vld [vmem:[%s1614_s1 + $0x134] ss:$8 sps:$4 sm:$0xff]   ;;  %v1165_v10 = vld [vmem:[%s1614_s1 + $0x130] ss:$8 sps:$4 sm:$0xff]  }
   0xe   : > { %638 = vmatpush1.bf16.msra.mxu1 %v1154_v3  ;;  %456 = vmatprep.subr.bf16.mxu0 %v1155_v4  ;;  %v1160_v7 = vld [vmem:[%s1614_s1 + $0x60] ss:$8 sps:$4 sm:$0xff]   ;;  %v1163_v9 = vld [vmem:[%s1614_s1 + $0x54] ss:$8 sps:$4 sm:$0xff]   ;;  %v1166_v11 = vld [vmem:[%s1614_s1 + $0x50] ss:$8 sps:$4 sm:$0xff]  }
   0xf   : > { %639 = vmatprep.subr.bf16.mxu1 %v1157_v5  ;;  %v1167_v12 = vld [vmem:[%s1614_s1 + $0x124] ss:$8 sps:$4 sm:$0xff]   ;;  %v1171_v14 = vld [vmem:[%s1614_s1 + $0x120] ss:$8 sps:$4 sm:$0xff]   ;;  %v1173_v16 = vld [vmem:[%s1614_s1 + $0x114] ss:$8 sps:$4 sm:$0xff]  }
  0x10   : > { %v1169_v13 = vld [vmem:[%s1614_s1 + $0x44] ss:$8 sps:$4 sm:$0xff]   ;;  %v1172_v15 = vld [vmem:[%s1614_s1 + $0x40] ss:$8 sps:$4 sm:$0xff]   ;;  %v1175_v17 = vld [vmem:[%s1614_s1 + $0x34] ss:$8 sps:$4 sm:$0xff]  }
  0x11   : > { %457 = vmatpush1.bf16.msra.mxu0 %v1159_v6  ;;  %v1177_v18 = vld [vmem:[%s1614_s1 + $0x110] ss:$8 sps:$4 sm:$0xff]   ;;  %v1179_v20 = vld [vmem:[%s1614_s1 + $0x104] ss:$8 sps:$4 sm:$0xff]   ;;  %v1183_v22 = vld [vmem:[%s1614_s1 + $0x100] ss:$8 sps:$4 sm:$0xff]  }
  0x12   : > { %640 = vmatpush1.bf16.msra.mxu1 %v1160_v7  ;;  %458 = vmatprep.subr.bf16.mxu0 %v1161_v8  ;;  %v1178_v19 = vld [vmem:[%s1614_s1 + $0x30] ss:$8 sps:$4 sm:$0xff]   ;;  %v1181_v21 = vld [vmem:[%s1614_s1 + $0x24] ss:$8 sps:$4 sm:$0xff]   ;;  %v1184_v23 = vld [vmem:[%s1614_s1 + $0x20] ss:$8 sps:$4 sm:$0xff]  }
  0x13   : > { %641 = vmatprep.subr.bf16.mxu1 %v1163_v9  ;;  %v1185_v24 = vld [vmem:[%s1614_s1 + $0xf4] ss:$8 sps:$4 sm:$0xff]   ;;  %v1189_v26 = vld [vmem:[%s1614_s1 + $0xf0] ss:$8 sps:$4 sm:$0xff]   ;;  %v1191_v28 = vld [vmem:[%s1614_s1 + $0xe4] ss:$8 sps:$4 sm:$0xff]  }
  0x14   : > { %v1187_v25 = vld [vmem:[%s1614_s1 + $0x14] ss:$8 sps:$4 sm:$0xff]   ;;  %v1190_v27 = vld [vmem:[%s1614_s1 + $0x10] ss:$8 sps:$4 sm:$0xff]   ;;  %v1193_v29 = vld [vmem:[%s1614_s1 + $0x4] ss:$8 sps:$4 sm:$0xff]  }
  0x15   : > { %459 = vmatpush1.bf16.msra.mxu0 %v1165_v10  ;;  %v1195_v30 = vld [vmem:[%s1614_s1 + $0xe0] ss:$8 sps:$4 sm:$0xff]   ;;  %v1197_v33 = vld [vmem:[%s1614_s1 + $0x1b4] ss:$8 sps:$4 sm:$0xff]   ;;  %s1619_s16 = smov (!%p201_p3, %s984_s16), 5  ;;  %v1431_v37 = vshrl.u32 %v222_v31, 7 }
  0x16   : > { %642 = vmatpush1.bf16.msra.mxu1 %v1166_v11  ;;  %460 = vmatprep.subr.bf16.mxu0 %v1167_v12  ;;  %v1196_v32 = vld [vmem:[%s1614_s1] ss:$8 sps:$4 sm:$0xff]   ;;  %v1199_v34 = vld [vmem:[%s1614_s1 + $0xd4] ss:$8 sps:$4 sm:$0xff]   ;;  %v1201_v35 = vld [vmem:[%s1614_s1 + $0x1b0] ss:$8 sps:$4 sm:$0xff]  }
  0x17   : > { %643 = vmatprep.subr.bf16.mxu1 %v1169_v13  ;;  %v1202_v36 = vld [vmem:[%s1614_s1 + $0xd0] ss:$8 sps:$4 sm:$0xff]   ;;  %s1139_s17 = sshll.u32 %s1619_s16, 5  ;;  %v1203_v38 = vld [vmem:[%s1614_s1 + $0x1a4] ss:$8 sps:$4 sm:$0xff]   ;;  %s991_s20 = sshll.u32 %s1619_s16, 1 }
  0x18   : > { %v1205_v39 = vld [vmem:[%s1614_s1 + $0xc4] ss:$8 sps:$4 sm:$0xff]   ;;  %s205_s25 = scalar_lea.vmem %s1613_s0, %s1139_s17  ;;  %s209_s28 = scalar_lea.vmem %s1616_s3, %s991_s20  ;;  %v224_v40 = vsub.s32 0, %v1431_v37  ;;  %v228_v41 = vsub.s32 1, %v1431_v37  ;;  %v1207_v42 = vld [vmem:[%s1614_s1 + $0x1a0] ss:$8 sps:$4 sm:$0xff]  }
  0x19   : > { %461 = vmatpush1.bf16.msra.mxu0 %v1171_v14  ;;  %v1208_v43 = vld [vmem:[%s1614_s1 + $0xc0] ss:$8 sps:$4 sm:$0xff]   ;;  %v1209_v44 = vld [vmem:[%s1614_s1 + $0x194] ss:$8 sps:$4 sm:$0xff]   ;;  %v1213_v47 = vld [vmem:[%s1614_s1 + $0x190] ss:$8 sps:$4 sm:$0xff]  }
  0x1a   : > { %644 = vmatpush1.bf16.msra.mxu1 %v1172_v15  ;;  %462 = vmatprep.subr.bf16.mxu0 %v1173_v16  ;;  %v1211_v45 = vld [vmem:[%s1614_s1 + $0xb4] ss:$8 sps:$4 sm:$0xff]   ;;  %v217_v46 = vld [vmem:[%s205_s25 + $0x8] sm:$0xff]  ;;  %v219_v48 = vld [vmem:[%s205_s25 + $0x18] sm:$0x1]  ;;  %vm450_vm0 = vcmask 785408  }
  0x1b   : > { %645 = vmatprep.subr.bf16.mxu1 %v1175_v17  ;;  %v220_v49 = vld [vmem:[%s209_s28] sm:$0x3]  ;;  %v218_v53 = vld [vmem:[%s205_s25 + $0x10] sm:$0x1]  ;;  %v1215_v55 = vld [vmem:[%s1614_s1 + $0x184] ss:$8 sps:$4 sm:$0xff]  }
  0x1c   : > { %v216_v50 = vld [vmem:[%s205_s25] sm:$0xff]  ;;  %v225_v51 = vrot.slane %v220_v49, %v224_v40  ;;  %v229_v52 = vrot.slane %v220_v49, %v228_v41  ;;  %v1214_v54 = vld [vmem:[%s1614_s1 + $0xb0] ss:$8 sps:$4 sm:$0xff]   ;;  %v1221_v1 = vld [vmem:[%s1614_s1 + $0x174] ss:$8 sps:$4 sm:$0xff]   ;;  %s1140_s27 = sshll.u32 %s1619_s16, 4 }
  0x1d   : > { %463 = vmatpush1.bf16.msra.mxu0 %v1177_v18  ;;  %v1217_v56 = vld [vmem:[%s1614_s1 + $0xa4] ss:$8 sps:$4 sm:$0xff]   ;;  %v1219_v61 = vld [vmem:[%s1614_s1 + $0x180] ss:$8 sps:$4 sm:$0xff]   ;;  %v1223_v2 = vld [vmem:[%s1614_s1 + $0x94] ss:$8 sps:$4 sm:$0xff]   ;;  %s214_s30 = scalar_lea.vmem %s1617_s4, %s1140_s27 }
  0x1e   : > { %646 = vmatpush1.bf16.msra.mxu1 %v1178_v19  ;;  %464 = vmatprep.subr.bf16.mxu0 %v1179_v20  ;;  %v233_v57 = vmul.f32 %v229_v52, %v217_v46  ;;  %v235_v58 = vmul.f32 %v229_v52, %v219_v48  ;;  %v232_v59 = vmul.f32 %v225_v51, %v216_v50  ;;  %v1220_v63 = vld [vmem:[%s1614_s1 + $0xa0] ss:$8 sps:$4 sm:$0xff]   ;;  %v1225_v7 = vld [vmem:[%s1614_s1 + $0x170] ss:$8 sps:$4 sm:$0xff]   ;;  %v1227_v9 = vld [vmem:[%s1614_s1 + $0x164] ss:$8 sps:$4 sm:$0xff]  }
  0x1f   : > { %647 = vmatprep.subr.bf16.mxu1 %v1181_v21  ;;  %v234_v60 = vmul.f32 %v225_v51, %v218_v53  ;;  %v1226_v8 = vld [vmem:[%s1614_s1 + $0x90] ss:$8 sps:$4 sm:$0xff]   ;;  %v1229_v10 = vld [vmem:[%s1614_s1 + $0x84] ss:$8 sps:$4 sm:$0xff]   ;;  %v1231_v14 = vld [vmem:[%s1614_s1 + $0x160] ss:$8 sps:$4 sm:$0xff]  }
  0x20   : > { %v237_v62 = vpack.c.bf16 %v235_v58, %v233_v57  ;;  %v1232_v15 = vld [vmem:[%s1614_s1 + $0x80] ss:$8 sps:$4 sm:$0xff]   ;;  %v1235_v16 = vld [vmem:[%s1614_s1 + $0x234] ss:$8 sps:$4 sm:$0xff]   ;;  %v1233_v18 = vld [vmem:[%s1614_s1 + $0x230] ss:$8 sps:$4 sm:$0xff]  }
  0x21   : > { %465 = vmatpush1.bf16.msra.mxu0 %v1183_v22  ;;  %v1482_v0 = vpack.c.bf16 %v234_v60, %v232_v59  ;;  %v1238_v20 = vld [vmem:[%s1614_s1 + $0x224] ss:$8 sps:$4 sm:$0xff]   ;;  %v1236_v21 = vld [vmem:[%s1614_s1 + $0x220] ss:$8 sps:$4 sm:$0xff]   ;;  %v1241_v22 = vld [vmem:[%s1614_s1 + $0x214] ss:$8 sps:$4 sm:$0xff]  }
  0x22   : > { %648 = vmatpush1.bf16.msra.mxu1 %v1184_v23  ;;  %466 = vmatprep.subr.bf16.mxu0 %v1185_v24  ;;  %v303_v3 = vshrl.u32 %v237_v62, 16  ;;  %v305_v4 = vshll.u32 %v237_v62, 16  ;;  %v710_v19 = vrot.slane %v237_v62, 1  ;;  %v1239_v23 = vld [vmem:[%s1614_s1 + $0x210] ss:$8 sps:$4 sm:$0xff]   ;;  %vm915_vm1 = vcmask 260096  }
  0x23   : > { %649 = vmatprep.subr.bf16.mxu1 %v1187_v25  ;;  %1079 = vmatprep.mubr.msk.bf16.mxu1 %vm450_vm0, %v237_v62  ;;  %v298_v6 = vshll.u32 %v1482_v0, 16  ;;  %v296_v12 = vshrl.u32 %v1482_v0, 16  ;;  %v1244_v24 = vld [vmem:[%s1614_s1 + $0x204] ss:$8 sps:$4 sm:$0xff]   ;;  %v1242_v25 = vld [vmem:[%s1614_s1 + $0x200] ss:$8 sps:$4 sm:$0xff]  }
  0x24   : > { %v307_v5 = vrot.slane %v305_v4, 1  ;;  %v1251_v31 = vld [vmem:[%s1614_s1 + $0x1d0] ss:$8 sps:$4 sm:$0xff]   ;;  %v1272_v48 = vld [vmem:[%s1614_s1 + $0x240] ss:$8 sps:$4 sm:$0xff]   ;;  %v709_v49 = vrot.slane %v1482_v0, 1 }
  0x25   : > { %467 = vmatpush1.bf16.msra.mxu0 %v1189_v26  ;;  %v300_v13 = vrot.slane %v298_v6, 1  ;;  %v1247_v26 = vld [vmem:[%s1614_s1 + $0x1f4] ss:$8 sps:$4 sm:$0xff]   ;;  %v1269_v46 = vld [vmem:[%s1614_s1 + $0x250] ss:$8 sps:$4 sm:$0xff]  }
  0x26   : > { %650 = vmatpush1.bf16.msra.mxu1 %v1190_v27  ;;  %468 = vmatprep.subr.bf16.mxu0 %v1191_v28  ;;  %v308_v11 = vor.u32 %v307_v5, %v303_v3  ;;  %v1245_v27 = vld [vmem:[%s1614_s1 + $0x1f0] ss:$8 sps:$4 sm:$0xff]   ;;  %v1250_v28 = vld [vmem:[%s1614_s1 + $0x1e4] ss:$8 sps:$4 sm:$0xff]   ;;  %v898_v58 = vld [vmem:[%s1615_s2] sm:$0x3] }
  0x27   : > { %651 = vmatprep.subr.bf16.mxu1 %v1193_v29  ;;  %v301_v17 = vor.u32 %v300_v13, %v296_v12  ;;  %v1248_v29 = vld [vmem:[%s1614_s1 + $0x1e0] ss:$8 sps:$4 sm:$0xff]   ;;  %v903_v60 = vrot.slane %v898_v58, %v224_v40 }
  0x28   : > { %1050 = vmatprep.mubr.msk.bf16.mxu0 %vm450_vm0, %v308_v11 }
  0x29   : > { %469 = vmatpush1.bf16.msra.mxu0 %v1195_v30  ;;  %v1253_v30 = vld [vmem:[%s1614_s1 + $0x1d4] ss:$8 sps:$4 sm:$0xff]  }
  0x2a   : > { %652 = vmatpush1.bf16.msra.mxu1 %v1196_v32  ;;  %474 = vmatprep.subr.bf16.mxu0 %v1197_v33  ;;  %v1256_v32 = vld [vmem:[%s1614_s1 + $0x1c4] ss:$8 sps:$4 sm:$0xff]   ;;  %v1254_v33 = vld [vmem:[%s1614_s1 + $0x1c0] ss:$8 sps:$4 sm:$0xff]  }
  0x2b   : > { %657 = vmatprep.subr.bf16.mxu1 %v1199_v34  ;;  %v1259_v34 = vld [vmem:[%s1614_s1 + $0x294] ss:$8 sps:$4 sm:$0xff]  }
  0x2d   : > { %475 = vmatpush2.bf16.msra.mxu0 %v1201_v35  ;;  %v1257_v35 = vld [vmem:[%s1614_s1 + $0x290] ss:$8 sps:$4 sm:$0xff]  }
  0x2e   : > { %658 = vmatpush2.bf16.msra.mxu1 %v1202_v36  ;;  %476 = vmatprep.subr.bf16.mxu0 %v1203_v38  ;;  %v1262_v36 = vld [vmem:[%s1614_s1 + $0x284] ss:$8 sps:$4 sm:$0xff]   ;;  %v1260_v38 = vld [vmem:[%s1614_s1 + $0x280] ss:$8 sps:$4 sm:$0xff]  }
  0x2f   : > { %659 = vmatprep.subr.bf16.mxu1 %v1205_v39  ;;  %v1265_v39 = vld [vmem:[%s1614_s1 + $0x274] ss:$8 sps:$4 sm:$0xff]  }
  0x31   : > { %477 = vmatpush2.bf16.msra.mxu0 %v1207_v42  ;;  %v1263_v42 = vld [vmem:[%s1614_s1 + $0x270] ss:$8 sps:$4 sm:$0xff]  }
  0x32   : > { %660 = vmatpush2.bf16.msra.mxu1 %v1208_v43  ;;  %478 = vmatprep.subr.bf16.mxu0 %v1209_v44  ;;  %v1268_v43 = vld [vmem:[%s1614_s1 + $0x264] ss:$8 sps:$4 sm:$0xff]   ;;  %v1266_v44 = vld [vmem:[%s1614_s1 + $0x260] ss:$8 sps:$4 sm:$0xff]  }
  0x33   : > { %661 = vmatprep.subr.bf16.mxu1 %v1211_v45  ;;  %v1271_v45 = vld [vmem:[%s1614_s1 + $0x254] ss:$8 sps:$4 sm:$0xff]  }
  0x35   : > { %479 = vmatpush2.bf16.msra.mxu0 %v1213_v47  ;;  %v1274_v47 = vld [vmem:[%s1614_s1 + $0x244] ss:$8 sps:$4 sm:$0xff]  }
  0x36   : > { %662 = vmatpush2.bf16.msra.mxu1 %v1214_v54  ;;  %480 = vmatprep.subr.bf16.mxu0 %v1215_v55 }
  0x37   : > { %663 = vmatprep.subr.bf16.mxu1 %v1217_v56 }
  0x39   : > { %481 = vmatpush2.bf16.msra.mxu0 %v1219_v61 }
  0x3a   : > { %664 = vmatpush2.bf16.msra.mxu1 %v1220_v63  ;;  %482 = vmatprep.subr.bf16.mxu0 %v1221_v1 }
  0x3b   : > { %665 = vmatprep.subr.bf16.mxu1 %v1223_v2 }
  0x3d   : > { %483 = vmatpush2.bf16.msra.mxu0 %v1225_v7 }
  0x3e   : > { %666 = vmatpush2.bf16.msra.mxu1 %v1226_v8  ;;  %484 = vmatprep.subr.bf16.mxu0 %v1227_v9 }
  0x3f   : > { %667 = vmatprep.subr.bf16.mxu1 %v1229_v10 }
  0x41   : > { %485 = vmatpush2.bf16.msra.mxu0 %v1231_v14 }
  0x42   : > { %668 = vmatpush2.bf16.msra.mxu1 %v1232_v15  ;;  %855 = vmatprep.subr.bf16.mxu0 %v1235_v16 }
  0x44   : > { %487 = vmatmul.mubr.bf16.vlgmr.msra.gmra.mxu0 %v301_v17 }
  0x45   : > { %670 = vmatmul.mubr.bf16.vlgmr.msra.gmra.mxu1 %v1482_v0  ;;  %856 = vmatpush1.bf16.msra.mxu0 %v1233_v18  ;;  %v907_v0 = vrot.slane %v898_v58, %v228_v41 }
  0x46   : > { %1136 = vmatprep.mubr.msk.bf16.mxu0 %vm450_vm0, %v710_v19  ;;  %857 = vmatprep.subr.bf16.mxu0 %v1238_v20 }
  0x49   : > { %858 = vmatpush1.bf16.msra.mxu0 %v1236_v21 }
  0x4a   : > { %859 = vmatprep.subr.bf16.mxu0 %v1241_v22 }
  0x4d   : > { %860 = vmatpush1.bf16.msra.mxu0 %v1239_v23 }
  0x4e   : > { %861 = vmatprep.subr.bf16.mxu0 %v1244_v24 }
  0x51   : > { %862 = vmatpush1.bf16.msra.mxu0 %v1242_v25 }
  0x52   : > { %863 = vmatprep.subr.bf16.mxu0 %v1247_v26 }
  0x55   : > { %864 = vmatpush1.bf16.msra.mxu0 %v1245_v27 }
  0x56   : > { %865 = vmatprep.subr.bf16.mxu0 %v1250_v28 }
  0x59   : > { %866 = vmatpush1.bf16.msra.mxu0 %v1248_v29 }
  0x5a   : > { %867 = vmatprep.subr.bf16.mxu0 %v1253_v30 }
  0x5d   : > { %868 = vmatpush1.bf16.msra.mxu0 %v1251_v31 }
  0x5e   : > { %869 = vmatprep.subr.bf16.mxu0 %v1256_v32 }
  0x61   : > { %870 = vmatpush1.bf16.msra.mxu0 %v1254_v33 }
  0x62   : > { %875 = vmatprep.subr.bf16.mxu0 %v1259_v34 }
  0x65   : > { %876 = vmatpush2.bf16.msra.mxu0 %v1257_v35 }
  0x66   : > { %877 = vmatprep.subr.bf16.mxu0 %v1262_v36 }
  0x69   : > { %878 = vmatpush2.bf16.msra.mxu0 %v1260_v38 }
  0x6a   : > { %879 = vmatprep.subr.bf16.mxu0 %v1265_v39 }
  0x6d   : > { %880 = vmatpush2.bf16.msra.mxu0 %v1263_v42 }
  0x6e   : > { %881 = vmatprep.subr.bf16.mxu0 %v1268_v43 }
  0x71   : > { %882 = vmatpush2.bf16.msra.mxu0 %v1266_v44 }
  0x72   : > { %883 = vmatprep.subr.bf16.mxu0 %v1271_v45 }
  0x75   : > { %884 = vmatpush2.bf16.msra.mxu0 %v1269_v46 }
  0x76   : > { %885 = vmatprep.subr.bf16.mxu0 %v1274_v47 }
  0x79   : > { %886 = vmatpush2.bf16.msra.mxu0 %v1272_v48 }
  0x7c   : > { %888 = vmatmul.mubr.bf16.vlgmr.msra.gmra.mxu0 %v709_v49 }
 0x104   : > { %v488_v50 = vpop.f32.mrf.mxu0 }
 0x105   : > { %v671_v51 = vpop.f32.mrf.mxu1 }
 0x106   : > { %v490_v52 = vpop.f32.mrf.mxu0  ;;  %v672_v59 = vadd.f32 %v671_v51, %v488_v50 }
 0x107   : > { %v673_v53 = vpop.f32.mrf.mxu1 }
 0x108   : > { %v492_v54 = vpop.f32.mrf.mxu0  ;;  %v674_v62 = vadd.f32 %v673_v53, %v490_v52 }
 0x109   : > { %v675_v55 = vpop.f32.mrf.mxu1 }
 0x10a   : > { %v493_v56 = vpop.f32.mrf.mxu0 }
 0x10b   : > { %v676_v57 = vpop.f32.mrf.mxu1 }
 0x13c   : > { %v889_v61 = vpop.f32.mrf.mxu0 }
 0x13d   : > { %v896_v63 = vadd.f32 %v889_v61, %v672_v59 }
 0x13e   : > { %v891_v1 = vpop.f32.mrf.mxu0 }
 0x13f   : > { %v910_v2 = vadd.f32 %v903_v60, %v896_v63  ;;  %v897_v3 = vadd.f32 %v891_v1, %v674_v62 }
 0x140   : > { %v893_v4 = vpop.f32.mrf.mxu0 }
 0x141   : > { %v912_v5 = vmax.f32 %v910_v2, 0.0  ;;  %v911_v6 = vadd.f32 %v907_v0, %v897_v3 }
 0x142   : > { %v894_v7 = vpop.f32.mrf.mxu0 }
 0x143   : > { %914 = vst [vmem:[%s214_s30] sm:$0x7f] %v912_v5  ;;  %v913_v40 = vmax.f32 %v911_v6, 0.0 }
 0x145   : > { %916 = vst.msk [vmem:[%s214_s30 + $0x8] sm:$0x7f] %vm915_vm1, %v913_v40 }
 0x146 PF: > { %s14_s15 = sadd.s32 1, %s1281_s15  }
 0x147   : > { %p11_p4 = scmp.ge.s32.totalorder %s14_s15, 8  }
 0x149   :  { %13 = sbr.rel (!%p11_p4) target bundleno = 1 (0x1), region = 71 }

// kernel: tile.69
= control target key start
LH: loop header
LB: loop body
LE: loop exit
PB: predicated region body
PF: predicated region fallthrough
CT: control target
= control target key end

     0   :  { %vm8_vm0 = vcmask 261120   ;;  %s33_s8 = smov 32   ;;  %vm14_vm1 = vcmask 785920   ;;  %vm20_vm2 = vcmask 523520   ;;  %s50_s0 = inlined_call_operand.vmem [shape: f32[3,32], index: 0, kind: input, shape index: {}]   ;;  %s51_s1 = inlined_call_operand.vmem [shape: f32[1,96], index: 1, kind: output, shape index: {}]  }
   0x1   :  { %v5_v0 = vld [vmem:[%s50_s0] sm:$0xf]  ;;  %s32_s0 = smov 64  }
   0x2   :  { %6 = vst [vmem:[#allocation1] sm:$0xf] %v5_v0 }
   0x9   :  { %v11_v1 = vld [vmem:[#allocation1 + $0x2] sm:$0x1]   ;;  %v7_v2 = vld [vmem:[#allocation1] sm:$0x1]   ;;  %v17_v3 = vld [vmem:[#allocation1 + $0x1] sm:$0x1]  }
   0xa   :  { %12 = vrot.lane.b32.xlu0 %v11_v1, %s32_s0  ;;  %9 = vst.msk [vmem:[#allocation0] sm:$0x1] %vm8_vm0, %v7_v2  }
   0xe   :  { %18 = vrot.lane.b32.xlu0 %v17_v3, %s33_s8 }
  0x7c   :  { %v13_v4 = vpop.permute.xlu0 %12  }
  0x7d   :  { %15 = vst.msk [vmem:[#allocation0] sm:$0x1] %vm14_vm1, %v13_v4  }
  0x80   :  { %v19_v5 = vpop.permute.xlu0 %18  }
  0x81   :  { %21 = vst.msk [vmem:[#allocation0] sm:$0x1] %vm20_vm2, %v19_v5  }
  0x88   :  { %v26_v6 = vld [vmem:[#allocation0] sm:$0x1] }
  0x89   :  { %29 = vst [vmem:[%s51_s1] sm:$0x1] %v26_v6 }

// kernel: tile.68
= control target key start
LH: loop header
LB: loop body
LE: loop exit
PB: predicated region body
PF: predicated region fallthrough
CT: control target
= control target key end

     0   :  { %s22_s0 = inlined_call_operand.vmem [shape: f32[32], index: 0, kind: input, shape index: {}]   ;;  %s23_s1 = inlined_call_operand.vmem [shape: f32[3,32], index: 1, kind: output, shape index: {}]  }
   0x1   :  { %v4_v0 = vld [vmem:[%s22_s0] ss:$0 sm:$0xff] }
   0x2   :  { %5 = vst [vmem:[%s23_s1] sm:$0xf] %v4_v0 }

// kernel: metafluad_forward.17
= control target key start
LH: loop header
LB: loop body
LE: loop exit
PB: predicated region body
PF: predicated region fallthrough
CT: control target
= control target key end

     0   :  { %s783_s12 = smov 0   ;;  %s930_s0 = inlined_call_operand.vmem [shape: f32[6,6,160], index: 0, kind: input, shape index: {}]   ;;  %s931_s1 = inlined_call_operand.vmem [shape: bf16[3,160,96], index: 1, kind: input, shape index: {}]   ;;  %s932_s2 = inlined_call_operand.vmem [shape: f32[1,96], index: 2, kind: input, shape index: {}]   ;;  %s933_s3 = inlined_call_operand.vmem [shape: f32[6,4,96], index: 3, kind: output, shape index: {}]  }
   0x1 LB: > { %s630_s13 = sadd.s32 4294967295, %s760_s12   ;;  %p634_p0 = scmp.ge.s32.totalorder %s760_s12, 1  ;;  %s760_s12 = sphi %s783_s12, %s13_s12  }
   0x2   : > { %p137_p1 = scmp.lt.s32.totalorder %s760_s12, 7 }
   0x4   : > { %p138_p2 = pnand %p634_p0, %p137_p1 }
   0x5   : > { %p160_p3 = scmp.lt.s32.totalorder (!%p138_p2), %s630_s13, 5 }
   0x6   : > { %141 = sbr.rel (%p138_p2) target bundleno = 292 (0x124), region = 32 }
   0xb   : > { %v724_v0 = vld [vmem:[%s931_s1 + $0x88] sm:$0xff]   ;;  %v762_v1 = vmov 0   ;;  %v725_v2 = vld [vmem:[%s931_s1 + $0x38] sm:$0xff]   ;;  %v726_v3 = vld [vmem:[%s931_s1 + $0x80] sm:$0xff]   ;;  %s935_s13 = smov (!%p160_p3, %s630_s13), 5  ;;  %vm290_vm0 = vcmask 261120  }
   0xc   : > { %294 = vmatprep.subr.bf16.mxu0 %v762_v1  ;;  %396 = vmatprep.subr.bf16.mxu1 %v762_v1  ;;  %v727_v4 = vld [vmem:[%s931_s1 + $0x30] sm:$0xff]   ;;  %v728_v5 = vld [vmem:[%s931_s1 + $0x78] sm:$0xff]   ;;  %v729_v6 = vld [vmem:[%s931_s1 + $0x28] sm:$0xff]   ;;  %s714_s5 = sshll.u32 %s935_s13, 4  ;;  %s637_s30 = sshll.u32 %s935_s13, 2  ;;  %vm575_vm1 = vcmask 781312  }
   0xd   : > { %295 = vmatpush1.bf16.msra.mxu0 %v724_v0  ;;  %397 = vmatpush1.bf16.msra.mxu1 %v725_v2  ;;  %v730_v7 = vld [vmem:[%s931_s1 + $0x70] sm:$0xff]   ;;  %v731_v8 = vld [vmem:[%s931_s1 + $0x20] sm:$0xff]   ;;  %v732_v9 = vld [vmem:[%s931_s1 + $0x68] sm:$0xff]   ;;  %s164_s10 = scalar_lea.vmem %s930_s0, %s714_s5  ;;  %s168_s6 = scalar_lea.vmem %s933_s3, %s637_s30 }
   0xe   : > { %296 = vmatprep.subr.bf16.mxu0 %v762_v1  ;;  %398 = vmatprep.subr.bf16.mxu1 %v762_v1  ;;  %v733_v10 = vld [vmem:[%s931_s1 + $0x18] sm:$0xff]   ;;  %v734_v11 = vld [vmem:[%s931_s1 + $0x60] sm:$0xff]   ;;  %v735_v12 = vld [vmem:[%s931_s1 + $0x10] sm:$0xff]  }
   0xf   : > { %v171_v13 = vld [vmem:[%s164_s10 + $0x8] sm:$0x3f]  ;;  %v736_v14 = vld [vmem:[%s931_s1 + $0x58] sm:$0xff]   ;;  %v170_v16 = vld [vmem:[%s164_s10] sm:$0x3f] }
  0x10   : > { %v173_v15 = vpack.c.bf16 %v171_v13, %v171_v13  ;;  %v737_v17 = vld [vmem:[%s931_s1 + $0x8] sm:$0xff]   ;;  %v738_v20 = vld [vmem:[%s931_s1 + $0x50] sm:$0xff]   ;;  %v172_v22 = vpack.c.bf16 %v170_v16, %v170_v16  ;;  %v739_v23 = vld [vmem:[%s931_s1] sm:$0xff]  }
  0x11   : > { %297 = vmatpush1.bf16.msra.mxu0 %v726_v3  ;;  %399 = vmatpush1.bf16.msra.mxu1 %v727_v4  ;;  %v740_v26 = vld [vmem:[%s931_s1 + $0x98] sm:$0xff]   ;;  %v741_v27 = vld [vmem:[%s931_s1 + $0x48] sm:$0xff]   ;;  %v742_v30 = vld [vmem:[%s931_s1 + $0x90] sm:$0xff]  }
  0x12   : > { %298 = vmatprep.subr.bf16.mxu0 %v762_v1  ;;  %400 = vmatprep.subr.bf16.mxu1 %v762_v1  ;;  %v223_v18 = vshrl.u32 %v173_v15, 16  ;;  %v225_v19 = vshll.u32 %v173_v15, 16  ;;  %v218_v25 = vshll.u32 %v172_v22, 16  ;;  %v216_v28 = vshrl.u32 %v172_v22, 16  ;;  %v743_v31 = vld [vmem:[%s931_s1 + $0x40] sm:$0xff]   ;;  %v744_v33 = vld [vmem:[%s931_s1 + $0xd8] sm:$0xff]  }
  0x13   : > { %679 = vmatprep.mubr.msk.bf16.mxu1 %vm290_vm0, %v173_v15  ;;  %v460_v34 = vrot.slane %v173_v15, 1  ;;  %v745_v35 = vld [vmem:[%s931_s1 + $0xd0] sm:$0xff]   ;;  %v746_v36 = vld [vmem:[%s931_s1 + $0xc8] sm:$0xff]   ;;  %v747_v37 = vld [vmem:[%s931_s1 + $0xc0] sm:$0xff]   ;;  %v459_v44 = vrot.slane %v172_v22, 1 }
  0x14   : > { %v227_v21 = vrot.slane %v225_v19, 1  ;;  %v220_v29 = vrot.slane %v218_v25, 1  ;;  %v748_v38 = vld [vmem:[%s931_s1 + $0xb8] sm:$0xff]   ;;  %v749_v39 = vld [vmem:[%s931_s1 + $0xb0] sm:$0xff]   ;;  %v750_v40 = vld [vmem:[%s931_s1 + $0xa8] sm:$0xff]  }
  0x15   : > { %299 = vmatpush1.bf16.msra.mxu0 %v728_v5  ;;  %401 = vmatpush1.bf16.msra.mxu1 %v729_v6  ;;  %v751_v41 = vld [vmem:[%s931_s1 + $0xa0] sm:$0xff]   ;;  %v752_v42 = vld [vmem:[%s931_s1 + $0xe8] sm:$0xff]  }
  0x16   : > { %300 = vmatprep.subr.bf16.mxu0 %v762_v1  ;;  %402 = vmatprep.subr.bf16.mxu1 %v762_v1  ;;  %v228_v24 = vor.u32 %v227_v21, %v223_v18  ;;  %v221_v32 = vor.u32 %v220_v29, %v216_v28  ;;  %v753_v43 = vld [vmem:[%s931_s1 + $0xe0] sm:$0xff]  }
  0x17   : > { %v711_v55 = vld [vmem:[%s932_s2] ss:$0 sm:$0xff] }
  0x18   : > { %668 = vmatprep.mubr.msk.bf16.mxu0 %vm290_vm0, %v228_v24 }
  0x19   : > { %301 = vmatpush1.bf16.msra.mxu0 %v730_v7  ;;  %403 = vmatpush1.bf16.msra.mxu1 %v731_v8 }
  0x1a   : > { %302 = vmatprep.subr.bf16.mxu0 %v762_v1  ;;  %404 = vmatprep.subr.bf16.mxu1 %v762_v1 }
  0x1d   : > { %303 = vmatpush1.bf16.msra.mxu0 %v732_v9  ;;  %405 = vmatpush1.bf16.msra.mxu1 %v733_v10 }
  0x1e   : > { %304 = vmatprep.subr.bf16.mxu0 %v762_v1  ;;  %406 = vmatprep.subr.bf16.mxu1 %v762_v1 }
  0x21   : > { %305 = vmatpush1.bf16.msra.mxu0 %v734_v11  ;;  %407 = vmatpush1.bf16.msra.mxu1 %v735_v12 }
  0x22   : > { %306 = vmatprep.subr.bf16.mxu0 %v762_v1  ;;  %408 = vmatprep.subr.bf16.mxu1 %v762_v1 }
  0x25   : > { %307 = vmatpush1.bf16.msra.mxu0 %v736_v14  ;;  %409 = vmatpush1.bf16.msra.mxu1 %v737_v17 }
  0x26   : > { %308 = vmatprep.subr.bf16.mxu0 %v762_v1  ;;  %410 = vmatprep.subr.bf16.mxu1 %v762_v1 }
  0x29   : > { %309 = vmatpush1.bf16.msra.mxu0 %v738_v20  ;;  %411 = vmatpush1.bf16.msra.mxu1 %v739_v23 }
  0x2a   : > { %322 = vmatprep.subr.bf16.mxu0 %v762_v1  ;;  %424 = vmatprep.subr.bf16.mxu1 %v762_v1 }
  0x2d   : > { %323 = vmatpush2.bf16.msra.mxu0 %v740_v26  ;;  %425 = vmatpush2.bf16.msra.mxu1 %v741_v27 }
  0x2e   : > { %324 = vmatprep.subr.bf16.mxu0 %v762_v1  ;;  %426 = vmatprep.subr.bf16.mxu1 %v762_v1 }
  0x31   : > { %325 = vmatpush2.bf16.msra.mxu0 %v742_v30  ;;  %427 = vmatpush2.bf16.msra.mxu1 %v743_v31 }
  0x32   : > { %525 = vmatprep.subr.bf16.mxu0 %v762_v1 }
  0x34   : > { %327 = vmatmul.mubr.bf16.vlgmr.msra.gmra.mxu0 %v221_v32  ;;  %429 = vmatmul.mubr.bf16.vlgmr.msra.gmra.mxu1 %v172_v22 }
  0x35   : > { %526 = vmatpush1.bf16.msra.mxu0 %v744_v33  ;;  %710 = vmatprep.mubr.msk.bf16.mxu0 %vm290_vm0, %v460_v34 }
  0x36   : > { %527 = vmatprep.subr.bf16.mxu0 %v762_v1 }
  0x39   : > { %528 = vmatpush1.bf16.msra.mxu0 %v745_v35 }
  0x3a   : > { %529 = vmatprep.subr.bf16.mxu0 %v762_v1 }
  0x3d   : > { %530 = vmatpush1.bf16.msra.mxu0 %v746_v36 }
  0x3e   : > { %531 = vmatprep.subr.bf16.mxu0 %v762_v1 }
  0x41   : > { %532 = vmatpush1.bf16.msra.mxu0 %v747_v37 }
  0x42   : > { %533 = vmatprep.subr.bf16.mxu0 %v762_v1 }
  0x45   : > { %534 = vmatpush1.bf16.msra.mxu0 %v748_v38 }
  0x46   : > { %535 = vmatprep.subr.bf16.mxu0 %v762_v1 }
  0x49   : > { %536 = vmatpush1.bf16.msra.mxu0 %v749_v39 }
  0x4a   : > { %537 = vmatprep.subr.bf16.mxu0 %v762_v1 }
  0x4d   : > { %538 = vmatpush1.bf16.msra.mxu0 %v750_v40 }
  0x4e   : > { %539 = vmatprep.subr.bf16.mxu0 %v762_v1 }
  0x51   : > { %540 = vmatpush1.bf16.msra.mxu0 %v751_v41 }
  0x52   : > { %553 = vmatprep.subr.bf16.mxu0 %v762_v1 }
  0x55   : > { %554 = vmatpush2.bf16.msra.mxu0 %v752_v42 }
  0x56   : > { %555 = vmatprep.subr.bf16.mxu0 %v762_v1 }
  0x59   : > { %556 = vmatpush2.bf16.msra.mxu0 %v753_v43 }
  0x5c   : > { %558 = vmatmul.mubr.bf16.vlgmr.msra.gmra.mxu0 %v459_v44 }
  0xf4   : > { %v328_v45 = vpop.f32.mrf.mxu0  ;;  %v430_v46 = vpop.f32.mrf.mxu1 }
  0xf5   : > { %v431_v53 = vadd.f32 %v430_v46, %v328_v45 }
  0xf6   : > { %v330_v47 = vpop.f32.mrf.mxu0  ;;  %v432_v48 = vpop.f32.mrf.mxu1 }
  0xf8   : > { %v331_v49 = vpop.f32.mrf.mxu0  ;;  %v433_v50 = vpop.f32.mrf.mxu1 }
  0xfa   : > { %v332_v51 = vpop.f32.mrf.mxu0  ;;  %v434_v52 = vpop.f32.mrf.mxu1 }
 0x11c   : > { %v559_v54 = vpop.f32.mrf.mxu0 }
 0x11d   : > { %v565_v56 = vadd.f32 %v559_v54, %v431_v53 }
 0x11e   : > { %v561_v57 = vpop.f32.mrf.mxu0 }
 0x11f   : > { %v573_v58 = vadd.f32 %v711_v55, %v565_v56 }
 0x120   : > { %v562_v59 = vpop.f32.mrf.mxu0 }
 0x121   : > { %v574_v60 = vmax.f32 %v573_v58, 0.0 }
 0x122   : > { %v563_v61 = vpop.f32.mrf.mxu0 }
 0x123   : > { %576 = vst.msk [vmem:[%s168_s6] sm:$0xf] %vm575_vm1, %v574_v60 }
 0x124 PF: > { %s13_s12 = sadd.s32 1, %s760_s12  }
 0x125   : > { %p10_p4 = scmp.ge.s32.totalorder %s13_s12, 8  }
 0x127   :  { %12 = sbr.rel (!%p10_p4) target bundleno = 1 (0x1), region = 64 }

// kernel: metafluad_forward.18
= control target key start
LH: loop header
LB: loop body
LE: loop exit
PB: predicated region body
PF: predicated region fallthrough
CT: control target
= control target key end

     0   :  { %v369_v1 = vmov 0   ;;  %vm242_vm0 = vcmask 1044480   ;;  %vm238_vm1 = vcmask 80896   ;;  %vm181_vm2 = vcmask 523264   ;;  %s496_s1 = inlined_call_operand.vmem [shape: bf16[192,256], index: 1, kind: input, shape index: {}]   ;;  %s497_s4 = inlined_call_operand.vmem [shape: bf16[10,256], index: 4, kind: input, shape index: {}]   ;;  %s498_s3 = inlined_call_operand.vmem [shape: f32[6,10], index: 3, kind: input, shape index: {}]   ;;  %s499_s0 = inlined_call_operand.vmem [shape: f32[6,192], index: 0, kind: input, shape index: {}]   ;;  %s500_s2 = inlined_call_operand.vmem [shape: f32[1,256], index: 2, kind: input, shape index: {}]   ;;  %s501_s5 = inlined_call_operand.vmem [shape: f32[6,256], index: 5, kind: output, shape index: {}]  }
   0x1   :  { %v330_v0 = vld [vmem:[%s496_s1 + $0x74] ss:$8 sps:$4 sm:$0xff]   ;;  %281 = vmatprep.mubr.bf16.mxu1 %v369_v1  ;;  %v332_v2 = vld [vmem:[%s496_s1 + $0x70] ss:$8 sps:$4 sm:$0xff]   ;;  %v333_v3 = vld [vmem:[%s496_s1 + $0x64] ss:$8 sps:$4 sm:$0xff]   ;;  %v51_v38 = vlaneseq }
   0x2   :  { %185 = vmatprep.subr.bf16.mxu0 %v330_v0  ;;  %v335_v4 = vld [vmem:[%s496_s1 + $0x60] ss:$8 sps:$4 sm:$0xff]   ;;  %v336_v5 = vld [vmem:[%s496_s1 + $0x54] ss:$8 sps:$4 sm:$0xff]   ;;  %v338_v6 = vld [vmem:[%s496_s1 + $0x50] ss:$8 sps:$4 sm:$0xff]  }
   0x3   :  { %186 = vmatpush1.bf16.msra.mxu0 %v332_v2  ;;  %v339_v7 = vld [vmem:[%s496_s1 + $0x44] ss:$8 sps:$4 sm:$0xff]   ;;  %v341_v8 = vld [vmem:[%s496_s1 + $0x40] ss:$8 sps:$4 sm:$0xff]   ;;  %v342_v9 = vld [vmem:[%s496_s1 + $0x34] ss:$8 sps:$4 sm:$0xff]  }
   0x4   :  { %187 = vmatprep.subr.bf16.mxu0 %v333_v3  ;;  %v360_v10 = vld [vmem:[%s497_s4 + $0x4] ss:$8 sps:$4 sm:$0x1f]   ;;  %v362_v11 = vld [vmem:[%s497_s4] ss:$8 sps:$4 sm:$0x1f]  }
   0x5   :  { %v344_v12 = vld [vmem:[%s496_s1 + $0x30] ss:$8 sps:$4 sm:$0xff]   ;;  %v345_v13 = vld [vmem:[%s496_s1 + $0x24] ss:$8 sps:$4 sm:$0xff]   ;;  %327 = vmatprep.subr.msk.bf16.mxu1 %vm242_vm0, %v360_v10  ;;  %v244_v14 = vsel %vm242_vm0, %v362_v11, 0  ;;  %v52_v39 = vshrl.u32 %v51_v38, 7 }
   0x6   :  { %v226_v15 = vld [vmem:[%s498_s3] sm:$0x3f]  ;;  %264 = vmatpush1.bf16.msra.mxu1 %v244_v14  ;;  %v22_v17 = vld [vmem:[%s499_s0 + $0x8] sm:$0x3f]  ;;  %v348_v20 = vld [vmem:[%s496_s1 + $0x14] ss:$8 sps:$4 sm:$0xff]  }
   0x7   :  { %188 = vmatpush1.bf16.msra.mxu0 %v335_v4  ;;  %v227_v16 = vpack.c.bf16 %v226_v15, %v226_v15  ;;  %v347_v18 = vld [vmem:[%s496_s1 + $0x20] ss:$8 sps:$4 sm:$0xff]   ;;  %v24_v19 = vpack.c.bf16 %v22_v17, %v22_v17  ;;  %v350_v21 = vld [vmem:[%s496_s1 + $0x10] ss:$8 sps:$4 sm:$0xff]   ;;  %v351_v22 = vld [vmem:[%s496_s1 + $0x4] ss:$8 sps:$4 sm:$0xff]  }
   0x8   :  { %189 = vmatprep.subr.bf16.mxu0 %v336_v5  ;;  %v353_v23 = vld [vmem:[%s496_s1] ss:$8 sps:$4 sm:$0xff]   ;;  %v354_v24 = vld [vmem:[%s496_s1 + $0xb4] ss:$8 sps:$4 sm:$0xff]   ;;  %v356_v25 = vld [vmem:[%s496_s1 + $0xb0] ss:$8 sps:$4 sm:$0xff]  }
   0x9   :  { %328 = vmatmul.mubr.msk.bf16.vlgmr.msra.gmra.mxu1 %vm238_vm1, %v227_v16  ;;  %324 = vmatprep.mubr.msk.bf16.mxu0 %vm181_vm2, %v24_v19  ;;  %v357_v26 = vld [vmem:[%s496_s1 + $0xa4] ss:$8 sps:$4 sm:$0xff]   ;;  %v359_v27 = vld [vmem:[%s496_s1 + $0xa0] ss:$8 sps:$4 sm:$0xff]   ;;  %v363_v28 = vld [vmem:[%s496_s1 + $0x94] ss:$8 sps:$4 sm:$0xff]  }
   0xa   :  { %v365_v29 = vld [vmem:[%s496_s1 + $0x90] ss:$8 sps:$4 sm:$0xff]   ;;  %v366_v30 = vld [vmem:[%s496_s1 + $0x84] ss:$8 sps:$4 sm:$0xff]   ;;  %v368_v31 = vld [vmem:[%s496_s1 + $0x80] ss:$8 sps:$4 sm:$0xff]  }
   0xb   :  { %190 = vmatpush1.bf16.msra.mxu0 %v338_v6  ;;  %v21_v32 = vld [vmem:[%s499_s0] sm:$0x3f]  ;;  %v53_v40 = vsub.s32 0, %v52_v39  ;;  %v57_v42 = vsub.s32 1, %v52_v39 }
   0xc   :  { %191 = vmatprep.subr.bf16.mxu0 %v339_v7  ;;  %v23_v33 = vpack.c.bf16 %v21_v32, %v21_v32  ;;  %v49_v41 = vld [vmem:[%s500_s2] sm:$0x3] }
   0xd   :  { %v54_v43 = vrot.slane %v49_v41, %v53_v40  ;;  %v58_v45 = vrot.slane %v49_v41, %v57_v42 }
   0xf   :  { %192 = vmatpush1.bf16.msra.mxu0 %v341_v8 }
  0x10   :  { %193 = vmatprep.subr.bf16.mxu0 %v342_v9 }
  0x13   :  { %194 = vmatpush1.bf16.msra.mxu0 %v344_v12 }
  0x14   :  { %195 = vmatprep.subr.bf16.mxu0 %v345_v13 }
  0x17   :  { %196 = vmatpush1.bf16.msra.mxu0 %v347_v18 }
  0x18   :  { %197 = vmatprep.subr.bf16.mxu0 %v348_v20 }
  0x1b   :  { %198 = vmatpush1.bf16.msra.mxu0 %v350_v21 }
  0x1c   :  { %199 = vmatprep.subr.bf16.mxu0 %v351_v22 }
  0x1f   :  { %200 = vmatpush1.bf16.msra.mxu0 %v353_v23 }
  0x20   :  { %209 = vmatprep.subr.bf16.mxu0 %v354_v24 }
  0x23   :  { %210 = vmatpush2.bf16.msra.mxu0 %v356_v25 }
  0x24   :  { %211 = vmatprep.subr.bf16.mxu0 %v357_v26 }
  0x27   :  { %212 = vmatpush2.bf16.msra.mxu0 %v359_v27 }
  0x28   :  { %213 = vmatprep.subr.bf16.mxu0 %v363_v28 }
  0x2b   :  { %214 = vmatpush2.bf16.msra.mxu0 %v365_v29 }
  0x2c   :  { %215 = vmatprep.subr.bf16.mxu0 %v366_v30 }
  0x2f   :  { %216 = vmatpush2.bf16.msra.mxu0 %v368_v31 }
  0x32   :  { %218 = vmatmul.mubr.bf16.vlgmr.msra.gmra.mxu0 %v23_v33 }
  0xc9   :  { %v283_v34 = vpop.f32.mrf.mxu1 }
  0xca   :  { %v290_v44 = vmax.f32 %v283_v34, 0.0 }
  0xcb   :  { %v285_v35 = vpop.f32.mrf.mxu1 }
  0xcc   :  { %v291_v49 = vmax.f32 %v285_v35, 0.0 }
  0xcd   :  { %v287_v36 = vpop.f32.mrf.mxu1 }
  0xcf   :  { %v288_v37 = vpop.f32.mrf.mxu1 }
  0xf2   :  { %v219_v46 = vpop.f32.mrf.mxu0 }
  0xf3   :  { %v220_v47 = vadd.f32 %v219_v46, %v54_v43 }
  0xf4   :  { %v221_v48 = vpop.f32.mrf.mxu0 }
  0xf5   :  { %v292_v50 = vmul.f32 %v290_v44, %v220_v47  ;;  %v222_v51 = vadd.f32 %v221_v48, %v58_v45 }
  0xf6   :  { %v223_v52 = vpop.f32.mrf.mxu0 }
  0xf7   :  { %294 = vst [vmem:[%s501_s5] sm:$0x3f] %v292_v50  ;;  %v293_v53 = vmul.f32 %v291_v49, %v222_v51 }
  0xf8   :  { %v224_v54 = vpop.f32.mrf.mxu0 }
  0xf9   :  { %295 = vst [vmem:[%s501_s5 + $0x8] sm:$0x3f] %v293_v53 }

// kernel: metafluad_forward.20
= control target key start
LH: loop header
LB: loop body
LE: loop exit
PB: predicated region body
PF: predicated region fallthrough
CT: control target
= control target key end

     0   :  { %v2768_v36 = vmov 0.0   ;;  %vm2769_vm0 = vmmov 0   ;;  %vm280_vm1 = vcmask 523264   ;;  %vm365_vm2 = vcmask 521216   ;;  %s2770_s23 = smov 64   ;;  %s3402_s4 = inlined_call_operand.vmem [shape: bf16[256,256], index: 4, kind: input, shape index: {}]   ;;  %s3403_s0 = inlined_call_operand.vmem [shape: f32[6,256], index: 0, kind: input, shape index: {}]   ;;  %s3404_s6 = inlined_call_operand.vmem [shape: f32[4,1,64], index: 6, kind: input, shape index: {}]   ;;  %s3405_s5 = inlined_call_operand.vmem [shape: f32[4,1,64], index: 5, kind: input, shape index: {}]   ;;  %s3406_s1 = inlined_call_operand.vmem [shape: f32[6,6], index: 1, kind: input, shape index: {}]   ;;  %s3407_s8 = inlined_call_operand.vmem [shape: bf16[256,256], index: 8, kind: input, shape index: {}]   ;;  %s3408_s2 = inlined_call_operand.vmem [shape: bf16[256,256], index: 2, kind: input, shape index: {}]   ;;  %s3409_s7 = inlined_call_operand.vmem [shape: f32[1,256], index: 7, kind: input, shape index: {}]   ;;  %s3410_s10 = inlined_call_operand.vmem [shape: f32[4,1,64], index: 10, kind: input, shape index: {}]   ;;  %s3411_s9 = inlined_call_operand.vmem [shape: f32[4,1,64], index: 9, kind: input, shape index: {}]   ;;  %s3412_s3 = inlined_call_operand.vmem [shape: f32[1,256], index: 3, kind: input, shape index: {}]   ;;  %s3413_s11 = inlined_call_operand.vmem [shape: f32[1,256], index: 11, kind: input, shape index: {}]   ;;  %s3414_s12 = inlined_call_operand.vmem [shape: f32[6,256], index: 12, kind: output, shape index: {}]  }
   0x1   :  { %v2592_v0 = vld [vmem:[%s3402_s4 + $0x74] ss:$8 sps:$4 sm:$0xff]   ;;  %v2594_v1 = vld [vmem:[%s3402_s4 + $0x70] ss:$8 sps:$4 sm:$0xff]   ;;  %v2595_v2 = vld [vmem:[%s3402_s4 + $0x64] ss:$8 sps:$4 sm:$0xff]   ;;  %2509 = vmatprep.subr.mxu1 %v2768_v36  ;;  %2511 = vmatprep.mubr.msk.f32.mxu1 %vm2769_vm0, %v2768_v36  ;;  %v369_v45 = vlaneseq }
   0x2   :  { %238 = vmatprep.subr.bf16.mxu0 %v2592_v0  ;;  %v2597_v3 = vld [vmem:[%s3402_s4 + $0x60] ss:$8 sps:$4 sm:$0xff]   ;;  %v2598_v4 = vld [vmem:[%s3402_s4 + $0x54] ss:$8 sps:$4 sm:$0xff]   ;;  %v2600_v5 = vld [vmem:[%s3402_s4 + $0x50] ss:$8 sps:$4 sm:$0xff]  }
   0x3   :  { %239 = vmatpush1.bf16.msra.mxu0 %v2594_v1  ;;  %v2601_v6 = vld [vmem:[%s3402_s4 + $0x44] ss:$8 sps:$4 sm:$0xff]   ;;  %v2603_v7 = vld [vmem:[%s3402_s4 + $0x40] ss:$8 sps:$4 sm:$0xff]   ;;  %v2604_v8 = vld [vmem:[%s3402_s4 + $0x34] ss:$8 sps:$4 sm:$0xff]  }
   0x4   :  { %240 = vmatprep.subr.bf16.mxu0 %v2595_v2  ;;  %v2606_v9 = vld [vmem:[%s3402_s4 + $0x30] ss:$8 sps:$4 sm:$0xff]   ;;  %v2607_v10 = vld [vmem:[%s3402_s4 + $0x24] ss:$8 sps:$4 sm:$0xff]   ;;  %v2609_v11 = vld [vmem:[%s3402_s4 + $0x20] ss:$8 sps:$4 sm:$0xff]  }
   0x5   :  { %v2610_v12 = vld [vmem:[%s3402_s4 + $0x14] ss:$8 sps:$4 sm:$0xff]   ;;  %v42_v13 = vld [vmem:[%s3403_s0 + $0x8] sm:$0x3f]  ;;  %v2612_v15 = vld [vmem:[%s3402_s4 + $0x10] ss:$8 sps:$4 sm:$0xff]  }
   0x6   :  { %v2878_v14 = vpack.c.bf16 %v42_v13, %v42_v13  ;;  %v2613_v16 = vld [vmem:[%s3402_s4 + $0x4] ss:$8 sps:$4 sm:$0xff]   ;;  %v2615_v17 = vld [vmem:[%s3402_s4] ss:$8 sps:$4 sm:$0xff]   ;;  %v2616_v18 = vld [vmem:[%s3402_s4 + $0xf4] ss:$8 sps:$4 sm:$0xff]  }
   0x7   :  { %241 = vmatpush1.bf16.msra.mxu0 %v2597_v3  ;;  %v2618_v19 = vld [vmem:[%s3402_s4 + $0xf0] ss:$8 sps:$4 sm:$0xff]   ;;  %v2619_v20 = vld [vmem:[%s3402_s4 + $0xe4] ss:$8 sps:$4 sm:$0xff]   ;;  %v2621_v21 = vld [vmem:[%s3402_s4 + $0xe0] ss:$8 sps:$4 sm:$0xff]  }
   0x8   :  { %242 = vmatprep.subr.bf16.mxu0 %v2598_v4  ;;  %270 = vmatprep.mubr.bf16.mxu0 %v2878_v14  ;;  %v2622_v22 = vld [vmem:[%s3402_s4 + $0xd4] ss:$8 sps:$4 sm:$0xff]   ;;  %v2624_v23 = vld [vmem:[%s3402_s4 + $0xd0] ss:$8 sps:$4 sm:$0xff]   ;;  %v2625_v24 = vld [vmem:[%s3402_s4 + $0xc4] ss:$8 sps:$4 sm:$0xff]  }
   0x9   :  { %v2627_v25 = vld [vmem:[%s3402_s4 + $0xc0] ss:$8 sps:$4 sm:$0xff]   ;;  %v2628_v26 = vld [vmem:[%s3402_s4 + $0xb4] ss:$8 sps:$4 sm:$0xff]   ;;  %v2630_v27 = vld [vmem:[%s3402_s4 + $0xb0] ss:$8 sps:$4 sm:$0xff]  }
   0xa   :  { %v2631_v28 = vld [vmem:[%s3402_s4 + $0xa4] ss:$8 sps:$4 sm:$0xff]   ;;  %v2633_v29 = vld [vmem:[%s3402_s4 + $0xa0] ss:$8 sps:$4 sm:$0xff]   ;;  %v2634_v30 = vld [vmem:[%s3402_s4 + $0x94] ss:$8 sps:$4 sm:$0xff]  }
   0xb   :  { %243 = vmatpush1.bf16.msra.mxu0 %v2600_v5  ;;  %v2636_v31 = vld [vmem:[%s3402_s4 + $0x90] ss:$8 sps:$4 sm:$0xff]   ;;  %v2637_v32 = vld [vmem:[%s3402_s4 + $0x84] ss:$8 sps:$4 sm:$0xff]   ;;  %v2639_v33 = vld [vmem:[%s3402_s4 + $0x80] ss:$8 sps:$4 sm:$0xff]  }
   0xc   :  { %244 = vmatprep.subr.bf16.mxu0 %v2601_v6  ;;  %v41_v34 = vld [vmem:[%s3403_s0] sm:$0x3f]  ;;  %vm395_vm3 = vcmask 1045504   ;;  %v2963_v46 = vshrl.u32 %v369_v45, 7  ;;  %vm379_vm6 = vcmask 46080   ;;  %vm391_vm7 = vcmask 48128  }
   0xd   :  { %v2941_v35 = vpack.c.bf16 %v41_v34, %v41_v34  ;;  %v2363_v37 = vld [vmem:[%s3404_s6] ss:$0 sm:$0xff]  ;;  %v2370_v58 = vld [vmem:[%s3404_s6 + $0x1] ss:$0 sm:$0xff]  ;;  %v2377_v4 = vld [vmem:[%s3404_s6 + $0x2] ss:$0 sm:$0xff] }
   0xe   :  { %v279_v40 = vld [vmem:[%s3405_s5] sm:$0x1]  ;;  %v2966_v47 = vsub.s32 0, %v2963_v46 }
   0xf   :  { %245 = vmatpush1.bf16.msra.mxu0 %v2603_v7  ;;  %v2972_v52 = vld [vmem:[%s3406_s1] sm:$0x3f] }
  0x10   :  { %246 = vmatprep.subr.bf16.mxu0 %v2604_v8  ;;  %vm377_vm5 = vcmp.gt.f32.partialorder %v2972_v52, 0.0 }
  0x13   :  { %247 = vmatpush1.bf16.msra.mxu0 %v2606_v9 }
  0x14   :  { %248 = vmatprep.subr.bf16.mxu0 %v2607_v10 }
  0x17   :  { %249 = vmatpush1.bf16.msra.mxu0 %v2609_v11  ;;  %v2366_v11 = vld [vmem:[%s3405_s5 + $0x1] sm:$0x1] }
  0x18   :  { %250 = vmatprep.subr.bf16.mxu0 %v2610_v12 }
  0x1b   :  { %251 = vmatpush1.bf16.msra.mxu0 %v2612_v15 }
  0x1c   :  { %252 = vmatprep.subr.bf16.mxu0 %v2613_v16 }
  0x1f   :  { %253 = vmatpush1.bf16.msra.mxu0 %v2615_v17 }
  0x20   :  { %254 = vmatprep.subr.bf16.mxu0 %v2616_v18 }
  0x23   :  { %255 = vmatpush2.bf16.msra.mxu0 %v2618_v19 }
  0x24   :  { %256 = vmatprep.subr.bf16.mxu0 %v2619_v20 }
  0x27   :  { %257 = vmatpush2.bf16.msra.mxu0 %v2621_v21 }
  0x28   :  { %258 = vmatprep.subr.bf16.mxu0 %v2622_v22 }
  0x2b   :  { %259 = vmatpush2.bf16.msra.mxu0 %v2624_v23 }
  0x2c   :  { %260 = vmatprep.subr.bf16.mxu0 %v2625_v24 }
  0x2f   :  { %261 = vmatpush2.bf16.msra.mxu0 %v2627_v25 }
  0x30   :  { %262 = vmatprep.subr.bf16.mxu0 %v2628_v26 }
  0x33   :  { %263 = vmatpush2.bf16.msra.mxu0 %v2630_v27 }
  0x34   :  { %264 = vmatprep.subr.bf16.mxu0 %v2631_v28 }
  0x37   :  { %265 = vmatpush2.bf16.msra.mxu0 %v2633_v29 }
  0x38   :  { %266 = vmatprep.subr.bf16.mxu0 %v2634_v30 }
  0x3b   :  { %267 = vmatpush2.bf16.msra.mxu0 %v2636_v31 }
  0x3c   :  { %268 = vmatprep.subr.bf16.mxu0 %v2637_v32  ;;  %v2373_v32 = vld [vmem:[%s3405_s5 + $0x2] sm:$0x1] }
  0x3f   :  { %269 = vmatpush2.bf16.msra.mxu0 %v2639_v33 }
  0x42   :  { %271 = vmatmul.mubr.bf16.vlgmr.msra.gmra.mxu0 %v2941_v35 }
 0x102   :  { %v272_v38 = vpop.f32.mrf.mxu0 }
 0x103   :  { %2510 = vmatpush3.xpose.msk.msra.mxu1 %vm280_vm1, %v272_v38  ;;  %v364_v39 = vmul.f32 %v2363_v37, %v272_v38 }
 0x104   :  { %v2954_v41 = vpop.f32.mrf.mxu0  ;;  %2514 = vmatprep.subr.mxu1 %v2768_v36 }
 0x105   :  { %v366_v42 = vsel %vm365_vm2, %v364_v39, 0.0  ;;  %v746_v7 = vmul.f32 %v2377_v4, %v2954_v41 }
 0x106   :  { %367 = vadd.xlane.f32.xlu0 %v366_v42  ;;  %v276_v43 = vpop.f32.mrf.mxu0  ;;  %2512 = vmatmul.mubr.msk.f32.vlgmr.msra.gmra.mxu1 %vm280_vm1, %v279_v40 }
 0x107   :  { %2515 = vmatpush3.msk.msra.mxu1 %vm395_vm3, %v272_v38  ;;  %2516 = vmatprep.mubr.msk.f32.mxu1 %vm2769_vm0, %v2768_v36  ;;  %v747_v8 = vsel %vm365_vm2, %v746_v7, 0.0 }
 0x108   :  { %v277_v44 = vpop.f32.mrf.mxu0  ;;  %2519 = vmatprep.subr.mxu1 %v2768_v36 }
 0x18f   :  { %v368_v50 = vpop.xlane.xlu0 %367 }
 0x1c6   :  { %v353_v48 = vpop.f32.mrf.mxu1 }
 0x1c7   :  { %v372_v49 = vrot.slane %v353_v48, %v2966_v47 }
 0x1c8   :  { %v2513_v51 = vpop.f32.mrf.mxu1 }
 0x1c9   :  { %v373_v53 = vadd.f32 %v372_v49, %v368_v50 }
 0x1cb   :  { %vm374_vm4 = vcmp.gt.f32.partialorder %v373_v53, 0.0  ;;  %v375_v54 = vmul.f32 0.2, %v373_v53 }
 0x1cd   :  { %v376_v55 = vsel %vm374_vm4, %v373_v53, %v375_v54 }
 0x1ce   :  { %v378_v56 = vsel %vm377_vm5, %v376_v55, -1e+30  ;;  %v2384_v55 = vld [vmem:[%s3404_s6 + $0x3] ss:$0 sm:$0xff] }
 0x1cf   :  { %v380_v57 = vsel %vm379_vm6, %v378_v56, -inf }
 0x1d0   :  { %381 = vmax.xlane.f32.xlu0 %v380_v57 }
 0x1e6   :  { %554 = vrot.lane.b32.xlu0 %v2370_v58, %s2770_s23 }
 0x259   :  { %v382_v59 = vpop.xlane.xlu0 %381 }
 0x25a   :  { %v383_v60 = vsub.f32 %v378_v56, %v382_v59 }
 0x25c   :  { %v384_v61 = vmul.f32 1.442695, %v383_v60 }
 0x25d   :  { %v555_v0 = vpop.permute.xlu0 %554 }
 0x25e   :  { %2736 = vpow2.f32 %v384_v61  ;;  %v557_v1 = vmul.f32 %v555_v0, %v272_v38 }
 0x26b   :  { %v2737_v62 = vpop.eup %2736 }
 0x26c   :  { %v386_v63 = vsel %vm379_vm6, %v2737_v62, 0.0 }
 0x26d   :  { %387 = vadd.xlane.f32.xlu1 %v386_v63 }
 0x27e   :  { %470 = vrot.lane.b32.xlu1 %v272_v38, %s2770_s23 }
 0x282   :  { %559 = vrot.lane.b32.xlu1 %v557_v1, %s2770_s23 }
 0x2f6   :  { %v388_v2 = vpop.xlane.xlu1 %387 }
 0x2f7   :  { %2738 = vrcp.f32 %v388_v2 }
 0x2fa   :  { %v471_v3 = vpop.permute.xlu1 %470 }
 0x2fe   :  { %v560_v5 = vpop.permute.xlu1 %559 }
 0x2ff   :  { %v562_v6 = vsel %vm365_vm2, %v560_v5, 0.0 }
 0x300   :  { %563 = vadd.xlane.f32.xlu1 %v562_v6 }
 0x304   :  { %v2739_v9 = vpop.eup %2738  ;;  %748 = vadd.xlane.f32.xlu1 %v747_v8 }
 0x305   :  { %v390_v10 = vmul.f32 %v2739_v9, %v2737_v62  ;;  %v2380_v62 = vld [vmem:[%s3405_s5 + $0x3] sm:$0x1] }
 0x307   :  { %2517 = vmatmul.mubr.msk.f32.vlgmr.msra.gmra.mxu1 %vm391_vm7, %v390_v10 }
 0x308   :  { %2520 = vmatpush3.xpose.msk.msra.mxu1 %vm280_vm1, %v471_v3  ;;  %2521 = vmatprep.mubr.msk.f32.mxu1 %vm2769_vm0, %v2768_v36 }
 0x309   :  { %2524 = vmatprep.subr.mxu1 %v2768_v36 }
 0x30b   :  { %2522 = vmatmul.mubr.msk.f32.vlgmr.msra.gmra.mxu1 %vm280_vm1, %v2366_v11 }
 0x30c   :  { %2525 = vmatpush3.msk.msra.mxu1 %vm395_vm3, %v471_v3  ;;  %2526 = vmatprep.mubr.msk.f32.mxu1 %vm2769_vm0, %v2768_v36 }
 0x30d   :  { %2529 = vmatprep.subr.mxu1 %v2768_v36 }
 0x389   :  { %v564_v17 = vpop.xlane.xlu1 %563 }
 0x38d   :  { %v749_v39 = vpop.xlane.xlu1 %748 }
 0x3c7   :  { %v3004_v12 = vpop.f32.mrf.mxu1 }
 0x3c9   :  { %v2518_v13 = vpop.f32.mrf.mxu1 }
 0x3cb   :  { %v543_v15 = vpop.f32.mrf.mxu1 }
 0x3cc   :  { %v568_v16 = vrot.slane %v543_v15, %v2966_v47 }
 0x3cd   :  { %v2523_v18 = vpop.f32.mrf.mxu1 }
 0x3ce   :  { %v569_v19 = vadd.f32 %v568_v16, %v564_v17 }
 0x3d0   :  { %vm570_vm8 = vcmp.gt.f32.partialorder %v569_v19, 0.0  ;;  %v571_v20 = vmul.f32 0.2, %v569_v19 }
 0x3d2   :  { %v572_v21 = vsel %vm570_vm8, %v569_v19, %v571_v20 }
 0x3d3   :  { %v573_v22 = vsel %vm377_vm5, %v572_v21, -1e+30  ;;  %v2640_v21 = vld [vmem:[%s3407_s8 + $0x70] ss:$8 sps:$4 sm:$0xff]  }
 0x3d4   :  { %v574_v23 = vsel %vm379_vm6, %v573_v22, -inf }
 0x3d5   :  { %575 = vmax.xlane.f32.xlu0 %v574_v23  ;;  %v2645_v23 = vld [vmem:[%s3407_s8 + $0x64] ss:$8 sps:$4 sm:$0xff]  }
 0x45e   :  { %v576_v24 = vpop.xlane.xlu0 %575 }
 0x45f   :  { %v577_v25 = vsub.f32 %v573_v22, %v576_v24  ;;  %v2642_v22 = vld [vmem:[%s3407_s8 + $0x74] ss:$8 sps:$4 sm:$0xff]   ;;  %v2643_v24 = vld [vmem:[%s3407_s8 + $0x60] ss:$8 sps:$4 sm:$0xff]  }
 0x460   :  { %1502 = vmatprep.subr.bf16.mxu0 %v2642_v22  ;;  %v2726_v22 = vld [vmem:[%s3408_s2 + $0xb4] ss:$8 sps:$4 sm:$0xff]  }
 0x461   :  { %v578_v26 = vmul.f32 1.442695, %v577_v25  ;;  %1503 = vmatpush1.bf16.msra.mxu0 %v2640_v21  ;;  %v2646_v25 = vld [vmem:[%s3407_s8 + $0x50] ss:$8 sps:$4 sm:$0xff]   ;;  %v2721_v21 = vld [vmem:[%s3408_s2 + $0xc0] ss:$8 sps:$4 sm:$0xff]  }
 0x462   :  { %1504 = vmatprep.subr.bf16.mxu0 %v2645_v23  ;;  %v2724_v23 = vld [vmem:[%s3408_s2 + $0xb0] ss:$8 sps:$4 sm:$0xff]  }
 0x463   :  { %2740 = vpow2.f32 %v578_v26  ;;  %v2651_v26 = vld [vmem:[%s3407_s8 + $0x44] ss:$8 sps:$4 sm:$0xff]  }
 0x465   :  { %1505 = vmatpush1.bf16.msra.mxu0 %v2643_v24  ;;  %v2729_v24 = vld [vmem:[%s3408_s2 + $0xa4] ss:$8 sps:$4 sm:$0xff]  }
 0x470   :  { %v2741_v27 = vpop.eup %2740 }
 0x471   :  { %v580_v28 = vsel %vm379_vm6, %v2741_v27, 0.0 }
 0x472   :  { %581 = vadd.xlane.f32.xlu0 %v580_v28  ;;  %v2654_v28 = vld [vmem:[%s3407_s8 + $0x34] ss:$8 sps:$4 sm:$0xff]  }
 0x4fb   :  { %v582_v29 = vpop.xlane.xlu0 %581 }
 0x4fc   :  { %2742 = vrcp.f32 %v582_v29  ;;  %v2652_v29 = vld [vmem:[%s3407_s8 + $0x30] ss:$8 sps:$4 sm:$0xff]  }
 0x509   :  { %v2743_v30 = vpop.eup %2742 }
 0x50a   :  { %v584_v31 = vmul.f32 %v2743_v30, %v2741_v27  ;;  %v2649_v27 = vld [vmem:[%s3407_s8 + $0x40] ss:$8 sps:$4 sm:$0xff]   ;;  %v2657_v30 = vld [vmem:[%s3407_s8 + $0x24] ss:$8 sps:$4 sm:$0xff]  }
 0x50c   :  { %2527 = vmatmul.mubr.msk.f32.vlgmr.msra.gmra.mxu1 %vm391_vm7, %v584_v31  ;;  %v2655_v31 = vld [vmem:[%s3407_s8 + $0x20] ss:$8 sps:$4 sm:$0xff]  }
 0x50d   :  { %2530 = vmatpush3.xpose.msk.msra.mxu1 %vm280_vm1, %v2954_v41  ;;  %2531 = vmatprep.mubr.msk.f32.mxu1 %vm2769_vm0, %v2768_v36 }
 0x50e   :  { %2534 = vmatprep.subr.mxu1 %v2768_v36 }
 0x510   :  { %2532 = vmatmul.mubr.msk.f32.vlgmr.msra.gmra.mxu1 %vm280_vm1, %v2373_v32  ;;  %v2660_v32 = vld [vmem:[%s3407_s8 + $0x14] ss:$8 sps:$4 sm:$0xff]  }
 0x511   :  { %2535 = vmatpush3.msk.msra.mxu1 %vm395_vm3, %v2954_v41  ;;  %2536 = vmatprep.mubr.msk.f32.mxu1 %vm2769_vm0, %v2768_v36 }
 0x512   :  { %2539 = vmatprep.subr.mxu1 %v2768_v36 }
 0x5cc   :  { %v656_v33 = vpop.f32.mrf.mxu1 }
 0x5ce   :  { %v2528_v34 = vpop.f32.mrf.mxu1 }
 0x5cf   :  { %v2663_v34 = vld [vmem:[%s3407_s8 + $0x4] ss:$8 sps:$4 sm:$0xff]  }
 0x5d0   :  { %v734_v37 = vpop.f32.mrf.mxu1 }
 0x5d1   :  { %v753_v38 = vrot.slane %v734_v37, %v2966_v47  ;;  %v2661_v37 = vld [vmem:[%s3407_s8] ss:$8 sps:$4 sm:$0xff]  }
 0x5d2   :  { %v2533_v40 = vpop.f32.mrf.mxu1 }
 0x5d3   :  { %v754_v42 = vadd.f32 %v753_v38, %v749_v39  ;;  %v2666_v38 = vld [vmem:[%s3407_s8 + $0xf4] ss:$8 sps:$4 sm:$0xff]   ;;  %v2664_v39 = vld [vmem:[%s3407_s8 + $0xf0] ss:$8 sps:$4 sm:$0xff]   ;;  %v2669_v40 = vld [vmem:[%s3407_s8 + $0xe4] ss:$8 sps:$4 sm:$0xff]  }
 0x5d5   :  { %vm755_vm9 = vcmp.gt.f32.partialorder %v754_v42, 0.0  ;;  %v756_v43 = vmul.f32 0.2, %v754_v42 }
 0x5d7   :  { %v757_v44 = vsel %vm755_vm9, %v754_v42, %v756_v43  ;;  %v2667_v42 = vld [vmem:[%s3407_s8 + $0xe0] ss:$8 sps:$4 sm:$0xff]   ;;  %v2672_v43 = vld [vmem:[%s3407_s8 + $0xd4] ss:$8 sps:$4 sm:$0xff]  }
 0x5d8   :  { %v758_v45 = vsel %vm377_vm5, %v757_v44, -1e+30  ;;  %v2670_v44 = vld [vmem:[%s3407_s8 + $0xd0] ss:$8 sps:$4 sm:$0xff]  }
 0x5d9   :  { %v759_v48 = vsel %vm379_vm6, %v758_v45, -inf }
 0x5da   :  { %760 = vmax.xlane.f32.xlu0 %v759_v48  ;;  %v2673_v48 = vld [vmem:[%s3407_s8 + $0xc0] ss:$8 sps:$4 sm:$0xff]  }
 0x5f0   :  { %847 = vrot.lane.b32.xlu0 %v2954_v41, %s2770_s23 }
 0x663   :  { %v761_v49 = vpop.xlane.xlu0 %760 }
 0x664   :  { %v762_v50 = vsub.f32 %v758_v45, %v761_v49  ;;  %v2675_v45 = vld [vmem:[%s3407_s8 + $0xc4] ss:$8 sps:$4 sm:$0xff]   ;;  %v2678_v49 = vld [vmem:[%s3407_s8 + $0xb4] ss:$8 sps:$4 sm:$0xff]  }
 0x666   :  { %v763_v51 = vmul.f32 1.442695, %v762_v50  ;;  %v2676_v50 = vld [vmem:[%s3407_s8 + $0xb0] ss:$8 sps:$4 sm:$0xff]  }
 0x667   :  { %v848_v61 = vpop.permute.xlu0 %847 }
 0x668   :  { %2744 = vpow2.f32 %v763_v51  ;;  %v2681_v51 = vld [vmem:[%s3407_s8 + $0xa4] ss:$8 sps:$4 sm:$0xff]  }
 0x675   :  { %v2745_v53 = vpop.eup %2744 }
 0x676   :  { %v765_v54 = vsel %vm379_vm6, %v2745_v53, 0.0 }
 0x677   :  { %766 = vadd.xlane.f32.xlu1 %v765_v54  ;;  %v2684_v54 = vld [vmem:[%s3407_s8 + $0x94] ss:$8 sps:$4 sm:$0xff]  }
 0x688   :  { %931 = vrot.lane.b32.xlu1 %v2384_v55, %s2770_s23  ;;  %v2682_v55 = vld [vmem:[%s3407_s8 + $0x90] ss:$8 sps:$4 sm:$0xff]  }
 0x700   :  { %v767_v56 = vpop.xlane.xlu1 %766 }
 0x701   :  { %2746 = vrcp.f32 %v767_v56  ;;  %v2687_v56 = vld [vmem:[%s3407_s8 + $0x84] ss:$8 sps:$4 sm:$0xff]  }
 0x704   :  { %v932_v57 = vpop.permute.xlu1 %931 }
 0x705   :  { %v934_v58 = vmul.f32 %v932_v57, %v2954_v41  ;;  %v2685_v57 = vld [vmem:[%s3407_s8 + $0x80] ss:$8 sps:$4 sm:$0xff]  }
 0x707   :  { %936 = vrot.lane.b32.xlu1 %v934_v58, %s2770_s23  ;;  %v2688_v58 = vld [vmem:[%s3408_s2 + $0x70] ss:$8 sps:$4 sm:$0xff]  }
 0x70e   :  { %v2747_v59 = vpop.eup %2746 }
 0x70f   :  { %v769_v60 = vmul.f32 %v2747_v59, %v2745_v53  ;;  %v2679_v53 = vld [vmem:[%s3407_s8 + $0xa0] ss:$8 sps:$4 sm:$0xff]   ;;  %v2690_v59 = vld [vmem:[%s3408_s2 + $0x74] ss:$8 sps:$4 sm:$0xff]  }
 0x711   :  { %2537 = vmatmul.mubr.msk.f32.vlgmr.msra.gmra.mxu1 %vm391_vm7, %v769_v60  ;;  %v2693_v60 = vld [vmem:[%s3408_s2 + $0x64] ss:$8 sps:$4 sm:$0xff]  }
 0x712   :  { %2540 = vmatpush3.xpose.msk.msra.mxu1 %vm280_vm1, %v848_v61  ;;  %2541 = vmatprep.mubr.msk.f32.mxu1 %vm2769_vm0, %v2768_v36 }
 0x713   :  { %2544 = vmatprep.subr.mxu1 %v2768_v36 }
 0x715   :  { %2542 = vmatmul.mubr.msk.f32.vlgmr.msra.gmra.mxu1 %vm280_vm1, %v2380_v62  ;;  %v2691_v62 = vld [vmem:[%s3408_s2 + $0x60] ss:$8 sps:$4 sm:$0xff]  }
 0x716   :  { %2545 = vmatpush3.msk.msra.mxu1 %vm395_vm3, %v848_v61  ;;  %2546 = vmatprep.mubr.msk.f32.mxu1 %vm2769_vm0, %v2768_v36 }
 0x717   :  { %1267 = vmatprep.subr.bf16.mxu1 %v2690_v59 }
 0x779   :  { %v937_v41 = vpop.permute.xlu1 %936 }
 0x77a   :  { %v939_v63 = vsel %vm365_vm2, %v937_v41, 0.0 }
 0x77b   :  { %940 = vadd.xlane.f32.xlu1 %v939_v63  ;;  %v2696_v63 = vld [vmem:[%s3408_s2 + $0x54] ss:$8 sps:$4 sm:$0xff]  }
 0x78c   :  { %1038 = vrot.lane.b32.xlu1 %v656_v33, %s2770_s23  ;;  %v2658_v33 = vld [vmem:[%s3407_s8 + $0x10] ss:$8 sps:$4 sm:$0xff]  }
 0x7d1   :  { %v3053_v0 = vpop.f32.mrf.mxu1 }
 0x7d3   :  { %v2538_v1 = vpop.f32.mrf.mxu1 }
 0x7d4   :  { %v2694_v1 = vld [vmem:[%s3408_s2 + $0x50] ss:$8 sps:$4 sm:$0xff]  }
 0x7d5   :  { %v920_v2 = vpop.f32.mrf.mxu1 }
 0x7d6   :  { %v945_v4 = vrot.slane %v920_v2, %v2966_v47  ;;  %v2699_v2 = vld [vmem:[%s3408_s2 + $0x44] ss:$8 sps:$4 sm:$0xff]  }
 0x7d7   :  { %v2543_v3 = vpop.f32.mrf.mxu1 }
 0x7d8   :  { %v2697_v3 = vld [vmem:[%s3408_s2 + $0x40] ss:$8 sps:$4 sm:$0xff]  }
 0x804   :  { %v941_v5 = vpop.xlane.xlu1 %940 }
 0x805   :  { %v946_v6 = vadd.f32 %v945_v4, %v941_v5  ;;  %v2702_v4 = vld [vmem:[%s3408_s2 + $0x34] ss:$8 sps:$4 sm:$0xff]   ;;  %v2700_v5 = vld [vmem:[%s3408_s2 + $0x30] ss:$8 sps:$4 sm:$0xff]  }
 0x807   :  { %v948_v7 = vmul.f32 0.2, %v946_v6  ;;  %vm947_vm10 = vcmp.gt.f32.partialorder %v946_v6, 0.0 }
 0x809   :  { %v949_v8 = vsel %vm947_vm10, %v946_v6, %v948_v7  ;;  %v2705_v6 = vld [vmem:[%s3408_s2 + $0x24] ss:$8 sps:$4 sm:$0xff]   ;;  %v2703_v7 = vld [vmem:[%s3408_s2 + $0x20] ss:$8 sps:$4 sm:$0xff]  }
 0x80a   :  { %v950_v9 = vsel %vm377_vm5, %v949_v8, -1e+30  ;;  %v2708_v8 = vld [vmem:[%s3408_s2 + $0x14] ss:$8 sps:$4 sm:$0xff]  }
 0x80b   :  { %v951_v10 = vsel %vm379_vm6, %v950_v9, -inf }
 0x80c   :  { %952 = vmax.xlane.f32.xlu0 %v951_v10  ;;  %v2711_v10 = vld [vmem:[%s3408_s2 + $0x4] ss:$8 sps:$4 sm:$0xff]  }
 0x895   :  { %v953_v11 = vpop.xlane.xlu0 %952 }
 0x896   :  { %v954_v13 = vsub.f32 %v950_v9, %v953_v11  ;;  %v2706_v9 = vld [vmem:[%s3408_s2 + $0x10] ss:$8 sps:$4 sm:$0xff]   ;;  %v2709_v11 = vld [vmem:[%s3408_s2] ss:$8 sps:$4 sm:$0xff]  }
 0x898   :  { %v955_v15 = vmul.f32 1.442695, %v954_v13  ;;  %v2714_v13 = vld [vmem:[%s3408_s2 + $0xf4] ss:$8 sps:$4 sm:$0xff]  }
 0x89a   :  { %2748 = vpow2.f32 %v955_v15  ;;  %v2712_v15 = vld [vmem:[%s3408_s2 + $0xf0] ss:$8 sps:$4 sm:$0xff]  }
 0x8a7   :  { %v2749_v16 = vpop.eup %2748 }
 0x8a8   :  { %v957_v17 = vsel %vm379_vm6, %v2749_v16, 0.0 }
 0x8a9   :  { %958 = vadd.xlane.f32.xlu0 %v957_v17  ;;  %v2715_v17 = vld [vmem:[%s3408_s2 + $0xe0] ss:$8 sps:$4 sm:$0xff]  }
 0x932   :  { %v959_v18 = vpop.xlane.xlu0 %958 }
 0x933   :  { %2750 = vrcp.f32 %v959_v18  ;;  %v2720_v18 = vld [vmem:[%s3408_s2 + $0xd4] ss:$8 sps:$4 sm:$0xff]  }
 0x940   :  { %v2751_v19 = vpop.eup %2750 }
 0x941   :  { %v961_v20 = vmul.f32 %v2751_v19, %v2749_v16  ;;  %v2717_v16 = vld [vmem:[%s3408_s2 + $0xe4] ss:$8 sps:$4 sm:$0xff]   ;;  %v2718_v19 = vld [vmem:[%s3408_s2 + $0xd0] ss:$8 sps:$4 sm:$0xff]  }
 0x943   :  { %2547 = vmatmul.mubr.msk.f32.vlgmr.msra.gmra.mxu1 %vm391_vm7, %v961_v20  ;;  %v2723_v20 = vld [vmem:[%s3408_s2 + $0xc4] ss:$8 sps:$4 sm:$0xff]  }
 0x944   :  { %1299 = vmatprep.mubr.bf16.mxu1 %v2878_v14  ;;  %v2648_v14 = vld [vmem:[%s3407_s8 + $0x54] ss:$8 sps:$4 sm:$0xff]   ;;  %1268 = vmatpush1.bf16.msra.mxu1 %v2688_v58 }
 0x945   :  { %1506 = vmatprep.subr.bf16.mxu0 %v2648_v14  ;;  %1269 = vmatprep.subr.bf16.mxu1 %v2693_v60  ;;  %v2727_v14 = vld [vmem:[%s3408_s2 + $0xa0] ss:$8 sps:$4 sm:$0xff]  }
 0x946   :  { %1507 = vmatpush1.bf16.msra.mxu0 %v2646_v25  ;;  %v2732_v25 = vld [vmem:[%s3408_s2 + $0x94] ss:$8 sps:$4 sm:$0xff]  }
 0x947   :  { %1508 = vmatprep.subr.bf16.mxu0 %v2651_v26  ;;  %v2730_v26 = vld [vmem:[%s3408_s2 + $0x90] ss:$8 sps:$4 sm:$0xff]  }
 0x948   :  { %1270 = vmatpush1.bf16.msra.mxu1 %v2691_v62 }
 0x949   :  { %1271 = vmatprep.subr.bf16.mxu1 %v2696_v63 }
 0x94a   :  { %1509 = vmatpush1.bf16.msra.mxu0 %v2649_v27  ;;  %v2735_v27 = vld [vmem:[%s3408_s2 + $0x84] ss:$8 sps:$4 sm:$0xff]  }
 0x94b   :  { %1510 = vmatprep.subr.bf16.mxu0 %v2654_v28  ;;  %v2733_v28 = vld [vmem:[%s3408_s2 + $0x80] ss:$8 sps:$4 sm:$0xff]  }
 0x94c   :  { %1272 = vmatpush1.bf16.msra.mxu1 %v2694_v1 }
 0x94d   :  { %1273 = vmatprep.subr.bf16.mxu1 %v2699_v2 }
 0x94e   :  { %1511 = vmatpush1.bf16.msra.mxu0 %v2652_v29  ;;  %v1047_v29 = vld [vmem:[%s3409_s7] sm:$0x3] }
 0x94f   :  { %1512 = vmatprep.subr.bf16.mxu0 %v2657_v30  ;;  %v1039_v30 = vpop.permute.xlu1 %1038 }
 0x950   :  { %1274 = vmatpush1.bf16.msra.mxu1 %v2697_v3 }
 0x951   :  { %1275 = vmatprep.subr.bf16.mxu1 %v2702_v4 }
 0x952   :  { %1513 = vmatpush1.bf16.msra.mxu0 %v2655_v31  ;;  %v3263_v31 = vsub.s32 1, %v2963_v46  ;;  %v2453_v46 = vld [vmem:[%s3410_s10] ss:$0 sm:$0xff] }
 0x953   :  { %1514 = vmatprep.subr.bf16.mxu0 %v2660_v32  ;;  %v1052_v32 = vrot.slane %v1047_v29, %v2966_v47 }
 0x954   :  { %1276 = vmatpush1.bf16.msra.mxu1 %v2700_v5 }
 0x955   :  { %1277 = vmatprep.subr.bf16.mxu1 %v2705_v6 }
 0x956   :  { %1515 = vmatpush1.bf16.msra.mxu0 %v2658_v33  ;;  %v1045_v33 = vsel %vm280_vm1, %v3004_v12, %v1039_v30 }
 0x957   :  { %1516 = vmatprep.subr.bf16.mxu0 %v2663_v34  ;;  %v1056_v34 = vrot.slane %v1047_v29, %v3263_v31 }
 0x958   :  { %1278 = vmatpush1.bf16.msra.mxu1 %v2703_v7 }
 0x959   :  { %1279 = vmatprep.subr.bf16.mxu1 %v2708_v8 }
 0x95a   :  { %1517 = vmatpush1.bf16.msra.mxu0 %v2661_v37  ;;  %v1059_v37 = vadd.f32 %v1052_v32, %v1045_v33 }
 0x95b   :  { %1518 = vmatprep.subr.bf16.mxu0 %v2666_v38 }
 0x95c   :  { %1280 = vmatpush1.bf16.msra.mxu1 %v2706_v9 }
 0x95d   :  { %1281 = vmatprep.subr.bf16.mxu1 %v2711_v10  ;;  %v2460_v10 = vld [vmem:[%s3410_s10 + $0x1] ss:$0 sm:$0xff] }
 0x95e   :  { %1519 = vmatpush2.bf16.msra.mxu0 %v2664_v39 }
 0x95f   :  { %1520 = vmatprep.subr.bf16.mxu0 %v2669_v40  ;;  %v1061_v40 = vmax.f32 %v1059_v37, 0.0 }
 0x960   :  { %1282 = vmatpush1.bf16.msra.mxu1 %v2709_v11 }
 0x961   :  { %1283 = vmatprep.subr.bf16.mxu1 %v2714_v13 }
 0x962   :  { %1521 = vmatpush2.bf16.msra.mxu0 %v2667_v42 }
 0x963   :  { %1522 = vmatprep.subr.bf16.mxu0 %v2672_v43 }
 0x964   :  { %1284 = vmatpush2.bf16.msra.mxu1 %v2712_v15 }
 0x965   :  { %1285 = vmatprep.subr.bf16.mxu1 %v2717_v16 }
 0x966   :  { %1523 = vmatpush2.bf16.msra.mxu0 %v2670_v44  ;;  %v1308_v44 = vpack.c.bf16 %v1061_v40, %v1061_v40 }
 0x967   :  { %1524 = vmatprep.subr.bf16.mxu0 %v2675_v45 }
 0x968   :  { %1286 = vmatpush2.bf16.msra.mxu1 %v2715_v17 }
 0x969   :  { %1287 = vmatprep.subr.bf16.mxu1 %v2720_v18 }
 0x96a   :  { %1525 = vmatpush2.bf16.msra.mxu0 %v2673_v48  ;;  %v1543_v48 = vld [vmem:[%s3411_s9] sm:$0x1] }
 0x96b   :  { %1526 = vmatprep.subr.bf16.mxu0 %v2678_v49 }
 0x96c   :  { %1288 = vmatpush2.bf16.msra.mxu1 %v2718_v19  ;;  %v2456_v19 = vld [vmem:[%s3411_s9 + $0x1] sm:$0x1] }
 0x96d   :  { %1289 = vmatprep.subr.bf16.mxu1 %v2723_v20  ;;  %v2467_v20 = vld [vmem:[%s3410_s10 + $0x2] ss:$0 sm:$0xff] }
 0x96e   :  { %1527 = vmatpush2.bf16.msra.mxu0 %v2676_v50 }
 0x96f   :  { %1528 = vmatprep.subr.bf16.mxu0 %v2681_v51 }
 0x970   :  { %1290 = vmatpush2.bf16.msra.mxu1 %v2721_v21 }
 0x971   :  { %1291 = vmatprep.subr.bf16.mxu1 %v2726_v22 }
 0x972   :  { %1529 = vmatpush2.bf16.msra.mxu0 %v2679_v53 }
 0x973   :  { %1530 = vmatprep.subr.bf16.mxu0 %v2684_v54  ;;  %v3292_v54 = vld [vmem:[%s3412_s3] sm:$0x3] }
 0x974   :  { %1292 = vmatpush2.bf16.msra.mxu1 %v2724_v23  ;;  %v1100_v52 = vrot.slane %v3292_v54, %v2966_v47 }
 0x975   :  { %1293 = vmatprep.subr.bf16.mxu1 %v2729_v24 }
 0x976   :  { %1531 = vmatpush2.bf16.msra.mxu0 %v2682_v55  ;;  %v1104_v55 = vrot.slane %v3292_v54, %v3263_v31 }
 0x977   :  { %1532 = vmatprep.subr.bf16.mxu0 %v2687_v56 }
 0x978   :  { %1294 = vmatpush2.bf16.msra.mxu1 %v2727_v14 }
 0x979   :  { %1295 = vmatprep.subr.bf16.mxu1 %v2732_v25 }
 0x97a   :  { %1533 = vmatpush2.bf16.msra.mxu0 %v2685_v57 }
 0x97c   :  { %1296 = vmatpush2.bf16.msra.mxu1 %v2730_v26 }
 0x97d   :  { %1297 = vmatprep.subr.bf16.mxu1 %v2735_v27 }
 0x980   :  { %1298 = vmatpush2.bf16.msra.mxu1 %v2733_v28 }
 0x981   :  { %2549 = vmatprep.subr.mxu1 %v2768_v36 }
 0x983   :  { %1300 = vmatmul.mubr.bf16.vlgmr.msra.gmra.mxu1 %v2941_v35 }
 0x984   :  { %2551 = vmatprep.mubr.msk.f32.mxu1 %vm2769_vm0, %v2768_v36 }
 0xa03   :  { %v1033_v61 = vpop.f32.mrf.mxu1 }
 0xa04   :  { %1042 = vrot.lane.b32.xlu0 %v1033_v61, %s2770_s23 }
 0xa05   :  { %v2548_v41 = vpop.f32.mrf.mxu1 }
 0xa43   :  { %v3287_v53 = vpop.f32.mrf.mxu1 }
 0xa45   :  { %v1303_v56 = vpop.f32.mrf.mxu1 }
 0xa46   :  { %v3297_v57 = vadd.f32 %v1303_v56, %v1104_v55 }
 0xa47   :  { %v1305_v58 = vpop.f32.mrf.mxu1 }
 0xa49   :  { %v1306_v59 = vpop.f32.mrf.mxu1 }
 0xa76   :  { %v1043_v35 = vpop.permute.xlu0 %1042 }
 0xa77   :  { %v1046_v38 = vsel %vm280_vm1, %v3053_v0, %v1043_v35 }
 0xa78   :  { %v1060_v39 = vadd.f32 %v1056_v34, %v1046_v38 }
 0xa7a   :  { %v1062_v42 = vmax.f32 %v1060_v39, 0.0 }
 0xa7c   :  { %v1309_v43 = vpack.c.bf16 %v1062_v42, %v1062_v42 }
 0xa7e   :  { %1534 = vmatprep.mubr.bf16.mxu0 %v1309_v43 }
 0xa7f   :  { %1535 = vmatmul.mubr.bf16.vlgmr.msra.gmra.mxu0 %v1308_v44 }
 0xb3f   :  { %v1536_v45 = vpop.f32.mrf.mxu0 }
 0xb40   :  { %2550 = vmatpush3.xpose.msk.msra.mxu1 %vm280_vm1, %v1536_v45  ;;  %v1627_v12 = vmul.f32 %v2453_v46, %v1536_v45 }
 0xb41   :  { %v3278_v0 = vpop.f32.mrf.mxu0  ;;  %2554 = vmatprep.subr.mxu1 %v2768_v36 }
 0xb42   :  { %v1628_v49 = vsel %vm365_vm2, %v1627_v12, 0.0  ;;  %v2004_v23 = vmul.f32 %v2467_v20, %v3278_v0 }
 0xb43   :  { %1629 = vadd.xlane.f32.xlu1 %v1628_v49  ;;  %v1540_v50 = vpop.f32.mrf.mxu0  ;;  %2552 = vmatmul.mubr.msk.f32.vlgmr.msra.gmra.mxu1 %vm280_vm1, %v1543_v48 }
 0xb44   :  { %2555 = vmatpush3.msk.msra.mxu1 %vm395_vm3, %v1536_v45  ;;  %2556 = vmatprep.mubr.msk.f32.mxu1 %vm2769_vm0, %v2768_v36  ;;  %v2005_v24 = vsel %vm365_vm2, %v2004_v23, 0.0 }
 0xb45   :  { %v1541_v51 = vpop.f32.mrf.mxu0  ;;  %2559 = vmatprep.subr.mxu1 %v2768_v36 }
 0xb54   :  { %1728 = vrot.lane.b32.xlu1 %v1536_v45, %s2770_s23 }
 0xbcc   :  { %v1630_v62 = vpop.xlane.xlu1 %1629 }
 0xbd0   :  { %v1729_v18 = vpop.permute.xlu1 %1728 }
 0xc03   :  { %v1616_v60 = vpop.f32.mrf.mxu1 }
 0xc04   :  { %v1634_v61 = vrot.slane %v1616_v60, %v2966_v47 }
 0xc05   :  { %v2553_v41 = vpop.f32.mrf.mxu1 }
 0xc06   :  { %v1635_v63 = vadd.f32 %v1634_v61, %v1630_v62 }
 0xc08   :  { %vm1636_vm11 = vcmp.gt.f32.partialorder %v1635_v63, 0.0  ;;  %v1637_v1 = vmul.f32 0.2, %v1635_v63 }
 0xc0a   :  { %v1638_v2 = vsel %vm1636_vm11, %v1635_v63, %v1637_v1 }
 0xc0b   :  { %v1639_v3 = vsel %vm377_vm5, %v1638_v2, -1e+30 }
 0xc0c   :  { %v1640_v4 = vsel %vm379_vm6, %v1639_v3, -inf }
 0xc0d   :  { %1641 = vmax.xlane.f32.xlu0 %v1640_v4 }
 0xc96   :  { %v1642_v5 = vpop.xlane.xlu0 %1641 }
 0xc97   :  { %v1643_v6 = vsub.f32 %v1639_v3, %v1642_v5  ;;  %v2474_v3 = vld [vmem:[%s3410_s10 + $0x3] ss:$0 sm:$0xff] }
 0xc99   :  { %v1644_v7 = vmul.f32 1.442695, %v1643_v6 }
 0xc9b   :  { %2752 = vpow2.f32 %v1644_v7 }
 0xca8   :  { %v2753_v8 = vpop.eup %2752 }
 0xca9   :  { %v1646_v9 = vsel %vm379_vm6, %v2753_v8, 0.0 }
 0xcaa   :  { %1647 = vadd.xlane.f32.xlu0 %v1646_v9 }
 0xcc0   :  { %1812 = vrot.lane.b32.xlu0 %v2460_v10, %s2770_s23  ;;  %v2470_v10 = vld [vmem:[%s3411_s9 + $0x3] sm:$0x1] }
 0xd33   :  { %v1648_v11 = vpop.xlane.xlu0 %1647 }
 0xd34   :  { %2754 = vrcp.f32 %v1648_v11 }
 0xd37   :  { %v1813_v13 = vpop.permute.xlu0 %1812 }
 0xd38   :  { %v1815_v15 = vmul.f32 %v1813_v13, %v1536_v45  ;;  %v2463_v45 = vld [vmem:[%s3411_s9 + $0x2] sm:$0x1] }
 0xd3a   :  { %1817 = vrot.lane.b32.xlu1 %v1815_v15, %s2770_s23 }
 0xd41   :  { %v2755_v16 = vpop.eup %2754 }
 0xd42   :  { %v1650_v17 = vmul.f32 %v2755_v16, %v2753_v8 }
 0xd44   :  { %2557 = vmatmul.mubr.msk.f32.vlgmr.msra.gmra.mxu1 %vm391_vm7, %v1650_v17 }
 0xd45   :  { %2560 = vmatpush3.xpose.msk.msra.mxu1 %vm280_vm1, %v1729_v18  ;;  %2561 = vmatprep.mubr.msk.f32.mxu1 %vm2769_vm0, %v2768_v36 }
 0xd46   :  { %2564 = vmatprep.subr.mxu1 %v2768_v36 }
 0xd48   :  { %2562 = vmatmul.mubr.msk.f32.vlgmr.msra.gmra.mxu1 %vm280_vm1, %v2456_v19 }
 0xd49   :  { %2565 = vmatpush3.msk.msra.mxu1 %vm395_vm3, %v1729_v18  ;;  %2566 = vmatprep.mubr.msk.f32.mxu1 %vm2769_vm0, %v2768_v36 }
 0xd4a   :  { %2569 = vmatprep.subr.mxu1 %v2768_v36 }
 0xdac   :  { %v1818_v21 = vpop.permute.xlu1 %1817 }
 0xdad   :  { %v1820_v22 = vsel %vm365_vm2, %v1818_v21, 0.0 }
 0xdae   :  { %1821 = vadd.xlane.f32.xlu1 %v1820_v22 }
 0xdb2   :  { %2006 = vadd.xlane.f32.xlu1 %v2005_v24 }
 0xe04   :  { %v3328_v14 = vpop.f32.mrf.mxu1 }
 0xe06   :  { %v2558_v25 = vpop.f32.mrf.mxu1 }
 0xe08   :  { %v1801_v26 = vpop.f32.mrf.mxu1 }
 0xe09   :  { %v1826_v28 = vrot.slane %v1801_v26, %v2966_v47 }
 0xe0a   :  { %v2563_v27 = vpop.f32.mrf.mxu1 }
 0xe37   :  { %v1822_v29 = vpop.xlane.xlu1 %1821 }
 0xe38   :  { %v1827_v30 = vadd.f32 %v1826_v28, %v1822_v29  ;;  %v2305_v29 = vld [vmem:[%s3413_s11] sm:$0x3] }
 0xe3a   :  { %v1829_v32 = vmul.f32 0.2, %v1827_v30  ;;  %vm1828_vm12 = vcmp.gt.f32.partialorder %v1827_v30, 0.0 }
 0xe3b   :  { %v2007_v51 = vpop.xlane.xlu1 %2006 }
 0xe3c   :  { %v1830_v33 = vsel %vm1828_vm12, %v1827_v30, %v1829_v32  ;;  %v2310_v32 = vrot.slane %v2305_v29, %v2966_v47 }
 0xe3d   :  { %v1831_v34 = vsel %vm377_vm5, %v1830_v33, -1e+30 }
 0xe3e   :  { %v1832_v37 = vsel %vm379_vm6, %v1831_v34, -inf }
 0xe3f   :  { %1833 = vmax.xlane.f32.xlu0 %v1832_v37  ;;  %v1302_v37 = vadd.f32 %v3287_v53, %v1100_v52 }
 0xec8   :  { %v1834_v35 = vpop.xlane.xlu0 %1833 }
 0xec9   :  { %v1835_v38 = vsub.f32 %v1831_v34, %v1834_v35 }
 0xecb   :  { %v1836_v39 = vmul.f32 1.442695, %v1835_v38 }
 0xecd   :  { %2756 = vpow2.f32 %v1836_v39 }
 0xeda   :  { %v2757_v40 = vpop.eup %2756 }
 0xedb   :  { %v1838_v42 = vsel %vm379_vm6, %v2757_v40, 0.0 }
 0xedc   :  { %1839 = vadd.xlane.f32.xlu0 %v1838_v42 }
 0xf65   :  { %v1840_v43 = vpop.xlane.xlu0 %1839 }
 0xf66   :  { %2758 = vrcp.f32 %v1840_v43  ;;  %v2314_v43 = vrot.slane %v2305_v29, %v3263_v31 }
 0xf73   :  { %v2759_v44 = vpop.eup %2758 }
 0xf74   :  { %v1842_v46 = vmul.f32 %v2759_v44, %v2757_v40 }
 0xf76   :  { %2567 = vmatmul.mubr.msk.f32.vlgmr.msra.gmra.mxu1 %vm391_vm7, %v1842_v46 }
 0xf77   :  { %2570 = vmatpush3.xpose.msk.msra.mxu1 %vm280_vm1, %v3278_v0  ;;  %2571 = vmatprep.mubr.msk.f32.mxu1 %vm2769_vm0, %v2768_v36 }
 0xf78   :  { %2574 = vmatprep.subr.mxu1 %v2768_v36 }
 0xf7a   :  { %2572 = vmatmul.mubr.msk.f32.vlgmr.msra.gmra.mxu1 %vm280_vm1, %v2463_v45 }
 0xf7b   :  { %2575 = vmatpush3.msk.msra.mxu1 %vm395_vm3, %v3278_v0  ;;  %2576 = vmatprep.mubr.msk.f32.mxu1 %vm2769_vm0, %v2768_v36 }
 0xf7c   :  { %2579 = vmatprep.subr.mxu1 %v2768_v36 }
0x1036   :  { %v1914_v12 = vpop.f32.mrf.mxu1 }
0x1038   :  { %v2568_v48 = vpop.f32.mrf.mxu1 }
0x103a   :  { %v1992_v49 = vpop.f32.mrf.mxu1 }
0x103b   :  { %v2011_v50 = vrot.slane %v1992_v49, %v2966_v47 }
0x103c   :  { %v2573_v55 = vpop.f32.mrf.mxu1 }
0x103d   :  { %v2012_v56 = vadd.f32 %v2011_v50, %v2007_v51 }
0x103f   :  { %vm2013_vm13 = vcmp.gt.f32.partialorder %v2012_v56, 0.0  ;;  %v2014_v58 = vmul.f32 0.2, %v2012_v56 }
0x1041   :  { %v2015_v59 = vsel %vm2013_vm13, %v2012_v56, %v2014_v58 }
0x1042   :  { %v2016_v60 = vsel %vm377_vm5, %v2015_v59, -1e+30 }
0x1043   :  { %v2017_v61 = vsel %vm379_vm6, %v2016_v60, -inf }
0x1044   :  { %2018 = vmax.xlane.f32.xlu0 %v2017_v61 }
0x105a   :  { %2105 = vrot.lane.b32.xlu0 %v3278_v0, %s2770_s23 }
0x10cd   :  { %v2019_v62 = vpop.xlane.xlu0 %2018 }
0x10ce   :  { %v2020_v41 = vsub.f32 %v2016_v60, %v2019_v62 }
0x10d0   :  { %v2021_v63 = vmul.f32 1.442695, %v2020_v41 }
0x10d1   :  { %v2106_v9 = vpop.permute.xlu0 %2105 }
0x10d2   :  { %2760 = vpow2.f32 %v2021_v63 }
0x10df   :  { %v2761_v1 = vpop.eup %2760 }
0x10e0   :  { %v2023_v2 = vsel %vm379_vm6, %v2761_v1, 0.0 }
0x10e1   :  { %2024 = vadd.xlane.f32.xlu1 %v2023_v2 }
0x10f2   :  { %2189 = vrot.lane.b32.xlu1 %v2474_v3, %s2770_s23 }
0x116a   :  { %v2025_v4 = vpop.xlane.xlu1 %2024 }
0x116b   :  { %2762 = vrcp.f32 %v2025_v4 }
0x116e   :  { %v2190_v5 = vpop.permute.xlu1 %2189 }
0x116f   :  { %v2192_v6 = vmul.f32 %v2190_v5, %v3278_v0 }
0x1171   :  { %2194 = vrot.lane.b32.xlu1 %v2192_v6, %s2770_s23 }
0x1178   :  { %v2763_v7 = vpop.eup %2762 }
0x1179   :  { %v2027_v8 = vmul.f32 %v2763_v7, %v2761_v1 }
0x117b   :  { %2577 = vmatmul.mubr.msk.f32.vlgmr.msra.gmra.mxu1 %vm391_vm7, %v2027_v8 }
0x117c   :  { %2580 = vmatpush3.xpose.msk.msra.mxu1 %vm280_vm1, %v2106_v9  ;;  %2581 = vmatprep.mubr.msk.f32.mxu1 %vm2769_vm0, %v2768_v36 }
0x117d   :  { %2584 = vmatprep.subr.mxu1 %v2768_v36 }
0x117f   :  { %2582 = vmatmul.mubr.msk.f32.vlgmr.msra.gmra.mxu1 %vm280_vm1, %v2470_v10 }
0x1180   :  { %2585 = vmatpush3.msk.msra.mxu1 %vm395_vm3, %v2106_v9  ;;  %2586 = vmatprep.mubr.msk.f32.mxu1 %vm2769_vm0, %v2768_v36 }
0x11e3   :  { %v2195_v0 = vpop.permute.xlu1 %2194 }
0x11e4   :  { %v2197_v11 = vsel %vm365_vm2, %v2195_v0, 0.0 }
0x11e5   :  { %2198 = vadd.xlane.f32.xlu1 %v2197_v11 }
0x123b   :  { %v2099_v13 = vpop.f32.mrf.mxu1 }
0x123d   :  { %v2578_v15 = vpop.f32.mrf.mxu1 }
0x123f   :  { %v2178_v16 = vpop.f32.mrf.mxu1 }
0x1240   :  { %v2203_v18 = vrot.slane %v2178_v16, %v2966_v47 }
0x1241   :  { %v2583_v17 = vpop.f32.mrf.mxu1 }
0x126e   :  { %v2199_v19 = vpop.xlane.xlu1 %2198 }
0x126f   :  { %v2204_v20 = vadd.f32 %v2203_v18, %v2199_v19 }
0x1271   :  { %v2206_v21 = vmul.f32 0.2, %v2204_v20  ;;  %vm2205_vm14 = vcmp.gt.f32.partialorder %v2204_v20, 0.0 }
0x1273   :  { %v2207_v22 = vsel %vm2205_vm14, %v2204_v20, %v2206_v21 }
0x1274   :  { %v2208_v23 = vsel %vm377_vm5, %v2207_v22, -1e+30 }
0x1275   :  { %v2209_v36 = vsel %vm379_vm6, %v2208_v23, -inf }
0x1276   :  { %2210 = vmax.xlane.f32.xlu0 %v2209_v36 }
0x12ff   :  { %v2211_v24 = vpop.xlane.xlu0 %2210 }
0x1300   :  { %v2212_v25 = vsub.f32 %v2208_v23, %v2211_v24 }
0x1302   :  { %v2213_v26 = vmul.f32 1.442695, %v2212_v25 }
0x1304   :  { %2764 = vpow2.f32 %v2213_v26 }
0x1311   :  { %v2765_v27 = vpop.eup %2764 }
0x1312   :  { %v2215_v28 = vsel %vm379_vm6, %v2765_v27, 0.0 }
0x1313   :  { %2216 = vadd.xlane.f32.xlu0 %v2215_v28 }
0x1329   :  { %2296 = vrot.lane.b32.xlu0 %v1914_v12, %s2770_s23 }
0x139c   :  { %v2217_v30 = vpop.xlane.xlu0 %2216 }
0x139d   :  { %2766 = vrcp.f32 %v2217_v30 }
0x13a0   :  { %v2297_v33 = vpop.permute.xlu0 %2296 }
0x13a1   :  { %v2303_v34 = vsel %vm280_vm1, %v3328_v14, %v2297_v33 }
0x13a2   :  { %v2317_v35 = vadd.f32 %v2310_v32, %v2303_v34 }
0x13a4   :  { %v2319_v38 = vadd.f32 %v2317_v35, %v1302_v37 }
0x13a6   :  { %v2321_v39 = vmax.f32 %v2319_v38, 0.0 }
0x13a8   :  { %2323 = vst [vmem:[%s3414_s12] sm:$0x3f] %v2321_v39 }
0x13aa   :  { %v2767_v40 = vpop.eup %2766 }
0x13ab   :  { %v2219_v42 = vmul.f32 %v2767_v40, %v2765_v27 }
0x13ad   :  { %2587 = vmatmul.mubr.msk.f32.vlgmr.msra.gmra.mxu1 %vm391_vm7, %v2219_v42 }
0x146d   :  { %v2291_v54 = vpop.f32.mrf.mxu1 }
0x146e   :  { %2300 = vrot.lane.b32.xlu1 %v2291_v54, %s2770_s23 }
0x146f   :  { %v2588_v47 = vpop.f32.mrf.mxu1 }
0x14e0   :  { %v2301_v14 = vpop.permute.xlu1 %2300 }
0x14e1   :  { %v2304_v53 = vsel %vm280_vm1, %v2099_v13, %v2301_v14 }
0x14e2   :  { %v2318_v44 = vadd.f32 %v2314_v43, %v2304_v53 }
0x14e4   :  { %v2320_v46 = vadd.f32 %v2318_v44, %v3297_v57 }
0x14e6   :  { %v2322_v45 = vmax.f32 %v2320_v46, 0.0 }
0x14e8   :  { %2324 = vst [vmem:[%s3414_s12 + $0x8] sm:$0x3f] %v2322_v45 }

// kernel: metafluad_forward.19
= control target key start
LH: loop header
LB: loop body
LE: loop exit
PB: predicated region body
PF: predicated region fallthrough
CT: control target
= control target key end

     0   :  { %vm795_vm0 = vcmask 1045504   ;;  %s6250_s3 = inlined_call_operand.vmem [shape: bf16[2,256,256], index: 3, kind: input, shape index: {}]   ;;  %s6251_s0 = inlined_call_operand.vmem [shape: f32[6,256], index: 0, kind: input, shape index: {}]   ;;  %s6252_s1 = inlined_call_operand.vmem [shape: bf16[256,256], index: 1, kind: input, shape index: {}]   ;;  %s6253_s5 = inlined_call_operand.vmem [shape: bf16[2,256,256], index: 5, kind: input, shape index: {}]   ;;  %s6254_s4 = inlined_call_operand.vmem [shape: f32[2,1,256], index: 4, kind: input, shape index: {}]   ;;  %s6255_s6 = inlined_call_operand.vmem [shape: f32[2,1,256], index: 6, kind: input, shape index: {}]   ;;  %s6256_s9 = inlined_call_operand.vmem [shape: bf16[2,256,512], index: 9, kind: input, shape index: {}]   ;;  %s6257_s11 = inlined_call_operand.vmem [shape: bf16[2,512,256], index: 11, kind: input, shape index: {}]   ;;  %s6258_s7 = inlined_call_operand.vmem [shape: f32[2,1,256], index: 7, kind: input, shape index: {}]   ;;  %s6259_s8 = inlined_call_operand.vmem [shape: f32[2,1,256], index: 8, kind: input, shape index: {}]   ;;  %s6260_s10 = inlined_call_operand.vmem [shape: f32[2,1,512], index: 10, kind: input, shape index: {}]   ;;  %s6261_s12 = inlined_call_operand.vmem [shape: f32[2,1,256], index: 12, kind: input, shape index: {}]   ;;  %s6262_s13 = inlined_call_operand.vmem [shape: f32[2,1,256], index: 13, kind: input, shape index: {}]   ;;  %s6263_s14 = inlined_call_operand.vmem [shape: f32[2,1,256], index: 14, kind: input, shape index: {}]   ;;  %s6264_s2 = inlined_call_operand.vmem [shape: f32[1,256], index: 2, kind: input, shape index: {}]   ;;  %s6265_s15 = inlined_call_operand.vmem [shape: f32[6,256], index: 15, kind: output, shape index: {}]  }
   0x1   :  { %v4077_v0 = vld [vmem:[%s6250_s3 + $0x74] ss:$8 sps:$4 sm:$0xff]   ;;  %v4079_v1 = vld [vmem:[%s6250_s3 + $0x70] ss:$8 sps:$4 sm:$0xff]   ;;  %v4080_v2 = vld [vmem:[%s6250_s3 + $0x64] ss:$8 sps:$4 sm:$0xff]  }
   0x2   :  { %503 = vmatprep.subr.bf16.mxu1 %v4077_v0  ;;  %v4082_v3 = vld [vmem:[%s6250_s3 + $0x60] ss:$8 sps:$4 sm:$0xff]   ;;  %v4083_v4 = vld [vmem:[%s6250_s3 + $0x54] ss:$8 sps:$4 sm:$0xff]   ;;  %v4085_v5 = vld [vmem:[%s6250_s3 + $0x50] ss:$8 sps:$4 sm:$0xff]  }
   0x3   :  { %504 = vmatpush1.bf16.msra.mxu1 %v4079_v1  ;;  %v4086_v6 = vld [vmem:[%s6250_s3 + $0x44] ss:$8 sps:$4 sm:$0xff]   ;;  %v4088_v7 = vld [vmem:[%s6250_s3 + $0x40] ss:$8 sps:$4 sm:$0xff]   ;;  %v4089_v8 = vld [vmem:[%s6250_s3 + $0x34] ss:$8 sps:$4 sm:$0xff]  }
   0x4   :  { %505 = vmatprep.subr.bf16.mxu1 %v4080_v2  ;;  %v4091_v9 = vld [vmem:[%s6250_s3 + $0x30] ss:$8 sps:$4 sm:$0xff]   ;;  %v4092_v10 = vld [vmem:[%s6250_s3 + $0x24] ss:$8 sps:$4 sm:$0xff]   ;;  %v4094_v11 = vld [vmem:[%s6250_s3 + $0x20] ss:$8 sps:$4 sm:$0xff]  }
   0x5   :  { %v4095_v12 = vld [vmem:[%s6250_s3 + $0x14] ss:$8 sps:$4 sm:$0xff]   ;;  %v4097_v13 = vld [vmem:[%s6250_s3 + $0x10] ss:$8 sps:$4 sm:$0xff]   ;;  %v4834_v14 = vld [vmem:[%s6251_s0 + $0x8] sm:$0x3f] }
   0x6   :  { %v53_v15 = vpack.c.bf16 %v4834_v14, %v4834_v14  ;;  %v4125_v16 = vld [vmem:[%s6252_s1 + $0x74] ss:$8 sps:$4 sm:$0xff]   ;;  %v4127_v17 = vld [vmem:[%s6252_s1 + $0x70] ss:$8 sps:$4 sm:$0xff]   ;;  %v4098_v18 = vld [vmem:[%s6250_s3 + $0x4] ss:$8 sps:$4 sm:$0xff]  }
   0x7   :  { %506 = vmatpush1.bf16.msra.mxu1 %v4082_v3  ;;  %v4128_v19 = vld [vmem:[%s6252_s1 + $0x64] ss:$8 sps:$4 sm:$0xff]   ;;  %v4100_v20 = vld [vmem:[%s6250_s3] ss:$8 sps:$4 sm:$0xff]   ;;  %258 = vmatprep.subr.bf16.mxu0 %v4125_v16  ;;  %v4131_v22 = vld [vmem:[%s6252_s1 + $0x54] ss:$8 sps:$4 sm:$0xff]  }
   0x8   :  { %507 = vmatprep.subr.bf16.mxu1 %v4083_v4  ;;  %535 = vmatprep.mubr.bf16.mxu1 %v53_v15  ;;  %v4130_v21 = vld [vmem:[%s6252_s1 + $0x60] ss:$8 sps:$4 sm:$0xff]   ;;  %v4101_v23 = vld [vmem:[%s6250_s3 + $0xf4] ss:$8 sps:$4 sm:$0xff]   ;;  %v4103_v24 = vld [vmem:[%s6250_s3 + $0xf0] ss:$8 sps:$4 sm:$0xff]  }
   0x9   :  { %290 = vmatprep.mubr.bf16.mxu0 %v53_v15  ;;  %259 = vmatpush1.bf16.msra.mxu0 %v4127_v17  ;;  %v4133_v25 = vld [vmem:[%s6252_s1 + $0x50] ss:$8 sps:$4 sm:$0xff]   ;;  %v4134_v26 = vld [vmem:[%s6252_s1 + $0x44] ss:$8 sps:$4 sm:$0xff]   ;;  %v4106_v28 = vld [vmem:[%s6250_s3 + $0xe0] ss:$8 sps:$4 sm:$0xff]  }
   0xa   :  { %260 = vmatprep.subr.bf16.mxu0 %v4128_v19  ;;  %v4104_v27 = vld [vmem:[%s6250_s3 + $0xe4] ss:$8 sps:$4 sm:$0xff]   ;;  %v4136_v29 = vld [vmem:[%s6252_s1 + $0x40] ss:$8 sps:$4 sm:$0xff]   ;;  %v4137_v30 = vld [vmem:[%s6252_s1 + $0x34] ss:$8 sps:$4 sm:$0xff]  }
   0xb   :  { %508 = vmatpush1.bf16.msra.mxu1 %v4085_v5  ;;  %v4107_v31 = vld [vmem:[%s6250_s3 + $0xd4] ss:$8 sps:$4 sm:$0xff]   ;;  %v4109_v32 = vld [vmem:[%s6250_s3 + $0xd0] ss:$8 sps:$4 sm:$0xff]   ;;  %v4140_v34 = vld [vmem:[%s6252_s1 + $0x24] ss:$8 sps:$4 sm:$0xff]  }
   0xc   :  { %509 = vmatprep.subr.bf16.mxu1 %v4086_v6  ;;  %v4139_v33 = vld [vmem:[%s6252_s1 + $0x30] ss:$8 sps:$4 sm:$0xff]   ;;  %v4110_v35 = vld [vmem:[%s6250_s3 + $0xc4] ss:$8 sps:$4 sm:$0xff]   ;;  %v4112_v36 = vld [vmem:[%s6250_s3 + $0xc0] ss:$8 sps:$4 sm:$0xff]  }
   0xd   :  { %261 = vmatpush1.bf16.msra.mxu0 %v4130_v21  ;;  %v4142_v37 = vld [vmem:[%s6252_s1 + $0x20] ss:$8 sps:$4 sm:$0xff]   ;;  %v4143_v38 = vld [vmem:[%s6252_s1 + $0x14] ss:$8 sps:$4 sm:$0xff]   ;;  %v4115_v40 = vld [vmem:[%s6250_s3 + $0xb0] ss:$8 sps:$4 sm:$0xff]  }
   0xe   :  { %262 = vmatprep.subr.bf16.mxu0 %v4131_v22  ;;  %v4113_v39 = vld [vmem:[%s6250_s3 + $0xb4] ss:$8 sps:$4 sm:$0xff]   ;;  %v4145_v41 = vld [vmem:[%s6252_s1 + $0x10] ss:$8 sps:$4 sm:$0xff]   ;;  %v4146_v42 = vld [vmem:[%s6252_s1 + $0x4] ss:$8 sps:$4 sm:$0xff]  }
   0xf   :  { %510 = vmatpush1.bf16.msra.mxu1 %v4088_v7  ;;  %v4116_v43 = vld [vmem:[%s6250_s3 + $0xa4] ss:$8 sps:$4 sm:$0xff]   ;;  %v4118_v44 = vld [vmem:[%s6250_s3 + $0xa0] ss:$8 sps:$4 sm:$0xff]   ;;  %v4149_v46 = vld [vmem:[%s6252_s1 + $0xf4] ss:$8 sps:$4 sm:$0xff]  }
  0x10   :  { %511 = vmatprep.subr.bf16.mxu1 %v4089_v8  ;;  %v4148_v45 = vld [vmem:[%s6252_s1] ss:$8 sps:$4 sm:$0xff]   ;;  %v4119_v47 = vld [vmem:[%s6250_s3 + $0x94] ss:$8 sps:$4 sm:$0xff]   ;;  %v4121_v48 = vld [vmem:[%s6250_s3 + $0x90] ss:$8 sps:$4 sm:$0xff]  }
  0x11   :  { %263 = vmatpush1.bf16.msra.mxu0 %v4133_v25  ;;  %v4151_v49 = vld [vmem:[%s6252_s1 + $0xf0] ss:$8 sps:$4 sm:$0xff]   ;;  %v4152_v50 = vld [vmem:[%s6252_s1 + $0xe4] ss:$8 sps:$4 sm:$0xff]   ;;  %v4124_v52 = vld [vmem:[%s6250_s3 + $0x80] ss:$8 sps:$4 sm:$0xff]  }
  0x12   :  { %264 = vmatprep.subr.bf16.mxu0 %v4134_v26  ;;  %v4122_v51 = vld [vmem:[%s6250_s3 + $0x84] ss:$8 sps:$4 sm:$0xff]   ;;  %v4154_v54 = vld [vmem:[%s6252_s1 + $0xe0] ss:$8 sps:$4 sm:$0xff]   ;;  %v4155_v55 = vld [vmem:[%s6252_s1 + $0xd4] ss:$8 sps:$4 sm:$0xff]  }
  0x13   :  { %512 = vmatpush1.bf16.msra.mxu1 %v4091_v9  ;;  %v4952_v53 = vld [vmem:[%s6251_s0] sm:$0x3f]  ;;  %v4157_v56 = vld [vmem:[%s6252_s1 + $0xd0] ss:$8 sps:$4 sm:$0xff]   ;;  %v4161_v60 = vld [vmem:[%s6252_s1 + $0xb4] ss:$8 sps:$4 sm:$0xff]  }
  0x14   :  { %513 = vmatprep.subr.bf16.mxu1 %v4092_v10  ;;  %v52_v57 = vpack.c.bf16 %v4952_v53, %v4952_v53  ;;  %v4158_v58 = vld [vmem:[%s6252_s1 + $0xc4] ss:$8 sps:$4 sm:$0xff]   ;;  %v4160_v59 = vld [vmem:[%s6252_s1 + $0xc0] ss:$8 sps:$4 sm:$0xff]   ;;  %v4163_v61 = vld [vmem:[%s6252_s1 + $0xb0] ss:$8 sps:$4 sm:$0xff]  }
  0x15   :  { %265 = vmatpush1.bf16.msra.mxu0 %v4136_v29  ;;  %v4164_v62 = vld [vmem:[%s6252_s1 + $0xa4] ss:$8 sps:$4 sm:$0xff]   ;;  %v4166_v63 = vld [vmem:[%s6252_s1 + $0xa0] ss:$8 sps:$4 sm:$0xff]   ;;  %v4167_v0 = vld [vmem:[%s6252_s1 + $0x94] ss:$8 sps:$4 sm:$0xff]  }
  0x16   :  { %266 = vmatprep.subr.bf16.mxu0 %v4137_v30  ;;  %v4169_v1 = vld [vmem:[%s6252_s1 + $0x90] ss:$8 sps:$4 sm:$0xff]   ;;  %v4170_v2 = vld [vmem:[%s6252_s1 + $0x84] ss:$8 sps:$4 sm:$0xff]   ;;  %v4172_v3 = vld [vmem:[%s6252_s1 + $0x80] ss:$8 sps:$4 sm:$0xff]  }
  0x17   :  { %514 = vmatpush1.bf16.msra.mxu1 %v4094_v11  ;;  %v4175_v4 = vld [vmem:[%s6253_s5 + $0x74] ss:$8 sps:$4 sm:$0xff]   ;;  %v4173_v5 = vld [vmem:[%s6253_s5 + $0x70] ss:$8 sps:$4 sm:$0xff]   ;;  %v4178_v6 = vld [vmem:[%s6253_s5 + $0x64] ss:$8 sps:$4 sm:$0xff]  }
  0x18   :  { %515 = vmatprep.subr.bf16.mxu1 %v4095_v12  ;;  %v4176_v7 = vld [vmem:[%s6253_s5 + $0x60] ss:$8 sps:$4 sm:$0xff]   ;;  %v4181_v8 = vld [vmem:[%s6253_s5 + $0x54] ss:$8 sps:$4 sm:$0xff]   ;;  %v4179_v9 = vld [vmem:[%s6253_s5 + $0x50] ss:$8 sps:$4 sm:$0xff]  }
  0x19   :  { %267 = vmatpush1.bf16.msra.mxu0 %v4139_v33  ;;  %v4184_v10 = vld [vmem:[%s6253_s5 + $0x44] ss:$8 sps:$4 sm:$0xff]   ;;  %v4182_v11 = vld [vmem:[%s6253_s5 + $0x40] ss:$8 sps:$4 sm:$0xff]   ;;  %v4187_v12 = vld [vmem:[%s6253_s5 + $0x34] ss:$8 sps:$4 sm:$0xff]  }
  0x1a   :  { %268 = vmatprep.subr.bf16.mxu0 %v4140_v34  ;;  %v4190_v15 = vld [vmem:[%s6253_s5 + $0x24] ss:$8 sps:$4 sm:$0xff]   ;;  %v4188_v16 = vld [vmem:[%s6253_s5 + $0x20] ss:$8 sps:$4 sm:$0xff]   ;;  %v4193_v17 = vld [vmem:[%s6253_s5 + $0x14] ss:$8 sps:$4 sm:$0xff]  }
  0x1b   :  { %516 = vmatpush1.bf16.msra.mxu1 %v4097_v13  ;;  %v4185_v13 = vld [vmem:[%s6253_s5 + $0x30] ss:$8 sps:$4 sm:$0xff]   ;;  %v4196_v19 = vld [vmem:[%s6253_s5 + $0x4] ss:$8 sps:$4 sm:$0xff]   ;;  %v4199_v21 = vld [vmem:[%s6253_s5 + $0xf4] ss:$8 sps:$4 sm:$0xff]  }
  0x1c   :  { %517 = vmatprep.subr.bf16.mxu1 %v4098_v18  ;;  %v4191_v18 = vld [vmem:[%s6253_s5 + $0x10] ss:$8 sps:$4 sm:$0xff]   ;;  %v4205_v25 = vld [vmem:[%s6253_s5 + $0xd4] ss:$8 sps:$4 sm:$0xff]  }
  0x1d   :  { %269 = vmatpush1.bf16.msra.mxu0 %v4142_v37  ;;  %v4197_v22 = vld [vmem:[%s6253_s5 + $0xf0] ss:$8 sps:$4 sm:$0xff]   ;;  %v4211_v29 = vld [vmem:[%s6253_s5 + $0xb4] ss:$8 sps:$4 sm:$0xff]   ;;  %v88_v37 = vlaneseq }
  0x1e   :  { %270 = vmatprep.subr.bf16.mxu0 %v4143_v38  ;;  %v4203_v26 = vld [vmem:[%s6253_s5 + $0xd0] ss:$8 sps:$4 sm:$0xff]   ;;  %v4217_v33 = vld [vmem:[%s6253_s5 + $0x94] ss:$8 sps:$4 sm:$0xff]  }
  0x1f   :  { %518 = vmatpush1.bf16.msra.mxu1 %v4100_v20  ;;  %v4194_v20 = vld [vmem:[%s6253_s5] ss:$8 sps:$4 sm:$0xff]   ;;  %v4209_v30 = vld [vmem:[%s6253_s5 + $0xb0] ss:$8 sps:$4 sm:$0xff]   ;;  %v5091_v38 = vshrl.u32 %v88_v37, 7 }
  0x20   :  { %519 = vmatprep.subr.bf16.mxu1 %v4101_v23  ;;  %v4202_v23 = vld [vmem:[%s6253_s5 + $0xe4] ss:$8 sps:$4 sm:$0xff]   ;;  %v4215_v34 = vld [vmem:[%s6253_s5 + $0x90] ss:$8 sps:$4 sm:$0xff]  }
  0x21   :  { %271 = vmatpush1.bf16.msra.mxu0 %v4145_v41  ;;  %v5100_v41 = vsub.s32 1, %v5091_v38  ;;  %v4266_v37 = vld [vmem:[%s6256_s9 + $0x8] ss:$16 sps:$4 sm:$0xff]  }
  0x22   :  { %272 = vmatprep.subr.bf16.mxu0 %v4146_v42 }
  0x23   :  { %520 = vmatpush2.bf16.msra.mxu1 %v4103_v24  ;;  %v4200_v24 = vld [vmem:[%s6253_s5 + $0xe0] ss:$8 sps:$4 sm:$0xff]  }
  0x24   :  { %521 = vmatprep.subr.bf16.mxu1 %v4104_v27  ;;  %v4208_v27 = vld [vmem:[%s6253_s5 + $0xc4] ss:$8 sps:$4 sm:$0xff]  }
  0x25   :  { %273 = vmatpush1.bf16.msra.mxu0 %v4148_v45 }
  0x26   :  { %274 = vmatprep.subr.bf16.mxu0 %v4149_v46 }
  0x27   :  { %522 = vmatpush2.bf16.msra.mxu1 %v4106_v28  ;;  %v4206_v28 = vld [vmem:[%s6253_s5 + $0xc0] ss:$8 sps:$4 sm:$0xff]  }
  0x28   :  { %523 = vmatprep.subr.bf16.mxu1 %v4107_v31  ;;  %v4214_v31 = vld [vmem:[%s6253_s5 + $0xa4] ss:$8 sps:$4 sm:$0xff]  }
  0x29   :  { %275 = vmatpush2.bf16.msra.mxu0 %v4151_v49 }
  0x2a   :  { %276 = vmatprep.subr.bf16.mxu0 %v4152_v50 }
  0x2b   :  { %524 = vmatpush2.bf16.msra.mxu1 %v4109_v32  ;;  %v4212_v32 = vld [vmem:[%s6253_s5 + $0xa0] ss:$8 sps:$4 sm:$0xff]  }
  0x2c   :  { %525 = vmatprep.subr.bf16.mxu1 %v4110_v35  ;;  %v4220_v35 = vld [vmem:[%s6253_s5 + $0x84] ss:$8 sps:$4 sm:$0xff]  }
  0x2d   :  { %277 = vmatpush2.bf16.msra.mxu0 %v4154_v54 }
  0x2e   :  { %278 = vmatprep.subr.bf16.mxu0 %v4155_v55 }
  0x2f   :  { %526 = vmatpush2.bf16.msra.mxu1 %v4112_v36  ;;  %v4218_v36 = vld [vmem:[%s6253_s5 + $0x80] ss:$8 sps:$4 sm:$0xff]  }
  0x30   :  { %527 = vmatprep.subr.bf16.mxu1 %v4113_v39  ;;  %v5094_v39 = vsub.s32 0, %v5091_v38 }
  0x31   :  { %279 = vmatpush2.bf16.msra.mxu0 %v4157_v56 }
  0x32   :  { %280 = vmatprep.subr.bf16.mxu0 %v4158_v58 }
  0x33   :  { %528 = vmatpush2.bf16.msra.mxu1 %v4115_v40  ;;  %v331_v40 = vld [vmem:[%s6254_s4] sm:$0x3] }
  0x34   :  { %529 = vmatprep.subr.bf16.mxu1 %v4116_v43  ;;  %v336_v42 = vrot.slane %v331_v40, %v5094_v39  ;;  %v340_v43 = vrot.slane %v331_v40, %v5100_v41  ;;  %v4271_v40 = vld [vmem:[%s6256_s9 + $0x1e4] ss:$16 sps:$4 sm:$0xff]  }
  0x35   :  { %281 = vmatpush2.bf16.msra.mxu0 %v4160_v59 }
  0x36   :  { %282 = vmatprep.subr.bf16.mxu0 %v4161_v60 }
  0x37   :  { %530 = vmatpush2.bf16.msra.mxu1 %v4118_v44 }
  0x38   :  { %531 = vmatprep.subr.bf16.mxu1 %v4119_v47 }
  0x39   :  { %283 = vmatpush2.bf16.msra.mxu0 %v4163_v61 }
  0x3a   :  { %284 = vmatprep.subr.bf16.mxu0 %v4164_v62 }
  0x3b   :  { %532 = vmatpush2.bf16.msra.mxu1 %v4121_v48 }
  0x3c   :  { %533 = vmatprep.subr.bf16.mxu1 %v4122_v51 }
  0x3d   :  { %285 = vmatpush2.bf16.msra.mxu0 %v4166_v63 }
  0x3e   :  { %286 = vmatprep.subr.bf16.mxu0 %v4167_v0 }
  0x3f   :  { %534 = vmatpush2.bf16.msra.mxu1 %v4124_v52 }
  0x41   :  { %287 = vmatpush2.bf16.msra.mxu0 %v4169_v1 }
  0x42   :  { %536 = vmatmul.mubr.bf16.vlgmr.msra.gmra.mxu1 %v52_v57  ;;  %288 = vmatprep.subr.bf16.mxu0 %v4170_v2 }
  0x45   :  { %289 = vmatpush2.bf16.msra.mxu0 %v4172_v3 }
  0x46   :  { %750 = vmatprep.subr.bf16.mxu0 %v4175_v4 }
  0x48   :  { %291 = vmatmul.mubr.bf16.vlgmr.msra.gmra.mxu0 %v52_v57  ;;  %v578_v57 = vld [vmem:[%s6255_s6] sm:$0x3] }
  0x49   :  { %751 = vmatpush1.bf16.msra.mxu0 %v4173_v5  ;;  %v583_v58 = vrot.slane %v578_v57, %v5094_v39  ;;  %v587_v59 = vrot.slane %v578_v57, %v5100_v41 }
  0x4a   :  { %752 = vmatprep.subr.bf16.mxu0 %v4178_v6 }
  0x4d   :  { %753 = vmatpush1.bf16.msra.mxu0 %v4176_v7  ;;  %v4223_v7 = vld [vmem:[%s6256_s9 + $0xe4] ss:$16 sps:$4 sm:$0xff]  }
  0x4e   :  { %754 = vmatprep.subr.bf16.mxu0 %v4181_v8  ;;  %v4226_v8 = vld [vmem:[%s6256_s9 + $0xec] ss:$16 sps:$4 sm:$0xff]   ;;  %1251 = vmatprep.subr.bf16.mxu1 %v4223_v7  ;;  %v4296_v7 = vld [vmem:[%s6256_s9 + $0x168] ss:$16 sps:$4 sm:$0xff]  }
  0x51   :  { %755 = vmatpush1.bf16.msra.mxu0 %v4179_v9  ;;  %v4227_v9 = vld [vmem:[%s6256_s9 + $0xc0] ss:$16 sps:$4 sm:$0xff]  }
  0x52   :  { %756 = vmatprep.subr.bf16.mxu0 %v4184_v10  ;;  %v4229_v10 = vld [vmem:[%s6256_s9 + $0xc4] ss:$16 sps:$4 sm:$0xff]  }
  0x55   :  { %757 = vmatpush1.bf16.msra.mxu0 %v4182_v11  ;;  %v4230_v11 = vld [vmem:[%s6256_s9 + $0xc8] ss:$16 sps:$4 sm:$0xff]  }
  0x56   :  { %758 = vmatprep.subr.bf16.mxu0 %v4187_v12  ;;  %v4232_v12 = vld [vmem:[%s6256_s9 + $0xcc] ss:$16 sps:$4 sm:$0xff]  }
  0x59   :  { %759 = vmatpush1.bf16.msra.mxu0 %v4185_v13  ;;  %v4235_v13 = vld [vmem:[%s6256_s9 + $0xa4] ss:$16 sps:$4 sm:$0xff]  }
  0x5a   :  { %760 = vmatprep.subr.bf16.mxu0 %v4190_v15  ;;  %v4233_v15 = vld [vmem:[%s6256_s9 + $0xa0] ss:$16 sps:$4 sm:$0xff]  }
  0x5d   :  { %761 = vmatpush1.bf16.msra.mxu0 %v4188_v16  ;;  %v4238_v16 = vld [vmem:[%s6256_s9 + $0xac] ss:$16 sps:$4 sm:$0xff]  }
  0x5e   :  { %762 = vmatprep.subr.bf16.mxu0 %v4193_v17  ;;  %v4236_v17 = vld [vmem:[%s6256_s9 + $0xa8] ss:$16 sps:$4 sm:$0xff]  }
  0x61   :  { %763 = vmatpush1.bf16.msra.mxu0 %v4191_v18  ;;  %v4241_v18 = vld [vmem:[%s6256_s9 + $0x84] ss:$16 sps:$4 sm:$0xff]  }
  0x62   :  { %764 = vmatprep.subr.bf16.mxu0 %v4196_v19  ;;  %v4244_v19 = vld [vmem:[%s6256_s9 + $0x8c] ss:$16 sps:$4 sm:$0xff]  }
  0x65   :  { %765 = vmatpush1.bf16.msra.mxu0 %v4194_v20  ;;  %v4239_v20 = vld [vmem:[%s6256_s9 + $0x80] ss:$16 sps:$4 sm:$0xff]  }
  0x66   :  { %766 = vmatprep.subr.bf16.mxu0 %v4199_v21  ;;  %v4242_v21 = vld [vmem:[%s6256_s9 + $0x88] ss:$16 sps:$4 sm:$0xff]  }
  0x69   :  { %767 = vmatpush2.bf16.msra.mxu0 %v4197_v22  ;;  %v4247_v22 = vld [vmem:[%s6256_s9 + $0x64] ss:$16 sps:$4 sm:$0xff]  }
  0x6a   :  { %768 = vmatprep.subr.bf16.mxu0 %v4202_v23  ;;  %v4250_v23 = vld [vmem:[%s6256_s9 + $0x6c] ss:$16 sps:$4 sm:$0xff]  }
  0x6d   :  { %769 = vmatpush2.bf16.msra.mxu0 %v4200_v24  ;;  %v4245_v24 = vld [vmem:[%s6256_s9 + $0x60] ss:$16 sps:$4 sm:$0xff]  }
  0x6e   :  { %770 = vmatprep.subr.bf16.mxu0 %v4205_v25  ;;  %v4248_v25 = vld [vmem:[%s6256_s9 + $0x68] ss:$16 sps:$4 sm:$0xff]  }
  0x71   :  { %771 = vmatpush2.bf16.msra.mxu0 %v4203_v26  ;;  %v4253_v26 = vld [vmem:[%s6256_s9 + $0x44] ss:$16 sps:$4 sm:$0xff]  }
  0x72   :  { %772 = vmatprep.subr.bf16.mxu0 %v4208_v27  ;;  %v4256_v27 = vld [vmem:[%s6256_s9 + $0x4c] ss:$16 sps:$4 sm:$0xff]  }
  0x75   :  { %773 = vmatpush2.bf16.msra.mxu0 %v4206_v28  ;;  %v4251_v28 = vld [vmem:[%s6256_s9 + $0x40] ss:$16 sps:$4 sm:$0xff]  }
  0x76   :  { %774 = vmatprep.subr.bf16.mxu0 %v4211_v29  ;;  %v4254_v29 = vld [vmem:[%s6256_s9 + $0x48] ss:$16 sps:$4 sm:$0xff]  }
  0x79   :  { %775 = vmatpush2.bf16.msra.mxu0 %v4209_v30  ;;  %v4259_v30 = vld [vmem:[%s6256_s9 + $0x24] ss:$16 sps:$4 sm:$0xff]  }
  0x7a   :  { %776 = vmatprep.subr.bf16.mxu0 %v4214_v31  ;;  %v4262_v31 = vld [vmem:[%s6256_s9 + $0x2c] ss:$16 sps:$4 sm:$0xff]  }
  0x7d   :  { %777 = vmatpush2.bf16.msra.mxu0 %v4212_v32  ;;  %v4257_v32 = vld [vmem:[%s6256_s9 + $0x20] ss:$16 sps:$4 sm:$0xff]  }
  0x7e   :  { %778 = vmatprep.subr.bf16.mxu0 %v4217_v33  ;;  %v4260_v33 = vld [vmem:[%s6256_s9 + $0x28] ss:$16 sps:$4 sm:$0xff]  }
  0x81   :  { %779 = vmatpush2.bf16.msra.mxu0 %v4215_v34  ;;  %v4265_v34 = vld [vmem:[%s6256_s9 + $0x4] ss:$16 sps:$4 sm:$0xff]  }
  0x82   :  { %780 = vmatprep.subr.bf16.mxu0 %v4220_v35  ;;  %v4263_v35 = vld [vmem:[%s6256_s9] ss:$16 sps:$4 sm:$0xff]  }
  0x85   :  { %781 = vmatpush2.bf16.msra.mxu0 %v4218_v36  ;;  %v4268_v36 = vld [vmem:[%s6256_s9 + $0xc] ss:$16 sps:$4 sm:$0xff]  }
  0x86   :  { %1292 = vmatprep.subr.bf16.mxu0 %v4226_v8  ;;  %v4304_v8 = vld [vmem:[%s6256_s9 + $0x14c] ss:$16 sps:$4 sm:$0xff]  }
 0x102   :  { %v537_v44 = vpop.f32.mrf.mxu1 }
 0x103   :  { %v538_v45 = vadd.f32 %v537_v44, %v336_v42  ;;  %v4274_v42 = vld [vmem:[%s6256_s9 + $0x1ec] ss:$16 sps:$4 sm:$0xff]   ;;  %v4272_v44 = vld [vmem:[%s6256_s9 + $0x1e8] ss:$16 sps:$4 sm:$0xff]  }
 0x104   :  { %v539_v46 = vpop.f32.mrf.mxu1 }
 0x105   :  { %v540_v47 = vadd.f32 %v539_v46, %v340_v43  ;;  %v544_v50 = vpack.c.bf16 %v538_v45, %v538_v45  ;;  %v4269_v43 = vld [vmem:[%s6256_s9 + $0x1e0] ss:$16 sps:$4 sm:$0xff]   ;;  %v4277_v45 = vld [vmem:[%s6256_s9 + $0x1c4] ss:$16 sps:$4 sm:$0xff]   ;;  %v4280_v46 = vld [vmem:[%s6256_s9 + $0x1cc] ss:$16 sps:$4 sm:$0xff]  }
 0x106   :  { %v541_v48 = vpop.f32.mrf.mxu1 }
 0x107   :  { %v545_v49 = vpack.c.bf16 %v540_v47, %v540_v47  ;;  %v4275_v47 = vld [vmem:[%s6256_s9 + $0x1c0] ss:$16 sps:$4 sm:$0xff]   ;;  %v4278_v48 = vld [vmem:[%s6256_s9 + $0x1c8] ss:$16 sps:$4 sm:$0xff]  }
 0x108   :  { %v542_v51 = vpop.f32.mrf.mxu1  ;;  %v5104_v52 = vpop.f32.mrf.mxu0 }
 0x109   :  { %782 = vmatprep.mubr.bf16.mxu0 %v545_v49 }
 0x10a   :  { %783 = vmatmul.mubr.bf16.vlgmr.msra.gmra.mxu0 %v544_v50  ;;  %v5106_v54 = vpop.f32.mrf.mxu0 }
 0x10c   :  { %v296_v55 = vpop.f32.mrf.mxu0 }
 0x10e   :  { %v297_v56 = vpop.f32.mrf.mxu0 }
 0x1ca   :  { %v784_v60 = vpop.f32.mrf.mxu0 }
 0x1cb   :  { %v785_v61 = vadd.f32 %v784_v60, %v583_v58 }
 0x1cc   :  { %v786_v62 = vpop.f32.mrf.mxu0 }
 0x1cd   :  { %v5114_v63 = vadd.f32 %v785_v61, %v4952_v53  ;;  %v787_v0 = vadd.f32 %v786_v62, %v587_v59  ;;  %v4221_v53 = vld [vmem:[%s6256_s9 + $0xe0] ss:$16 sps:$4 sm:$0xff]   ;;  %v4283_v61 = vld [vmem:[%s6256_s9 + $0x1a4] ss:$16 sps:$4 sm:$0xff]   ;;  %v4286_v62 = vld [vmem:[%s6256_s9 + $0x1ac] ss:$16 sps:$4 sm:$0xff]  }
 0x1ce   :  { %v788_v1 = vpop.f32.mrf.mxu0  ;;  %1252 = vmatpush1.bf16.msra.mxu1 %v4221_v53  ;;  %v4293_v53 = vld [vmem:[%s6256_s9 + $0x160] ss:$16 sps:$4 sm:$0xff]  }
 0x1cf   :  { %v5117_v2 = vadd.f32 %v787_v0, %v4834_v14  ;;  %v796_v4 = vsel %vm795_vm0, %v5114_v63, 0.0  ;;  %v4224_v14 = vld [vmem:[%s6256_s9 + $0xe8] ss:$16 sps:$4 sm:$0xff]   ;;  %1253 = vmatprep.subr.bf16.mxu1 %v4229_v10  ;;  %v4287_v1 = vld [vmem:[%s6256_s9 + $0x180] ss:$16 sps:$4 sm:$0xff]  }
 0x1d0   :  { %v789_v3 = vpop.f32.mrf.mxu0  ;;  %1293 = vmatpush1.bf16.msra.mxu0 %v4224_v14  ;;  %v4284_v0 = vld [vmem:[%s6256_s9 + $0x1a8] ss:$16 sps:$4 sm:$0xff]   ;;  %v4301_v14 = vld [vmem:[%s6256_s9 + $0x144] ss:$16 sps:$4 sm:$0xff]  }
 0x1d1   :  { %v797_v5 = vsel %vm795_vm0, %v5117_v2, 0.0  ;;  %1294 = vmatprep.subr.bf16.mxu0 %v4232_v12  ;;  %v4290_v3 = vld [vmem:[%s6256_s9 + $0x188] ss:$16 sps:$4 sm:$0xff]   ;;  %v4310_v12 = vld [vmem:[%s6256_s9 + $0x12c] ss:$16 sps:$4 sm:$0xff]  }
 0x1d2   :  { %v798_v6 = vadd.f32 %v797_v5, %v796_v4  ;;  %1254 = vmatpush1.bf16.msra.mxu1 %v4227_v9  ;;  %v4292_v4 = vld [vmem:[%s6256_s9 + $0x18c] ss:$16 sps:$4 sm:$0xff]   ;;  %v4295_v5 = vld [vmem:[%s6256_s9 + $0x164] ss:$16 sps:$4 sm:$0xff]   ;;  %v4299_v9 = vld [vmem:[%s6256_s9 + $0x140] ss:$16 sps:$4 sm:$0xff]  }
 0x1d3   :  { %1255 = vmatprep.subr.bf16.mxu1 %v4235_v13  ;;  %v4302_v10 = vld [vmem:[%s6256_s9 + $0x148] ss:$16 sps:$4 sm:$0xff]   ;;  %v4305_v13 = vld [vmem:[%s6256_s9 + $0x120] ss:$16 sps:$4 sm:$0xff]  }
 0x1d4   :  { %799 = vadd.xlane.f32.xlu0 %v798_v6  ;;  %1295 = vmatpush1.bf16.msra.mxu0 %v4230_v11  ;;  %v4298_v6 = vld [vmem:[%s6256_s9 + $0x16c] ss:$16 sps:$4 sm:$0xff]   ;;  %v4307_v11 = vld [vmem:[%s6256_s9 + $0x124] ss:$16 sps:$4 sm:$0xff]  }
 0x1d5   :  { %1296 = vmatprep.subr.bf16.mxu0 %v4238_v16  ;;  %v4313_v16 = vld [vmem:[%s6256_s9 + $0x104] ss:$16 sps:$4 sm:$0xff]  }
 0x1d6   :  { %1256 = vmatpush1.bf16.msra.mxu1 %v4233_v15  ;;  %v4308_v15 = vld [vmem:[%s6256_s9 + $0x128] ss:$16 sps:$4 sm:$0xff]  }
 0x1d7   :  { %1257 = vmatprep.subr.bf16.mxu1 %v4241_v18  ;;  %v4311_v18 = vld [vmem:[%s6256_s9 + $0x100] ss:$16 sps:$4 sm:$0xff]  }
 0x1d8   :  { %1297 = vmatpush1.bf16.msra.mxu0 %v4236_v17  ;;  %v4316_v17 = vld [vmem:[%s6256_s9 + $0x10c] ss:$16 sps:$4 sm:$0xff]  }
 0x1d9   :  { %1298 = vmatprep.subr.bf16.mxu0 %v4244_v19  ;;  %v4314_v19 = vld [vmem:[%s6256_s9 + $0x108] ss:$16 sps:$4 sm:$0xff]  }
 0x1da   :  { %1258 = vmatpush1.bf16.msra.mxu1 %v4239_v20  ;;  %v4319_v20 = vld [vmem:[%s6257_s11 + $0x74] ss:$8 sps:$4 sm:$0xff]  }
 0x1db   :  { %1259 = vmatprep.subr.bf16.mxu1 %v4247_v22 }
 0x1dc   :  { %1299 = vmatpush1.bf16.msra.mxu0 %v4242_v21  ;;  %v4322_v21 = vld [vmem:[%s6257_s11 + $0x174] ss:$8 sps:$4 sm:$0xff]  }
 0x1dd   :  { %1300 = vmatprep.subr.bf16.mxu0 %v4250_v23 }
 0x1de   :  { %1260 = vmatpush1.bf16.msra.mxu1 %v4245_v24 }
 0x1df   :  { %1261 = vmatprep.subr.bf16.mxu1 %v4253_v26  ;;  %v794_v26 = vld [vmem:[%s6259_s8] sm:$0x3] }
 0x1e0   :  { %1301 = vmatpush1.bf16.msra.mxu0 %v4248_v25  ;;  %v793_v25 = vld [vmem:[%s6258_s7] sm:$0x3] }
 0x1e1   :  { %1302 = vmatprep.subr.bf16.mxu0 %v4256_v27  ;;  %v821_v27 = vrot.slane %v793_v25, %v5094_v39 }
 0x1e2   :  { %1262 = vmatpush1.bf16.msra.mxu1 %v4251_v28  ;;  %v825_v28 = vrot.slane %v793_v25, %v5100_v41  ;;  %v4383_v25 = vld [vmem:[%s6257_s11 + $0xc0] ss:$8 sps:$4 sm:$0xff]  }
 0x1e3   :  { %1263 = vmatprep.subr.bf16.mxu1 %v4259_v30 }
 0x1e4   :  { %1303 = vmatpush1.bf16.msra.mxu0 %v4254_v29 }
 0x1e5   :  { %1304 = vmatprep.subr.bf16.mxu0 %v4262_v31  ;;  %v834_v31 = vrot.slane %v794_v26, %v5094_v39 }
 0x1e6   :  { %1264 = vmatpush1.bf16.msra.mxu1 %v4257_v32  ;;  %v838_v32 = vrot.slane %v794_v26, %v5100_v41  ;;  %v4386_v26 = vld [vmem:[%s6257_s11 + $0x1c0] ss:$8 sps:$4 sm:$0xff]  }
 0x1e7   :  { %1265 = vmatprep.subr.bf16.mxu1 %v4265_v34 }
 0x1e8   :  { %1305 = vmatpush1.bf16.msra.mxu0 %v4260_v33 }
 0x1e9   :  { %1306 = vmatprep.subr.bf16.mxu0 %v4268_v36 }
 0x1ea   :  { %1266 = vmatpush1.bf16.msra.mxu1 %v4263_v35 }
 0x1eb   :  { %1267 = vmatprep.subr.bf16.mxu1 %v4271_v40 }
 0x1ec   :  { %1307 = vmatpush1.bf16.msra.mxu0 %v4266_v37 }
 0x1ed   :  { %1308 = vmatprep.subr.bf16.mxu0 %v4274_v42 }
 0x1ee   :  { %1268 = vmatpush2.bf16.msra.mxu1 %v4269_v43  ;;  %v4317_v43 = vld [vmem:[%s6257_s11 + $0x70] ss:$8 sps:$4 sm:$0xff]  }
 0x1ef   :  { %1269 = vmatprep.subr.bf16.mxu1 %v4277_v45  ;;  %v4325_v45 = vld [vmem:[%s6257_s11 + $0x64] ss:$8 sps:$4 sm:$0xff]  }
 0x1f0   :  { %1309 = vmatpush2.bf16.msra.mxu0 %v4272_v44  ;;  %v4320_v44 = vld [vmem:[%s6257_s11 + $0x170] ss:$8 sps:$4 sm:$0xff]  }
 0x1f1   :  { %1310 = vmatprep.subr.bf16.mxu0 %v4280_v46  ;;  %v4328_v46 = vld [vmem:[%s6257_s11 + $0x164] ss:$8 sps:$4 sm:$0xff]  }
 0x1f2   :  { %1270 = vmatpush2.bf16.msra.mxu1 %v4275_v47  ;;  %v4323_v47 = vld [vmem:[%s6257_s11 + $0x60] ss:$8 sps:$4 sm:$0xff]  }
 0x1f3   :  { %1271 = vmatprep.subr.bf16.mxu1 %v4283_v61  ;;  %v4346_v61 = vld [vmem:[%s6257_s11 + $0x134] ss:$8 sps:$4 sm:$0xff]  }
 0x1f4   :  { %1311 = vmatpush2.bf16.msra.mxu0 %v4278_v48  ;;  %v4326_v48 = vld [vmem:[%s6257_s11 + $0x160] ss:$8 sps:$4 sm:$0xff]  }
 0x1f5   :  { %1312 = vmatprep.subr.bf16.mxu0 %v4286_v62  ;;  %v4341_v62 = vld [vmem:[%s6257_s11 + $0x30] ss:$8 sps:$4 sm:$0xff]  }
 0x1f8   :  { %1313 = vmatpush2.bf16.msra.mxu0 %v4284_v0  ;;  %v4349_v0 = vld [vmem:[%s6257_s11 + $0x24] ss:$8 sps:$4 sm:$0xff]  }
 0x1f9   :  { %1314 = vmatprep.subr.bf16.mxu0 %v4292_v4  ;;  %v4355_v4 = vld [vmem:[%s6257_s11 + $0x14] ss:$8 sps:$4 sm:$0xff]  }
 0x1fc   :  { %1315 = vmatpush2.bf16.msra.mxu0 %v4290_v3  ;;  %v4350_v3 = vld [vmem:[%s6257_s11 + $0x120] ss:$8 sps:$4 sm:$0xff]  }
 0x1fd   :  { %1316 = vmatprep.subr.bf16.mxu0 %v4298_v6  ;;  %v4353_v6 = vld [vmem:[%s6257_s11 + $0x10] ss:$8 sps:$4 sm:$0xff]  }
 0x200   :  { %1317 = vmatpush2.bf16.msra.mxu0 %v4296_v7  ;;  %v4361_v7 = vld [vmem:[%s6257_s11 + $0x4] ss:$8 sps:$4 sm:$0xff]  }
 0x201   :  { %1318 = vmatprep.subr.bf16.mxu0 %v4304_v8  ;;  %v4359_v8 = vld [vmem:[%s6257_s11] ss:$8 sps:$4 sm:$0xff]  }
 0x204   :  { %1319 = vmatpush2.bf16.msra.mxu0 %v4302_v10  ;;  %v4367_v10 = vld [vmem:[%s6257_s11 + $0xf4] ss:$8 sps:$4 sm:$0xff]  }
 0x205   :  { %1320 = vmatprep.subr.bf16.mxu0 %v4310_v12  ;;  %v4365_v12 = vld [vmem:[%s6257_s11 + $0xf0] ss:$8 sps:$4 sm:$0xff]  }
 0x208   :  { %1321 = vmatpush2.bf16.msra.mxu0 %v4308_v15  ;;  %v4373_v15 = vld [vmem:[%s6257_s11 + $0xe4] ss:$8 sps:$4 sm:$0xff]  }
 0x209   :  { %1322 = vmatprep.subr.bf16.mxu0 %v4316_v17  ;;  %v4371_v17 = vld [vmem:[%s6257_s11 + $0xe0] ss:$8 sps:$4 sm:$0xff]  }
 0x20c   :  { %1323 = vmatpush2.bf16.msra.mxu0 %v4314_v19  ;;  %v4379_v19 = vld [vmem:[%s6257_s11 + $0xd4] ss:$8 sps:$4 sm:$0xff]  }
 0x20d   :  { %1778 = vmatprep.subr.bf16.mxu0 %v4322_v21  ;;  %v4377_v21 = vld [vmem:[%s6257_s11 + $0xd0] ss:$8 sps:$4 sm:$0xff]  }
 0x25d   :  { %v800_v49 = vpop.xlane.xlu0 %799 }
 0x25e   :  { %v802_v50 = vmul.f32 0.00390625, %v800_v49  ;;  %v4331_v49 = vld [vmem:[%s6257_s11 + $0x54] ss:$8 sps:$4 sm:$0xff]  }
 0x260   :  { %v5244_v51 = vsub.f32 %v5114_v63, %v802_v50  ;;  %v5247_v55 = vsub.f32 %v5117_v2, %v802_v50  ;;  %v4281_v63 = vld [vmem:[%s6256_s9 + $0x1a0] ss:$16 sps:$4 sm:$0xff]   ;;  %v4289_v2 = vld [vmem:[%s6256_s9 + $0x184] ss:$16 sps:$4 sm:$0xff]  }
 0x261   :  { %1272 = vmatpush2.bf16.msra.mxu1 %v4281_v63  ;;  %v4334_v50 = vld [vmem:[%s6257_s11 + $0x154] ss:$8 sps:$4 sm:$0xff]   ;;  %v4344_v63 = vld [vmem:[%s6257_s11 + $0x130] ss:$8 sps:$4 sm:$0xff]  }
 0x262   :  { %v805_v56 = vmul.f32 %v5244_v51, %v5244_v51  ;;  %v806_v57 = vmul.f32 %v5247_v55, %v5247_v55  ;;  %1273 = vmatprep.subr.bf16.mxu1 %v4289_v2  ;;  %v4347_v2 = vld [vmem:[%s6257_s11 + $0x20] ss:$8 sps:$4 sm:$0xff]  }
 0x264   :  { %v807_v58 = vsel %vm795_vm0, %v805_v56, 0.0  ;;  %v808_v59 = vsel %vm795_vm0, %v806_v57, 0.0  ;;  %v4337_v56 = vld [vmem:[%s6257_s11 + $0x44] ss:$8 sps:$4 sm:$0xff]  }
 0x265   :  { %v809_v60 = vadd.f32 %v808_v59, %v807_v58  ;;  %1274 = vmatpush2.bf16.msra.mxu1 %v4287_v1  ;;  %v4340_v57 = vld [vmem:[%s6257_s11 + $0x144] ss:$8 sps:$4 sm:$0xff]   ;;  %v4335_v58 = vld [vmem:[%s6257_s11 + $0x40] ss:$8 sps:$4 sm:$0xff]  }
 0x266   :  { %1275 = vmatprep.subr.bf16.mxu1 %v4295_v5  ;;  %v4338_v59 = vld [vmem:[%s6257_s11 + $0x140] ss:$8 sps:$4 sm:$0xff]   ;;  %v4352_v1 = vld [vmem:[%s6257_s11 + $0x124] ss:$8 sps:$4 sm:$0xff]   ;;  %v4358_v5 = vld [vmem:[%s6257_s11 + $0x114] ss:$8 sps:$4 sm:$0xff]  }
 0x267   :  { %810 = vadd.xlane.f32.xlu0 %v809_v60  ;;  %v4343_v60 = vld [vmem:[%s6257_s11 + $0x34] ss:$8 sps:$4 sm:$0xff]  }
 0x269   :  { %1276 = vmatpush2.bf16.msra.mxu1 %v4293_v53  ;;  %v4356_v53 = vld [vmem:[%s6257_s11 + $0x110] ss:$8 sps:$4 sm:$0xff]  }
 0x26a   :  { %1277 = vmatprep.subr.bf16.mxu1 %v4301_v14  ;;  %v4364_v14 = vld [vmem:[%s6257_s11 + $0x104] ss:$8 sps:$4 sm:$0xff]  }
 0x26d   :  { %1278 = vmatpush2.bf16.msra.mxu1 %v4299_v9  ;;  %v4362_v9 = vld [vmem:[%s6257_s11 + $0x100] ss:$8 sps:$4 sm:$0xff]  }
 0x26e   :  { %1279 = vmatprep.subr.bf16.mxu1 %v4307_v11  ;;  %v4370_v11 = vld [vmem:[%s6257_s11 + $0x1f4] ss:$8 sps:$4 sm:$0xff]  }
 0x271   :  { %1280 = vmatpush2.bf16.msra.mxu1 %v4305_v13  ;;  %v4368_v13 = vld [vmem:[%s6257_s11 + $0x1f0] ss:$8 sps:$4 sm:$0xff]  }
 0x272   :  { %1281 = vmatprep.subr.bf16.mxu1 %v4313_v16  ;;  %v4376_v16 = vld [vmem:[%s6257_s11 + $0x1e4] ss:$8 sps:$4 sm:$0xff]  }
 0x275   :  { %1282 = vmatpush2.bf16.msra.mxu1 %v4311_v18  ;;  %v4374_v18 = vld [vmem:[%s6257_s11 + $0x1e0] ss:$8 sps:$4 sm:$0xff]  }
 0x276   :  { %1737 = vmatprep.subr.bf16.mxu1 %v4319_v20  ;;  %v4382_v20 = vld [vmem:[%s6257_s11 + $0x1d4] ss:$8 sps:$4 sm:$0xff]  }
 0x2f0   :  { %v811_v22 = vpop.xlane.xlu0 %810 }
 0x2f1   :  { %v812_v23 = vmul.f32 0.00390625, %v811_v22  ;;  %v4380_v22 = vld [vmem:[%s6257_s11 + $0x1d0] ss:$8 sps:$4 sm:$0xff]  }
 0x2f3   :  { %v813_v24 = vadd.f32 1e-05, %v812_v23  ;;  %v4385_v23 = vld [vmem:[%s6257_s11 + $0xc4] ss:$8 sps:$4 sm:$0xff]  }
 0x2f5   :  { %4701 = vrsqrt.f32 %v813_v24  ;;  %v4388_v24 = vld [vmem:[%s6257_s11 + $0x1c4] ss:$8 sps:$4 sm:$0xff]  }
 0x302   :  { %v4702_v29 = vpop.eup %4701 }
 0x303   :  { %v816_v30 = vmul.f32 %v4702_v29, %v5247_v55  ;;  %v815_v33 = vmul.f32 %v4702_v29, %v5244_v51  ;;  %v4329_v51 = vld [vmem:[%s6257_s11 + $0x50] ss:$8 sps:$4 sm:$0xff]  }
 0x304   :  { %v4332_v55 = vld [vmem:[%s6257_s11 + $0x150] ss:$8 sps:$4 sm:$0xff]  }
 0x305   :  { %v829_v34 = vmul.f32 %v825_v28, %v816_v30  ;;  %v828_v35 = vmul.f32 %v821_v27, %v815_v33  ;;  %v4391_v27 = vld [vmem:[%s6257_s11 + $0xb4] ss:$8 sps:$4 sm:$0xff]   ;;  %v4389_v29 = vld [vmem:[%s6257_s11 + $0xb0] ss:$8 sps:$4 sm:$0xff]   ;;  %v4395_v33 = vld [vmem:[%s6257_s11 + $0xa0] ss:$8 sps:$4 sm:$0xff]  }
 0x306   :  { %v4394_v28 = vld [vmem:[%s6257_s11 + $0x1b4] ss:$8 sps:$4 sm:$0xff]   ;;  %v4392_v30 = vld [vmem:[%s6257_s11 + $0x1b0] ss:$8 sps:$4 sm:$0xff]  }
 0x307   :  { %v5345_v36 = vadd.f32 %v838_v32, %v829_v34  ;;  %v5347_v37 = vadd.f32 %v834_v31, %v828_v35  ;;  %v4397_v31 = vld [vmem:[%s6257_s11 + $0xa4] ss:$8 sps:$4 sm:$0xff]   ;;  %v4398_v34 = vld [vmem:[%s6257_s11 + $0x1a0] ss:$8 sps:$4 sm:$0xff]   ;;  %v4403_v35 = vld [vmem:[%s6257_s11 + $0x94] ss:$8 sps:$4 sm:$0xff]  }
 0x308   :  { %v4400_v32 = vld [vmem:[%s6257_s11 + $0x1a4] ss:$8 sps:$4 sm:$0xff]  }
 0x309   :  { %v844_v40 = vpack.c.bf16 %v5345_v36, %v5345_v36  ;;  %v843_v42 = vpack.c.bf16 %v5347_v37, %v5347_v37 }
 0x30b   :  { %1283 = vmatprep.mubr.bf16.mxu1 %v844_v40  ;;  %1324 = vmatprep.mubr.bf16.mxu0 %v844_v40  ;;  %v4406_v40 = vld [vmem:[%s6257_s11 + $0x194] ss:$8 sps:$4 sm:$0xff]  }
 0x30c   :  { %1284 = vmatmul.mubr.bf16.vlgmr.msra.gmra.mxu1 %v843_v42  ;;  %1325 = vmatmul.mubr.bf16.vlgmr.msra.gmra.mxu0 %v843_v42  ;;  %v4401_v42 = vld [vmem:[%s6257_s11 + $0x90] ss:$8 sps:$4 sm:$0xff]  }
 0x30d   :  { %1738 = vmatpush1.bf16.msra.mxu1 %v4317_v43  ;;  %1779 = vmatpush1.bf16.msra.mxu0 %v4320_v44  ;;  %v4404_v43 = vld [vmem:[%s6257_s11 + $0x190] ss:$8 sps:$4 sm:$0xff]   ;;  %v4409_v44 = vld [vmem:[%s6257_s11 + $0x84] ss:$8 sps:$4 sm:$0xff]  }
 0x30e   :  { %1739 = vmatprep.subr.bf16.mxu1 %v4325_v45  ;;  %1780 = vmatprep.subr.bf16.mxu0 %v4328_v46  ;;  %v4412_v45 = vld [vmem:[%s6257_s11 + $0x184] ss:$8 sps:$4 sm:$0xff]   ;;  %v4407_v46 = vld [vmem:[%s6257_s11 + $0x80] ss:$8 sps:$4 sm:$0xff]  }
 0x311   :  { %1740 = vmatpush1.bf16.msra.mxu1 %v4323_v47  ;;  %1781 = vmatpush1.bf16.msra.mxu0 %v4326_v48  ;;  %v4410_v47 = vld [vmem:[%s6257_s11 + $0x180] ss:$8 sps:$4 sm:$0xff]   ;;  %v921_v48 = vsub.s32 2, %v5091_v38 }
 0x312   :  { %1741 = vmatprep.subr.bf16.mxu1 %v4331_v49  ;;  %1782 = vmatprep.subr.bf16.mxu0 %v4334_v50  ;;  %v909_v49 = vld [vmem:[%s6260_s10] sm:$0xf]  ;;  %v925_v50 = vsub.s32 3, %v5091_v38 }
 0x315   :  { %1742 = vmatpush1.bf16.msra.mxu1 %v4329_v51  ;;  %1783 = vmatpush1.bf16.msra.mxu0 %v4332_v55  ;;  %v914_v51 = vrot.slane %v909_v49, %v5094_v39  ;;  %v922_v55 = vrot.slane %v909_v49, %v921_v48 }
 0x316   :  { %1743 = vmatprep.subr.bf16.mxu1 %v4337_v56  ;;  %1784 = vmatprep.subr.bf16.mxu0 %v4340_v57  ;;  %v918_v56 = vrot.slane %v909_v49, %v5100_v41  ;;  %v926_v57 = vrot.slane %v909_v49, %v925_v50  ;;  %v4433_v49 = vld [vmem:[%s6250_s3 + $0x114] ss:$8 sps:$4 sm:$0xff]  }
 0x319   :  { %1744 = vmatpush1.bf16.msra.mxu1 %v4335_v58  ;;  %1785 = vmatpush1.bf16.msra.mxu0 %v4338_v59 }
 0x31a   :  { %1745 = vmatprep.subr.bf16.mxu1 %v4343_v60  ;;  %1786 = vmatprep.subr.bf16.mxu0 %v4346_v61 }
 0x31d   :  { %1746 = vmatpush1.bf16.msra.mxu1 %v4341_v62  ;;  %1787 = vmatpush1.bf16.msra.mxu0 %v4344_v63 }
 0x31e   :  { %1747 = vmatprep.subr.bf16.mxu1 %v4349_v0  ;;  %1788 = vmatprep.subr.bf16.mxu0 %v4352_v1 }
 0x321   :  { %1748 = vmatpush1.bf16.msra.mxu1 %v4347_v2  ;;  %1789 = vmatpush1.bf16.msra.mxu0 %v4350_v3 }
 0x322   :  { %1749 = vmatprep.subr.bf16.mxu1 %v4355_v4  ;;  %1790 = vmatprep.subr.bf16.mxu0 %v4358_v5 }
 0x325   :  { %1750 = vmatpush1.bf16.msra.mxu1 %v4353_v6  ;;  %1791 = vmatpush1.bf16.msra.mxu0 %v4356_v53 }
 0x326   :  { %1751 = vmatprep.subr.bf16.mxu1 %v4361_v7  ;;  %1792 = vmatprep.subr.bf16.mxu0 %v4364_v14 }
 0x329   :  { %1752 = vmatpush1.bf16.msra.mxu1 %v4359_v8  ;;  %1793 = vmatpush1.bf16.msra.mxu0 %v4362_v9 }
 0x32a   :  { %1753 = vmatprep.subr.bf16.mxu1 %v4367_v10  ;;  %1794 = vmatprep.subr.bf16.mxu0 %v4370_v11 }
 0x32d   :  { %1754 = vmatpush2.bf16.msra.mxu1 %v4365_v12  ;;  %1795 = vmatpush2.bf16.msra.mxu0 %v4368_v13  ;;  %v1405_v12 = vld [vmem:[%s6261_s12] sm:$0x3] }
 0x32e   :  { %1755 = vmatprep.subr.bf16.mxu1 %v4373_v15  ;;  %1796 = vmatprep.subr.bf16.mxu0 %v4376_v16  ;;  %v1410_v13 = vrot.slane %v1405_v12, %v5094_v39  ;;  %v1414_v15 = vrot.slane %v1405_v12, %v5100_v41  ;;  %v4457_v12 = vld [vmem:[%s6250_s3 + $0x194] ss:$8 sps:$4 sm:$0xff]  }
 0x331   :  { %1756 = vmatpush2.bf16.msra.mxu1 %v4371_v17  ;;  %1797 = vmatpush2.bf16.msra.mxu0 %v4374_v18 }
 0x332   :  { %1757 = vmatprep.subr.bf16.mxu1 %v4379_v19  ;;  %1798 = vmatprep.subr.bf16.mxu0 %v4382_v20 }
 0x335   :  { %1758 = vmatpush2.bf16.msra.mxu1 %v4377_v21  ;;  %1799 = vmatpush2.bf16.msra.mxu0 %v4380_v22 }
 0x336   :  { %1759 = vmatprep.subr.bf16.mxu1 %v4385_v23  ;;  %1800 = vmatprep.subr.bf16.mxu0 %v4388_v24 }
 0x339   :  { %1760 = vmatpush2.bf16.msra.mxu1 %v4383_v25  ;;  %1801 = vmatpush2.bf16.msra.mxu0 %v4386_v26 }
 0x33a   :  { %1761 = vmatprep.subr.bf16.mxu1 %v4391_v27  ;;  %1802 = vmatprep.subr.bf16.mxu0 %v4394_v28 }
 0x33d   :  { %1762 = vmatpush2.bf16.msra.mxu1 %v4389_v29  ;;  %1803 = vmatpush2.bf16.msra.mxu0 %v4392_v30 }
 0x33e   :  { %1763 = vmatprep.subr.bf16.mxu1 %v4397_v31  ;;  %1804 = vmatprep.subr.bf16.mxu0 %v4400_v32 }
 0x341   :  { %1764 = vmatpush2.bf16.msra.mxu1 %v4395_v33  ;;  %1805 = vmatpush2.bf16.msra.mxu0 %v4398_v34  ;;  %v4413_v33 = vld [vmem:[%s6250_s3 + $0x170] ss:$8 sps:$4 sm:$0xff]   ;;  %v4415_v34 = vld [vmem:[%s6250_s3 + $0x174] ss:$8 sps:$4 sm:$0xff]  }
 0x342   :  { %1765 = vmatprep.subr.bf16.mxu1 %v4403_v35  ;;  %1806 = vmatprep.subr.bf16.mxu0 %v4406_v40  ;;  %v4421_v35 = vld [vmem:[%s6250_s3 + $0x154] ss:$8 sps:$4 sm:$0xff]   ;;  %v4419_v40 = vld [vmem:[%s6250_s3 + $0x150] ss:$8 sps:$4 sm:$0xff]  }
 0x345   :  { %1766 = vmatpush2.bf16.msra.mxu1 %v4401_v42  ;;  %1807 = vmatpush2.bf16.msra.mxu0 %v4404_v43  ;;  %v4424_v42 = vld [vmem:[%s6250_s3 + $0x144] ss:$8 sps:$4 sm:$0xff]   ;;  %v4422_v43 = vld [vmem:[%s6250_s3 + $0x140] ss:$8 sps:$4 sm:$0xff]  }
 0x346   :  { %1767 = vmatprep.subr.bf16.mxu1 %v4409_v44  ;;  %1808 = vmatprep.subr.bf16.mxu0 %v4412_v45  ;;  %v4427_v44 = vld [vmem:[%s6250_s3 + $0x134] ss:$8 sps:$4 sm:$0xff]   ;;  %v4425_v45 = vld [vmem:[%s6250_s3 + $0x130] ss:$8 sps:$4 sm:$0xff]  }
 0x349   :  { %1768 = vmatpush2.bf16.msra.mxu1 %v4407_v46  ;;  %1809 = vmatpush2.bf16.msra.mxu0 %v4410_v47  ;;  %v4430_v46 = vld [vmem:[%s6250_s3 + $0x124] ss:$8 sps:$4 sm:$0xff]   ;;  %v4428_v47 = vld [vmem:[%s6250_s3 + $0x120] ss:$8 sps:$4 sm:$0xff]  }
 0x34a   :  { %2077 = vmatprep.subr.bf16.mxu1 %v4415_v34  ;;  %v4485_v34 = vld [vmem:[%s6253_s5 + $0x1f0] ss:$8 sps:$4 sm:$0xff]  }
 0x3cc   :  { %v1285_v58 = vpop.f32.mrf.mxu1  ;;  %v1326_v59 = vpop.f32.mrf.mxu0 }
 0x3cd   :  { %v1286_v60 = vadd.f32 %v1285_v58, %v914_v51  ;;  %v1327_v61 = vadd.f32 %v1326_v59, %v922_v55  ;;  %v4431_v51 = vld [vmem:[%s6250_s3 + $0x110] ss:$8 sps:$4 sm:$0xff]   ;;  %v4436_v55 = vld [vmem:[%s6250_s3 + $0x104] ss:$8 sps:$4 sm:$0xff]  }
 0x3ce   :  { %v1287_v62 = vpop.f32.mrf.mxu1  ;;  %v1328_v63 = vpop.f32.mrf.mxu0  ;;  %v4437_v58 = vld [vmem:[%s6250_s3 + $0x1f0] ss:$8 sps:$4 sm:$0xff]   ;;  %v4442_v59 = vld [vmem:[%s6250_s3 + $0x1e4] ss:$8 sps:$4 sm:$0xff]  }
 0x3cf   :  { %v1288_v0 = vadd.f32 %v1287_v62, %v918_v56  ;;  %v1329_v1 = vadd.f32 %v1328_v63, %v926_v57  ;;  %v1333_v2 = vmax.f32 %v1286_v60, 0.0  ;;  %v1335_v3 = vmax.f32 %v1327_v61, 0.0  ;;  %v4434_v56 = vld [vmem:[%s6250_s3 + $0x100] ss:$8 sps:$4 sm:$0xff]   ;;  %v4439_v57 = vld [vmem:[%s6250_s3 + $0x1f4] ss:$8 sps:$4 sm:$0xff]  }
 0x3d0   :  { %v1289_v4 = vpop.f32.mrf.mxu1  ;;  %v1330_v5 = vpop.f32.mrf.mxu0  ;;  %v4440_v60 = vld [vmem:[%s6250_s3 + $0x1e0] ss:$8 sps:$4 sm:$0xff]  }
 0x3d1   :  { %v1334_v6 = vmax.f32 %v1288_v0, 0.0  ;;  %v1336_v53 = vmax.f32 %v1329_v1, 0.0  ;;  %v1337_v10 = vpack.c.bf16 %v1333_v2, %v1333_v2  ;;  %v1339_v11 = vpack.c.bf16 %v1335_v3, %v1335_v3 }
 0x3d2   :  { %v1290_v7 = vpop.f32.mrf.mxu1  ;;  %v1331_v14 = vpop.f32.mrf.mxu0 }
 0x3d3   :  { %v1338_v8 = vpack.c.bf16 %v1334_v6, %v1334_v6  ;;  %v1340_v9 = vpack.c.bf16 %v1336_v53, %v1336_v53  ;;  %v4445_v6 = vld [vmem:[%s6250_s3 + $0x1d4] ss:$8 sps:$4 sm:$0xff]   ;;  %v4443_v53 = vld [vmem:[%s6250_s3 + $0x1d0] ss:$8 sps:$4 sm:$0xff]   ;;  %v4446_v7 = vld [vmem:[%s6250_s3 + $0x1c0] ss:$8 sps:$4 sm:$0xff]  }
 0x3d4   :  { %v4448_v14 = vld [vmem:[%s6250_s3 + $0x1c4] ss:$8 sps:$4 sm:$0xff]  }
 0x3d5   :  { %1769 = vmatprep.mubr.bf16.mxu1 %v1338_v8  ;;  %1810 = vmatprep.mubr.bf16.mxu0 %v1340_v9  ;;  %v4451_v8 = vld [vmem:[%s6250_s3 + $0x1b4] ss:$8 sps:$4 sm:$0xff]   ;;  %v4449_v9 = vld [vmem:[%s6250_s3 + $0x1b0] ss:$8 sps:$4 sm:$0xff]  }
 0x3d6   :  { %1770 = vmatmul.mubr.bf16.vlgmr.msra.gmra.mxu1 %v1337_v10  ;;  %1811 = vmatmul.mubr.bf16.vlgmr.msra.gmra.mxu0 %v1339_v11  ;;  %v4454_v10 = vld [vmem:[%s6250_s3 + $0x1a4] ss:$8 sps:$4 sm:$0xff]   ;;  %v4452_v11 = vld [vmem:[%s6250_s3 + $0x1a0] ss:$8 sps:$4 sm:$0xff]  }
 0x3d7   :  { %2078 = vmatpush1.bf16.msra.mxu1 %v4413_v33  ;;  %v4487_v33 = vld [vmem:[%s6253_s5 + $0x1f4] ss:$8 sps:$4 sm:$0xff]  }
 0x496   :  { %v1771_v16 = vpop.f32.mrf.mxu1  ;;  %v1812_v17 = vpop.f32.mrf.mxu0 }
 0x497   :  { %v1772_v18 = vadd.f32 %v1771_v16, %v1410_v13  ;;  %v4455_v13 = vld [vmem:[%s6250_s3 + $0x190] ss:$8 sps:$4 sm:$0xff]   ;;  %v4458_v16 = vld [vmem:[%s6250_s3 + $0x180] ss:$8 sps:$4 sm:$0xff]  }
 0x498   :  { %v1773_v19 = vpop.f32.mrf.mxu1  ;;  %v1814_v20 = vpop.f32.mrf.mxu0 }
 0x499   :  { %v1813_v21 = vadd.f32 %v1812_v17, %v1772_v18  ;;  %v1774_v22 = vadd.f32 %v1773_v19, %v1414_v15  ;;  %v4460_v15 = vld [vmem:[%s6250_s3 + $0x184] ss:$8 sps:$4 sm:$0xff]   ;;  %v4461_v17 = vld [vmem:[%s6253_s5 + $0x170] ss:$8 sps:$4 sm:$0xff]   ;;  %v4463_v18 = vld [vmem:[%s6253_s5 + $0x174] ss:$8 sps:$4 sm:$0xff]  }
 0x49a   :  { %v1775_v23 = vpop.f32.mrf.mxu1  ;;  %v1816_v24 = vpop.f32.mrf.mxu0  ;;  %v4466_v19 = vld [vmem:[%s6253_s5 + $0x164] ss:$8 sps:$4 sm:$0xff]   ;;  %2326 = vmatprep.subr.bf16.mxu0 %v4463_v18 }
 0x49b   :  { %v1819_v25 = vadd.f32 %v1813_v21, %v5347_v37  ;;  %v1815_v26 = vadd.f32 %v1814_v20, %v1774_v22  ;;  %v4418_v37 = vld [vmem:[%s6250_s3 + $0x164] ss:$8 sps:$4 sm:$0xff]   ;;  %2327 = vmatpush1.bf16.msra.mxu0 %v4461_v17  ;;  %v4464_v20 = vld [vmem:[%s6253_s5 + $0x160] ss:$8 sps:$4 sm:$0xff]   ;;  %v4469_v21 = vld [vmem:[%s6253_s5 + $0x154] ss:$8 sps:$4 sm:$0xff]  }
 0x49c   :  { %v1776_v27 = vpop.f32.mrf.mxu1  ;;  %v1817_v28 = vpop.f32.mrf.mxu0  ;;  %2079 = vmatprep.subr.bf16.mxu1 %v4418_v37  ;;  %2328 = vmatprep.subr.bf16.mxu0 %v4466_v19  ;;  %v4467_v22 = vld [vmem:[%s6253_s5 + $0x150] ss:$8 sps:$4 sm:$0xff]   ;;  %v4472_v23 = vld [vmem:[%s6253_s5 + $0x144] ss:$8 sps:$4 sm:$0xff]   ;;  %v4470_v24 = vld [vmem:[%s6253_s5 + $0x140] ss:$8 sps:$4 sm:$0xff]  }
 0x49d   :  { %v1820_v29 = vadd.f32 %v1815_v26, %v5345_v36  ;;  %v1823_v30 = vsel %vm795_vm0, %v1819_v25, 0.0  ;;  %v4416_v36 = vld [vmem:[%s6250_s3 + $0x160] ss:$8 sps:$4 sm:$0xff]   ;;  %v4473_v26 = vld [vmem:[%s6253_s5 + $0x130] ss:$8 sps:$4 sm:$0xff]  }
 0x49e   :  { %2080 = vmatpush1.bf16.msra.mxu1 %v4416_v36  ;;  %v4478_v27 = vld [vmem:[%s6253_s5 + $0x124] ss:$8 sps:$4 sm:$0xff]   ;;  %v4476_v28 = vld [vmem:[%s6253_s5 + $0x120] ss:$8 sps:$4 sm:$0xff]  }
 0x49f   :  { %v1824_v31 = vsel %vm795_vm0, %v1820_v29, 0.0  ;;  %2081 = vmatprep.subr.bf16.mxu1 %v4421_v35  ;;  %2329 = vmatpush1.bf16.msra.mxu0 %v4464_v20  ;;  %v4490_v37 = vld [vmem:[%s6253_s5 + $0x1e4] ss:$8 sps:$4 sm:$0xff]   ;;  %v4488_v36 = vld [vmem:[%s6253_s5 + $0x1e0] ss:$8 sps:$4 sm:$0xff]  }
 0x4a0   :  { %v1825_v32 = vadd.f32 %v1824_v31, %v1823_v30  ;;  %2330 = vmatprep.subr.bf16.mxu0 %v4469_v21  ;;  %v4479_v30 = vld [vmem:[%s6253_s5 + $0x110] ss:$8 sps:$4 sm:$0xff]   ;;  %v4484_v31 = vld [vmem:[%s6253_s5 + $0x104] ss:$8 sps:$4 sm:$0xff]   ;;  %v4493_v35 = vld [vmem:[%s6253_s5 + $0x1d4] ss:$8 sps:$4 sm:$0xff]  }
 0x4a1   :  { %v3782_v21 = vld [vmem:[%s6255_s6 + $0x2] sm:$0x3] }
 0x4a2   :  { %1826 = vadd.xlane.f32.xlu1 %v1825_v32  ;;  %2082 = vmatpush1.bf16.msra.mxu1 %v4419_v40  ;;  %v4482_v32 = vld [vmem:[%s6253_s5 + $0x100] ss:$8 sps:$4 sm:$0xff]   ;;  %v4491_v40 = vld [vmem:[%s6253_s5 + $0x1d0] ss:$8 sps:$4 sm:$0xff]  }
 0x4a3   :  { %2083 = vmatprep.subr.bf16.mxu1 %v4424_v42  ;;  %2331 = vmatpush1.bf16.msra.mxu0 %v4467_v22  ;;  %v4496_v42 = vld [vmem:[%s6253_s5 + $0x1c4] ss:$8 sps:$4 sm:$0xff]   ;;  %v2159_v22 = vrot.slane %v3782_v21, %v5094_v39 }
 0x4a4   :  { %2332 = vmatprep.subr.bf16.mxu0 %v4472_v23  ;;  %v2163_v23 = vrot.slane %v3782_v21, %v5100_v41 }
 0x4a6   :  { %2084 = vmatpush1.bf16.msra.mxu1 %v4422_v43  ;;  %v4494_v43 = vld [vmem:[%s6253_s5 + $0x1c0] ss:$8 sps:$4 sm:$0xff]  }
 0x4a7   :  { %2085 = vmatprep.subr.bf16.mxu1 %v4427_v44  ;;  %2333 = vmatpush1.bf16.msra.mxu0 %v4470_v24  ;;  %v4499_v44 = vld [vmem:[%s6253_s5 + $0x1b4] ss:$8 sps:$4 sm:$0xff]  }
 0x4aa   :  { %2086 = vmatpush1.bf16.msra.mxu1 %v4425_v45  ;;  %v4497_v45 = vld [vmem:[%s6253_s5 + $0x1b0] ss:$8 sps:$4 sm:$0xff]  }
 0x4ab   :  { %2087 = vmatprep.subr.bf16.mxu1 %v4430_v46  ;;  %v4502_v46 = vld [vmem:[%s6253_s5 + $0x1a4] ss:$8 sps:$4 sm:$0xff]  }
 0x4ae   :  { %2088 = vmatpush1.bf16.msra.mxu1 %v4428_v47  ;;  %v4500_v47 = vld [vmem:[%s6253_s5 + $0x1a0] ss:$8 sps:$4 sm:$0xff]  }
 0x4af   :  { %2089 = vmatprep.subr.bf16.mxu1 %v4433_v49 }
 0x4b2   :  { %2090 = vmatpush1.bf16.msra.mxu1 %v4431_v51 }
 0x4b3   :  { %2091 = vmatprep.subr.bf16.mxu1 %v4436_v55 }
 0x4b6   :  { %2092 = vmatpush1.bf16.msra.mxu1 %v4434_v56  ;;  %v1821_v56 = vld [vmem:[%s6262_s13] sm:$0x3] }
 0x4b7   :  { %2093 = vmatprep.subr.bf16.mxu1 %v4439_v57  ;;  %v1822_v57 = vld [vmem:[%s6263_s14] sm:$0x3] }
 0x4ba   :  { %2094 = vmatpush2.bf16.msra.mxu1 %v4437_v58  ;;  %v1847_v58 = vrot.slane %v1821_v56, %v5094_v39 }
 0x4bb   :  { %2095 = vmatprep.subr.bf16.mxu1 %v4442_v59  ;;  %v1851_v59 = vrot.slane %v1821_v56, %v5100_v41  ;;  %v4532_v56 = vld [vmem:[%s6256_s9 + $0x28c] ss:$16 sps:$4 sm:$0xff]  }
 0x4be   :  { %2096 = vmatpush2.bf16.msra.mxu1 %v4440_v60 }
 0x4bf   :  { %2097 = vmatprep.subr.bf16.mxu1 %v4445_v6 }
 0x4c2   :  { %2098 = vmatpush2.bf16.msra.mxu1 %v4443_v53 }
 0x4c3   :  { %2099 = vmatprep.subr.bf16.mxu1 %v4448_v14  ;;  %v4505_v14 = vld [vmem:[%s6253_s5 + $0x194] ss:$8 sps:$4 sm:$0xff]  }
 0x4c6   :  { %2100 = vmatpush2.bf16.msra.mxu1 %v4446_v7 }
 0x4c7   :  { %2101 = vmatprep.subr.bf16.mxu1 %v4451_v8  ;;  %v4506_v8 = vld [vmem:[%s6253_s5 + $0x180] ss:$8 sps:$4 sm:$0xff]  }
 0x4ca   :  { %2102 = vmatpush2.bf16.msra.mxu1 %v4449_v9  ;;  %v3717_v9 = vld [vmem:[%s6254_s4 + $0x2] sm:$0x3] }
 0x4cb   :  { %2103 = vmatprep.subr.bf16.mxu1 %v4454_v10  ;;  %v1910_v10 = vrot.slane %v3717_v9, %v5094_v39 }
 0x4ce   :  { %2104 = vmatpush2.bf16.msra.mxu1 %v4452_v11  ;;  %v1914_v11 = vrot.slane %v3717_v9, %v5100_v41  ;;  %v4559_v9 = vld [vmem:[%s6256_s9 + $0x3e4] ss:$16 sps:$4 sm:$0xff]  }
 0x4cf   :  { %2105 = vmatprep.subr.bf16.mxu1 %v4457_v12 }
 0x4d2   :  { %2106 = vmatpush2.bf16.msra.mxu1 %v4455_v13 }
 0x4d3   :  { %2107 = vmatprep.subr.bf16.mxu1 %v4460_v15 }
 0x4d6   :  { %2108 = vmatpush2.bf16.msra.mxu1 %v4458_v16 }
 0x52b   :  { %v1827_v61 = vpop.xlane.xlu1 %1826 }
 0x52c   :  { %v1828_v62 = vmul.f32 0.00390625, %v1827_v61 }
 0x52e   :  { %v5619_v63 = vsub.f32 %v1819_v25, %v1828_v62  ;;  %v5621_v0 = vsub.f32 %v1820_v29, %v1828_v62  ;;  %v4475_v25 = vld [vmem:[%s6253_s5 + $0x134] ss:$8 sps:$4 sm:$0xff]   ;;  %v1860_v62 = vrot.slane %v1822_v57, %v5094_v39 }
 0x52f   :  { %2334 = vmatprep.subr.bf16.mxu0 %v4475_v25  ;;  %v4481_v29 = vld [vmem:[%s6253_s5 + $0x114] ss:$8 sps:$4 sm:$0xff]  }
 0x530   :  { %v1831_v1 = vmul.f32 %v5619_v63, %v5619_v63  ;;  %v1832_v2 = vmul.f32 %v5621_v0, %v5621_v0  ;;  %2335 = vmatpush1.bf16.msra.mxu0 %v4473_v26 }
 0x531   :  { %2336 = vmatprep.subr.bf16.mxu0 %v4478_v27 }
 0x532   :  { %v1833_v3 = vsel %vm795_vm0, %v1831_v1, 0.0  ;;  %v1834_v4 = vsel %vm795_vm0, %v1832_v2, 0.0  ;;  %v1864_v1 = vrot.slane %v1822_v57, %v5100_v41  ;;  %v4527_v57 = vld [vmem:[%s6256_s9 + $0x280] ss:$16 sps:$4 sm:$0xff]  }
 0x533   :  { %v1835_v5 = vadd.f32 %v1834_v4, %v1833_v3 }
 0x534   :  { %2337 = vmatpush1.bf16.msra.mxu0 %v4476_v28 }
 0x535   :  { %1836 = vadd.xlane.f32.xlu1 %v1835_v5  ;;  %2338 = vmatprep.subr.bf16.mxu0 %v4481_v29 }
 0x538   :  { %2339 = vmatpush1.bf16.msra.mxu0 %v4479_v30 }
 0x539   :  { %2340 = vmatprep.subr.bf16.mxu0 %v4484_v31 }
 0x53c   :  { %2341 = vmatpush1.bf16.msra.mxu0 %v4482_v32 }
 0x53d   :  { %2342 = vmatprep.subr.bf16.mxu0 %v4487_v33 }
 0x540   :  { %2343 = vmatpush2.bf16.msra.mxu0 %v4485_v34 }
 0x541   :  { %2344 = vmatprep.subr.bf16.mxu0 %v4490_v37  ;;  %v4509_v37 = vld [vmem:[%s6256_s9 + $0x2e0] ss:$16 sps:$4 sm:$0xff]  }
 0x544   :  { %2345 = vmatpush2.bf16.msra.mxu0 %v4488_v36  ;;  %v4511_v36 = vld [vmem:[%s6256_s9 + $0x2e4] ss:$16 sps:$4 sm:$0xff]  }
 0x545   :  { %2346 = vmatprep.subr.bf16.mxu0 %v4493_v35  ;;  %v4512_v35 = vld [vmem:[%s6256_s9 + $0x2e8] ss:$16 sps:$4 sm:$0xff]   ;;  %2829 = vmatprep.subr.bf16.mxu1 %v4511_v36  ;;  %v4586_v36 = vld [vmem:[%s6256_s9 + $0x36c] ss:$16 sps:$4 sm:$0xff]  }
 0x548   :  { %2347 = vmatpush2.bf16.msra.mxu0 %v4491_v40  ;;  %v4514_v40 = vld [vmem:[%s6256_s9 + $0x2ec] ss:$16 sps:$4 sm:$0xff]  }
 0x549   :  { %2348 = vmatprep.subr.bf16.mxu0 %v4496_v42  ;;  %v4517_v42 = vld [vmem:[%s6256_s9 + $0x2c4] ss:$16 sps:$4 sm:$0xff]  }
 0x54c   :  { %2349 = vmatpush2.bf16.msra.mxu0 %v4494_v43  ;;  %v4520_v43 = vld [vmem:[%s6256_s9 + $0x2cc] ss:$16 sps:$4 sm:$0xff]  }
 0x54d   :  { %2350 = vmatprep.subr.bf16.mxu0 %v4499_v44  ;;  %v4515_v44 = vld [vmem:[%s6256_s9 + $0x2c0] ss:$16 sps:$4 sm:$0xff]  }
 0x550   :  { %2351 = vmatpush2.bf16.msra.mxu0 %v4497_v45  ;;  %v4518_v45 = vld [vmem:[%s6256_s9 + $0x2c8] ss:$16 sps:$4 sm:$0xff]  }
 0x551   :  { %2352 = vmatprep.subr.bf16.mxu0 %v4502_v46  ;;  %v4523_v46 = vld [vmem:[%s6256_s9 + $0x2a4] ss:$16 sps:$4 sm:$0xff]  }
 0x554   :  { %2353 = vmatpush2.bf16.msra.mxu0 %v4500_v47  ;;  %v4526_v47 = vld [vmem:[%s6256_s9 + $0x2ac] ss:$16 sps:$4 sm:$0xff]  }
 0x555   :  { %2354 = vmatprep.subr.bf16.mxu0 %v4505_v14  ;;  %v4553_v14 = vld [vmem:[%s6256_s9 + $0x204] ss:$16 sps:$4 sm:$0xff]  }
 0x5be   :  { %v1837_v49 = vpop.xlane.xlu1 %1836 }
 0x5bf   :  { %v1838_v51 = vmul.f32 0.00390625, %v1837_v49  ;;  %v4521_v49 = vld [vmem:[%s6256_s9 + $0x2a0] ss:$16 sps:$4 sm:$0xff]  }
 0x5c1   :  { %v1839_v55 = vadd.f32 1e-05, %v1838_v51  ;;  %v4524_v51 = vld [vmem:[%s6256_s9 + $0x2a8] ss:$16 sps:$4 sm:$0xff]  }
 0x5c3   :  { %4703 = vrsqrt.f32 %v1839_v55  ;;  %v4529_v55 = vld [vmem:[%s6256_s9 + $0x284] ss:$16 sps:$4 sm:$0xff]  }
 0x5d0   :  { %v4704_v60 = vpop.eup %4703 }
 0x5d1   :  { %v1842_v61 = vmul.f32 %v4704_v60, %v5621_v0  ;;  %v1841_v2 = vmul.f32 %v4704_v60, %v5619_v63  ;;  %v4503_v0 = vld [vmem:[%s6253_s5 + $0x190] ss:$8 sps:$4 sm:$0xff]   ;;  %v4508_v63 = vld [vmem:[%s6253_s5 + $0x184] ss:$8 sps:$4 sm:$0xff]  }
 0x5d2   :  { %2355 = vmatpush2.bf16.msra.mxu0 %v4503_v0  ;;  %v4538_v60 = vld [vmem:[%s6256_s9 + $0x26c] ss:$16 sps:$4 sm:$0xff]  }
 0x5d3   :  { %v1855_v3 = vmul.f32 %v1851_v59, %v1842_v61  ;;  %v1854_v4 = vmul.f32 %v1847_v58, %v1841_v2  ;;  %2356 = vmatprep.subr.bf16.mxu0 %v4508_v63  ;;  %v4530_v58 = vld [vmem:[%s6256_s9 + $0x288] ss:$16 sps:$4 sm:$0xff]   ;;  %v4535_v59 = vld [vmem:[%s6256_s9 + $0x264] ss:$16 sps:$4 sm:$0xff]   ;;  %v4533_v61 = vld [vmem:[%s6256_s9 + $0x260] ss:$16 sps:$4 sm:$0xff]  }
 0x5d4   :  { %v4544_v2 = vld [vmem:[%s6256_s9 + $0x24c] ss:$16 sps:$4 sm:$0xff]   ;;  %v4551_v63 = vld [vmem:[%s6256_s9 + $0x200] ss:$16 sps:$4 sm:$0xff]  }
 0x5d5   :  { %v1868_v5 = vadd.f32 %v1864_v1, %v1855_v3  ;;  %v1867_v6 = vadd.f32 %v1860_v62, %v1854_v4  ;;  %v4536_v62 = vld [vmem:[%s6256_s9 + $0x268] ss:$16 sps:$4 sm:$0xff]   ;;  %v4541_v1 = vld [vmem:[%s6256_s9 + $0x244] ss:$16 sps:$4 sm:$0xff]   ;;  %v4539_v3 = vld [vmem:[%s6256_s9 + $0x240] ss:$16 sps:$4 sm:$0xff]  }
 0x5d6   :  { %2357 = vmatpush2.bf16.msra.mxu0 %v4506_v8  ;;  %v4542_v4 = vld [vmem:[%s6256_s9 + $0x248] ss:$16 sps:$4 sm:$0xff]   ;;  %v4556_v0 = vld [vmem:[%s6256_s9 + $0x20c] ss:$16 sps:$4 sm:$0xff]  }
 0x5d7   :  { %v1870_v53 = vpack.c.bf16 %v1868_v5, %v1868_v5  ;;  %v1869_v7 = vpack.c.bf16 %v1867_v6, %v1867_v6  ;;  %2870 = vmatprep.subr.bf16.mxu0 %v4514_v40  ;;  %v4554_v8 = vld [vmem:[%s6256_s9 + $0x208] ss:$16 sps:$4 sm:$0xff]  }
 0x5d8   :  { %v4584_v40 = vld [vmem:[%s6256_s9 + $0x368] ss:$16 sps:$4 sm:$0xff]  }
 0x5d9   :  { %2109 = vmatprep.mubr.bf16.mxu1 %v1870_v53  ;;  %v4545_v53 = vld [vmem:[%s6256_s9 + $0x220] ss:$16 sps:$4 sm:$0xff]  }
 0x5da   :  { %2110 = vmatmul.mubr.bf16.vlgmr.msra.gmra.mxu1 %v1869_v7  ;;  %v4548_v7 = vld [vmem:[%s6256_s9 + $0x228] ss:$16 sps:$4 sm:$0xff]  }
 0x5db   :  { %2830 = vmatpush1.bf16.msra.mxu1 %v4509_v37  ;;  %v4583_v37 = vld [vmem:[%s6256_s9 + $0x364] ss:$16 sps:$4 sm:$0xff]  }
 0x5dc   :  { %2831 = vmatprep.subr.bf16.mxu1 %v4517_v42  ;;  %v4589_v42 = vld [vmem:[%s6256_s9 + $0x344] ss:$16 sps:$4 sm:$0xff]  }
 0x5df   :  { %2832 = vmatpush1.bf16.msra.mxu1 %v4515_v44  ;;  %v4587_v44 = vld [vmem:[%s6256_s9 + $0x340] ss:$16 sps:$4 sm:$0xff]  }
 0x5e0   :  { %2833 = vmatprep.subr.bf16.mxu1 %v4523_v46  ;;  %v4595_v46 = vld [vmem:[%s6256_s9 + $0x324] ss:$16 sps:$4 sm:$0xff]  }
 0x5e3   :  { %2834 = vmatpush1.bf16.msra.mxu1 %v4521_v49  ;;  %v4593_v49 = vld [vmem:[%s6256_s9 + $0x320] ss:$16 sps:$4 sm:$0xff]  }
 0x5e4   :  { %2835 = vmatprep.subr.bf16.mxu1 %v4529_v55  ;;  %v4601_v55 = vld [vmem:[%s6256_s9 + $0x304] ss:$16 sps:$4 sm:$0xff]  }
 0x5e7   :  { %2836 = vmatpush1.bf16.msra.mxu1 %v4527_v57  ;;  %v4599_v57 = vld [vmem:[%s6256_s9 + $0x300] ss:$16 sps:$4 sm:$0xff]  }
 0x5e8   :  { %2837 = vmatprep.subr.bf16.mxu1 %v4535_v59  ;;  %v4607_v59 = vld [vmem:[%s6257_s11 + $0x274] ss:$8 sps:$4 sm:$0xff]  }
 0x5eb   :  { %2838 = vmatpush1.bf16.msra.mxu1 %v4533_v61 }
 0x5ec   :  { %2839 = vmatprep.subr.bf16.mxu1 %v4541_v1 }
 0x5ef   :  { %2840 = vmatpush1.bf16.msra.mxu1 %v4539_v3  ;;  %v3816_v3 = vld [vmem:[%s6259_s8 + $0x2] sm:$0x3] }
 0x69a   :  { %v2111_v12 = vpop.f32.mrf.mxu1 }
 0x69b   :  { %v2112_v13 = vadd.f32 %v2111_v12, %v1910_v10  ;;  %v4562_v10 = vld [vmem:[%s6256_s9 + $0x3ec] ss:$16 sps:$4 sm:$0xff]   ;;  %v4560_v12 = vld [vmem:[%s6256_s9 + $0x3e8] ss:$16 sps:$4 sm:$0xff]  }
 0x69c   :  { %v2113_v15 = vpop.f32.mrf.mxu1 }
 0x69d   :  { %v2114_v16 = vadd.f32 %v2113_v15, %v1914_v11  ;;  %v2118_v19 = vpack.c.bf16 %v2112_v13, %v2112_v13  ;;  %v4557_v11 = vld [vmem:[%s6256_s9 + $0x3e0] ss:$16 sps:$4 sm:$0xff]   ;;  %v4565_v13 = vld [vmem:[%s6256_s9 + $0x3c4] ss:$16 sps:$4 sm:$0xff]   ;;  %v4568_v15 = vld [vmem:[%s6256_s9 + $0x3cc] ss:$16 sps:$4 sm:$0xff]  }
 0x69e   :  { %v2115_v17 = vpop.f32.mrf.mxu1 }
 0x69f   :  { %v2119_v18 = vpack.c.bf16 %v2114_v16, %v2114_v16  ;;  %v4563_v16 = vld [vmem:[%s6256_s9 + $0x3c0] ss:$16 sps:$4 sm:$0xff]   ;;  %v4566_v17 = vld [vmem:[%s6256_s9 + $0x3c8] ss:$16 sps:$4 sm:$0xff]  }
 0x6a0   :  { %v2116_v20 = vpop.f32.mrf.mxu1 }
 0x6a1   :  { %2358 = vmatprep.mubr.bf16.mxu0 %v2119_v18 }
 0x6a2   :  { %2359 = vmatmul.mubr.bf16.vlgmr.msra.gmra.mxu0 %v2118_v19 }
 0x6a3   :  { %2871 = vmatpush1.bf16.msra.mxu0 %v4512_v35  ;;  %v4581_v35 = vld [vmem:[%s6256_s9 + $0x360] ss:$16 sps:$4 sm:$0xff]  }
 0x6a4   :  { %2872 = vmatprep.subr.bf16.mxu0 %v4520_v43  ;;  %v4592_v43 = vld [vmem:[%s6256_s9 + $0x34c] ss:$16 sps:$4 sm:$0xff]  }
 0x6a7   :  { %2873 = vmatpush1.bf16.msra.mxu0 %v4518_v45  ;;  %v4590_v45 = vld [vmem:[%s6256_s9 + $0x348] ss:$16 sps:$4 sm:$0xff]  }
 0x6a8   :  { %2874 = vmatprep.subr.bf16.mxu0 %v4526_v47  ;;  %v4598_v47 = vld [vmem:[%s6256_s9 + $0x32c] ss:$16 sps:$4 sm:$0xff]  }
 0x6ab   :  { %2875 = vmatpush1.bf16.msra.mxu0 %v4524_v51  ;;  %v4596_v51 = vld [vmem:[%s6256_s9 + $0x328] ss:$16 sps:$4 sm:$0xff]  }
 0x6ac   :  { %2876 = vmatprep.subr.bf16.mxu0 %v4532_v56  ;;  %v4604_v56 = vld [vmem:[%s6256_s9 + $0x30c] ss:$16 sps:$4 sm:$0xff]  }
 0x6af   :  { %2877 = vmatpush1.bf16.msra.mxu0 %v4530_v58  ;;  %v4602_v58 = vld [vmem:[%s6256_s9 + $0x308] ss:$16 sps:$4 sm:$0xff]  }
 0x6b0   :  { %2878 = vmatprep.subr.bf16.mxu0 %v4538_v60  ;;  %v4610_v60 = vld [vmem:[%s6257_s11 + $0x374] ss:$8 sps:$4 sm:$0xff]  }
 0x6b3   :  { %2879 = vmatpush1.bf16.msra.mxu0 %v4536_v62 }
 0x6b4   :  { %2880 = vmatprep.subr.bf16.mxu0 %v4544_v2  ;;  %v3815_v2 = vld [vmem:[%s6258_s7 + $0x2] sm:$0x3] }
 0x6b7   :  { %2881 = vmatpush1.bf16.msra.mxu0 %v4542_v4  ;;  %v2397_v4 = vrot.slane %v3815_v2, %v5094_v39 }
 0x762   :  { %v2360_v24 = vpop.f32.mrf.mxu0 }
 0x763   :  { %v2361_v25 = vadd.f32 %v2360_v24, %v2159_v22 }
 0x764   :  { %v2362_v26 = vpop.f32.mrf.mxu0 }
 0x765   :  { %v5783_v27 = vadd.f32 %v2361_v25, %v1867_v6  ;;  %v2363_v28 = vadd.f32 %v2362_v26, %v2163_v23  ;;  %v4550_v6 = vld [vmem:[%s6256_s9 + $0x22c] ss:$16 sps:$4 sm:$0xff]  }
 0x766   :  { %v2364_v29 = vpop.f32.mrf.mxu0  ;;  %2882 = vmatprep.subr.bf16.mxu0 %v4550_v6 }
 0x767   :  { %v5785_v30 = vadd.f32 %v2363_v28, %v1868_v5  ;;  %v2373_v32 = vsel %vm795_vm0, %v5783_v27, 0.0  ;;  %v4547_v5 = vld [vmem:[%s6256_s9 + $0x224] ss:$16 sps:$4 sm:$0xff]   ;;  %2883 = vmatpush1.bf16.msra.mxu0 %v4548_v7  ;;  %v4574_v28 = vld [vmem:[%s6256_s9 + $0x3ac] ss:$16 sps:$4 sm:$0xff]   ;;  %v2410_v7 = vrot.slane %v3816_v3, %v5094_v39 }
 0x768   :  { %v2365_v31 = vpop.f32.mrf.mxu0  ;;  %2841 = vmatprep.subr.bf16.mxu1 %v4547_v5  ;;  %2884 = vmatprep.subr.bf16.mxu0 %v4556_v0  ;;  %v4569_v29 = vld [vmem:[%s6256_s9 + $0x3a0] ss:$16 sps:$4 sm:$0xff]   ;;  %v2401_v5 = vrot.slane %v3815_v2, %v5100_v41  ;;  %v4673_v2 = vld [vmem:[%s6257_s11 + $0x2c4] ss:$8 sps:$4 sm:$0xff]  }
 0x769   :  { %v2374_v33 = vsel %vm795_vm0, %v5785_v30, 0.0  ;;  %2842 = vmatpush1.bf16.msra.mxu1 %v4545_v53  ;;  %v4575_v31 = vld [vmem:[%s6256_s9 + $0x380] ss:$16 sps:$4 sm:$0xff]  }
 0x76a   :  { %v2375_v34 = vadd.f32 %v2374_v33, %v2373_v32  ;;  %2843 = vmatprep.subr.bf16.mxu1 %v4553_v14  ;;  %v4577_v32 = vld [vmem:[%s6256_s9 + $0x384] ss:$16 sps:$4 sm:$0xff]   ;;  %v4578_v33 = vld [vmem:[%s6256_s9 + $0x388] ss:$16 sps:$4 sm:$0xff]   ;;  %v2414_v14 = vrot.slane %v3816_v3, %v5100_v41 }
 0x76b   :  { %2885 = vmatpush1.bf16.msra.mxu0 %v4554_v8  ;;  %v4676_v3 = vld [vmem:[%s6257_s11 + $0x3c4] ss:$8 sps:$4 sm:$0xff]  }
 0x76c   :  { %2376 = vadd.xlane.f32.xlu0 %v2375_v34  ;;  %2886 = vmatprep.subr.bf16.mxu0 %v4562_v10  ;;  %v4580_v34 = vld [vmem:[%s6256_s9 + $0x38c] ss:$16 sps:$4 sm:$0xff]  }
 0x76d   :  { %2844 = vmatpush1.bf16.msra.mxu1 %v4551_v63 }
 0x76e   :  { %2845 = vmatprep.subr.bf16.mxu1 %v4559_v9 }
 0x76f   :  { %2887 = vmatpush2.bf16.msra.mxu0 %v4560_v12 }
 0x770   :  { %2888 = vmatprep.subr.bf16.mxu0 %v4568_v15  ;;  %v4608_v15 = vld [vmem:[%s6257_s11 + $0x370] ss:$8 sps:$4 sm:$0xff]  }
 0x771   :  { %2846 = vmatpush2.bf16.msra.mxu1 %v4557_v11 }
 0x772   :  { %2847 = vmatprep.subr.bf16.mxu1 %v4565_v13  ;;  %v4605_v13 = vld [vmem:[%s6257_s11 + $0x270] ss:$8 sps:$4 sm:$0xff]  }
 0x773   :  { %2889 = vmatpush2.bf16.msra.mxu0 %v4566_v17  ;;  %v4616_v17 = vld [vmem:[%s6257_s11 + $0x364] ss:$8 sps:$4 sm:$0xff]  }
 0x774   :  { %2890 = vmatprep.subr.bf16.mxu0 %v4574_v28  ;;  %v4631_v28 = vld [vmem:[%s6257_s11 + $0x234] ss:$8 sps:$4 sm:$0xff]  }
 0x775   :  { %2848 = vmatpush2.bf16.msra.mxu1 %v4563_v16  ;;  %v4613_v16 = vld [vmem:[%s6257_s11 + $0x264] ss:$8 sps:$4 sm:$0xff]  }
 0x7f5   :  { %v2377_v18 = vpop.xlane.xlu0 %2376 }
 0x7f6   :  { %v2378_v19 = vmul.f32 0.00390625, %v2377_v18  ;;  %v4611_v18 = vld [vmem:[%s6257_s11 + $0x260] ss:$8 sps:$4 sm:$0xff]  }
 0x7f8   :  { %v5912_v20 = vsub.f32 %v5783_v27, %v2378_v19  ;;  %v5915_v21 = vsub.f32 %v5785_v30, %v2378_v19  ;;  %v4571_v27 = vld [vmem:[%s6256_s9 + $0x3a4] ss:$16 sps:$4 sm:$0xff]   ;;  %v4572_v30 = vld [vmem:[%s6256_s9 + $0x3a8] ss:$16 sps:$4 sm:$0xff]  }
 0x7f9   :  { %2849 = vmatprep.subr.bf16.mxu1 %v4571_v27  ;;  %2891 = vmatpush2.bf16.msra.mxu0 %v4572_v30  ;;  %v4614_v19 = vld [vmem:[%s6257_s11 + $0x360] ss:$8 sps:$4 sm:$0xff]   ;;  %v4629_v30 = vld [vmem:[%s6257_s11 + $0x230] ss:$8 sps:$4 sm:$0xff]  }
 0x7fa   :  { %v2381_v22 = vmul.f32 %v5912_v20, %v5912_v20  ;;  %v2382_v23 = vmul.f32 %v5915_v21, %v5915_v21  ;;  %2850 = vmatpush2.bf16.msra.mxu1 %v4569_v29  ;;  %2892 = vmatprep.subr.bf16.mxu0 %v4580_v34  ;;  %v4626_v27 = vld [vmem:[%s6257_s11 + $0x340] ss:$8 sps:$4 sm:$0xff]   ;;  %v4634_v29 = vld [vmem:[%s6257_s11 + $0x334] ss:$8 sps:$4 sm:$0xff]  }
 0x7fb   :  { %2851 = vmatprep.subr.bf16.mxu1 %v4577_v32  ;;  %v4637_v32 = vld [vmem:[%s6257_s11 + $0x224] ss:$8 sps:$4 sm:$0xff]   ;;  %v4635_v34 = vld [vmem:[%s6257_s11 + $0x220] ss:$8 sps:$4 sm:$0xff]  }
 0x7fc   :  { %v2383_v24 = vsel %vm795_vm0, %v2381_v22, 0.0  ;;  %v2384_v25 = vsel %vm795_vm0, %v2382_v23, 0.0  ;;  %v4617_v22 = vld [vmem:[%s6257_s11 + $0x250] ss:$8 sps:$4 sm:$0xff]  }
 0x7fd   :  { %v2385_v26 = vadd.f32 %v2384_v25, %v2383_v24  ;;  %2893 = vmatpush2.bf16.msra.mxu0 %v4578_v33  ;;  %v4620_v23 = vld [vmem:[%s6257_s11 + $0x350] ss:$8 sps:$4 sm:$0xff]   ;;  %v4625_v24 = vld [vmem:[%s6257_s11 + $0x244] ss:$8 sps:$4 sm:$0xff]  }
 0x7fe   :  { %2852 = vmatpush2.bf16.msra.mxu1 %v4575_v31  ;;  %2894 = vmatprep.subr.bf16.mxu0 %v4586_v36  ;;  %v4628_v25 = vld [vmem:[%s6257_s11 + $0x344] ss:$8 sps:$4 sm:$0xff]   ;;  %v4632_v31 = vld [vmem:[%s6257_s11 + $0x330] ss:$8 sps:$4 sm:$0xff]   ;;  %v4643_v36 = vld [vmem:[%s6257_s11 + $0x214] ss:$8 sps:$4 sm:$0xff]  }
 0x7ff   :  { %2386 = vadd.xlane.f32.xlu1 %v2385_v26  ;;  %2853 = vmatprep.subr.bf16.mxu1 %v4583_v37  ;;  %v4623_v26 = vld [vmem:[%s6257_s11 + $0x240] ss:$8 sps:$4 sm:$0xff]   ;;  %v4640_v33 = vld [vmem:[%s6257_s11 + $0x324] ss:$8 sps:$4 sm:$0xff]  }
 0x800   :  { %v4638_v37 = vld [vmem:[%s6257_s11 + $0x320] ss:$8 sps:$4 sm:$0xff]  }
 0x801   :  { %2895 = vmatpush2.bf16.msra.mxu0 %v4584_v40  ;;  %v4641_v40 = vld [vmem:[%s6257_s11 + $0x210] ss:$8 sps:$4 sm:$0xff]  }
 0x802   :  { %2854 = vmatpush2.bf16.msra.mxu1 %v4581_v35  ;;  %2896 = vmatprep.subr.bf16.mxu0 %v4592_v43  ;;  %v4646_v35 = vld [vmem:[%s6257_s11 + $0x314] ss:$8 sps:$4 sm:$0xff]   ;;  %v4649_v43 = vld [vmem:[%s6257_s11 + $0x204] ss:$8 sps:$4 sm:$0xff]  }
 0x803   :  { %2855 = vmatprep.subr.bf16.mxu1 %v4589_v42  ;;  %v4644_v42 = vld [vmem:[%s6257_s11 + $0x310] ss:$8 sps:$4 sm:$0xff]  }
 0x805   :  { %2897 = vmatpush2.bf16.msra.mxu0 %v4590_v45  ;;  %v4647_v45 = vld [vmem:[%s6257_s11 + $0x200] ss:$8 sps:$4 sm:$0xff]  }
 0x806   :  { %2856 = vmatpush2.bf16.msra.mxu1 %v4587_v44  ;;  %2898 = vmatprep.subr.bf16.mxu0 %v4598_v47  ;;  %v4652_v44 = vld [vmem:[%s6257_s11 + $0x304] ss:$8 sps:$4 sm:$0xff]   ;;  %v4655_v47 = vld [vmem:[%s6257_s11 + $0x2f4] ss:$8 sps:$4 sm:$0xff]  }
 0x807   :  { %2857 = vmatprep.subr.bf16.mxu1 %v4595_v46  ;;  %v4650_v46 = vld [vmem:[%s6257_s11 + $0x300] ss:$8 sps:$4 sm:$0xff]  }
 0x809   :  { %2899 = vmatpush2.bf16.msra.mxu0 %v4596_v51  ;;  %v4653_v51 = vld [vmem:[%s6257_s11 + $0x2f0] ss:$8 sps:$4 sm:$0xff]  }
 0x80a   :  { %2858 = vmatpush2.bf16.msra.mxu1 %v4593_v49  ;;  %2900 = vmatprep.subr.bf16.mxu0 %v4604_v56  ;;  %v4658_v49 = vld [vmem:[%s6257_s11 + $0x3f4] ss:$8 sps:$4 sm:$0xff]   ;;  %v4661_v56 = vld [vmem:[%s6257_s11 + $0x2e4] ss:$8 sps:$4 sm:$0xff]  }
 0x80b   :  { %2859 = vmatprep.subr.bf16.mxu1 %v4601_v55  ;;  %v4656_v55 = vld [vmem:[%s6257_s11 + $0x3f0] ss:$8 sps:$4 sm:$0xff]  }
 0x80d   :  { %2901 = vmatpush2.bf16.msra.mxu0 %v4602_v58  ;;  %v4659_v58 = vld [vmem:[%s6257_s11 + $0x2e0] ss:$8 sps:$4 sm:$0xff]  }
 0x80e   :  { %2860 = vmatpush2.bf16.msra.mxu1 %v4599_v57  ;;  %3358 = vmatprep.subr.bf16.mxu0 %v4610_v60  ;;  %v4664_v57 = vld [vmem:[%s6257_s11 + $0x3e4] ss:$8 sps:$4 sm:$0xff]   ;;  %v4667_v60 = vld [vmem:[%s6257_s11 + $0x2d4] ss:$8 sps:$4 sm:$0xff]  }
 0x80f   :  { %3317 = vmatprep.subr.bf16.mxu1 %v4607_v59  ;;  %v4662_v59 = vld [vmem:[%s6257_s11 + $0x3e0] ss:$8 sps:$4 sm:$0xff]  }
 0x888   :  { %v2387_v61 = vpop.xlane.xlu1 %2386 }
 0x889   :  { %v2388_v62 = vmul.f32 0.00390625, %v2387_v61  ;;  %v4670_v61 = vld [vmem:[%s6257_s11 + $0x3d4] ss:$8 sps:$4 sm:$0xff]  }
 0x88b   :  { %v2389_v1 = vadd.f32 1e-05, %v2388_v62  ;;  %v4665_v62 = vld [vmem:[%s6257_s11 + $0x2d0] ss:$8 sps:$4 sm:$0xff]  }
 0x88d   :  { %4705 = vrsqrt.f32 %v2389_v1  ;;  %v4668_v1 = vld [vmem:[%s6257_s11 + $0x3d0] ss:$8 sps:$4 sm:$0xff]  }
 0x89a   :  { %v4706_v6 = vpop.eup %4705 }
 0x89b   :  { %v2392_v53 = vmul.f32 %v4706_v6, %v5915_v21  ;;  %v2391_v0 = vmul.f32 %v4706_v6, %v5912_v20  ;;  %v4619_v20 = vld [vmem:[%s6257_s11 + $0x254] ss:$8 sps:$4 sm:$0xff]  }
 0x89c   :  { %v4622_v21 = vld [vmem:[%s6257_s11 + $0x354] ss:$8 sps:$4 sm:$0xff]  }
 0x89d   :  { %v2405_v63 = vmul.f32 %v2401_v5, %v2392_v53  ;;  %v2404_v8 = vmul.f32 %v2397_v4, %v2391_v0  ;;  %v4671_v4 = vld [vmem:[%s6257_s11 + $0x2c0] ss:$8 sps:$4 sm:$0xff]   ;;  %v4679_v6 = vld [vmem:[%s6257_s11 + $0x2b4] ss:$8 sps:$4 sm:$0xff]   ;;  %v4685_v0 = vld [vmem:[%s6257_s11 + $0x2a4] ss:$8 sps:$4 sm:$0xff]  }
 0x89e   :  { %v4674_v5 = vld [vmem:[%s6257_s11 + $0x3c0] ss:$8 sps:$4 sm:$0xff]   ;;  %v4682_v53 = vld [vmem:[%s6257_s11 + $0x3b4] ss:$8 sps:$4 sm:$0xff]  }
 0x89f   :  { %v6013_v9 = vadd.f32 %v2414_v14, %v2405_v63  ;;  %v6015_v10 = vadd.f32 %v2410_v7, %v2404_v8  ;;  %v4677_v7 = vld [vmem:[%s6257_s11 + $0x2b0] ss:$8 sps:$4 sm:$0xff]   ;;  %v4688_v63 = vld [vmem:[%s6257_s11 + $0x3a4] ss:$8 sps:$4 sm:$0xff]   ;;  %v4683_v8 = vld [vmem:[%s6257_s11 + $0x2a0] ss:$8 sps:$4 sm:$0xff]  }
 0x8a0   :  { %v4680_v14 = vld [vmem:[%s6257_s11 + $0x3b0] ss:$8 sps:$4 sm:$0xff]  }
 0x8a1   :  { %v2420_v11 = vpack.c.bf16 %v6013_v9, %v6013_v9  ;;  %v2419_v12 = vpack.c.bf16 %v6015_v10, %v6015_v10 }
 0x8a3   :  { %2861 = vmatprep.mubr.bf16.mxu1 %v2420_v11  ;;  %2902 = vmatprep.mubr.bf16.mxu0 %v2420_v11  ;;  %v4686_v11 = vld [vmem:[%s6257_s11 + $0x3a0] ss:$8 sps:$4 sm:$0xff]  }
 0x8a4   :  { %2862 = vmatmul.mubr.bf16.vlgmr.msra.gmra.mxu1 %v2419_v12  ;;  %2903 = vmatmul.mubr.bf16.vlgmr.msra.gmra.mxu0 %v2419_v12  ;;  %v4691_v12 = vld [vmem:[%s6257_s11 + $0x294] ss:$8 sps:$4 sm:$0xff]  }
 0x8a5   :  { %3318 = vmatpush1.bf16.msra.mxu1 %v4605_v13  ;;  %3359 = vmatpush1.bf16.msra.mxu0 %v4608_v15  ;;  %v4694_v13 = vld [vmem:[%s6257_s11 + $0x394] ss:$8 sps:$4 sm:$0xff]   ;;  %v4689_v15 = vld [vmem:[%s6257_s11 + $0x290] ss:$8 sps:$4 sm:$0xff]  }
 0x8a6   :  { %3319 = vmatprep.subr.bf16.mxu1 %v4613_v16  ;;  %3360 = vmatprep.subr.bf16.mxu0 %v4616_v17  ;;  %v4692_v16 = vld [vmem:[%s6257_s11 + $0x390] ss:$8 sps:$4 sm:$0xff]   ;;  %v4697_v17 = vld [vmem:[%s6257_s11 + $0x284] ss:$8 sps:$4 sm:$0xff]  }
 0x8a9   :  { %3320 = vmatpush1.bf16.msra.mxu1 %v4611_v18  ;;  %3361 = vmatpush1.bf16.msra.mxu0 %v4614_v19  ;;  %v4700_v18 = vld [vmem:[%s6257_s11 + $0x384] ss:$8 sps:$4 sm:$0xff]   ;;  %v4695_v19 = vld [vmem:[%s6257_s11 + $0x280] ss:$8 sps:$4 sm:$0xff]  }
 0x8aa   :  { %3321 = vmatprep.subr.bf16.mxu1 %v4619_v20  ;;  %3362 = vmatprep.subr.bf16.mxu0 %v4622_v21  ;;  %v4698_v20 = vld [vmem:[%s6257_s11 + $0x380] ss:$8 sps:$4 sm:$0xff]   ;;  %v3881_v21 = vld [vmem:[%s6260_s10 + $0x4] sm:$0xf] }
 0x8ad   :  { %3322 = vmatpush1.bf16.msra.mxu1 %v4617_v22  ;;  %3363 = vmatpush1.bf16.msra.mxu0 %v4620_v23  ;;  %v2492_v22 = vrot.slane %v3881_v21, %v5094_v39  ;;  %v2500_v23 = vrot.slane %v3881_v21, %v921_v48 }
 0x8ae   :  { %3323 = vmatprep.subr.bf16.mxu1 %v4625_v24  ;;  %3364 = vmatprep.subr.bf16.mxu0 %v4628_v25  ;;  %v2496_v24 = vrot.slane %v3881_v21, %v5100_v41  ;;  %v2504_v25 = vrot.slane %v3881_v21, %v925_v50 }
 0x8b1   :  { %3324 = vmatpush1.bf16.msra.mxu1 %v4623_v26  ;;  %3365 = vmatpush1.bf16.msra.mxu0 %v4626_v27 }
 0x8b2   :  { %3325 = vmatprep.subr.bf16.mxu1 %v4631_v28  ;;  %3366 = vmatprep.subr.bf16.mxu0 %v4634_v29 }
 0x8b5   :  { %3326 = vmatpush1.bf16.msra.mxu1 %v4629_v30  ;;  %3367 = vmatpush1.bf16.msra.mxu0 %v4632_v31 }
 0x8b6   :  { %3327 = vmatprep.subr.bf16.mxu1 %v4637_v32  ;;  %3368 = vmatprep.subr.bf16.mxu0 %v4640_v33 }
 0x8b9   :  { %3328 = vmatpush1.bf16.msra.mxu1 %v4635_v34  ;;  %3369 = vmatpush1.bf16.msra.mxu0 %v4638_v37 }
 0x8ba   :  { %3329 = vmatprep.subr.bf16.mxu1 %v4643_v36  ;;  %3370 = vmatprep.subr.bf16.mxu0 %v4646_v35 }
 0x8bd   :  { %3330 = vmatpush1.bf16.msra.mxu1 %v4641_v40  ;;  %3371 = vmatpush1.bf16.msra.mxu0 %v4644_v42 }
 0x8be   :  { %3331 = vmatprep.subr.bf16.mxu1 %v4649_v43  ;;  %3372 = vmatprep.subr.bf16.mxu0 %v4652_v44 }
 0x8c1   :  { %3332 = vmatpush1.bf16.msra.mxu1 %v4647_v45  ;;  %3373 = vmatpush1.bf16.msra.mxu0 %v4650_v46  ;;  %v4010_v46 = vld [vmem:[%s6261_s12 + $0x2] sm:$0x3] }
 0x8c2   :  { %3333 = vmatprep.subr.bf16.mxu1 %v4655_v47  ;;  %3374 = vmatprep.subr.bf16.mxu0 %v4658_v49  ;;  %v2990_v47 = vrot.slane %v4010_v46, %v5094_v39  ;;  %v2994_v49 = vrot.slane %v4010_v46, %v5100_v41 }
 0x8c5   :  { %3334 = vmatpush2.bf16.msra.mxu1 %v4653_v51  ;;  %3375 = vmatpush2.bf16.msra.mxu0 %v4656_v55 }
 0x8c6   :  { %3335 = vmatprep.subr.bf16.mxu1 %v4661_v56  ;;  %3376 = vmatprep.subr.bf16.mxu0 %v4664_v57 }
 0x8c9   :  { %3336 = vmatpush2.bf16.msra.mxu1 %v4659_v58  ;;  %3377 = vmatpush2.bf16.msra.mxu0 %v4662_v59 }
 0x8ca   :  { %3337 = vmatprep.subr.bf16.mxu1 %v4667_v60  ;;  %3378 = vmatprep.subr.bf16.mxu0 %v4670_v61 }
 0x8cd   :  { %3338 = vmatpush2.bf16.msra.mxu1 %v4665_v62  ;;  %3379 = vmatpush2.bf16.msra.mxu0 %v4668_v1 }
 0x8ce   :  { %3339 = vmatprep.subr.bf16.mxu1 %v4673_v2  ;;  %3380 = vmatprep.subr.bf16.mxu0 %v4676_v3 }
 0x8d1   :  { %3340 = vmatpush2.bf16.msra.mxu1 %v4671_v4  ;;  %3381 = vmatpush2.bf16.msra.mxu0 %v4674_v5 }
 0x8d2   :  { %3341 = vmatprep.subr.bf16.mxu1 %v4679_v6  ;;  %3382 = vmatprep.subr.bf16.mxu0 %v4682_v53 }
 0x8d5   :  { %3342 = vmatpush2.bf16.msra.mxu1 %v4677_v7  ;;  %3383 = vmatpush2.bf16.msra.mxu0 %v4680_v14 }
 0x8d6   :  { %3343 = vmatprep.subr.bf16.mxu1 %v4685_v0  ;;  %3384 = vmatprep.subr.bf16.mxu0 %v4688_v63 }
 0x8d9   :  { %3344 = vmatpush2.bf16.msra.mxu1 %v4683_v8  ;;  %3385 = vmatpush2.bf16.msra.mxu0 %v4686_v11 }
 0x8da   :  { %3345 = vmatprep.subr.bf16.mxu1 %v4691_v12  ;;  %3386 = vmatprep.subr.bf16.mxu0 %v4694_v13 }
 0x8dd   :  { %3346 = vmatpush2.bf16.msra.mxu1 %v4689_v15  ;;  %3387 = vmatpush2.bf16.msra.mxu0 %v4692_v16 }
 0x8de   :  { %3347 = vmatprep.subr.bf16.mxu1 %v4697_v17  ;;  %3388 = vmatprep.subr.bf16.mxu0 %v4700_v18  ;;  %v4075_v18 = vld [vmem:[%s6262_s13 + $0x2] sm:$0x3] }
 0x8df   :  { %v3429_v21 = vrot.slane %v4075_v18, %v5094_v39 }
 0x8e1   :  { %3348 = vmatpush2.bf16.msra.mxu1 %v4695_v19  ;;  %3389 = vmatpush2.bf16.msra.mxu0 %v4698_v20  ;;  %v86_v19 = vld [vmem:[%s6264_s2] sm:$0x3]  ;;  %v4076_v20 = vld [vmem:[%s6263_s14 + $0x2] sm:$0x3] }
 0x964   :  { %v2863_v26 = vpop.f32.mrf.mxu1  ;;  %v2904_v27 = vpop.f32.mrf.mxu0 }
 0x965   :  { %v2864_v28 = vadd.f32 %v2863_v26, %v2492_v22  ;;  %v2905_v29 = vadd.f32 %v2904_v27, %v2500_v23  ;;  %v3433_v22 = vrot.slane %v4075_v18, %v5100_v41  ;;  %v3442_v26 = vrot.slane %v4076_v20, %v5094_v39 }
 0x966   :  { %v2865_v30 = vpop.f32.mrf.mxu1  ;;  %v2906_v31 = vpop.f32.mrf.mxu0  ;;  %v3446_v27 = vrot.slane %v4076_v20, %v5100_v41 }
 0x967   :  { %v2866_v32 = vadd.f32 %v2865_v30, %v2496_v24  ;;  %v2907_v33 = vadd.f32 %v2906_v31, %v2504_v25  ;;  %v2911_v34 = vmax.f32 %v2864_v28, 0.0  ;;  %v2913_v37 = vmax.f32 %v2905_v29, 0.0 }
 0x968   :  { %v2867_v36 = vpop.f32.mrf.mxu1  ;;  %v2908_v35 = vpop.f32.mrf.mxu0  ;;  %v91_v24 = vrot.slane %v86_v19, %v5094_v39  ;;  %v95_v25 = vrot.slane %v86_v19, %v5100_v41 }
 0x969   :  { %v2912_v40 = vmax.f32 %v2866_v32, 0.0  ;;  %v2914_v42 = vmax.f32 %v2907_v33, 0.0  ;;  %v2915_v38 = vpack.c.bf16 %v2911_v34, %v2911_v34  ;;  %v2917_v50 = vpack.c.bf16 %v2913_v37, %v2913_v37 }
 0x96a   :  { %v2868_v48 = vpop.f32.mrf.mxu1  ;;  %v2909_v43 = vpop.f32.mrf.mxu0  ;;  %v293_v32 = vadd.f32 %v5104_v52, %v91_v24  ;;  %v295_v33 = vadd.f32 %v5106_v54, %v95_v25 }
 0x96b   :  { %v2916_v44 = vpack.c.bf16 %v2912_v40, %v2912_v40  ;;  %v2918_v45 = vpack.c.bf16 %v2914_v42, %v2914_v42 }
 0x96d   :  { %3349 = vmatprep.mubr.bf16.mxu1 %v2916_v44  ;;  %3390 = vmatprep.mubr.bf16.mxu0 %v2918_v45 }
 0x96e   :  { %3350 = vmatmul.mubr.bf16.vlgmr.msra.gmra.mxu1 %v2915_v38  ;;  %3391 = vmatmul.mubr.bf16.vlgmr.msra.gmra.mxu0 %v2917_v50 }
 0xa2e   :  { %v3351_v51 = vpop.f32.mrf.mxu1  ;;  %v3392_v55 = vpop.f32.mrf.mxu0 }
 0xa2f   :  { %v3352_v56 = vadd.f32 %v3351_v51, %v2990_v47 }
 0xa30   :  { %v3353_v57 = vpop.f32.mrf.mxu1  ;;  %v3394_v58 = vpop.f32.mrf.mxu0 }
 0xa31   :  { %v3393_v59 = vadd.f32 %v3392_v55, %v3352_v56  ;;  %v3354_v60 = vadd.f32 %v3353_v57, %v2994_v49 }
 0xa32   :  { %v3355_v61 = vpop.f32.mrf.mxu1  ;;  %v3396_v62 = vpop.f32.mrf.mxu0 }
 0xa33   :  { %v3399_v1 = vadd.f32 %v3393_v59, %v6015_v10  ;;  %v3395_v2 = vadd.f32 %v3394_v58, %v3354_v60 }
 0xa34   :  { %v3356_v3 = vpop.f32.mrf.mxu1  ;;  %v3397_v4 = vpop.f32.mrf.mxu0 }
 0xa35   :  { %v3400_v5 = vadd.f32 %v3395_v2, %v6013_v9  ;;  %v3405_v6 = vsel %vm795_vm0, %v3399_v1, 0.0 }
 0xa37   :  { %v3406_v53 = vsel %vm795_vm0, %v3400_v5, 0.0 }
 0xa38   :  { %v3407_v7 = vadd.f32 %v3406_v53, %v3405_v6 }
 0xa3a   :  { %3408 = vadd.xlane.f32.xlu0 %v3407_v7 }
 0xac3   :  { %v3409_v14 = vpop.xlane.xlu0 %3408 }
 0xac4   :  { %v3410_v0 = vmul.f32 0.00390625, %v3409_v14 }
 0xac6   :  { %v3411_v63 = vsub.f32 %v3399_v1, %v3410_v0  ;;  %v3412_v8 = vsub.f32 %v3400_v5, %v3410_v0 }
 0xac8   :  { %v3413_v11 = vmul.f32 %v3411_v63, %v3411_v63  ;;  %v3414_v12 = vmul.f32 %v3412_v8, %v3412_v8 }
 0xaca   :  { %v3415_v13 = vsel %vm795_vm0, %v3413_v11, 0.0  ;;  %v3416_v10 = vsel %vm795_vm0, %v3414_v12, 0.0 }
 0xacb   :  { %v3417_v15 = vadd.f32 %v3416_v10, %v3415_v13 }
 0xacd   :  { %3418 = vadd.xlane.f32.xlu1 %v3417_v15 }
 0xb56   :  { %v3419_v16 = vpop.xlane.xlu1 %3418 }
 0xb57   :  { %v3420_v9 = vmul.f32 0.00390625, %v3419_v16 }
 0xb59   :  { %v3421_v17 = vadd.f32 1e-05, %v3420_v9 }
 0xb5b   :  { %4707 = vrsqrt.f32 %v3421_v17 }
 0xb68   :  { %v4708_v23 = vpop.eup %4707 }
 0xb69   :  { %v3423_v28 = vmul.f32 %v4708_v23, %v3411_v63  ;;  %v3424_v29 = vmul.f32 %v4708_v23, %v3412_v8 }
 0xb6b   :  { %v3436_v30 = vmul.f32 %v3429_v21, %v3423_v28  ;;  %v3437_v31 = vmul.f32 %v3433_v22, %v3424_v29 }
 0xb6d   :  { %v3449_v34 = vadd.f32 %v3442_v26, %v3436_v30  ;;  %v3450_v37 = vadd.f32 %v3446_v27, %v3437_v31 }
 0xb6f   :  { %v3451_v36 = vadd.f32 %v3449_v34, %v293_v32  ;;  %v3452_v35 = vadd.f32 %v3450_v37, %v295_v33 }
 0xb71   :  { %v3453_v40 = vmax.f32 %v3451_v36, 0.0  ;;  %v3454_v42 = vmax.f32 %v3452_v35, 0.0 }
 0xb73   :  { %3455 = vst [vmem:[%s6265_s15] sm:$0x3f] %v3453_v40  ;;  %3456 = vst [vmem:[%s6265_s15 + $0x8] sm:$0x3f] %v3454_v42 }

// kernel: metafluad_forward.21
= control target key start
LH: loop header
LB: loop body
LE: loop exit
PB: predicated region body
PF: predicated region fallthrough
CT: control target
= control target key end

     0   :  { %vm2007_vm6 = vcmask 1041408   ;;  %vm2026_vm9 = vcmask 7168   ;;  %vm2028_vm10 = vcmask 1024   ;;  %s3579_s1 = inlined_call_operand.vmem [shape: bf16[1024,512], index: 1, kind: input, shape index: {}]   ;;  %s3580_s0 = inlined_call_operand.vmem [shape: f32[10,1024], index: 0, kind: input, shape index: {}]   ;;  %s3581_s4 = inlined_call_operand.<no memory space> [shape: f32[1,1], index: 4, kind: input, shape index: {}]   ;;  %s3582_s2 = inlined_call_operand.vmem [shape: f32[1,512], index: 2, kind: input, shape index: {}]   ;;  %s3583_s3 = inlined_call_operand.vmem [shape: f32[1,512], index: 3, kind: input, shape index: {}]   ;;  %s3584_s5 = inlined_call_operand.vmem [shape: f32[10,1], index: 5, kind: output, shape index: {}]  }
   0x1   :  { %v2291_v0 = vld [vmem:[%s3579_s1 + $0xe4] ss:$16 sps:$4 sm:$0xff]   ;;  %v2295_v2 = vld [vmem:[%s3579_s1 + $0xe0] ss:$16 sps:$4 sm:$0xff]   ;;  %v23_v46 = vld [vmem:[%s3580_s0 + $0x8] sm:$0xff] }
   0x2   :  { %v2293_v1 = vld [vmem:[%s3579_s1 + $0x2e4] ss:$16 sps:$4 sm:$0xff]   ;;  %1604 = vmatprep.subr.bf16.mxu0 %v2291_v0  ;;  %v2296_v3 = vld [vmem:[%s3579_s1 + $0x2e0] ss:$16 sps:$4 sm:$0xff]   ;;  %v31_v47 = vld [vmem:[%s3580_s0 + $0x48] sm:$0x3] }
   0x3   :  { %1647 = vmatprep.subr.bf16.mxu1 %v2293_v1  ;;  %v2297_v4 = vld [vmem:[%s3579_s1 + $0xc4] ss:$16 sps:$4 sm:$0xff]   ;;  %1605 = vmatpush1.bf16.msra.mxu0 %v2295_v2  ;;  %v2301_v6 = vld [vmem:[%s3579_s1 + $0xc0] ss:$16 sps:$4 sm:$0xff]   ;;  %v25_v48 = vld [vmem:[%s3580_s0 + $0x18] sm:$0xff]  ;;  %v2864_v53 = vpack.c.bf16 %v31_v47, %v23_v46 }
   0x4   :  { %1648 = vmatpush1.bf16.msra.mxu1 %v2296_v3  ;;  %v2299_v5 = vld [vmem:[%s3579_s1 + $0x2c4] ss:$16 sps:$4 sm:$0xff]   ;;  %1606 = vmatprep.subr.bf16.mxu0 %v2297_v4  ;;  %v2302_v7 = vld [vmem:[%s3579_s1 + $0x2c0] ss:$16 sps:$4 sm:$0xff]   ;;  %v33_v49 = vld [vmem:[%s3580_s0 + $0x58] sm:$0x3] }
   0x5   :  { %1649 = vmatprep.subr.bf16.mxu1 %v2299_v5  ;;  %v2303_v8 = vld [vmem:[%s3579_s1 + $0xa4] ss:$16 sps:$4 sm:$0xff]   ;;  %v2307_v10 = vld [vmem:[%s3579_s1 + $0xa0] ss:$16 sps:$4 sm:$0xff]   ;;  %v2866_v54 = vpack.c.bf16 %v33_v49, %v25_v48  ;;  %1636 = vmatprep.mubr.bf16.mxu0 %v2864_v53  ;;  %v37_v46 = vld [vmem:[%s3580_s0 + $0x78] sm:$0x3] }
   0x6   :  { %v2305_v9 = vld [vmem:[%s3579_s1 + $0x2a4] ss:$16 sps:$4 sm:$0xff]   ;;  %v2308_v11 = vld [vmem:[%s3579_s1 + $0x2a0] ss:$16 sps:$4 sm:$0xff]  }
   0x7   :  { %1607 = vmatpush1.bf16.msra.mxu0 %v2301_v6  ;;  %v2309_v12 = vld [vmem:[%s3579_s1 + $0x84] ss:$16 sps:$4 sm:$0xff]   ;;  %v2313_v14 = vld [vmem:[%s3579_s1 + $0x80] ss:$16 sps:$4 sm:$0xff]   ;;  %1679 = vmatprep.mubr.bf16.mxu1 %v2866_v54 }
   0x8   :  { %1650 = vmatpush1.bf16.msra.mxu1 %v2302_v7  ;;  %1608 = vmatprep.subr.bf16.mxu0 %v2303_v8  ;;  %v2311_v13 = vld [vmem:[%s3579_s1 + $0x284] ss:$16 sps:$4 sm:$0xff]   ;;  %v2314_v15 = vld [vmem:[%s3579_s1 + $0x280] ss:$16 sps:$4 sm:$0xff]  }
   0x9   :  { %1651 = vmatprep.subr.bf16.mxu1 %v2305_v9  ;;  %v2315_v16 = vld [vmem:[%s3579_s1 + $0x64] ss:$16 sps:$4 sm:$0xff]   ;;  %v2319_v18 = vld [vmem:[%s3579_s1 + $0x60] ss:$16 sps:$4 sm:$0xff]  }
   0xa   :  { %v2317_v17 = vld [vmem:[%s3579_s1 + $0x264] ss:$16 sps:$4 sm:$0xff]   ;;  %v2320_v19 = vld [vmem:[%s3579_s1 + $0x260] ss:$16 sps:$4 sm:$0xff]  }
   0xb   :  { %1609 = vmatpush1.bf16.msra.mxu0 %v2307_v10  ;;  %v2321_v20 = vld [vmem:[%s3579_s1 + $0x44] ss:$16 sps:$4 sm:$0xff]   ;;  %v2325_v22 = vld [vmem:[%s3579_s1 + $0x40] ss:$16 sps:$4 sm:$0xff]  }
   0xc   :  { %1652 = vmatpush1.bf16.msra.mxu1 %v2308_v11  ;;  %1610 = vmatprep.subr.bf16.mxu0 %v2309_v12  ;;  %v2323_v21 = vld [vmem:[%s3579_s1 + $0x244] ss:$16 sps:$4 sm:$0xff]   ;;  %v2326_v23 = vld [vmem:[%s3579_s1 + $0x240] ss:$16 sps:$4 sm:$0xff]  }
   0xd   :  { %1653 = vmatprep.subr.bf16.mxu1 %v2311_v13  ;;  %v2327_v24 = vld [vmem:[%s3579_s1 + $0x24] ss:$16 sps:$4 sm:$0xff]   ;;  %v2331_v26 = vld [vmem:[%s3579_s1 + $0x20] ss:$16 sps:$4 sm:$0xff]  }
   0xe   :  { %v2329_v25 = vld [vmem:[%s3579_s1 + $0x224] ss:$16 sps:$4 sm:$0xff]   ;;  %v2332_v27 = vld [vmem:[%s3579_s1 + $0x220] ss:$16 sps:$4 sm:$0xff]  }
   0xf   :  { %1611 = vmatpush1.bf16.msra.mxu0 %v2313_v14  ;;  %v2333_v28 = vld [vmem:[%s3579_s1 + $0x4] ss:$16 sps:$4 sm:$0xff]   ;;  %v2337_v30 = vld [vmem:[%s3579_s1] ss:$16 sps:$4 sm:$0xff]  }
  0x10   :  { %1654 = vmatpush1.bf16.msra.mxu1 %v2314_v15  ;;  %1612 = vmatprep.subr.bf16.mxu0 %v2315_v16  ;;  %v2335_v29 = vld [vmem:[%s3579_s1 + $0x204] ss:$16 sps:$4 sm:$0xff]   ;;  %v2338_v31 = vld [vmem:[%s3579_s1 + $0x200] ss:$16 sps:$4 sm:$0xff]  }
  0x11   :  { %1655 = vmatprep.subr.bf16.mxu1 %v2317_v17  ;;  %v2339_v32 = vld [vmem:[%s3579_s1 + $0x1e4] ss:$16 sps:$4 sm:$0xff]   ;;  %v2343_v34 = vld [vmem:[%s3579_s1 + $0x1e0] ss:$16 sps:$4 sm:$0xff]  }
  0x12   :  { %v2341_v33 = vld [vmem:[%s3579_s1 + $0x3e4] ss:$16 sps:$4 sm:$0xff]   ;;  %v2344_v35 = vld [vmem:[%s3579_s1 + $0x3e0] ss:$16 sps:$4 sm:$0xff]  }
  0x13   :  { %1613 = vmatpush1.bf16.msra.mxu0 %v2319_v18  ;;  %v2345_v36 = vld [vmem:[%s3579_s1 + $0x1c4] ss:$16 sps:$4 sm:$0xff]   ;;  %v2349_v38 = vld [vmem:[%s3579_s1 + $0x1c0] ss:$16 sps:$4 sm:$0xff]  }
  0x14   :  { %1656 = vmatpush1.bf16.msra.mxu1 %v2320_v19  ;;  %1614 = vmatprep.subr.bf16.mxu0 %v2321_v20  ;;  %v2347_v37 = vld [vmem:[%s3579_s1 + $0x3c4] ss:$16 sps:$4 sm:$0xff]   ;;  %v2350_v39 = vld [vmem:[%s3579_s1 + $0x3c0] ss:$16 sps:$4 sm:$0xff]  }
  0x15   :  { %1657 = vmatprep.subr.bf16.mxu1 %v2323_v21  ;;  %v2351_v40 = vld [vmem:[%s3579_s1 + $0x1a4] ss:$16 sps:$4 sm:$0xff]   ;;  %v2355_v42 = vld [vmem:[%s3579_s1 + $0x1a0] ss:$16 sps:$4 sm:$0xff]  }
  0x16   :  { %v2353_v41 = vld [vmem:[%s3579_s1 + $0x3a4] ss:$16 sps:$4 sm:$0xff]   ;;  %v2356_v43 = vld [vmem:[%s3579_s1 + $0x3a0] ss:$16 sps:$4 sm:$0xff]  }
  0x17   :  { %1615 = vmatpush1.bf16.msra.mxu0 %v2325_v22  ;;  %v2357_v44 = vld [vmem:[%s3579_s1 + $0x184] ss:$16 sps:$4 sm:$0xff]   ;;  %v2361_v50 = vld [vmem:[%s3579_s1 + $0x180] ss:$16 sps:$4 sm:$0xff]  }
  0x18   :  { %1658 = vmatpush1.bf16.msra.mxu1 %v2326_v23  ;;  %1616 = vmatprep.subr.bf16.mxu0 %v2327_v24  ;;  %v2359_v45 = vld [vmem:[%s3579_s1 + $0x384] ss:$16 sps:$4 sm:$0xff]   ;;  %v2362_v51 = vld [vmem:[%s3579_s1 + $0x380] ss:$16 sps:$4 sm:$0xff]  }
  0x19   :  { %1659 = vmatprep.subr.bf16.mxu1 %v2329_v25  ;;  %v2363_v52 = vld [vmem:[%s3579_s1 + $0x164] ss:$16 sps:$4 sm:$0xff]   ;;  %v2367_v56 = vld [vmem:[%s3579_s1 + $0x160] ss:$16 sps:$4 sm:$0xff]  }
  0x1a   :  { %v2365_v55 = vld [vmem:[%s3579_s1 + $0x364] ss:$16 sps:$4 sm:$0xff]   ;;  %v2368_v57 = vld [vmem:[%s3579_s1 + $0x360] ss:$16 sps:$4 sm:$0xff]  }
  0x1b   :  { %1617 = vmatpush1.bf16.msra.mxu0 %v2331_v26  ;;  %v2369_v58 = vld [vmem:[%s3579_s1 + $0x144] ss:$16 sps:$4 sm:$0xff]   ;;  %v2373_v60 = vld [vmem:[%s3579_s1 + $0x140] ss:$16 sps:$4 sm:$0xff]  }
  0x1c   :  { %1660 = vmatpush1.bf16.msra.mxu1 %v2332_v27  ;;  %1618 = vmatprep.subr.bf16.mxu0 %v2333_v28  ;;  %v2371_v59 = vld [vmem:[%s3579_s1 + $0x344] ss:$16 sps:$4 sm:$0xff]   ;;  %v2374_v61 = vld [vmem:[%s3579_s1 + $0x340] ss:$16 sps:$4 sm:$0xff]  }
  0x1d   :  { %1661 = vmatprep.subr.bf16.mxu1 %v2335_v29  ;;  %v2375_v62 = vld [vmem:[%s3579_s1 + $0x124] ss:$16 sps:$4 sm:$0xff]   ;;  %v2379_v0 = vld [vmem:[%s3579_s1 + $0x120] ss:$16 sps:$4 sm:$0xff]  }
  0x1e   :  { %v2377_v63 = vld [vmem:[%s3579_s1 + $0x324] ss:$16 sps:$4 sm:$0xff]   ;;  %v2380_v1 = vld [vmem:[%s3579_s1 + $0x320] ss:$16 sps:$4 sm:$0xff]  }
  0x1f   :  { %1619 = vmatpush1.bf16.msra.mxu0 %v2337_v30  ;;  %v2381_v2 = vld [vmem:[%s3579_s1 + $0x104] ss:$16 sps:$4 sm:$0xff]   ;;  %v2385_v4 = vld [vmem:[%s3579_s1 + $0x100] ss:$16 sps:$4 sm:$0xff]  }
  0x20   :  { %1662 = vmatpush1.bf16.msra.mxu1 %v2338_v31  ;;  %1620 = vmatprep.subr.bf16.mxu0 %v2339_v32  ;;  %v2383_v3 = vld [vmem:[%s3579_s1 + $0x304] ss:$16 sps:$4 sm:$0xff]   ;;  %v2386_v5 = vld [vmem:[%s3579_s1 + $0x300] ss:$16 sps:$4 sm:$0xff]  }
  0x21   :  { %1663 = vmatprep.subr.bf16.mxu1 %v2341_v33  ;;  %v22_v6 = vld [vmem:[%s3580_s0] sm:$0xff]  ;;  %v24_v8 = vld [vmem:[%s3580_s0 + $0x10] sm:$0xff] }
  0x22   :  { %v30_v7 = vld [vmem:[%s3580_s0 + $0x40] sm:$0x3]  ;;  %v32_v9 = vld [vmem:[%s3580_s0 + $0x50] sm:$0x3]  ;;  %v2389_v10 = vld [vmem:[%s3579_s1 + $0x4e4] ss:$16 sps:$4 sm:$0xff]  }
  0x23   :  { %1621 = vmatpush2.bf16.msra.mxu0 %v2343_v34  ;;  %v2392_v11 = vld [vmem:[%s3579_s1 + $0x6e4] ss:$16 sps:$4 sm:$0xff]   ;;  %v2933_v12 = vpack.c.bf16 %v30_v7, %v22_v6  ;;  %v2935_v13 = vpack.c.bf16 %v32_v9, %v24_v8  ;;  %v2387_v14 = vld [vmem:[%s3579_s1 + $0x4e0] ss:$16 sps:$4 sm:$0xff]  }
  0x24   :  { %1664 = vmatpush2.bf16.msra.mxu1 %v2344_v35  ;;  %1622 = vmatprep.subr.bf16.mxu0 %v2345_v36  ;;  %v2390_v15 = vld [vmem:[%s3579_s1 + $0x6e0] ss:$16 sps:$4 sm:$0xff]   ;;  %v2395_v16 = vld [vmem:[%s3579_s1 + $0x4c4] ss:$16 sps:$4 sm:$0xff]  }
  0x25   :  { %1665 = vmatprep.subr.bf16.mxu1 %v2347_v37  ;;  %v2398_v17 = vld [vmem:[%s3579_s1 + $0x6c4] ss:$16 sps:$4 sm:$0xff]   ;;  %v2393_v18 = vld [vmem:[%s3579_s1 + $0x4c0] ss:$16 sps:$4 sm:$0xff]  }
  0x26   :  { %v2396_v19 = vld [vmem:[%s3579_s1 + $0x6c0] ss:$16 sps:$4 sm:$0xff]   ;;  %v2401_v20 = vld [vmem:[%s3579_s1 + $0x4a4] ss:$16 sps:$4 sm:$0xff]  }
  0x27   :  { %1623 = vmatpush2.bf16.msra.mxu0 %v2349_v38  ;;  %v2404_v21 = vld [vmem:[%s3579_s1 + $0x6a4] ss:$16 sps:$4 sm:$0xff]   ;;  %v2399_v22 = vld [vmem:[%s3579_s1 + $0x4a0] ss:$16 sps:$4 sm:$0xff]  }
  0x28   :  { %1666 = vmatpush2.bf16.msra.mxu1 %v2350_v39  ;;  %1624 = vmatprep.subr.bf16.mxu0 %v2351_v40  ;;  %v2402_v23 = vld [vmem:[%s3579_s1 + $0x6a0] ss:$16 sps:$4 sm:$0xff]   ;;  %v2407_v24 = vld [vmem:[%s3579_s1 + $0x484] ss:$16 sps:$4 sm:$0xff]   ;;  %v27_v40 = vld [vmem:[%s3580_s0 + $0x28] sm:$0xff] }
  0x29   :  { %1667 = vmatprep.subr.bf16.mxu1 %v2353_v41  ;;  %v2410_v25 = vld [vmem:[%s3579_s1 + $0x684] ss:$16 sps:$4 sm:$0xff]   ;;  %v2405_v26 = vld [vmem:[%s3579_s1 + $0x480] ss:$16 sps:$4 sm:$0xff]   ;;  %v35_v41 = vld [vmem:[%s3580_s0 + $0x68] sm:$0x3] }
  0x2a   :  { %v2408_v27 = vld [vmem:[%s3579_s1 + $0x680] ss:$16 sps:$4 sm:$0xff]   ;;  %v2413_v28 = vld [vmem:[%s3579_s1 + $0x464] ss:$16 sps:$4 sm:$0xff]  }
  0x2b   :  { %1625 = vmatpush2.bf16.msra.mxu0 %v2355_v42  ;;  %v2416_v29 = vld [vmem:[%s3579_s1 + $0x664] ss:$16 sps:$4 sm:$0xff]   ;;  %v2411_v30 = vld [vmem:[%s3579_s1 + $0x460] ss:$16 sps:$4 sm:$0xff]   ;;  %v29_v42 = vld [vmem:[%s3580_s0 + $0x38] sm:$0xff] }
  0x2c   :  { %1668 = vmatpush2.bf16.msra.mxu1 %v2356_v43  ;;  %1626 = vmatprep.subr.bf16.mxu0 %v2357_v44  ;;  %v2414_v31 = vld [vmem:[%s3579_s1 + $0x660] ss:$16 sps:$4 sm:$0xff]   ;;  %v2419_v32 = vld [vmem:[%s3579_s1 + $0x444] ss:$16 sps:$4 sm:$0xff]   ;;  %v3037_v47 = vpack.c.bf16 %v37_v46, %v29_v42  ;;  %v2509_v42 = vld [vmem:[%s3579_s1 + $0x6c] ss:$16 sps:$4 sm:$0xff]  }
  0x2d   :  { %1669 = vmatprep.subr.bf16.mxu1 %v2359_v45  ;;  %v2422_v33 = vld [vmem:[%s3579_s1 + $0x644] ss:$16 sps:$4 sm:$0xff]   ;;  %v2417_v34 = vld [vmem:[%s3579_s1 + $0x440] ss:$16 sps:$4 sm:$0xff]   ;;  %v3032_v45 = vpack.c.bf16 %v35_v41, %v27_v40  ;;  %v2503_v40 = vld [vmem:[%s3579_s1 + $0x8c] ss:$16 sps:$4 sm:$0xff]  }
  0x2e   :  { %v2420_v35 = vld [vmem:[%s3579_s1 + $0x640] ss:$16 sps:$4 sm:$0xff]   ;;  %v2425_v36 = vld [vmem:[%s3579_s1 + $0x424] ss:$16 sps:$4 sm:$0xff]   ;;  %v2504_v41 = vld [vmem:[%s3579_s1 + $0x288] ss:$16 sps:$4 sm:$0xff]  }
  0x2f   :  { %1627 = vmatpush2.bf16.msra.mxu0 %v2361_v50  ;;  %v2428_v37 = vld [vmem:[%s3579_s1 + $0x624] ss:$16 sps:$4 sm:$0xff]   ;;  %v2423_v38 = vld [vmem:[%s3579_s1 + $0x420] ss:$16 sps:$4 sm:$0xff]   ;;  %v2510_v46 = vld [vmem:[%s3579_s1 + $0x268] ss:$16 sps:$4 sm:$0xff]  }
  0x30   :  { %1670 = vmatpush2.bf16.msra.mxu1 %v2362_v51  ;;  %1628 = vmatprep.subr.bf16.mxu0 %v2363_v52  ;;  %v2426_v39 = vld [vmem:[%s3579_s1 + $0x620] ss:$16 sps:$4 sm:$0xff]   ;;  %v2431_v43 = vld [vmem:[%s3579_s1 + $0x404] ss:$16 sps:$4 sm:$0xff]  }
  0x31   :  { %1671 = vmatprep.subr.bf16.mxu1 %v2365_v55  ;;  %v2434_v44 = vld [vmem:[%s3579_s1 + $0x604] ss:$16 sps:$4 sm:$0xff]   ;;  %v2429_v48 = vld [vmem:[%s3579_s1 + $0x400] ss:$16 sps:$4 sm:$0xff]  }
  0x32   :  { %v2432_v49 = vld [vmem:[%s3579_s1 + $0x600] ss:$16 sps:$4 sm:$0xff]   ;;  %v2437_v50 = vld [vmem:[%s3579_s1 + $0x5e4] ss:$16 sps:$4 sm:$0xff]  }
  0x33   :  { %1629 = vmatpush2.bf16.msra.mxu0 %v2367_v56  ;;  %v2440_v51 = vld [vmem:[%s3579_s1 + $0x7e4] ss:$16 sps:$4 sm:$0xff]   ;;  %v2435_v52 = vld [vmem:[%s3579_s1 + $0x5e0] ss:$16 sps:$4 sm:$0xff]  }
  0x34   :  { %1672 = vmatpush2.bf16.msra.mxu1 %v2368_v57  ;;  %1630 = vmatprep.subr.bf16.mxu0 %v2369_v58  ;;  %v2438_v55 = vld [vmem:[%s3579_s1 + $0x7e0] ss:$16 sps:$4 sm:$0xff]   ;;  %v2443_v56 = vld [vmem:[%s3579_s1 + $0x5c4] ss:$16 sps:$4 sm:$0xff]  }
  0x35   :  { %1673 = vmatprep.subr.bf16.mxu1 %v2371_v59  ;;  %v2446_v57 = vld [vmem:[%s3579_s1 + $0x7c4] ss:$16 sps:$4 sm:$0xff]   ;;  %v2441_v58 = vld [vmem:[%s3579_s1 + $0x5c0] ss:$16 sps:$4 sm:$0xff]  }
  0x36   :  { %v2444_v59 = vld [vmem:[%s3579_s1 + $0x7c0] ss:$16 sps:$4 sm:$0xff]   ;;  %v2467_v8 = vld [vmem:[%s3579_s1 + $0x544] ss:$16 sps:$4 sm:$0xff]  }
  0x37   :  { %1631 = vmatpush2.bf16.msra.mxu0 %v2373_v60  ;;  %v2449_v60 = vld [vmem:[%s3579_s1 + $0x5a4] ss:$16 sps:$4 sm:$0xff]   ;;  %v2459_v6 = vld [vmem:[%s3579_s1 + $0x560] ss:$16 sps:$4 sm:$0xff]  }
  0x38   :  { %1674 = vmatpush2.bf16.msra.mxu1 %v2374_v61  ;;  %1632 = vmatprep.subr.bf16.mxu0 %v2375_v62  ;;  %v2452_v61 = vld [vmem:[%s3579_s1 + $0x7a4] ss:$16 sps:$4 sm:$0xff]   ;;  %v2447_v62 = vld [vmem:[%s3579_s1 + $0x5a0] ss:$16 sps:$4 sm:$0xff]  }
  0x39   :  { %1675 = vmatprep.subr.bf16.mxu1 %v2377_v63  ;;  %v2450_v63 = vld [vmem:[%s3579_s1 + $0x7a0] ss:$16 sps:$4 sm:$0xff]   ;;  %v2470_v9 = vld [vmem:[%s3579_s1 + $0x744] ss:$16 sps:$4 sm:$0xff]  }
  0x3a   :  { %v2462_v7 = vld [vmem:[%s3579_s1 + $0x760] ss:$16 sps:$4 sm:$0xff]  }
  0x3b   :  { %1633 = vmatpush2.bf16.msra.mxu0 %v2379_v0  ;;  %v2455_v0 = vld [vmem:[%s3579_s1 + $0x584] ss:$16 sps:$4 sm:$0xff]  }
  0x3c   :  { %1676 = vmatpush2.bf16.msra.mxu1 %v2380_v1  ;;  %1634 = vmatprep.subr.bf16.mxu0 %v2381_v2  ;;  %v2458_v1 = vld [vmem:[%s3579_s1 + $0x784] ss:$16 sps:$4 sm:$0xff]   ;;  %v2453_v2 = vld [vmem:[%s3579_s1 + $0x580] ss:$16 sps:$4 sm:$0xff]  }
  0x3d   :  { %1677 = vmatprep.subr.bf16.mxu1 %v2383_v3  ;;  %v2456_v3 = vld [vmem:[%s3579_s1 + $0x780] ss:$16 sps:$4 sm:$0xff]  }
  0x3f   :  { %1635 = vmatpush2.bf16.msra.mxu0 %v2385_v4  ;;  %v2461_v4 = vld [vmem:[%s3579_s1 + $0x564] ss:$16 sps:$4 sm:$0xff]  }
  0x40   :  { %1678 = vmatpush2.bf16.msra.mxu1 %v2386_v5  ;;  %1690 = vmatprep.subr.bf16.mxu0 %v2389_v10  ;;  %v2464_v5 = vld [vmem:[%s3579_s1 + $0x764] ss:$16 sps:$4 sm:$0xff]   ;;  %v2465_v10 = vld [vmem:[%s3579_s1 + $0x540] ss:$16 sps:$4 sm:$0xff]  }
  0x41   :  { %1733 = vmatprep.subr.bf16.mxu1 %v2392_v11  ;;  %v2468_v11 = vld [vmem:[%s3579_s1 + $0x740] ss:$16 sps:$4 sm:$0xff]  }
  0x42   :  { %1637 = vmatmul.mubr.bf16.vlgmr.msra.gmra.mxu0 %v2933_v12 }
  0x43   :  { %1680 = vmatmul.mubr.bf16.vlgmr.msra.gmra.mxu1 %v2935_v13  ;;  %1691 = vmatpush1.bf16.msra.mxu0 %v2387_v14  ;;  %v2473_v14 = vld [vmem:[%s3579_s1 + $0x524] ss:$16 sps:$4 sm:$0xff]  }
  0x44   :  { %1734 = vmatpush1.bf16.msra.mxu1 %v2390_v15  ;;  %1692 = vmatprep.subr.bf16.mxu0 %v2395_v16  ;;  %v2476_v15 = vld [vmem:[%s3579_s1 + $0x724] ss:$16 sps:$4 sm:$0xff]   ;;  %v2471_v16 = vld [vmem:[%s3579_s1 + $0x520] ss:$16 sps:$4 sm:$0xff]  }
  0x45   :  { %1735 = vmatprep.subr.bf16.mxu1 %v2398_v17  ;;  %1722 = vmatprep.mubr.bf16.mxu0 %v3032_v45  ;;  %v2474_v17 = vld [vmem:[%s3579_s1 + $0x720] ss:$16 sps:$4 sm:$0xff]  }
  0x46   :  { %1765 = vmatprep.mubr.bf16.mxu1 %v3037_v47 }
  0x47   :  { %1693 = vmatpush1.bf16.msra.mxu0 %v2393_v18  ;;  %v2479_v18 = vld [vmem:[%s3579_s1 + $0x504] ss:$16 sps:$4 sm:$0xff]  }
  0x48   :  { %1736 = vmatpush1.bf16.msra.mxu1 %v2396_v19  ;;  %1694 = vmatprep.subr.bf16.mxu0 %v2401_v20  ;;  %v2482_v19 = vld [vmem:[%s3579_s1 + $0x704] ss:$16 sps:$4 sm:$0xff]   ;;  %v2477_v20 = vld [vmem:[%s3579_s1 + $0x500] ss:$16 sps:$4 sm:$0xff]  }
  0x49   :  { %1737 = vmatprep.subr.bf16.mxu1 %v2404_v21  ;;  %v2480_v21 = vld [vmem:[%s3579_s1 + $0x700] ss:$16 sps:$4 sm:$0xff]  }
  0x4b   :  { %1695 = vmatpush1.bf16.msra.mxu0 %v2399_v22  ;;  %v26_v22 = vld [vmem:[%s3580_s0 + $0x20] sm:$0xff] }
  0x4c   :  { %1738 = vmatpush1.bf16.msra.mxu1 %v2402_v23  ;;  %1696 = vmatprep.subr.bf16.mxu0 %v2407_v24  ;;  %v34_v23 = vld [vmem:[%s3580_s0 + $0x60] sm:$0x3]  ;;  %v28_v24 = vld [vmem:[%s3580_s0 + $0x30] sm:$0xff] }
  0x4d   :  { %1739 = vmatprep.subr.bf16.mxu1 %v2410_v25  ;;  %v36_v25 = vld [vmem:[%s3580_s0 + $0x70] sm:$0x3] }
  0x4f   :  { %1697 = vmatpush1.bf16.msra.mxu0 %v2405_v26  ;;  %v2485_v26 = vld [vmem:[%s3579_s1 + $0xec] ss:$16 sps:$4 sm:$0xff]  }
  0x50   :  { %1740 = vmatpush1.bf16.msra.mxu1 %v2408_v27  ;;  %1698 = vmatprep.subr.bf16.mxu0 %v2413_v28  ;;  %v2488_v27 = vld [vmem:[%s3579_s1 + $0x2ec] ss:$16 sps:$4 sm:$0xff]   ;;  %v3161_v28 = vpack.c.bf16 %v34_v23, %v26_v22  ;;  %v2561_v22 = vld [vmem:[%s3579_s1 + $0x148] ss:$16 sps:$4 sm:$0xff]  }
  0x51   :  { %1741 = vmatprep.subr.bf16.mxu1 %v2416_v29  ;;  %v3163_v29 = vpack.c.bf16 %v36_v25, %v28_v24  ;;  %v2564_v23 = vld [vmem:[%s3579_s1 + $0x348] ss:$16 sps:$4 sm:$0xff]   ;;  %v2569_v24 = vld [vmem:[%s3579_s1 + $0x12c] ss:$16 sps:$4 sm:$0xff]  }
  0x52   :  { %v2572_v25 = vld [vmem:[%s3579_s1 + $0x32c] ss:$16 sps:$4 sm:$0xff]  }
  0x53   :  { %1699 = vmatpush1.bf16.msra.mxu0 %v2411_v30  ;;  %v2483_v30 = vld [vmem:[%s3579_s1 + $0xe8] ss:$16 sps:$4 sm:$0xff]  }
  0x54   :  { %1742 = vmatpush1.bf16.msra.mxu1 %v2414_v31  ;;  %1700 = vmatprep.subr.bf16.mxu0 %v2419_v32  ;;  %v2486_v31 = vld [vmem:[%s3579_s1 + $0x2e8] ss:$16 sps:$4 sm:$0xff]   ;;  %v2491_v32 = vld [vmem:[%s3579_s1 + $0xcc] ss:$16 sps:$4 sm:$0xff]  }
  0x55   :  { %1743 = vmatprep.subr.bf16.mxu1 %v2422_v33  ;;  %v2494_v33 = vld [vmem:[%s3579_s1 + $0x2cc] ss:$16 sps:$4 sm:$0xff]  }
  0x57   :  { %1701 = vmatpush1.bf16.msra.mxu0 %v2417_v34  ;;  %v2489_v34 = vld [vmem:[%s3579_s1 + $0xc8] ss:$16 sps:$4 sm:$0xff]  }
  0x58   :  { %1744 = vmatpush1.bf16.msra.mxu1 %v2420_v35  ;;  %1702 = vmatprep.subr.bf16.mxu0 %v2425_v36  ;;  %v2492_v35 = vld [vmem:[%s3579_s1 + $0x2c8] ss:$16 sps:$4 sm:$0xff]   ;;  %v2497_v36 = vld [vmem:[%s3579_s1 + $0xac] ss:$16 sps:$4 sm:$0xff]  }
  0x59   :  { %1745 = vmatprep.subr.bf16.mxu1 %v2428_v37  ;;  %v2500_v37 = vld [vmem:[%s3579_s1 + $0x2ac] ss:$16 sps:$4 sm:$0xff]  }
  0x5b   :  { %1703 = vmatpush1.bf16.msra.mxu0 %v2423_v38  ;;  %v2495_v38 = vld [vmem:[%s3579_s1 + $0xa8] ss:$16 sps:$4 sm:$0xff]  }
  0x5c   :  { %1746 = vmatpush1.bf16.msra.mxu1 %v2426_v39  ;;  %1704 = vmatprep.subr.bf16.mxu0 %v2431_v43  ;;  %v2498_v39 = vld [vmem:[%s3579_s1 + $0x2a8] ss:$16 sps:$4 sm:$0xff]   ;;  %v2512_v43 = vld [vmem:[%s3579_s1 + $0x26c] ss:$16 sps:$4 sm:$0xff]  }
  0x5d   :  { %1747 = vmatprep.subr.bf16.mxu1 %v2434_v44  ;;  %v2507_v44 = vld [vmem:[%s3579_s1 + $0x68] ss:$16 sps:$4 sm:$0xff]  }
  0x5f   :  { %1705 = vmatpush1.bf16.msra.mxu0 %v2429_v48  ;;  %v2515_v48 = vld [vmem:[%s3579_s1 + $0x4c] ss:$16 sps:$4 sm:$0xff]  }
  0x60   :  { %1748 = vmatpush1.bf16.msra.mxu1 %v2432_v49  ;;  %1706 = vmatprep.subr.bf16.mxu0 %v2437_v50  ;;  %v2518_v49 = vld [vmem:[%s3579_s1 + $0x24c] ss:$16 sps:$4 sm:$0xff]   ;;  %v2513_v50 = vld [vmem:[%s3579_s1 + $0x48] ss:$16 sps:$4 sm:$0xff]  }
  0x61   :  { %1749 = vmatprep.subr.bf16.mxu1 %v2440_v51  ;;  %v2516_v51 = vld [vmem:[%s3579_s1 + $0x248] ss:$16 sps:$4 sm:$0xff]  }
  0x63   :  { %1707 = vmatpush2.bf16.msra.mxu0 %v2435_v52  ;;  %v2521_v52 = vld [vmem:[%s3579_s1 + $0x2c] ss:$16 sps:$4 sm:$0xff]  }
  0x64   :  { %1750 = vmatpush2.bf16.msra.mxu1 %v2438_v55  ;;  %1708 = vmatprep.subr.bf16.mxu0 %v2443_v56  ;;  %v2524_v55 = vld [vmem:[%s3579_s1 + $0x22c] ss:$16 sps:$4 sm:$0xff]   ;;  %v2519_v56 = vld [vmem:[%s3579_s1 + $0x28] ss:$16 sps:$4 sm:$0xff]  }
  0x65   :  { %1751 = vmatprep.subr.bf16.mxu1 %v2446_v57  ;;  %v2522_v57 = vld [vmem:[%s3579_s1 + $0x228] ss:$16 sps:$4 sm:$0xff]  }
  0x67   :  { %1709 = vmatpush2.bf16.msra.mxu0 %v2441_v58  ;;  %v2527_v58 = vld [vmem:[%s3579_s1 + $0xc] ss:$16 sps:$4 sm:$0xff]  }
  0x68   :  { %1752 = vmatpush2.bf16.msra.mxu1 %v2444_v59  ;;  %1710 = vmatprep.subr.bf16.mxu0 %v2449_v60  ;;  %v2530_v59 = vld [vmem:[%s3579_s1 + $0x20c] ss:$16 sps:$4 sm:$0xff]   ;;  %v2525_v60 = vld [vmem:[%s3579_s1 + $0x8] ss:$16 sps:$4 sm:$0xff]  }
  0x69   :  { %1753 = vmatprep.subr.bf16.mxu1 %v2452_v61  ;;  %v2528_v61 = vld [vmem:[%s3579_s1 + $0x208] ss:$16 sps:$4 sm:$0xff]  }
  0x6b   :  { %1711 = vmatpush2.bf16.msra.mxu0 %v2447_v62  ;;  %v2533_v62 = vld [vmem:[%s3579_s1 + $0x1ec] ss:$16 sps:$4 sm:$0xff]  }
  0x6c   :  { %1754 = vmatpush2.bf16.msra.mxu1 %v2450_v63  ;;  %1712 = vmatprep.subr.bf16.mxu0 %v2455_v0  ;;  %v2536_v63 = vld [vmem:[%s3579_s1 + $0x3ec] ss:$16 sps:$4 sm:$0xff]   ;;  %v2531_v0 = vld [vmem:[%s3579_s1 + $0x1e8] ss:$16 sps:$4 sm:$0xff]  }
  0x6d   :  { %1755 = vmatprep.subr.bf16.mxu1 %v2458_v1  ;;  %v2534_v1 = vld [vmem:[%s3579_s1 + $0x3e8] ss:$16 sps:$4 sm:$0xff]  }
  0x6f   :  { %1713 = vmatpush2.bf16.msra.mxu0 %v2453_v2  ;;  %v2539_v2 = vld [vmem:[%s3579_s1 + $0x1cc] ss:$16 sps:$4 sm:$0xff]  }
  0x70   :  { %1756 = vmatpush2.bf16.msra.mxu1 %v2456_v3  ;;  %1714 = vmatprep.subr.bf16.mxu0 %v2461_v4  ;;  %v2542_v3 = vld [vmem:[%s3579_s1 + $0x3cc] ss:$16 sps:$4 sm:$0xff]   ;;  %v2537_v4 = vld [vmem:[%s3579_s1 + $0x1c8] ss:$16 sps:$4 sm:$0xff]  }
  0x71   :  { %1757 = vmatprep.subr.bf16.mxu1 %v2464_v5  ;;  %v2540_v5 = vld [vmem:[%s3579_s1 + $0x3c8] ss:$16 sps:$4 sm:$0xff]  }
  0x73   :  { %1715 = vmatpush2.bf16.msra.mxu0 %v2459_v6  ;;  %v2545_v6 = vld [vmem:[%s3579_s1 + $0x1ac] ss:$16 sps:$4 sm:$0xff]  }
  0x74   :  { %1758 = vmatpush2.bf16.msra.mxu1 %v2462_v7  ;;  %1716 = vmatprep.subr.bf16.mxu0 %v2467_v8  ;;  %v2548_v7 = vld [vmem:[%s3579_s1 + $0x3ac] ss:$16 sps:$4 sm:$0xff]   ;;  %v2543_v8 = vld [vmem:[%s3579_s1 + $0x1a8] ss:$16 sps:$4 sm:$0xff]  }
  0x75   :  { %1759 = vmatprep.subr.bf16.mxu1 %v2470_v9  ;;  %v2546_v9 = vld [vmem:[%s3579_s1 + $0x3a8] ss:$16 sps:$4 sm:$0xff]  }
  0x77   :  { %1717 = vmatpush2.bf16.msra.mxu0 %v2465_v10  ;;  %v2551_v10 = vld [vmem:[%s3579_s1 + $0x18c] ss:$16 sps:$4 sm:$0xff]  }
  0x78   :  { %1760 = vmatpush2.bf16.msra.mxu1 %v2468_v11  ;;  %1718 = vmatprep.subr.bf16.mxu0 %v2473_v14  ;;  %v2554_v11 = vld [vmem:[%s3579_s1 + $0x38c] ss:$16 sps:$4 sm:$0xff]   ;;  %v2549_v14 = vld [vmem:[%s3579_s1 + $0x188] ss:$16 sps:$4 sm:$0xff]  }
  0x79   :  { %1761 = vmatprep.subr.bf16.mxu1 %v2476_v15  ;;  %v2552_v15 = vld [vmem:[%s3579_s1 + $0x388] ss:$16 sps:$4 sm:$0xff]  }
  0x7b   :  { %1719 = vmatpush2.bf16.msra.mxu0 %v2471_v16  ;;  %v2557_v16 = vld [vmem:[%s3579_s1 + $0x16c] ss:$16 sps:$4 sm:$0xff]  }
  0x7c   :  { %1762 = vmatpush2.bf16.msra.mxu1 %v2474_v17  ;;  %1720 = vmatprep.subr.bf16.mxu0 %v2479_v18  ;;  %v2560_v17 = vld [vmem:[%s3579_s1 + $0x36c] ss:$16 sps:$4 sm:$0xff]   ;;  %v2555_v18 = vld [vmem:[%s3579_s1 + $0x168] ss:$16 sps:$4 sm:$0xff]  }
  0x7d   :  { %1763 = vmatprep.subr.bf16.mxu1 %v2482_v19  ;;  %v2558_v19 = vld [vmem:[%s3579_s1 + $0x368] ss:$16 sps:$4 sm:$0xff]  }
  0x7f   :  { %1721 = vmatpush2.bf16.msra.mxu0 %v2477_v20  ;;  %v2563_v20 = vld [vmem:[%s3579_s1 + $0x14c] ss:$16 sps:$4 sm:$0xff]  }
  0x80   :  { %1764 = vmatpush2.bf16.msra.mxu1 %v2480_v21  ;;  %1776 = vmatprep.subr.bf16.mxu0 %v2485_v26  ;;  %v2566_v21 = vld [vmem:[%s3579_s1 + $0x34c] ss:$16 sps:$4 sm:$0xff]   ;;  %v2567_v26 = vld [vmem:[%s3579_s1 + $0x128] ss:$16 sps:$4 sm:$0xff]  }
  0x81   :  { %1819 = vmatprep.subr.bf16.mxu1 %v2488_v27  ;;  %v2570_v27 = vld [vmem:[%s3579_s1 + $0x328] ss:$16 sps:$4 sm:$0xff]  }
  0x82   :  { %1723 = vmatmul.mubr.bf16.vlgmr.msra.gmra.mxu0 %v3161_v28 }
  0x83   :  { %1766 = vmatmul.mubr.bf16.vlgmr.msra.gmra.mxu1 %v3163_v29  ;;  %1777 = vmatpush1.bf16.msra.mxu0 %v2483_v30  ;;  %v2575_v30 = vld [vmem:[%s3579_s1 + $0x10c] ss:$16 sps:$4 sm:$0xff]  }
  0x84   :  { %1820 = vmatpush1.bf16.msra.mxu1 %v2486_v31  ;;  %1778 = vmatprep.subr.bf16.mxu0 %v2491_v32  ;;  %v2578_v31 = vld [vmem:[%s3579_s1 + $0x30c] ss:$16 sps:$4 sm:$0xff]   ;;  %v2573_v32 = vld [vmem:[%s3579_s1 + $0x108] ss:$16 sps:$4 sm:$0xff]  }
  0x85   :  { %1821 = vmatprep.subr.bf16.mxu1 %v2494_v33  ;;  %1808 = vmatprep.mubr.bf16.mxu0 %v2864_v53  ;;  %v2506_v53 = vld [vmem:[%s3579_s1 + $0x28c] ss:$16 sps:$4 sm:$0xff]   ;;  %v2576_v33 = vld [vmem:[%s3579_s1 + $0x308] ss:$16 sps:$4 sm:$0xff]  }
  0x86   :  { %1851 = vmatprep.mubr.bf16.mxu1 %v2866_v54  ;;  %v2501_v54 = vld [vmem:[%s3579_s1 + $0x88] ss:$16 sps:$4 sm:$0xff]  }
  0x87   :  { %1779 = vmatpush1.bf16.msra.mxu0 %v2489_v34  ;;  %v2581_v34 = vld [vmem:[%s3579_s1 + $0x4ec] ss:$16 sps:$4 sm:$0xff]  }
  0x88   :  { %1822 = vmatpush1.bf16.msra.mxu1 %v2492_v35  ;;  %1780 = vmatprep.subr.bf16.mxu0 %v2497_v36  ;;  %v2584_v35 = vld [vmem:[%s3579_s1 + $0x6ec] ss:$16 sps:$4 sm:$0xff]   ;;  %v2579_v36 = vld [vmem:[%s3579_s1 + $0x4e8] ss:$16 sps:$4 sm:$0xff]  }
  0x89   :  { %1823 = vmatprep.subr.bf16.mxu1 %v2500_v37  ;;  %v2582_v37 = vld [vmem:[%s3579_s1 + $0x6e8] ss:$16 sps:$4 sm:$0xff]  }
  0x8b   :  { %1781 = vmatpush1.bf16.msra.mxu0 %v2495_v38  ;;  %v2587_v38 = vld [vmem:[%s3579_s1 + $0x4cc] ss:$16 sps:$4 sm:$0xff]  }
  0x8c   :  { %1824 = vmatpush1.bf16.msra.mxu1 %v2498_v39  ;;  %1782 = vmatprep.subr.bf16.mxu0 %v2503_v40  ;;  %v2590_v39 = vld [vmem:[%s3579_s1 + $0x6cc] ss:$16 sps:$4 sm:$0xff]   ;;  %v2585_v40 = vld [vmem:[%s3579_s1 + $0x4c8] ss:$16 sps:$4 sm:$0xff]  }
  0x8d   :  { %1825 = vmatprep.subr.bf16.mxu1 %v2506_v53  ;;  %v2588_v53 = vld [vmem:[%s3579_s1 + $0x6c8] ss:$16 sps:$4 sm:$0xff]  }
  0x8f   :  { %1783 = vmatpush1.bf16.msra.mxu0 %v2501_v54  ;;  %v2593_v54 = vld [vmem:[%s3579_s1 + $0x4ac] ss:$16 sps:$4 sm:$0xff]  }
  0x90   :  { %1826 = vmatpush1.bf16.msra.mxu1 %v2504_v41  ;;  %1784 = vmatprep.subr.bf16.mxu0 %v2509_v42  ;;  %v2594_v41 = vld [vmem:[%s3579_s1 + $0x6a8] ss:$16 sps:$4 sm:$0xff]   ;;  %v2599_v42 = vld [vmem:[%s3579_s1 + $0x48c] ss:$16 sps:$4 sm:$0xff]  }
  0x91   :  { %1827 = vmatprep.subr.bf16.mxu1 %v2512_v43  ;;  %v2600_v43 = vld [vmem:[%s3579_s1 + $0x688] ss:$16 sps:$4 sm:$0xff]  }
  0x93   :  { %1785 = vmatpush1.bf16.msra.mxu0 %v2507_v44  ;;  %v2605_v44 = vld [vmem:[%s3579_s1 + $0x46c] ss:$16 sps:$4 sm:$0xff]  }
  0x94   :  { %1828 = vmatpush1.bf16.msra.mxu1 %v2510_v46  ;;  %1786 = vmatprep.subr.bf16.mxu0 %v2515_v48  ;;  %v2608_v46 = vld [vmem:[%s3579_s1 + $0x66c] ss:$16 sps:$4 sm:$0xff]   ;;  %v2603_v48 = vld [vmem:[%s3579_s1 + $0x468] ss:$16 sps:$4 sm:$0xff]  }
  0x95   :  { %1829 = vmatprep.subr.bf16.mxu1 %v2518_v49  ;;  %v2606_v49 = vld [vmem:[%s3579_s1 + $0x668] ss:$16 sps:$4 sm:$0xff]  }
  0x97   :  { %1787 = vmatpush1.bf16.msra.mxu0 %v2513_v50  ;;  %v2611_v50 = vld [vmem:[%s3579_s1 + $0x44c] ss:$16 sps:$4 sm:$0xff]  }
  0x98   :  { %1830 = vmatpush1.bf16.msra.mxu1 %v2516_v51  ;;  %1788 = vmatprep.subr.bf16.mxu0 %v2521_v52  ;;  %v2614_v51 = vld [vmem:[%s3579_s1 + $0x64c] ss:$16 sps:$4 sm:$0xff]   ;;  %v2609_v52 = vld [vmem:[%s3579_s1 + $0x448] ss:$16 sps:$4 sm:$0xff]  }
  0x99   :  { %1831 = vmatprep.subr.bf16.mxu1 %v2524_v55  ;;  %v2612_v55 = vld [vmem:[%s3579_s1 + $0x648] ss:$16 sps:$4 sm:$0xff]  }
  0x9b   :  { %1789 = vmatpush1.bf16.msra.mxu0 %v2519_v56  ;;  %v2617_v56 = vld [vmem:[%s3579_s1 + $0x42c] ss:$16 sps:$4 sm:$0xff]  }
  0x9c   :  { %1832 = vmatpush1.bf16.msra.mxu1 %v2522_v57  ;;  %1790 = vmatprep.subr.bf16.mxu0 %v2527_v58  ;;  %v2620_v57 = vld [vmem:[%s3579_s1 + $0x62c] ss:$16 sps:$4 sm:$0xff]   ;;  %v2615_v58 = vld [vmem:[%s3579_s1 + $0x428] ss:$16 sps:$4 sm:$0xff]  }
  0x9d   :  { %1833 = vmatprep.subr.bf16.mxu1 %v2530_v59  ;;  %v2618_v59 = vld [vmem:[%s3579_s1 + $0x628] ss:$16 sps:$4 sm:$0xff]  }
  0x9f   :  { %1791 = vmatpush1.bf16.msra.mxu0 %v2525_v60  ;;  %v2623_v60 = vld [vmem:[%s3579_s1 + $0x40c] ss:$16 sps:$4 sm:$0xff]  }
  0xa0   :  { %1834 = vmatpush1.bf16.msra.mxu1 %v2528_v61  ;;  %1792 = vmatprep.subr.bf16.mxu0 %v2533_v62  ;;  %v2626_v61 = vld [vmem:[%s3579_s1 + $0x60c] ss:$16 sps:$4 sm:$0xff]   ;;  %v2621_v62 = vld [vmem:[%s3579_s1 + $0x408] ss:$16 sps:$4 sm:$0xff]  }
  0xa1   :  { %1835 = vmatprep.subr.bf16.mxu1 %v2536_v63  ;;  %v2624_v63 = vld [vmem:[%s3579_s1 + $0x608] ss:$16 sps:$4 sm:$0xff]  }
  0xa3   :  { %1793 = vmatpush2.bf16.msra.mxu0 %v2531_v0  ;;  %v2629_v0 = vld [vmem:[%s3579_s1 + $0x5ec] ss:$16 sps:$4 sm:$0xff]  }
  0xa4   :  { %1836 = vmatpush2.bf16.msra.mxu1 %v2534_v1  ;;  %1794 = vmatprep.subr.bf16.mxu0 %v2539_v2  ;;  %v2632_v1 = vld [vmem:[%s3579_s1 + $0x7ec] ss:$16 sps:$4 sm:$0xff]   ;;  %v2627_v2 = vld [vmem:[%s3579_s1 + $0x5e8] ss:$16 sps:$4 sm:$0xff]  }
  0xa5   :  { %1837 = vmatprep.subr.bf16.mxu1 %v2542_v3  ;;  %v2630_v3 = vld [vmem:[%s3579_s1 + $0x7e8] ss:$16 sps:$4 sm:$0xff]  }
  0xa7   :  { %1795 = vmatpush2.bf16.msra.mxu0 %v2537_v4  ;;  %v2635_v4 = vld [vmem:[%s3579_s1 + $0x5cc] ss:$16 sps:$4 sm:$0xff]  }
  0xa8   :  { %1838 = vmatpush2.bf16.msra.mxu1 %v2540_v5  ;;  %1796 = vmatprep.subr.bf16.mxu0 %v2545_v6  ;;  %v2638_v5 = vld [vmem:[%s3579_s1 + $0x7cc] ss:$16 sps:$4 sm:$0xff]   ;;  %v2633_v6 = vld [vmem:[%s3579_s1 + $0x5c8] ss:$16 sps:$4 sm:$0xff]  }
  0xa9   :  { %1839 = vmatprep.subr.bf16.mxu1 %v2548_v7  ;;  %v2636_v7 = vld [vmem:[%s3579_s1 + $0x7c8] ss:$16 sps:$4 sm:$0xff]  }
  0xab   :  { %1797 = vmatpush2.bf16.msra.mxu0 %v2543_v8  ;;  %v2641_v8 = vld [vmem:[%s3579_s1 + $0x5ac] ss:$16 sps:$4 sm:$0xff]  }
  0xac   :  { %1840 = vmatpush2.bf16.msra.mxu1 %v2546_v9  ;;  %1798 = vmatprep.subr.bf16.mxu0 %v2551_v10  ;;  %v2644_v9 = vld [vmem:[%s3579_s1 + $0x7ac] ss:$16 sps:$4 sm:$0xff]   ;;  %v2639_v10 = vld [vmem:[%s3579_s1 + $0x5a8] ss:$16 sps:$4 sm:$0xff]  }
  0xad   :  { %1841 = vmatprep.subr.bf16.mxu1 %v2554_v11  ;;  %v2642_v11 = vld [vmem:[%s3579_s1 + $0x7a8] ss:$16 sps:$4 sm:$0xff]  }
  0xaf   :  { %1799 = vmatpush2.bf16.msra.mxu0 %v2549_v14  ;;  %v2647_v14 = vld [vmem:[%s3579_s1 + $0x58c] ss:$16 sps:$4 sm:$0xff]  }
  0xb0   :  { %1842 = vmatpush2.bf16.msra.mxu1 %v2552_v15  ;;  %1800 = vmatprep.subr.bf16.mxu0 %v2557_v16  ;;  %v2650_v15 = vld [vmem:[%s3579_s1 + $0x78c] ss:$16 sps:$4 sm:$0xff]   ;;  %v2645_v16 = vld [vmem:[%s3579_s1 + $0x588] ss:$16 sps:$4 sm:$0xff]  }
  0xb1   :  { %1843 = vmatprep.subr.bf16.mxu1 %v2560_v17  ;;  %v2648_v17 = vld [vmem:[%s3579_s1 + $0x788] ss:$16 sps:$4 sm:$0xff]  }
  0xb3   :  { %1801 = vmatpush2.bf16.msra.mxu0 %v2555_v18  ;;  %v2653_v18 = vld [vmem:[%s3579_s1 + $0x56c] ss:$16 sps:$4 sm:$0xff]  }
  0xb4   :  { %1844 = vmatpush2.bf16.msra.mxu1 %v2558_v19  ;;  %1802 = vmatprep.subr.bf16.mxu0 %v2563_v20  ;;  %v2656_v19 = vld [vmem:[%s3579_s1 + $0x76c] ss:$16 sps:$4 sm:$0xff]   ;;  %v2651_v20 = vld [vmem:[%s3579_s1 + $0x568] ss:$16 sps:$4 sm:$0xff]  }
  0xb5   :  { %1845 = vmatprep.subr.bf16.mxu1 %v2566_v21  ;;  %v2654_v21 = vld [vmem:[%s3579_s1 + $0x768] ss:$16 sps:$4 sm:$0xff]  }
  0xb7   :  { %1803 = vmatpush2.bf16.msra.mxu0 %v2561_v22  ;;  %v2659_v22 = vld [vmem:[%s3579_s1 + $0x54c] ss:$16 sps:$4 sm:$0xff]  }
  0xb8   :  { %1846 = vmatpush2.bf16.msra.mxu1 %v2564_v23  ;;  %1804 = vmatprep.subr.bf16.mxu0 %v2569_v24  ;;  %v2662_v23 = vld [vmem:[%s3579_s1 + $0x74c] ss:$16 sps:$4 sm:$0xff]   ;;  %v2657_v24 = vld [vmem:[%s3579_s1 + $0x548] ss:$16 sps:$4 sm:$0xff]  }
  0xb9   :  { %1847 = vmatprep.subr.bf16.mxu1 %v2572_v25  ;;  %v2660_v25 = vld [vmem:[%s3579_s1 + $0x748] ss:$16 sps:$4 sm:$0xff]  }
  0xbb   :  { %1805 = vmatpush2.bf16.msra.mxu0 %v2567_v26  ;;  %v2665_v26 = vld [vmem:[%s3579_s1 + $0x52c] ss:$16 sps:$4 sm:$0xff]  }
  0xbc   :  { %1848 = vmatpush2.bf16.msra.mxu1 %v2570_v27  ;;  %1806 = vmatprep.subr.bf16.mxu0 %v2575_v30  ;;  %v2668_v27 = vld [vmem:[%s3579_s1 + $0x72c] ss:$16 sps:$4 sm:$0xff]   ;;  %v2663_v30 = vld [vmem:[%s3579_s1 + $0x528] ss:$16 sps:$4 sm:$0xff]  }
  0xbd   :  { %1849 = vmatprep.subr.bf16.mxu1 %v2578_v31  ;;  %v2666_v31 = vld [vmem:[%s3579_s1 + $0x728] ss:$16 sps:$4 sm:$0xff]  }
  0xbf   :  { %1807 = vmatpush2.bf16.msra.mxu0 %v2573_v32  ;;  %v2671_v32 = vld [vmem:[%s3579_s1 + $0x50c] ss:$16 sps:$4 sm:$0xff]  }
  0xc0   :  { %1850 = vmatpush2.bf16.msra.mxu1 %v2576_v33  ;;  %1862 = vmatprep.subr.bf16.mxu0 %v2581_v34  ;;  %v2674_v33 = vld [vmem:[%s3579_s1 + $0x70c] ss:$16 sps:$4 sm:$0xff]   ;;  %v2669_v34 = vld [vmem:[%s3579_s1 + $0x508] ss:$16 sps:$4 sm:$0xff]  }
  0xc1   :  { %1905 = vmatprep.subr.bf16.mxu1 %v2584_v35  ;;  %v2672_v35 = vld [vmem:[%s3579_s1 + $0x708] ss:$16 sps:$4 sm:$0xff]  }
  0xc2   :  { %1809 = vmatmul.mubr.bf16.vlgmr.msra.gmra.mxu0 %v2933_v12  ;;  %v2596_v12 = vld [vmem:[%s3579_s1 + $0x6ac] ss:$16 sps:$4 sm:$0xff]  }
  0xc3   :  { %1852 = vmatmul.mubr.bf16.vlgmr.msra.gmra.mxu1 %v2935_v13  ;;  %1863 = vmatpush1.bf16.msra.mxu0 %v2579_v36  ;;  %v2591_v13 = vld [vmem:[%s3579_s1 + $0x4a8] ss:$16 sps:$4 sm:$0xff]   ;;  %v10_v36 = vstv %s3581_s4 }
  0xc4   :  { %1906 = vmatpush1.bf16.msra.mxu1 %v2582_v37  ;;  %1864 = vmatprep.subr.bf16.mxu0 %v2587_v38  ;;  %11 = vst [vmem:[#allocation2] sm:$0x1] %v10_v36 }
  0xc5   :  { %1907 = vmatprep.subr.bf16.mxu1 %v2590_v39  ;;  %1894 = vmatprep.mubr.bf16.mxu0 %v3032_v45  ;;  %v2602_v45 = vld [vmem:[%s3579_s1 + $0x68c] ss:$16 sps:$4 sm:$0xff]  }
  0xc6   :  { %1937 = vmatprep.mubr.bf16.mxu1 %v3037_v47  ;;  %v2597_v47 = vld [vmem:[%s3579_s1 + $0x488] ss:$16 sps:$4 sm:$0xff]  }
  0xc7   :  { %1865 = vmatpush1.bf16.msra.mxu0 %v2585_v40 }
  0xc8   :  { %1908 = vmatpush1.bf16.msra.mxu1 %v2588_v53  ;;  %1866 = vmatprep.subr.bf16.mxu0 %v2593_v54 }
  0xc9   :  { %1909 = vmatprep.subr.bf16.mxu1 %v2596_v12  ;;  %v304_v12 = vlaneseq }
  0xcb   :  { %1867 = vmatpush1.bf16.msra.mxu0 %v2591_v13 }
  0xcc   :  { %1910 = vmatpush1.bf16.msra.mxu1 %v2594_v41  ;;  %1868 = vmatprep.subr.bf16.mxu0 %v2599_v42 }
  0xcd   :  { %1911 = vmatprep.subr.bf16.mxu1 %v2602_v45  ;;  %v3556_v45 = vshrl.u32 %v304_v12, 7 }
  0xcf   :  { %1869 = vmatpush1.bf16.msra.mxu0 %v2597_v47 }
  0xd0   :  { %1912 = vmatpush1.bf16.msra.mxu1 %v2600_v43  ;;  %1870 = vmatprep.subr.bf16.mxu0 %v2605_v44  ;;  %v302_v44 = vld [vmem:[%s3582_s2] sm:$0xf] }
  0xd1   :  { %1913 = vmatprep.subr.bf16.mxu1 %v2608_v46  ;;  %v306_v46 = vsub.s32 0, %v3556_v45 }
  0xd3   :  { %1871 = vmatpush1.bf16.msra.mxu0 %v2603_v48 }
  0xd4   :  { %1914 = vmatpush1.bf16.msra.mxu1 %v2606_v49  ;;  %1872 = vmatprep.subr.bf16.mxu0 %v2611_v50 }
  0xd5   :  { %1915 = vmatprep.subr.bf16.mxu1 %v2614_v51  ;;  %v307_v51 = vrot.slane %v302_v44, %v306_v46 }
  0xd7   :  { %1873 = vmatpush1.bf16.msra.mxu0 %v2609_v52 }
  0xd8   :  { %1916 = vmatpush1.bf16.msra.mxu1 %v2612_v55  ;;  %1874 = vmatprep.subr.bf16.mxu0 %v2617_v56 }
  0xd9   :  { %1917 = vmatprep.subr.bf16.mxu1 %v2620_v57 }
  0xdb   :  { %1875 = vmatpush1.bf16.msra.mxu0 %v2615_v58 }
  0xdc   :  { %1918 = vmatpush1.bf16.msra.mxu1 %v2618_v59  ;;  %1876 = vmatprep.subr.bf16.mxu0 %v2623_v60 }
  0xdd   :  { %1919 = vmatprep.subr.bf16.mxu1 %v2626_v61 }
  0xdf   :  { %1877 = vmatpush1.bf16.msra.mxu0 %v2621_v62  ;;  %v314_v62 = vsub.s32 2, %v3556_v45 }
  0xe0   :  { %1920 = vmatpush1.bf16.msra.mxu1 %v2624_v63  ;;  %1878 = vmatprep.subr.bf16.mxu0 %v2629_v0 }
  0xe1   :  { %1921 = vmatprep.subr.bf16.mxu1 %v2632_v1  ;;  %v318_v1 = vsub.s32 3, %v3556_v45 }
  0xe3   :  { %1879 = vmatpush2.bf16.msra.mxu0 %v2627_v2 }
  0xe4   :  { %1922 = vmatpush2.bf16.msra.mxu1 %v2630_v3  ;;  %1880 = vmatprep.subr.bf16.mxu0 %v2635_v4 }
  0xe5   :  { %1923 = vmatprep.subr.bf16.mxu1 %v2638_v5 }
  0xe7   :  { %1881 = vmatpush2.bf16.msra.mxu0 %v2633_v6 }
  0xe8   :  { %1924 = vmatpush2.bf16.msra.mxu1 %v2636_v7  ;;  %1882 = vmatprep.subr.bf16.mxu0 %v2641_v8  ;;  %v315_v8 = vrot.slane %v302_v44, %v314_v62 }
  0xe9   :  { %1925 = vmatprep.subr.bf16.mxu1 %v2644_v9 }
  0xeb   :  { %1883 = vmatpush2.bf16.msra.mxu0 %v2639_v10 }
  0xec   :  { %1926 = vmatpush2.bf16.msra.mxu1 %v2642_v11  ;;  %1884 = vmatprep.subr.bf16.mxu0 %v2647_v14  ;;  %v319_v11 = vrot.slane %v302_v44, %v318_v1 }
  0xed   :  { %1927 = vmatprep.subr.bf16.mxu1 %v2650_v15 }
  0xef   :  { %1885 = vmatpush2.bf16.msra.mxu0 %v2645_v16 }
  0xf0   :  { %1928 = vmatpush2.bf16.msra.mxu1 %v2648_v17  ;;  %1886 = vmatprep.subr.bf16.mxu0 %v2653_v18 }
  0xf1   :  { %1929 = vmatprep.subr.bf16.mxu1 %v2656_v19 }
  0xf3   :  { %1887 = vmatpush2.bf16.msra.mxu0 %v2651_v20 }
  0xf4   :  { %1930 = vmatpush2.bf16.msra.mxu1 %v2654_v21  ;;  %1888 = vmatprep.subr.bf16.mxu0 %v2659_v22 }
  0xf5   :  { %1931 = vmatprep.subr.bf16.mxu1 %v2662_v23 }
  0xf7   :  { %1889 = vmatpush2.bf16.msra.mxu0 %v2657_v24 }
  0xf8   :  { %1932 = vmatpush2.bf16.msra.mxu1 %v2660_v25  ;;  %1890 = vmatprep.subr.bf16.mxu0 %v2665_v26 }
  0xf9   :  { %1933 = vmatprep.subr.bf16.mxu1 %v2668_v27 }
  0xfb   :  { %1891 = vmatpush2.bf16.msra.mxu0 %v2663_v30 }
  0xfc   :  { %1934 = vmatpush2.bf16.msra.mxu1 %v2666_v31  ;;  %1892 = vmatprep.subr.bf16.mxu0 %v2671_v32 }
  0xfd   :  { %1935 = vmatprep.subr.bf16.mxu1 %v2674_v33 }
  0xff   :  { %1893 = vmatpush2.bf16.msra.mxu0 %v2669_v34 }
 0x100   :  { %1936 = vmatpush2.bf16.msra.mxu1 %v2672_v35  ;;  %v1972_v35 = vld [vmem:[%s3583_s3] sm:$0xf] }
 0x102   :  { %1895 = vmatmul.mubr.bf16.vlgmr.msra.gmra.mxu0 %v3161_v28  ;;  %v1638_v37 = vpop.f32.mrf.mxu0 }
 0x103   :  { %1938 = vmatmul.mubr.bf16.vlgmr.msra.gmra.mxu1 %v3163_v29  ;;  %v1681_v38 = vpop.f32.mrf.mxu1  ;;  %v310_v29 = vsub.s32 1, %v3556_v45  ;;  %v1639_v59 = vadd.f32 %v1638_v37, %v307_v51 }
 0x104   :  { %v1640_v39 = vpop.f32.mrf.mxu0 }
 0x105   :  { %v1683_v40 = vpop.f32.mrf.mxu1  ;;  %v311_v49 = vrot.slane %v302_v44, %v310_v29  ;;  %v1682_v3 = vadd.f32 %v1681_v38, %v1639_v59  ;;  %v1981_v38 = vrot.slane %v1972_v35, %v310_v29  ;;  %v1985_v29 = vrot.slane %v1972_v35, %v314_v62 }
 0x106   :  { %v1642_v53 = vpop.f32.mrf.mxu0 }
 0x107   :  { %v1685_v54 = vpop.f32.mrf.mxu1  ;;  %v1641_v55 = vadd.f32 %v1640_v39, %v311_v49  ;;  %v1643_v60 = vadd.f32 %v1642_v53, %v307_v51 }
 0x108   :  { %v1644_v13 = vpop.f32.mrf.mxu0 }
 0x109   :  { %v1687_v41 = vpop.f32.mrf.mxu1  ;;  %v1645_v57 = vadd.f32 %v1644_v13, %v311_v49  ;;  %v1684_v63 = vadd.f32 %v1683_v40, %v1641_v55  ;;  %v1686_v4 = vadd.f32 %v1685_v54, %v1643_v60  ;;  %v1989_v55 = vrot.slane %v1972_v35, %v318_v1 }
 0x10b   :  { %v1688_v0 = vadd.f32 %v1687_v41, %v1645_v57 }
 0x142   :  { %v1724_v42 = vpop.f32.mrf.mxu0 }
 0x143   :  { %v1767_v28 = vpop.f32.mrf.mxu1  ;;  %v1725_v9 = vadd.f32 %v1724_v42, %v1682_v3  ;;  %v1977_v42 = vrot.slane %v1972_v35, %v306_v46 }
 0x144   :  { %v1726_v47 = vpop.f32.mrf.mxu0 }
 0x145   :  { %v1769_v43 = vpop.f32.mrf.mxu1  ;;  %v1727_v5 = vadd.f32 %v1726_v47, %v1684_v63  ;;  %v1768_v19 = vadd.f32 %v1767_v28, %v1725_v9 }
 0x146   :  { %v1728_v48 = vpop.f32.mrf.mxu0 }
 0x147   :  { %v1771_v50 = vpop.f32.mrf.mxu1  ;;  %v1729_v10 = vadd.f32 %v1728_v48, %v1686_v4  ;;  %v1770_v15 = vadd.f32 %v1769_v43, %v1727_v5  ;;  %v1956_v30 = vmul.f32 0.01, %v1768_v19  ;;  %vm1948_vm2 = vcmp.gt.f32.partialorder %v1768_v19, 0.0 }
 0x148   :  { %v1730_v52 = vpop.f32.mrf.mxu0 }
 0x149   :  { %v1773_v56 = vpop.f32.mrf.mxu1  ;;  %v1731_v7 = vadd.f32 %v1730_v52, %v1688_v0  ;;  %v1772_v20 = vadd.f32 %v1771_v50, %v1729_v10  ;;  %v1957_v23 = vmul.f32 0.01, %v1770_v15  ;;  %vm1949_vm0 = vcmp.gt.f32.partialorder %v1770_v15, 0.0 }
 0x14a   :  { %v1964_v45 = vsel %vm1948_vm2, %v1768_v19, %v1956_v30 }
 0x14b   :  { %v1774_v17 = vadd.f32 %v1773_v56, %v1731_v7  ;;  %v1960_v31 = vmul.f32 0.01, %v1772_v20  ;;  %vm1952_vm3 = vcmp.gt.f32.partialorder %v1772_v20, 0.0  ;;  %v1965_v39 = vsel %vm1949_vm0, %v1770_v15, %v1957_v23 }
 0x14c   :  { %v1995_v56 = vmul.f32 %v1981_v38, %v1965_v39  ;;  %v1994_v63 = vmul.f32 %v1977_v42, %v1964_v45 }
 0x14d   :  { %v1961_v25 = vmul.f32 0.01, %v1774_v17  ;;  %vm1953_vm1 = vcmp.gt.f32.partialorder %v1774_v17, 0.0  ;;  %v1968_v28 = vsel %vm1952_vm3, %v1772_v20, %v1960_v31 }
 0x14e   :  { %v1998_v60 = vmul.f32 %v1977_v42, %v1968_v28 }
 0x14f   :  { %v1969_v54 = vsel %vm1953_vm1, %v1774_v17, %v1961_v25 }
 0x150   :  { %v1999_v51 = vmul.f32 %v1981_v38, %v1969_v54  ;;  %v2008_v10 = vsel %vm2007_vm6, %v1998_v60, 0.0 }
 0x152   :  { %v2009_v62 = vsel %vm2007_vm6, %v1999_v51, 0.0 }
 0x182   :  { %v1810_v58 = vpop.f32.mrf.mxu0 }
 0x183   :  { %v1853_v61 = vpop.f32.mrf.mxu1  ;;  %v1811_v18 = vadd.f32 %v1810_v58, %v315_v8 }
 0x184   :  { %v1812_v2 = vpop.f32.mrf.mxu0 }
 0x185   :  { %v1855_v6 = vpop.f32.mrf.mxu1  ;;  %v1813_v21 = vadd.f32 %v1812_v2, %v319_v11  ;;  %v1854_v26 = vadd.f32 %v1853_v61, %v1811_v18 }
 0x186   :  { %v1814_v14 = vpop.f32.mrf.mxu0 }
 0x187   :  { %v1857_v16 = vpop.f32.mrf.mxu1  ;;  %v1815_v27 = vadd.f32 %v1814_v14, %v315_v8  ;;  %v1856_v36 = vadd.f32 %v1855_v6, %v1813_v21  ;;  %v2002_v6 = vadd.f32 %v1995_v56, %v1994_v63  ;;  %v2010_v14 = vadd.f32 %v2009_v62, %v2008_v10  ;;  %v2290_v21 = vld [vmem:[#allocation2] ss:$0 sm:$0xff] }
 0x188   :  { %v1816_v22 = vpop.f32.mrf.mxu0 }
 0x189   :  { %v1859_v24 = vpop.f32.mrf.mxu1  ;;  %v1817_v32 = vadd.f32 %v1816_v22, %v319_v11  ;;  %v1858_v12 = vadd.f32 %v1857_v16, %v1815_v27 }
 0x18b   :  { %v1860_v47 = vadd.f32 %v1859_v24, %v1817_v32 }
 0x1c2   :  { %v1896_v33 = vpop.f32.mrf.mxu0 }
 0x1c3   :  { %v1939_v34 = vpop.f32.mrf.mxu1  ;;  %v1897_v37 = vadd.f32 %v1896_v33, %v1854_v26 }
 0x1c4   :  { %v1898_v40 = vpop.f32.mrf.mxu0 }
 0x1c5   :  { %v1941_v53 = vpop.f32.mrf.mxu1  ;;  %v1940_v13 = vadd.f32 %v1939_v34, %v1897_v37  ;;  %v1899_v41 = vadd.f32 %v1898_v40, %v1856_v36 }
 0x1c6   :  { %v1900_v43 = vpop.f32.mrf.mxu0 }
 0x1c7   :  { %v1943_v44 = vpop.f32.mrf.mxu1  ;;  %vm1950_vm4 = vcmp.gt.f32.partialorder %v1940_v13, 0.0  ;;  %v1958_v48 = vmul.f32 0.01, %v1940_v13  ;;  %v1942_v49 = vadd.f32 %v1941_v53, %v1899_v41  ;;  %v1901_v50 = vadd.f32 %v1900_v43, %v1858_v12 }
 0x1c8   :  { %v1902_v52 = vpop.f32.mrf.mxu0 }
 0x1c9   :  { %vm1951_vm5 = vcmp.gt.f32.partialorder %v1942_v49, 0.0  ;;  %v1959_v57 = vmul.f32 0.01, %v1942_v49  ;;  %v1944_v58 = vadd.f32 %v1943_v44, %v1901_v50  ;;  %v1903_v59 = vadd.f32 %v1902_v52, %v1860_v47  ;;  %v1945_v46 = vpop.f32.mrf.mxu1 }
 0x1ca   :  { %v1966_v61 = vsel %vm1950_vm4, %v1940_v13, %v1958_v48 }
 0x1cb   :  { %vm1954_vm7 = vcmp.gt.f32.partialorder %v1944_v58, 0.0  ;;  %v1962_v0 = vmul.f32 0.01, %v1944_v58  ;;  %v1946_v2 = vadd.f32 %v1945_v46, %v1903_v59  ;;  %v1967_v3 = vsel %vm1951_vm5, %v1942_v49, %v1959_v57 }
 0x1cc   :  { %v1996_v4 = vmul.f32 %v1985_v29, %v1966_v61  ;;  %v1997_v5 = vmul.f32 %v1989_v55, %v1967_v3 }
 0x1cd   :  { %v1970_v1 = vsel %vm1954_vm7, %v1944_v58, %v1962_v0  ;;  %vm1955_vm8 = vcmp.gt.f32.partialorder %v1946_v2, 0.0  ;;  %v1963_v7 = vmul.f32 0.01, %v1946_v2 }
 0x1ce   :  { %v2000_v8 = vmul.f32 %v1985_v29, %v1970_v1  ;;  %v2003_v9 = vadd.f32 %v2002_v6, %v1996_v4 }
 0x1cf   :  { %v1971_v11 = vsel %vm1955_vm8, %v1946_v2, %v1963_v7 }
 0x1d0   :  { %v2004_v15 = vadd.f32 %v2003_v9, %v1997_v5  ;;  %v2001_v16 = vmul.f32 %v1989_v55, %v1971_v11  ;;  %v2011_v17 = vsel %vm2007_vm6, %v2000_v8, 0.0 }
 0x1d1   :  { %v2012_v18 = vadd.f32 %v2011_v17, %v2010_v14 }
 0x1d2   :  { %2005 = vadd.xlane.f32.xlu0 %v2004_v15  ;;  %v2013_v19 = vsel %vm2007_vm6, %v2001_v16, 0.0 }
 0x1d3   :  { %v2014_v20 = vadd.f32 %v2013_v19, %v2012_v18 }
 0x1d6   :  { %2015 = vadd.xlane.f32.xlu0 %v2014_v20 }
 0x25b   :  { %v2006_v22 = vpop.xlane.xlu0 %2005 }
 0x25c   :  { %v2024_v23 = vadd.f32 %v2290_v21, %v2006_v22 }
 0x25e   :  { %2027 = vst.msk [vmem:[%s3584_s5] sm:$0xff] %vm2026_vm9, %v2024_v23 }
 0x25f   :  { %v2016_v24 = vpop.xlane.xlu0 %2015 }
 0x260   :  { %v2025_v25 = vadd.f32 %v2290_v21, %v2016_v24 }
 0x262   :  { %2029 = vst.msk [vmem:[%s3584_s5 + $0x8] sm:$0x3] %vm2028_vm10, %v2025_v25 }

</bundles_post_ra>
